<compile_context>
chip_gen: v7x
topology: tpu7x:2x2x1
jax: 0.10.0
libtpu: 0.0.40
codegen_flags: <defaults>
</compile_context>

<pallas_src>
import functools

import jax
import jax.numpy as jnp
from jax.experimental import pallas as pl
from jax.experimental.pallas import tpu as pltpu


def _round_up(x, m):
    return (x + m - 1) // m * m


# ---------------------------------------------------------------------------
# Fused kernel: conv1+BN1+ReLU -> conv2+BN2+ReLU -> MaxPool -> fc1 -> fc2 -> cls
# ---------------------------------------------------------------------------
def _cuboid_kernel(p1_ref, w1_ref, sh1_ref, w2_ref, sh2_ref,
                   wf1_ref, bf1_ref, wf2_ref, bf2_ref, wcls_ref, bcls_ref,
                   latent_ref, logits_ref, y1p_ref, *,
                   B_blk, D1, H1, W1):
    Ph, Pw = H1 + 2, W1 + 2                      # conv2 input padded by 1
    D2, H2, W2 = D1 + 1, H1 + 1, W1 + 1          # conv2 output extent
    Dp, Hp, Wp = D2 // 2, H2 // 2, W2 // 2       # pooled extent
    n_ext = (D2 - 1) * Ph * Pw + (H2 - 1) * Pw + W2   # extended conv2 row count
    C1 = w1_ref.shape[1]                          # 32
    C2 = w2_ref.shape[1]                          # 64
    Fpad = wf1_ref.shape[0]
    pad_lanes = Fpad - Dp * Hp * Wp * C2

    # Zero the padded conv2-input buffer ONCE; interior rows are overwritten per sample,
    # the halo rows stay zero (this is the conv padding).
    y1p_ref[...] = jnp.zeros(y1p_ref.shape, y1p_ref.dtype)

    flat_rows = []
    for b in range(B_blk):
        # ---- conv1 (im2col matmul, K = 8*Cin) + folded-BN1 shift + ReLU, in registers ----
        y1 = jnp.dot(p1_ref[b], w1_ref[...], preferred_element_type=jnp.float32)
        y1 = jnp.maximum(y1 + sh1_ref[...], 0.0)                       # (M1, C1) f32

        # ---- scatter conv1 rows straight into the interior of the padded buffer ----
        for d in range(D1):
            for h in range(H1):
                src = (d * H1 + h) * W1
                dst = (d + 1) * Ph * Pw + (h + 1) * Pw + 1
                y1p_ref[pl.ds(dst, W1), :] = y1[src:src + W1, :]

        # ---- conv2: 8 shifted taps lane-concatenated -> single K = 8*C1 matmul.
        #      Rows whose flat index does not decode to a valid (do,ho,wo) are harmless
        #      over-compute and are never read by the pooling stage. ----
        taps = [y1p_ref[pl.ds(kd * Ph * Pw + kh * Pw + kw, n_ext), :].astype(jnp.bfloat16)
                for kd in range(2) for kh in range(2) for kw in range(2)]
        lhs = jnp.concatenate(taps, axis=-1)                           # (n_ext, 8*C1) bf16
        y2 = jnp.dot(lhs, w2_ref[...], preferred_element_type=jnp.float32)
        y2 = jnp.maximum(y2 + sh2_ref[...], 0.0)                       # (n_ext, C2) f32

        # ---- MaxPool3d(2,2,2)/stride 2: three whole-buffer shifted maxes (VPU) ... ----
        m = jnp.maximum(y2[:-1, :], y2[1:, :])                         # over kw
        m = jnp.maximum(m[:-Pw, :], m[Pw:, :])                         # over kh
        m = jnp.maximum(m[:-(Ph * Pw), :], m[Ph * Pw:, :])             # over kd

        # ---- ... then one gather pass assembling the lane-dense (d,h,w,c) flat row ----
        pieces = []
        for dp in range(Dp):
            for hp in range(Hp):
                for wp in range(Wp):
                    r = 2 * (dp * Ph * Pw + hp * Pw + wp)
                    pieces.append(m[r:r + 1, :])
        if pad_lanes:
            pieces.append(jnp.zeros((1, pad_lanes), jnp.float32))
        flat_rows.append(jnp.concatenate(pieces, axis=-1))             # (1, Fpad) f32

    flat = jnp.concatenate(flat_rows, axis=0).astype(jnp.bfloat16)     # (B_blk, Fpad) bf16

    # ---- MLP head, fully resident bf16 weights, single step ----
    # TODO(synk): Dropout(0.5) is the identity in eval mode; training-mode dropout masks and
    # training-mode BatchNorm batch statistics are not implemented.
    h = jnp.dot(flat, wf1_ref[...], preferred_element_type=jnp.float32) + bf1_ref[...]
    h = jnp.maximum(h, 0.0)
    h = jnp.dot(h.astype(jnp.bfloat16), wf2_ref[...],
                preferred_element_type=jnp.float32) + bf2_ref[...]
    h = jnp.maximum(h, 0.0)
    latent_ref[...] = h                                                # == latent_features
    logits_ref[...] = jnp.dot(h.astype(jnp.bfloat16), wcls_ref[...],
                              preferred_element_type=jnp.float32) + bcls_ref[...]


def cuboid_fused(p1, w1m, sh1, w2m, sh2, wf1, bf1, wf2, bf2, wcls, bcls, *, spatial):
    """p1: (B, D1*H1*W1, 8*Cin) bf16 conv1 patches. Returns (latent (B,512) f32, logits_pad)."""
    B, M1, K1 = p1.shape
    D1, H1, W1 = spatial
    assert M1 == D1 * H1 * W1
    Pd, Ph, Pw = D1 + 2, H1 + 2, W1 + 2
    C1 = w1m.shape[1]
    C2 = w2m.shape[1]
    Hd = wf2.shape[1]
    Ncp = wcls.shape[1]
    Fpad = wf1.shape[0]

    # Whole (small) batch in a single grid step: per-step overhead and inter-kernel glue
    # dominate this tiny model, so one big block beats a per-sample grid.
    # TODO(synk): for large batches, split into batch groups on a "parallel" grid axis
    # (also lets the second v7x TensorCore contribute) and bound the unrolled sample loop.
    kernel = functools.partial(_cuboid_kernel, B_blk=B, D1=D1, H1=H1, W1=W1)

    return pl.pallas_call(
        kernel,
        grid=(1,),
        in_specs=[
            pl.BlockSpec((B, M1, K1), lambda g: (0, 0, 0)),    # conv1 patches (whole batch)
            pl.BlockSpec((K1, C1), lambda g: (0, 0)),          # conv1 weight (BN1 folded)
            pl.BlockSpec((1, C1), lambda g: (0, 0)),           # BN1 shift
            pl.BlockSpec((8 * C1, C2), lambda g: (0, 0)),      # conv2 weight, taps stacked on K
            pl.BlockSpec((1, C2), lambda g: (0, 0)),           # BN2 shift
            pl.BlockSpec((Fpad, Hd), lambda g: (0, 0)),        # fc1 weight, (d,h,w,c) order
            pl.BlockSpec((1, Hd), lambda g: (0, 0)),
            pl.BlockSpec((Hd, Hd), lambda g: (0, 0)),          # fc2 weight
            pl.BlockSpec((1, Hd), lambda g: (0, 0)),
            pl.BlockSpec((Hd, Ncp), lambda g: (0, 0)),         # classifier (padded to 128)
            pl.BlockSpec((1, Ncp), lambda g: (0, 0)),
        ],
        out_specs=(
            pl.BlockSpec((B, Hd), lambda g: (0, 0)),
            pl.BlockSpec((B, Ncp), lambda g: (0, 0)),
        ),
        out_shape=(
            jax.ShapeDtypeStruct((B, Hd), jnp.float32),
            jax.ShapeDtypeStruct((B, Ncp), jnp.float32),
        ),
        scratch_shapes=[pltpu.VMEM((Pd * Ph * Pw, C1), jnp.float32)],  # zero-padded conv1 act
        compiler_params=pltpu.CompilerParams(
            dimension_semantics=("arbitrary",),
            vmem_limit_bytes=32 * 1024 * 1024,
        ),
    )(p1, w1m, sh1, w2m, sh2, wf1, bf1, wf2, bf2, wcls, bcls)


# ---------------------------------------------------------------------------
# Glue (layout / parameter prep), plain JAX
# ---------------------------------------------------------------------------
def _im2col_k2_p1(x):
    """x: [B, D, H, W, C] -> patches [B, Do*Ho*Wo, 8*C] for a 2x2x2 conv, padding=1."""
    xp = jnp.pad(x, ((0, 0), (1, 1), (1, 1), (1, 1), (0, 0)))
    B, Dpad, Hpad, Wpad, C = xp.shape
    Do, Ho, Wo = Dpad - 1, Hpad - 1, Wpad - 1
    cols = []
    for kd in range(2):
        for kh in range(2):
            for kw in range(2):
                cols.append(xp[:, kd:kd + Do, kh:kh + Ho, kw:kw + Wo, :])
    patches = jnp.concatenate(cols, axis=-1)  # feature order: (kd, kh, kw, c)
    return patches.reshape(B, Do * Ho * Wo, 8 * C), (Do, Ho, Wo)


def _bn_scale_shift(conv_bias, gamma, beta, mean, var, eps=1e-5):
    # eval-mode BatchNorm: scale folds into the conv weight columns, shift applied in-kernel.
    scale = gamma / jnp.sqrt(var + eps)
    shift = scale * (conv_bias - mean) + beta
    return scale, shift


def cuboid_classifier_forward(params, x_ncdhw):
    B, Cin = x_ncdhw.shape[0], x_ncdhw.shape[1]
    x = jnp.transpose(x_ncdhw, (0, 2, 3, 4, 1)).astype(jnp.float32)  # NCDHW -> NDHWC

    # conv1 im2col stays in glue (K = 8*Cin is tiny); conv2's taps are formed in-kernel.
    p1, (D1, H1, W1) = _im2col_k2_p1(x)
    p1 = p1.astype(jnp.bfloat16)

    s1, sh1 = _bn_scale_shift(params["conv1_b"], params["bn1_g"], params["bn1_b"],
                              params["bn1_m"], params["bn1_v"])
    w1m = jnp.transpose(params["conv1_w"], (2, 3, 4, 1, 0)).reshape(8 * Cin, 32)
    w1m = (w1m * s1[None, :]).astype(jnp.bfloat16)          # fold BN1 scale into weights
    sh1 = sh1[None, :].astype(jnp.float32)

    s2, sh2 = _bn_scale_shift(params["conv2_b"], params["bn2_g"], params["bn2_b"],
                              params["bn2_m"], params["bn2_v"])
    w2m = jnp.transpose(params["conv2_w"], (2, 3, 4, 1, 0)).reshape(8 * 32, 64)
    w2m = (w2m * s2[None, :]).astype(jnp.bfloat16)          # fold BN2 scale, taps on K axis
    sh2 = sh2[None, :].astype(jnp.float32)

    D2, H2, W2 = D1 + 1, H1 + 1, W1 + 1
    Dp, Hp, Wp = D2 // 2, H2 // 2, W2 // 2
    F = Dp * Hp * Wp * 64
    Fpad = _round_up(F, 256)

    # fc1 weight: permute from PyTorch's (c,d,h,w) flatten order to the kernel's (d,h,w,c)
    # order and zero-pad the reduction dim so the in-kernel flat row is lane-aligned.
    wf1 = params["fc1_w"].reshape(512, 64, Dp, Hp, Wp)
    wf1 = jnp.transpose(wf1, (2, 3, 4, 1, 0)).reshape(F, 512)
    wf1 = jnp.pad(wf1, ((0, Fpad - F), (0, 0))).astype(jnp.bfloat16)
    bf1 = params["fc1_b"][None, :].astype(jnp.float32)

    wf2 = params["fc2_w"].T.astype(jnp.bfloat16)
    bf2 = params["fc2_b"][None, :].astype(jnp.float32)

    Nc = params["cls_w"].shape[0]
    Ncp = _round_up(Nc, 128)                               # lane-dense logits store
    wcls = jnp.pad(params["cls_w"].T, ((0, 0), (0, Ncp - Nc))).astype(jnp.bfloat16)
    bcls = jnp.pad(params["cls_b"], (0, Ncp - Nc))[None, :].astype(jnp.float32)

    latent, logits_pad = cuboid_fused(p1, w1m, sh1, w2m, sh2,
                                      wf1, bf1, wf2, bf2, wcls, bcls,
                                      spatial=(D1, H1, W1))
    return logits_pad[:, :Nc], latent


def init_params(key, cube_size, channels=1, num_classes=5):
    D, H, W = cube_size
    Dp, Hp, Wp = (D + 2) // 2, (H + 2) // 2, (W + 2) // 2  # two k=2,p=1 convs then pool/2
    fc_in = 64 * Dp * Hp * Wp
    ks = list(jax.random.split(key, 18))
    nrm = lambda k, shape, s: (s * jax.random.normal(k, shape)).astype(jnp.float32)
    uni = lambda k, shape: jax.random.uniform(k, shape, jnp.float32, 0.5, 1.5)
    return dict(
        conv1_w=nrm(ks[0], (32, channels, 2, 2, 2), 0.2),   # PyTorch layout [Cout,Cin,kD,kH,kW]
        conv1_b=nrm(ks[1], (32,), 0.1),
        bn1_g=1.0 + nrm(ks[2], (32,), 0.1),
        bn1_b=nrm(ks[3], (32,), 0.1),
        bn1_m=nrm(ks[4], (32,), 0.1),
        bn1_v=uni(ks[5], (32,)),
        conv2_w=nrm(ks[6], (64, 32, 2, 2, 2), 0.1),
        conv2_b=nrm(ks[7], (64,), 0.1),
        bn2_g=1.0 + nrm(ks[8], (64,), 0.1),
        bn2_b=nrm(ks[9], (64,), 0.1),
        bn2_m=nrm(ks[10], (64,), 0.1),
        bn2_v=uni(ks[11], (64,)),
        fc1_w=nrm(ks[12], (512, fc_in), 0.05),               # PyTorch layout [out, in]
        fc1_b=nrm(ks[13], (512,), 0.05),
        fc2_w=nrm(ks[14], (512, 512), 0.05),
        fc2_b=nrm(ks[15], (512,), 0.05),
        cls_w=nrm(ks[16], (num_classes, 512), 0.05),
        cls_b=nrm(ks[17], (num_classes,), 0.05),
    )


if __name__ == "__main__":
    cube_size = [4, 4, 4]
    channels = 1
    num_classes = 5
    batch = 2

    key = jax.random.PRNGKey(0)
    kx, kp = jax.random.split(key)
    x = jax.random.normal(kx, (batch, channels, *cube_size), dtype=jnp.float32)
    params = init_params(kp, cube_size, channels, num_classes)

    fwd = jax.jit(cuboid_classifier_forward)
    logits, latent = fwd(params, x)
    jax.block_until_ready((logits, latent))

    assert logits.shape == (batch, num_classes), logits.shape
    assert latent.shape == (batch, 512), latent.shape
    assert bool(jnp.isfinite(logits).all()) and bool(jnp.isfinite(latent).all())
    print("KERNEL_OK")
</pallas_src>

<mosaic_0001>
module attributes {stable_mosaic.version = 11 : i64} {
  func.func @_cuboid_kernel(%arg0: i32, %arg1: memref<2x125x8xbf16, #tpu.memory_space<vmem>>, %arg2: memref<8x32xbf16, #tpu.memory_space<vmem>>, %arg3: memref<1x32xf32, #tpu.memory_space<vmem>>, %arg4: memref<256x64xbf16, #tpu.memory_space<vmem>>, %arg5: memref<1x64xf32, #tpu.memory_space<vmem>>, %arg6: memref<1792x512xbf16, #tpu.memory_space<vmem>>, %arg7: memref<1x512xf32, #tpu.memory_space<vmem>>, %arg8: memref<512x512xbf16, #tpu.memory_space<vmem>>, %arg9: memref<1x512xf32, #tpu.memory_space<vmem>>, %arg10: memref<512x128xbf16, #tpu.memory_space<vmem>>, %arg11: memref<1x128xf32, #tpu.memory_space<vmem>>, %arg12: memref<2x512xf32, #tpu.memory_space<vmem>>, %arg13: memref<2x128xf32, #tpu.memory_space<vmem>>, %arg14: memref<343x32xf32, #tpu.memory_space<vmem>>) attributes {dimension_semantics = [#tpu.dimension_semantics<arbitrary>], iteration_bounds = array<i64: 1>, scalar_prefetch = 0 : i64, scratch_operands = 1 : i64, tpu.core_type = #tpu.core_type<tc>, window_params = [{pipeline_mode = #tpu.pipeline_mode<synchronous>, transform_indices = @transform_0, window_bounds = array<i64: 2, 125, 8>}, {pipeline_mode = #tpu.pipeline_mode<synchronous>, transform_indices = @transform_1, window_bounds = array<i64: 8, 32>}, {pipeline_mode = #tpu.pipeline_mode<synchronous>, transform_indices = @transform_2, window_bounds = array<i64: 1, 32>}, {pipeline_mode = #tpu.pipeline_mode<synchronous>, transform_indices = @transform_3, window_bounds = array<i64: 256, 64>}, {pipeline_mode = #tpu.pipeline_mode<synchronous>, transform_indices = @transform_4, window_bounds = array<i64: 1, 64>}, {pipeline_mode = #tpu.pipeline_mode<synchronous>, transform_indices = @transform_5, window_bounds = array<i64: 1792, 512>}, {pipeline_mode = #tpu.pipeline_mode<synchronous>, transform_indices = @transform_6, window_bounds = array<i64: 1, 512>}, {pipeline_mode = #tpu.pipeline_mode<synchronous>, transform_indices = @transform_7, window_bounds = array<i64: 512, 512>}, {pipeline_mode = #tpu.pipeline_mode<synchronous>, transform_indices = @transform_8, window_bounds = array<i64: 1, 512>}, {pipeline_mode = #tpu.pipeline_mode<synchronous>, transform_indices = @transform_9, window_bounds = array<i64: 512, 128>}, {pipeline_mode = #tpu.pipeline_mode<synchronous>, transform_indices = @transform_10, window_bounds = array<i64: 1, 128>}, {pipeline_mode = #tpu.pipeline_mode<synchronous>, transform_indices = @transform_11, window_bounds = array<i64: 2, 512>}, {pipeline_mode = #tpu.pipeline_mode<synchronous>, transform_indices = @transform_12, window_bounds = array<i64: 2, 128>}]} {
    %cst = arith.constant 0.000000e+00 : f32
    %0 = vector.broadcast %cst : f32 to vector<343x32xf32>
    %c0 = arith.constant 0 : index
    %c0_0 = arith.constant 0 : index
    %1 = vector.load %arg14[%c0, %c0_0] : memref<343x32xf32, #tpu.memory_space<vmem>>, vector<343x32xf32>
    tpu.vector_store %arg14[%c0, %c0_0], %0 {strides = array<i32>} : memref<343x32xf32, #tpu.memory_space<vmem>>, vector<343x32xf32>,
    %c0_1 = arith.constant 0 : index
    %c0_2 = arith.constant 0 : index
    %c0_3 = arith.constant 0 : index
    %2 = vector.load %arg1[%c0_1, %c0_2, %c0_3] : memref<2x125x8xbf16, #tpu.memory_space<vmem>>, vector<1x125x8xbf16>
    %3 = vector.shape_cast %2 : vector<1x125x8xbf16> to vector<125x8xbf16>
    %c0_4 = arith.constant 0 : index
    %c0_5 = arith.constant 0 : index
    %4 = vector.load %arg2[%c0_4, %c0_5] : memref<8x32xbf16, #tpu.memory_space<vmem>>, vector<8x32xbf16>
    %cst_6 = arith.constant dense<0.000000e+00> : vector<125x32xf32>
    %5 = tpu.matmul %3, %4, %cst_6 {dimension_numbers = #tpu.dot_dimension_numbers<[1], [0], [0], [1], [0, 0, 1, 1], [], []>} : vector<125x8xbf16>, vector<8x32xbf16>, vector<125x32xf32> -> vector<125x32xf32>
    %c0_7 = arith.constant 0 : index
    %c0_8 = arith.constant 0 : index
    %6 = vector.load %arg3[%c0_7, %c0_8] : memref<1x32xf32, #tpu.memory_space<vmem>>, vector<1x32xf32>
    %7 = vector.broadcast %6 : vector<1x32xf32> to vector<125x32xf32>
    %8 = arith.addf %5, %7 : vector<125x32xf32>
    %cst_9 = arith.constant 0.000000e+00 : f32
    %9 = vector.broadcast %cst_9 : f32 to vector<125x32xf32>
    %10 = arith.maximumf %8, %9 : vector<125x32xf32>
    %11 = vector.extract_strided_slice %10 {offsets = [0, 0], sizes = [5, 32], strides = [1, 1]} : vector<125x32xf32> to vector<5x32xf32>
    %c57 = arith.constant 57 : index
    %c0_10 = arith.constant 0 : index
    %12 = vector.load %arg14[%c57, %c0_10] : memref<343x32xf32, #tpu.memory_space<vmem>>, vector<5x32xf32>
    tpu.vector_store %arg14[%c57, %c0_10], %11 {strides = array<i32>} : memref<343x32xf32, #tpu.memory_space<vmem>>, vector<5x32xf32>,
    %13 = vector.extract_strided_slice %10 {offsets = [5, 0], sizes = [5, 32], strides = [1, 1]} : vector<125x32xf32> to vector<5x32xf32>
    %c64 = arith.constant 64 : index
    %c0_11 = arith.constant 0 : index
    %14 = vector.load %arg14[%c64, %c0_11] : memref<343x32xf32, #tpu.memory_space<vmem>>, vector<5x32xf32>
    tpu.vector_store %arg14[%c64, %c0_11], %13 {strides = array<i32>} : memref<343x32xf32, #tpu.memory_space<vmem>>, vector<5x32xf32>,
    %15 = vector.extract_strided_slice %10 {offsets = [10, 0], sizes = [5, 32], strides = [1, 1]} : vector<125x32xf32> to vector<5x32xf32>
    %c71 = arith.constant 71 : index
    %c0_12 = arith.constant 0 : index
    %16 = vector.load %arg14[%c71, %c0_12] : memref<343x32xf32, #tpu.memory_space<vmem>>, vector<5x32xf32>
    tpu.vector_store %arg14[%c71, %c0_12], %15 {strides = array<i32>} : memref<343x32xf32, #tpu.memory_space<vmem>>, vector<5x32xf32>,
    %17 = vector.extract_strided_slice %10 {offsets = [15, 0], sizes = [5, 32], strides = [1, 1]} : vector<125x32xf32> to vector<5x32xf32>
    %c78 = arith.constant 78 : index
    %c0_13 = arith.constant 0 : index
    %18 = vector.load %arg14[%c78, %c0_13] : memref<343x32xf32, #tpu.memory_space<vmem>>, vector<5x32xf32>
    tpu.vector_store %arg14[%c78, %c0_13], %17 {strides = array<i32>} : memref<343x32xf32, #tpu.memory_space<vmem>>, vector<5x32xf32>,
    %19 = vector.extract_strided_slice %10 {offsets = [20, 0], sizes = [5, 32], strides = [1, 1]} : vector<125x32xf32> to vector<5x32xf32>
    %c85 = arith.constant 85 : index
    %c0_14 = arith.constant 0 : index
    %20 = vector.load %arg14[%c85, %c0_14] : memref<343x32xf32, #tpu.memory_space<vmem>>, vector<5x32xf32>
    tpu.vector_store %arg14[%c85, %c0_14], %19 {strides = array<i32>} : memref<343x32xf32, #tpu.memory_space<vmem>>, vector<5x32xf32>,
    %21 = vector.extract_strided_slice %10 {offsets = [25, 0], sizes = [5, 32], strides = [1, 1]} : vector<125x32xf32> to vector<5x32xf32>
    %c106 = arith.constant 106 : index
    %c0_15 = arith.constant 0 : index
    %22 = vector.load %arg14[%c106, %c0_15] : memref<343x32xf32, #tpu.memory_space<vmem>>, vector<5x32xf32>
    tpu.vector_store %arg14[%c106, %c0_15], %21 {strides = array<i32>} : memref<343x32xf32, #tpu.memory_space<vmem>>, vector<5x32xf32>,
    %23 = vector.extract_strided_slice %10 {offsets = [30, 0], sizes = [5, 32], strides = [1, 1]} : vector<125x32xf32> to vector<5x32xf32>
    %c113 = arith.constant 113 : index
    %c0_16 = arith.constant 0 : index
    %24 = vector.load %arg14[%c113, %c0_16] : memref<343x32xf32, #tpu.memory_space<vmem>>, vector<5x32xf32>
    tpu.vector_store %arg14[%c113, %c0_16], %23 {strides = array<i32>} : memref<343x32xf32, #tpu.memory_space<vmem>>, vector<5x32xf32>,
    %25 = vector.extract_strided_slice %10 {offsets = [35, 0], sizes = [5, 32], strides = [1, 1]} : vector<125x32xf32> to vector<5x32xf32>
    %c120 = arith.constant 120 : index
    %c0_17 = arith.constant 0 : index
    %26 = vector.load %arg14[%c120, %c0_17] : memref<343x32xf32, #tpu.memory_space<vmem>>, vector<5x32xf32>
    tpu.vector_store %arg14[%c120, %c0_17], %25 {strides = array<i32>} : memref<343x32xf32, #tpu.memory_space<vmem>>, vector<5x32xf32>,
    %27 = vector.extract_strided_slice %10 {offsets = [40, 0], sizes = [5, 32], strides = [1, 1]} : vector<125x32xf32> to vector<5x32xf32>
    %c127 = arith.constant 127 : index
    %c0_18 = arith.constant 0 : index
    %28 = vector.load %arg14[%c127, %c0_18] : memref<343x32xf32, #tpu.memory_space<vmem>>, vector<5x32xf32>
    tpu.vector_store %arg14[%c127, %c0_18], %27 {strides = array<i32>} : memref<343x32xf32, #tpu.memory_space<vmem>>, vector<5x32xf32>,
    %29 = vector.extract_strided_slice %10 {offsets = [45, 0], sizes = [5, 32], strides = [1, 1]} : vector<125x32xf32> to vector<5x32xf32>
    %c134 = arith.constant 134 : index
    %c0_19 = arith.constant 0 : index
    %30 = vector.load %arg14[%c134, %c0_19] : memref<343x32xf32, #tpu.memory_space<vmem>>, vector<5x32xf32>
    tpu.vector_store %arg14[%c134, %c0_19], %29 {strides = array<i32>} : memref<343x32xf32, #tpu.memory_space<vmem>>, vector<5x32xf32>,
    %31 = vector.extract_strided_slice %10 {offsets = [50, 0], sizes = [5, 32], strides = [1, 1]} : vector<125x32xf32> to vector<5x32xf32>
    %c155 = arith.constant 155 : index
    %c0_20 = arith.constant 0 : index
    %32 = vector.load %arg14[%c155, %c0_20] : memref<343x32xf32, #tpu.memory_space<vmem>>, vector<5x32xf32>
    tpu.vector_store %arg14[%c155, %c0_20], %31 {strides = array<i32>} : memref<343x32xf32, #tpu.memory_space<vmem>>, vector<5x32xf32>,
    %33 = vector.extract_strided_slice %10 {offsets = [55, 0], sizes = [5, 32], strides = [1, 1]} : vector<125x32xf32> to vector<5x32xf32>
    %c162 = arith.constant 162 : index
    %c0_21 = arith.constant 0 : index
    %34 = vector.load %arg14[%c162, %c0_21] : memref<343x32xf32, #tpu.memory_space<vmem>>, vector<5x32xf32>
    tpu.vector_store %arg14[%c162, %c0_21], %33 {strides = array<i32>} : memref<343x32xf32, #tpu.memory_space<vmem>>, vector<5x32xf32>,
    %35 = vector.extract_strided_slice %10 {offsets = [60, 0], sizes = [5, 32], strides = [1, 1]} : vector<125x32xf32> to vector<5x32xf32>
    %c169 = arith.constant 169 : index
    %c0_22 = arith.constant 0 : index
    %36 = vector.load %arg14[%c169, %c0_22] : memref<343x32xf32, #tpu.memory_space<vmem>>, vector<5x32xf32>
    tpu.vector_store %arg14[%c169, %c0_22], %35 {strides = array<i32>} : memref<343x32xf32, #tpu.memory_space<vmem>>, vector<5x32xf32>,
    %37 = vector.extract_strided_slice %10 {offsets = [65, 0], sizes = [5, 32], strides = [1, 1]} : vector<125x32xf32> to vector<5x32xf32>
    %c176 = arith.constant 176 : index
    %c0_23 = arith.constant 0 : index
    %38 = vector.load %arg14[%c176, %c0_23] : memref<343x32xf32, #tpu.memory_space<vmem>>, vector<5x32xf32>
    tpu.vector_store %arg14[%c176, %c0_23], %37 {strides = array<i32>} : memref<343x32xf32, #tpu.memory_space<vmem>>, vector<5x32xf32>,
    %39 = vector.extract_strided_slice %10 {offsets = [70, 0], sizes = [5, 32], strides = [1, 1]} : vector<125x32xf32> to vector<5x32xf32>
    %c183 = arith.constant 183 : index
    %c0_24 = arith.constant 0 : index
    %40 = vector.load %arg14[%c183, %c0_24] : memref<343x32xf32, #tpu.memory_space<vmem>>, vector<5x32xf32>
    tpu.vector_store %arg14[%c183, %c0_24], %39 {strides = array<i32>} : memref<343x32xf32, #tpu.memory_space<vmem>>, vector<5x32xf32>,
    %41 = vector.extract_strided_slice %10 {offsets = [75, 0], sizes = [5, 32], strides = [1, 1]} : vector<125x32xf32> to vector<5x32xf32>
    %c204 = arith.constant 204 : index
    %c0_25 = arith.constant 0 : index
    %42 = vector.load %arg14[%c204, %c0_25] : memref<343x32xf32, #tpu.memory_space<vmem>>, vector<5x32xf32>
    tpu.vector_store %arg14[%c204, %c0_25], %41 {strides = array<i32>} : memref<343x32xf32, #tpu.memory_space<vmem>>, vector<5x32xf32>,
    %43 = vector.extract_strided_slice %10 {offsets = [80, 0], sizes = [5, 32], strides = [1, 1]} : vector<125x32xf32> to vector<5x32xf32>
    %c211 = arith.constant 211 : index
    %c0_26 = arith.constant 0 : index
    %44 = vector.load %arg14[%c211, %c0_26] : memref<343x32xf32, #tpu.memory_space<vmem>>, vector<5x32xf32>
    tpu.vector_store %arg14[%c211, %c0_26], %43 {strides = array<i32>} : memref<343x32xf32, #tpu.memory_space<vmem>>, vector<5x32xf32>,
    %45 = vector.extract_strided_slice %10 {offsets = [85, 0], sizes = [5, 32], strides = [1, 1]} : vector<125x32xf32> to vector<5x32xf32>
    %c218 = arith.constant 218 : index
    %c0_27 = arith.constant 0 : index
    %46 = vector.load %arg14[%c218, %c0_27] : memref<343x32xf32, #tpu.memory_space<vmem>>, vector<5x32xf32>
    tpu.vector_store %arg14[%c218, %c0_27], %45 {strides = array<i32>} : memref<343x32xf32, #tpu.memory_space<vmem>>, vector<5x32xf32>,
    %47 = vector.extract_strided_slice %10 {offsets = [90, 0], sizes = [5, 32], strides = [1, 1]} : vector<125x32xf32> to vector<5x32xf32>
    %c225 = arith.constant 225 : index
    %c0_28 = arith.constant 0 : index
    %48 = vector.load %arg14[%c225, %c0_28] : memref<343x32xf32, #tpu.memory_space<vmem>>, vector<5x32xf32>
    tpu.vector_store %arg14[%c225, %c0_28], %47 {strides = array<i32>} : memref<343x32xf32, #tpu.memory_space<vmem>>, vector<5x32xf32>,
    %49 = vector.extract_strided_slice %10 {offsets = [95, 0], sizes = [5, 32], strides = [1, 1]} : vector<125x32xf32> to vector<5x32xf32>
    %c232 = arith.constant 232 : index
    %c0_29 = arith.constant 0 : index
    %50 = vector.load %arg14[%c232, %c0_29] : memref<343x32xf32, #tpu.memory_space<vmem>>, vector<5x32xf32>
    tpu.vector_store %arg14[%c232, %c0_29], %49 {strides = array<i32>} : memref<343x32xf32, #tpu.memory_space<vmem>>, vector<5x32xf32>,
    %51 = vector.extract_strided_slice %10 {offsets = [100, 0], sizes = [5, 32], strides = [1, 1]} : vector<125x32xf32> to vector<5x32xf32>
    %c253 = arith.constant 253 : index
    %c0_30 = arith.constant 0 : index
    %52 = vector.load %arg14[%c253, %c0_30] : memref<343x32xf32, #tpu.memory_space<vmem>>, vector<5x32xf32>
    tpu.vector_store %arg14[%c253, %c0_30], %51 {strides = array<i32>} : memref<343x32xf32, #tpu.memory_space<vmem>>, vector<5x32xf32>,
    %53 = vector.extract_strided_slice %10 {offsets = [105, 0], sizes = [5, 32], strides = [1, 1]} : vector<125x32xf32> to vector<5x32xf32>
    %c260 = arith.constant 260 : index
    %c0_31 = arith.constant 0 : index
    %54 = vector.load %arg14[%c260, %c0_31] : memref<343x32xf32, #tpu.memory_space<vmem>>, vector<5x32xf32>
    tpu.vector_store %arg14[%c260, %c0_31], %53 {strides = array<i32>} : memref<343x32xf32, #tpu.memory_space<vmem>>, vector<5x32xf32>,
    %55 = vector.extract_strided_slice %10 {offsets = [110, 0], sizes = [5, 32], strides = [1, 1]} : vector<125x32xf32> to vector<5x32xf32>
    %c267 = arith.constant 267 : index
    %c0_32 = arith.constant 0 : index
    %56 = vector.load %arg14[%c267, %c0_32] : memref<343x32xf32, #tpu.memory_space<vmem>>, vector<5x32xf32>
    tpu.vector_store %arg14[%c267, %c0_32], %55 {strides = array<i32>} : memref<343x32xf32, #tpu.memory_space<vmem>>, vector<5x32xf32>,
    %57 = vector.extract_strided_slice %10 {offsets = [115, 0], sizes = [5, 32], strides = [1, 1]} : vector<125x32xf32> to vector<5x32xf32>
    %c274 = arith.constant 274 : index
    %c0_33 = arith.constant 0 : index
    %58 = vector.load %arg14[%c274, %c0_33] : memref<343x32xf32, #tpu.memory_space<vmem>>, vector<5x32xf32>
    tpu.vector_store %arg14[%c274, %c0_33], %57 {strides = array<i32>} : memref<343x32xf32, #tpu.memory_space<vmem>>, vector<5x32xf32>,
    %59 = vector.extract_strided_slice %10 {offsets = [120, 0], sizes = [5, 32], strides = [1, 1]} : vector<125x32xf32> to vector<5x32xf32>
    %c281 = arith.constant 281 : index
    %c0_34 = arith.constant 0 : index
    %60 = vector.load %arg14[%c281, %c0_34] : memref<343x32xf32, #tpu.memory_space<vmem>>, vector<5x32xf32>
    tpu.vector_store %arg14[%c281, %c0_34], %59 {strides = array<i32>} : memref<343x32xf32, #tpu.memory_space<vmem>>, vector<5x32xf32>,
    %c0_35 = arith.constant 0 : index
    %c0_36 = arith.constant 0 : index
    %61 = vector.load %arg14[%c0_35, %c0_36] : memref<343x32xf32, #tpu.memory_space<vmem>>, vector<286x32xf32>
    %62 = arith.truncf %61 : vector<286x32xf32> to vector<286x32xbf16>
    %c1 = arith.constant 1 : index
    %c0_37 = arith.constant 0 : index
    %63 = vector.load %arg14[%c1, %c0_37] : memref<343x32xf32, #tpu.memory_space<vmem>>, vector<286x32xf32>
    %64 = arith.truncf %63 : vector<286x32xf32> to vector<286x32xbf16>
    %c7 = arith.constant 7 : index
    %c0_38 = arith.constant 0 : index
    %65 = vector.load %arg14[%c7, %c0_38] : memref<343x32xf32, #tpu.memory_space<vmem>>, vector<286x32xf32>
    %66 = arith.truncf %65 : vector<286x32xf32> to vector<286x32xbf16>
    %c8 = arith.constant 8 : index
    %c0_39 = arith.constant 0 : index
    %67 = vector.load %arg14[%c8, %c0_39] : memref<343x32xf32, #tpu.memory_space<vmem>>, vector<286x32xf32>
    %68 = arith.truncf %67 : vector<286x32xf32> to vector<286x32xbf16>
    %c49 = arith.constant 49 : index
    %c0_40 = arith.constant 0 : index
    %69 = vector.load %arg14[%c49, %c0_40] : memref<343x32xf32, #tpu.memory_space<vmem>>, vector<286x32xf32>
    %70 = arith.truncf %69 : vector<286x32xf32> to vector<286x32xbf16>
    %c50 = arith.constant 50 : index
    %c0_41 = arith.constant 0 : index
    %71 = vector.load %arg14[%c50, %c0_41] : memref<343x32xf32, #tpu.memory_space<vmem>>, vector<286x32xf32>
    %72 = arith.truncf %71 : vector<286x32xf32> to vector<286x32xbf16>
    %c56 = arith.constant 56 : index
    %c0_42 = arith.constant 0 : index
    %73 = vector.load %arg14[%c56, %c0_42] : memref<343x32xf32, #tpu.memory_space<vmem>>, vector<286x32xf32>
    %74 = arith.truncf %73 : vector<286x32xf32> to vector<286x32xbf16>
    %c57_43 = arith.constant 57 : index
    %c0_44 = arith.constant 0 : index
    %75 = vector.load %arg14[%c57_43, %c0_44] : memref<343x32xf32, #tpu.memory_space<vmem>>, vector<286x32xf32>
    %76 = arith.truncf %75 : vector<286x32xf32> to vector<286x32xbf16>
    %77 = tpu.concatenate %62, %64, %66, %68, %70, %72, %74, %76 in 1 : vector<286x32xbf16>, vector<286x32xbf16>, vector<286x32xbf16>, vector<286x32xbf16>, vector<286x32xbf16>, vector<286x32xbf16>, vector<286x32xbf16>, vector<286x32xbf16> -> vector<286x256xbf16>
    %c0_45 = arith.constant 0 : index
    %c0_46 = arith.constant 0 : index
    %78 = vector.load %arg4[%c0_45, %c0_46] : memref<256x64xbf16, #tpu.memory_space<vmem>>, vector<256x64xbf16>
    %cst_47 = arith.constant dense<0.000000e+00> : vector<286x64xf32>
    %79 = tpu.matmul %77, %78, %cst_47 {dimension_numbers = #tpu.dot_dimension_numbers<[1], [0], [0], [1], [0, 0, 1, 1], [], []>} : vector<286x256xbf16>, vector<256x64xbf16>, vector<286x64xf32> -> vector<286x64xf32>
    %c0_48 = arith.constant 0 : index
    %c0_49 = arith.constant 0 : index
    %80 = vector.load %arg5[%c0_48, %c0_49] : memref<1x64xf32, #tpu.memory_space<vmem>>, vector<1x64xf32>
    %81 = vector.broadcast %80 : vector<1x64xf32> to vector<286x64xf32>
    %82 = arith.addf %79, %81 : vector<286x64xf32>
    %cst_50 = arith.constant 0.000000e+00 : f32
    %83 = vector.broadcast %cst_50 : f32 to vector<286x64xf32>
    %84 = arith.maximumf %82, %83 : vector<286x64xf32>
    %85 = vector.extract_strided_slice %84 {offsets = [0, 0], sizes = [285, 64], strides = [1, 1]} : vector<286x64xf32> to vector<285x64xf32>
    %86 = vector.extract_strided_slice %84 {offsets = [1, 0], sizes = [285, 64], strides = [1, 1]} : vector<286x64xf32> to vector<285x64xf32>
    %87 = arith.maximumf %85, %86 : vector<285x64xf32>
    %88 = vector.extract_strided_slice %87 {offsets = [0, 0], sizes = [278, 64], strides = [1, 1]} : vector<285x64xf32> to vector<278x64xf32>
    %89 = vector.extract_strided_slice %87 {offsets = [7, 0], sizes = [278, 64], strides = [1, 1]} : vector<285x64xf32> to vector<278x64xf32>
    %90 = arith.maximumf %88, %89 : vector<278x64xf32>
    %91 = vector.extract_strided_slice %90 {offsets = [0, 0], sizes = [229, 64], strides = [1, 1]} : vector<278x64xf32> to vector<229x64xf32>
    %92 = vector.extract_strided_slice %90 {offsets = [49, 0], sizes = [229, 64], strides = [1, 1]} : vector<278x64xf32> to vector<229x64xf32>
    %93 = arith.maximumf %91, %92 : vector<229x64xf32>
    %94 = vector.extract_strided_slice %93 {offsets = [0, 0], sizes = [1, 64], strides = [1, 1]} : vector<229x64xf32> to vector<1x64xf32>
    %95 = vector.extract_strided_slice %93 {offsets = [2, 0], sizes = [1, 64], strides = [1, 1]} : vector<229x64xf32> to vector<1x64xf32>
    %96 = vector.extract_strided_slice %93 {offsets = [4, 0], sizes = [1, 64], strides = [1, 1]} : vector<229x64xf32> to vector<1x64xf32>
    %97 = vector.extract_strided_slice %93 {offsets = [14, 0], sizes = [1, 64], strides = [1, 1]} : vector<229x64xf32> to vector<1x64xf32>
    %98 = vector.extract_strided_slice %93 {offsets = [16, 0], sizes = [1, 64], strides = [1, 1]} : vector<229x64xf32> to vector<1x64xf32>
    %99 = vector.extract_strided_slice %93 {offsets = [18, 0], sizes = [1, 64], strides = [1, 1]} : vector<229x64xf32> to vector<1x64xf32>
    %100 = vector.extract_strided_slice %93 {offsets = [28, 0], sizes = [1, 64], strides = [1, 1]} : vector<229x64xf32> to vector<1x64xf32>
    %101 = vector.extract_strided_slice %93 {offsets = [30, 0], sizes = [1, 64], strides = [1, 1]} : vector<229x64xf32> to vector<1x64xf32>
    %102 = vector.extract_strided_slice %93 {offsets = [32, 0], sizes = [1, 64], strides = [1, 1]} : vector<229x64xf32> to vector<1x64xf32>
    %103 = vector.extract_strided_slice %93 {offsets = [98, 0], sizes = [1, 64], strides = [1, 1]} : vector<229x64xf32> to vector<1x64xf32>
    %104 = vector.extract_strided_slice %93 {offsets = [100, 0], sizes = [1, 64], strides = [1, 1]} : vector<229x64xf32> to vector<1x64xf32>
    %105 = vector.extract_strided_slice %93 {offsets = [102, 0], sizes = [1, 64], strides = [1, 1]} : vector<229x64xf32> to vector<1x64xf32>
    %106 = vector.extract_strided_slice %93 {offsets = [112, 0], sizes = [1, 64], strides = [1, 1]} : vector<229x64xf32> to vector<1x64xf32>
    %107 = vector.extract_strided_slice %93 {offsets = [114, 0], sizes = [1, 64], strides = [1, 1]} : vector<229x64xf32> to vector<1x64xf32>
    %108 = vector.extract_strided_slice %93 {offsets = [116, 0], sizes = [1, 64], strides = [1, 1]} : vector<229x64xf32> to vector<1x64xf32>
    %109 = vector.extract_strided_slice %93 {offsets = [126, 0], sizes = [1, 64], strides = [1, 1]} : vector<229x64xf32> to vector<1x64xf32>
    %110 = vector.extract_strided_slice %93 {offsets = [128, 0], sizes = [1, 64], strides = [1, 1]} : vector<229x64xf32> to vector<1x64xf32>
    %111 = vector.extract_strided_slice %93 {offsets = [130, 0], sizes = [1, 64], strides = [1, 1]} : vector<229x64xf32> to vector<1x64xf32>
    %112 = vector.extract_strided_slice %93 {offsets = [196, 0], sizes = [1, 64], strides = [1, 1]} : vector<229x64xf32> to vector<1x64xf32>
    %113 = vector.extract_strided_slice %93 {offsets = [198, 0], sizes = [1, 64], strides = [1, 1]} : vector<229x64xf32> to vector<1x64xf32>
    %114 = vector.extract_strided_slice %93 {offsets = [200, 0], sizes = [1, 64], strides = [1, 1]} : vector<229x64xf32> to vector<1x64xf32>
    %115 = vector.extract_strided_slice %93 {offsets = [210, 0], sizes = [1, 64], strides = [1, 1]} : vector<229x64xf32> to vector<1x64xf32>
    %116 = vector.extract_strided_slice %93 {offsets = [212, 0], sizes = [1, 64], strides = [1, 1]} : vector<229x64xf32> to vector<1x64xf32>
    %117 = vector.extract_strided_slice %93 {offsets = [214, 0], sizes = [1, 64], strides = [1, 1]} : vector<229x64xf32> to vector<1x64xf32>
    %118 = vector.extract_strided_slice %93 {offsets = [224, 0], sizes = [1, 64], strides = [1, 1]} : vector<229x64xf32> to vector<1x64xf32>
    %119 = vector.extract_strided_slice %93 {offsets = [226, 0], sizes = [1, 64], strides = [1, 1]} : vector<229x64xf32> to vector<1x64xf32>
    %120 = vector.extract_strided_slice %93 {offsets = [228, 0], sizes = [1, 64], strides = [1, 1]} : vector<229x64xf32> to vector<1x64xf32>
    %cst_51 = arith.constant 0.000000e+00 : f32
    %121 = vector.broadcast %cst_51 : f32 to vector<1x64xf32>
    %122 = tpu.concatenate %94, %95, %96, %97, %98, %99, %100, %101, %102, %103, %104, %105, %106, %107, %108, %109 in 1 : vector<1x64xf32>, vector<1x64xf32>, vector<1x64xf32>, vector<1x64xf32>, vector<1x64xf32>, vector<1x64xf32>, vector<1x64xf32>, vector<1x64xf32>, vector<1x64xf32>, vector<1x64xf32>, vector<1x64xf32>, vector<1x64xf32>, vector<1x64xf32>, vector<1x64xf32>, vector<1x64xf32>, vector<1x64xf32> -> vector<1x1024xf32>
    %123 = tpu.concatenate %110, %111, %112, %113, %114, %115, %116, %117, %118, %119, %120, %121 in 1 : vector<1x64xf32>, vector<1x64xf32>, vector<1x64xf32>, vector<1x64xf32>, vector<1x64xf32>, vector<1x64xf32>, vector<1x64xf32>, vector<1x64xf32>, vector<1x64xf32>, vector<1x64xf32>, vector<1x64xf32>, vector<1x64xf32> -> vector<1x768xf32>
    %124 = tpu.concatenate %122, %123 in 1 : vector<1x1024xf32>, vector<1x768xf32> -> vector<1x1792xf32>
    %c1_52 = arith.constant 1 : index
    %c0_53 = arith.constant 0 : index
    %c0_54 = arith.constant 0 : index
    %125 = vector.load %arg1[%c1_52, %c0_53, %c0_54] : memref<2x125x8xbf16, #tpu.memory_space<vmem>>, vector<1x125x8xbf16>
    %126 = vector.shape_cast %125 : vector<1x125x8xbf16> to vector<125x8xbf16>
    %c0_55 = arith.constant 0 : index
    %c0_56 = arith.constant 0 : index
    %127 = vector.load %arg2[%c0_55, %c0_56] : memref<8x32xbf16, #tpu.memory_space<vmem>>, vector<8x32xbf16>
    %cst_57 = arith.constant dense<0.000000e+00> : vector<125x32xf32>
    %128 = tpu.matmul %126, %127, %cst_57 {dimension_numbers = #tpu.dot_dimension_numbers<[1], [0], [0], [1], [0, 0, 1, 1], [], []>} : vector<125x8xbf16>, vector<8x32xbf16>, vector<125x32xf32> -> vector<125x32xf32>
    %c0_58 = arith.constant 0 : index
    %c0_59 = arith.constant 0 : index
    %129 = vector.load %arg3[%c0_58, %c0_59] : memref<1x32xf32, #tpu.memory_space<vmem>>, vector<1x32xf32>
    %130 = vector.broadcast %129 : vector<1x32xf32> to vector<125x32xf32>
    %131 = arith.addf %128, %130 : vector<125x32xf32>
    %cst_60 = arith.constant 0.000000e+00 : f32
    %132 = vector.broadcast %cst_60 : f32 to vector<125x32xf32>
    %133 = arith.maximumf %131, %132 : vector<125x32xf32>
    %134 = vector.extract_strided_slice %133 {offsets = [0, 0], sizes = [5, 32], strides = [1, 1]} : vector<125x32xf32> to vector<5x32xf32>
    %c57_61 = arith.constant 57 : index
    %c0_62 = arith.constant 0 : index
    %135 = vector.load %arg14[%c57_61, %c0_62] : memref<343x32xf32, #tpu.memory_space<vmem>>, vector<5x32xf32>
    tpu.vector_store %arg14[%c57_61, %c0_62], %134 {strides = array<i32>} : memref<343x32xf32, #tpu.memory_space<vmem>>, vector<5x32xf32>,
    %136 = vector.extract_strided_slice %133 {offsets = [5, 0], sizes = [5, 32], strides = [1, 1]} : vector<125x32xf32> to vector<5x32xf32>
    %c64_63 = arith.constant 64 : index
    %c0_64 = arith.constant 0 : index
    %137 = vector.load %arg14[%c64_63, %c0_64] : memref<343x32xf32, #tpu.memory_space<vmem>>, vector<5x32xf32>
    tpu.vector_store %arg14[%c64_63, %c0_64], %136 {strides = array<i32>} : memref<343x32xf32, #tpu.memory_space<vmem>>, vector<5x32xf32>,
    %138 = vector.extract_strided_slice %133 {offsets = [10, 0], sizes = [5, 32], strides = [1, 1]} : vector<125x32xf32> to vector<5x32xf32>
    %c71_65 = arith.constant 71 : index
    %c0_66 = arith.constant 0 : index
    %139 = vector.load %arg14[%c71_65, %c0_66] : memref<343x32xf32, #tpu.memory_space<vmem>>, vector<5x32xf32>
    tpu.vector_store %arg14[%c71_65, %c0_66], %138 {strides = array<i32>} : memref<343x32xf32, #tpu.memory_space<vmem>>, vector<5x32xf32>,
    %140 = vector.extract_strided_slice %133 {offsets = [15, 0], sizes = [5, 32], strides = [1, 1]} : vector<125x32xf32> to vector<5x32xf32>
    %c78_67 = arith.constant 78 : index
    %c0_68 = arith.constant 0 : index
    %141 = vector.load %arg14[%c78_67, %c0_68] : memref<343x32xf32, #tpu.memory_space<vmem>>, vector<5x32xf32>
    tpu.vector_store %arg14[%c78_67, %c0_68], %140 {strides = array<i32>} : memref<343x32xf32, #tpu.memory_space<vmem>>, vector<5x32xf32>,
    %142 = vector.extract_strided_slice %133 {offsets = [20, 0], sizes = [5, 32], strides = [1, 1]} : vector<125x32xf32> to vector<5x32xf32>
    %c85_69 = arith.constant 85 : index
    %c0_70 = arith.constant 0 : index
    %143 = vector.load %arg14[%c85_69, %c0_70] : memref<343x32xf32, #tpu.memory_space<vmem>>, vector<5x32xf32>
    tpu.vector_store %arg14[%c85_69, %c0_70], %142 {strides = array<i32>} : memref<343x32xf32, #tpu.memory_space<vmem>>, vector<5x32xf32>,
    %144 = vector.extract_strided_slice %133 {offsets = [25, 0], sizes = [5, 32], strides = [1, 1]} : vector<125x32xf32> to vector<5x32xf32>
    %c106_71 = arith.constant 106 : index
    %c0_72 = arith.constant 0 : index
    %145 = vector.load %arg14[%c106_71, %c0_72] : memref<343x32xf32, #tpu.memory_space<vmem>>, vector<5x32xf32>
    tpu.vector_store %arg14[%c106_71, %c0_72], %144 {strides = array<i32>} : memref<343x32xf32, #tpu.memory_space<vmem>>, vector<5x32xf32>,
    %146 = vector.extract_strided_slice %133 {offsets = [30, 0], sizes = [5, 32], strides = [1, 1]} : vector<125x32xf32> to vector<5x32xf32>
    %c113_73 = arith.constant 113 : index
    %c0_74 = arith.constant 0 : index
    %147 = vector.load %arg14[%c113_73, %c0_74] : memref<343x32xf32, #tpu.memory_space<vmem>>, vector<5x32xf32>
    tpu.vector_store %arg14[%c113_73, %c0_74], %146 {strides = array<i32>} : memref<343x32xf32, #tpu.memory_space<vmem>>, vector<5x32xf32>,
    %148 = vector.extract_strided_slice %133 {offsets = [35, 0], sizes = [5, 32], strides = [1, 1]} : vector<125x32xf32> to vector<5x32xf32>
    %c120_75 = arith.constant 120 : index
    %c0_76 = arith.constant 0 : index
    %149 = vector.load %arg14[%c120_75, %c0_76] : memref<343x32xf32, #tpu.memory_space<vmem>>, vector<5x32xf32>
    tpu.vector_store %arg14[%c120_75, %c0_76], %148 {strides = array<i32>} : memref<343x32xf32, #tpu.memory_space<vmem>>, vector<5x32xf32>,
    %150 = vector.extract_strided_slice %133 {offsets = [40, 0], sizes = [5, 32], strides = [1, 1]} : vector<125x32xf32> to vector<5x32xf32>
    %c127_77 = arith.constant 127 : index
    %c0_78 = arith.constant 0 : index
    %151 = vector.load %arg14[%c127_77, %c0_78] : memref<343x32xf32, #tpu.memory_space<vmem>>, vector<5x32xf32>
    tpu.vector_store %arg14[%c127_77, %c0_78], %150 {strides = array<i32>} : memref<343x32xf32, #tpu.memory_space<vmem>>, vector<5x32xf32>,
    %152 = vector.extract_strided_slice %133 {offsets = [45, 0], sizes = [5, 32], strides = [1, 1]} : vector<125x32xf32> to vector<5x32xf32>
    %c134_79 = arith.constant 134 : index
    %c0_80 = arith.constant 0 : index
    %153 = vector.load %arg14[%c134_79, %c0_80] : memref<343x32xf32, #tpu.memory_space<vmem>>, vector<5x32xf32>
    tpu.vector_store %arg14[%c134_79, %c0_80], %152 {strides = array<i32>} : memref<343x32xf32, #tpu.memory_space<vmem>>, vector<5x32xf32>,
    %154 = vector.extract_strided_slice %133 {offsets = [50, 0], sizes = [5, 32], strides = [1, 1]} : vector<125x32xf32> to vector<5x32xf32>
    %c155_81 = arith.constant 155 : index
    %c0_82 = arith.constant 0 : index
    %155 = vector.load %arg14[%c155_81, %c0_82] : memref<343x32xf32, #tpu.memory_space<vmem>>, vector<5x32xf32>
    tpu.vector_store %arg14[%c155_81, %c0_82], %154 {strides = array<i32>} : memref<343x32xf32, #tpu.memory_space<vmem>>, vector<5x32xf32>,
    %156 = vector.extract_strided_slice %133 {offsets = [55, 0], sizes = [5, 32], strides = [1, 1]} : vector<125x32xf32> to vector<5x32xf32>
    %c162_83 = arith.constant 162 : index
    %c0_84 = arith.constant 0 : index
    %157 = vector.load %arg14[%c162_83, %c0_84] : memref<343x32xf32, #tpu.memory_space<vmem>>, vector<5x32xf32>
    tpu.vector_store %arg14[%c162_83, %c0_84], %156 {strides = array<i32>} : memref<343x32xf32, #tpu.memory_space<vmem>>, vector<5x32xf32>,
    %158 = vector.extract_strided_slice %133 {offsets = [60, 0], sizes = [5, 32], strides = [1, 1]} : vector<125x32xf32> to vector<5x32xf32>
    %c169_85 = arith.constant 169 : index
    %c0_86 = arith.constant 0 : index
    %159 = vector.load %arg14[%c169_85, %c0_86] : memref<343x32xf32, #tpu.memory_space<vmem>>, vector<5x32xf32>
    tpu.vector_store %arg14[%c169_85, %c0_86], %158 {strides = array<i32>} : memref<343x32xf32, #tpu.memory_space<vmem>>, vector<5x32xf32>,
    %160 = vector.extract_strided_slice %133 {offsets = [65, 0], sizes = [5, 32], strides = [1, 1]} : vector<125x32xf32> to vector<5x32xf32>
    %c176_87 = arith.constant 176 : index
    %c0_88 = arith.constant 0 : index
    %161 = vector.load %arg14[%c176_87, %c0_88] : memref<343x32xf32, #tpu.memory_space<vmem>>, vector<5x32xf32>
    tpu.vector_store %arg14[%c176_87, %c0_88], %160 {strides = array<i32>} : memref<343x32xf32, #tpu.memory_space<vmem>>, vector<5x32xf32>,
    %162 = vector.extract_strided_slice %133 {offsets = [70, 0], sizes = [5, 32], strides = [1, 1]} : vector<125x32xf32> to vector<5x32xf32>
    %c183_89 = arith.constant 183 : index
    %c0_90 = arith.constant 0 : index
    %163 = vector.load %arg14[%c183_89, %c0_90] : memref<343x32xf32, #tpu.memory_space<vmem>>, vector<5x32xf32>
    tpu.vector_store %arg14[%c183_89, %c0_90], %162 {strides = array<i32>} : memref<343x32xf32, #tpu.memory_space<vmem>>, vector<5x32xf32>,
    %164 = vector.extract_strided_slice %133 {offsets = [75, 0], sizes = [5, 32], strides = [1, 1]} : vector<125x32xf32> to vector<5x32xf32>
    %c204_91 = arith.constant 204 : index
    %c0_92 = arith.constant 0 : index
    %165 = vector.load %arg14[%c204_91, %c0_92] : memref<343x32xf32, #tpu.memory_space<vmem>>, vector<5x32xf32>
    tpu.vector_store %arg14[%c204_91, %c0_92], %164 {strides = array<i32>} : memref<343x32xf32, #tpu.memory_space<vmem>>, vector<5x32xf32>,
    %166 = vector.extract_strided_slice %133 {offsets = [80, 0], sizes = [5, 32], strides = [1, 1]} : vector<125x32xf32> to vector<5x32xf32>
    %c211_93 = arith.constant 211 : index
    %c0_94 = arith.constant 0 : index
    %167 = vector.load %arg14[%c211_93, %c0_94] : memref<343x32xf32, #tpu.memory_space<vmem>>, vector<5x32xf32>
    tpu.vector_store %arg14[%c211_93, %c0_94], %166 {strides = array<i32>} : memref<343x32xf32, #tpu.memory_space<vmem>>, vector<5x32xf32>,
    %168 = vector.extract_strided_slice %133 {offsets = [85, 0], sizes = [5, 32], strides = [1, 1]} : vector<125x32xf32> to vector<5x32xf32>
    %c218_95 = arith.constant 218 : index
    %c0_96 = arith.constant 0 : index
    %169 = vector.load %arg14[%c218_95, %c0_96] : memref<343x32xf32, #tpu.memory_space<vmem>>, vector<5x32xf32>
    tpu.vector_store %arg14[%c218_95, %c0_96], %168 {strides = array<i32>} : memref<343x32xf32, #tpu.memory_space<vmem>>, vector<5x32xf32>,
    %170 = vector.extract_strided_slice %133 {offsets = [90, 0], sizes = [5, 32], strides = [1, 1]} : vector<125x32xf32> to vector<5x32xf32>
    %c225_97 = arith.constant 225 : index
    %c0_98 = arith.constant 0 : index
    %171 = vector.load %arg14[%c225_97, %c0_98] : memref<343x32xf32, #tpu.memory_space<vmem>>, vector<5x32xf32>
    tpu.vector_store %arg14[%c225_97, %c0_98], %170 {strides = array<i32>} : memref<343x32xf32, #tpu.memory_space<vmem>>, vector<5x32xf32>,
    %172 = vector.extract_strided_slice %133 {offsets = [95, 0], sizes = [5, 32], strides = [1, 1]} : vector<125x32xf32> to vector<5x32xf32>
    %c232_99 = arith.constant 232 : index
    %c0_100 = arith.constant 0 : index
    %173 = vector.load %arg14[%c232_99, %c0_100] : memref<343x32xf32, #tpu.memory_space<vmem>>, vector<5x32xf32>
    tpu.vector_store %arg14[%c232_99, %c0_100], %172 {strides = array<i32>} : memref<343x32xf32, #tpu.memory_space<vmem>>, vector<5x32xf32>,
    %174 = vector.extract_strided_slice %133 {offsets = [100, 0], sizes = [5, 32], strides = [1, 1]} : vector<125x32xf32> to vector<5x32xf32>
    %c253_101 = arith.constant 253 : index
    %c0_102 = arith.constant 0 : index
    %175 = vector.load %arg14[%c253_101, %c0_102] : memref<343x32xf32, #tpu.memory_space<vmem>>, vector<5x32xf32>
    tpu.vector_store %arg14[%c253_101, %c0_102], %174 {strides = array<i32>} : memref<343x32xf32, #tpu.memory_space<vmem>>, vector<5x32xf32>,
    %176 = vector.extract_strided_slice %133 {offsets = [105, 0], sizes = [5, 32], strides = [1, 1]} : vector<125x32xf32> to vector<5x32xf32>
    %c260_103 = arith.constant 260 : index
    %c0_104 = arith.constant 0 : index
    %177 = vector.load %arg14[%c260_103, %c0_104] : memref<343x32xf32, #tpu.memory_space<vmem>>, vector<5x32xf32>
    tpu.vector_store %arg14[%c260_103, %c0_104], %176 {strides = array<i32>} : memref<343x32xf32, #tpu.memory_space<vmem>>, vector<5x32xf32>,
    %178 = vector.extract_strided_slice %133 {offsets = [110, 0], sizes = [5, 32], strides = [1, 1]} : vector<125x32xf32> to vector<5x32xf32>
    %c267_105 = arith.constant 267 : index
    %c0_106 = arith.constant 0 : index
    %179 = vector.load %arg14[%c267_105, %c0_106] : memref<343x32xf32, #tpu.memory_space<vmem>>, vector<5x32xf32>
    tpu.vector_store %arg14[%c267_105, %c0_106], %178 {strides = array<i32>} : memref<343x32xf32, #tpu.memory_space<vmem>>, vector<5x32xf32>,
    %180 = vector.extract_strided_slice %133 {offsets = [115, 0], sizes = [5, 32], strides = [1, 1]} : vector<125x32xf32> to vector<5x32xf32>
    %c274_107 = arith.constant 274 : index
    %c0_108 = arith.constant 0 : index
    %181 = vector.load %arg14[%c274_107, %c0_108] : memref<343x32xf32, #tpu.memory_space<vmem>>, vector<5x32xf32>
    tpu.vector_store %arg14[%c274_107, %c0_108], %180 {strides = array<i32>} : memref<343x32xf32, #tpu.memory_space<vmem>>, vector<5x32xf32>,
    %182 = vector.extract_strided_slice %133 {offsets = [120, 0], sizes = [5, 32], strides = [1, 1]} : vector<125x32xf32> to vector<5x32xf32>
    %c281_109 = arith.constant 281 : index
    %c0_110 = arith.constant 0 : index
    %183 = vector.load %arg14[%c281_109, %c0_110] : memref<343x32xf32, #tpu.memory_space<vmem>>, vector<5x32xf32>
    tpu.vector_store %arg14[%c281_109, %c0_110], %182 {strides = array<i32>} : memref<343x32xf32, #tpu.memory_space<vmem>>, vector<5x32xf32>,
    %c0_111 = arith.constant 0 : index
    %c0_112 = arith.constant 0 : index
    %184 = vector.load %arg14[%c0_111, %c0_112] : memref<343x32xf32, #tpu.memory_space<vmem>>, vector<286x32xf32>
    %185 = arith.truncf %184 : vector<286x32xf32> to vector<286x32xbf16>
    %c1_113 = arith.constant 1 : index
    %c0_114 = arith.constant 0 : index
    %186 = vector.load %arg14[%c1_113, %c0_114] : memref<343x32xf32, #tpu.memory_space<vmem>>, vector<286x32xf32>
    %187 = arith.truncf %186 : vector<286x32xf32> to vector<286x32xbf16>
    %c7_115 = arith.constant 7 : index
    %c0_116 = arith.constant 0 : index
    %188 = vector.load %arg14[%c7_115, %c0_116] : memref<343x32xf32, #tpu.memory_space<vmem>>, vector<286x32xf32>
    %189 = arith.truncf %188 : vector<286x32xf32> to vector<286x32xbf16>
    %c8_117 = arith.constant 8 : index
    %c0_118 = arith.constant 0 : index
    %190 = vector.load %arg14[%c8_117, %c0_118] : memref<343x32xf32, #tpu.memory_space<vmem>>, vector<286x32xf32>
    %191 = arith.truncf %190 : vector<286x32xf32> to vector<286x32xbf16>
    %c49_119 = arith.constant 49 : index
    %c0_120 = arith.constant 0 : index
    %192 = vector.load %arg14[%c49_119, %c0_120] : memref<343x32xf32, #tpu.memory_space<vmem>>, vector<286x32xf32>
    %193 = arith.truncf %192 : vector<286x32xf32> to vector<286x32xbf16>
    %c50_121 = arith.constant 50 : index
    %c0_122 = arith.constant 0 : index
    %194 = vector.load %arg14[%c50_121, %c0_122] : memref<343x32xf32, #tpu.memory_space<vmem>>, vector<286x32xf32>
    %195 = arith.truncf %194 : vector<286x32xf32> to vector<286x32xbf16>
    %c56_123 = arith.constant 56 : index
    %c0_124 = arith.constant 0 : index
    %196 = vector.load %arg14[%c56_123, %c0_124] : memref<343x32xf32, #tpu.memory_space<vmem>>, vector<286x32xf32>
    %197 = arith.truncf %196 : vector<286x32xf32> to vector<286x32xbf16>
    %c57_125 = arith.constant 57 : index
    %c0_126 = arith.constant 0 : index
    %198 = vector.load %arg14[%c57_125, %c0_126] : memref<343x32xf32, #tpu.memory_space<vmem>>, vector<286x32xf32>
    %199 = arith.truncf %198 : vector<286x32xf32> to vector<286x32xbf16>
    %200 = tpu.concatenate %185, %187, %189, %191, %193, %195, %197, %199 in 1 : vector<286x32xbf16>, vector<286x32xbf16>, vector<286x32xbf16>, vector<286x32xbf16>, vector<286x32xbf16>, vector<286x32xbf16>, vector<286x32xbf16>, vector<286x32xbf16> -> vector<286x256xbf16>
    %c0_127 = arith.constant 0 : index
    %c0_128 = arith.constant 0 : index
    %201 = vector.load %arg4[%c0_127, %c0_128] : memref<256x64xbf16, #tpu.memory_space<vmem>>, vector<256x64xbf16>
    %cst_129 = arith.constant dense<0.000000e+00> : vector<286x64xf32>
    %202 = tpu.matmul %200, %201, %cst_129 {dimension_numbers = #tpu.dot_dimension_numbers<[1], [0], [0], [1], [0, 0, 1, 1], [], []>} : vector<286x256xbf16>, vector<256x64xbf16>, vector<286x64xf32> -> vector<286x64xf32>
    %c0_130 = arith.constant 0 : index
    %c0_131 = arith.constant 0 : index
    %203 = vector.load %arg5[%c0_130, %c0_131] : memref<1x64xf32, #tpu.memory_space<vmem>>, vector<1x64xf32>
    %204 = vector.broadcast %203 : vector<1x64xf32> to vector<286x64xf32>
    %205 = arith.addf %202, %204 : vector<286x64xf32>
    %cst_132 = arith.constant 0.000000e+00 : f32
    %206 = vector.broadcast %cst_132 : f32 to vector<286x64xf32>
    %207 = arith.maximumf %205, %206 : vector<286x64xf32>
    %208 = vector.extract_strided_slice %207 {offsets = [0, 0], sizes = [285, 64], strides = [1, 1]} : vector<286x64xf32> to vector<285x64xf32>
    %209 = vector.extract_strided_slice %207 {offsets = [1, 0], sizes = [285, 64], strides = [1, 1]} : vector<286x64xf32> to vector<285x64xf32>
    %210 = arith.maximumf %208, %209 : vector<285x64xf32>
    %211 = vector.extract_strided_slice %210 {offsets = [0, 0], sizes = [278, 64], strides = [1, 1]} : vector<285x64xf32> to vector<278x64xf32>
    %212 = vector.extract_strided_slice %210 {offsets = [7, 0], sizes = [278, 64], strides = [1, 1]} : vector<285x64xf32> to vector<278x64xf32>
    %213 = arith.maximumf %211, %212 : vector<278x64xf32>
    %214 = vector.extract_strided_slice %213 {offsets = [0, 0], sizes = [229, 64], strides = [1, 1]} : vector<278x64xf32> to vector<229x64xf32>
    %215 = vector.extract_strided_slice %213 {offsets = [49, 0], sizes = [229, 64], strides = [1, 1]} : vector<278x64xf32> to vector<229x64xf32>
    %216 = arith.maximumf %214, %215 : vector<229x64xf32>
    %217 = vector.extract_strided_slice %216 {offsets = [0, 0], sizes = [1, 64], strides = [1, 1]} : vector<229x64xf32> to vector<1x64xf32>
    %218 = vector.extract_strided_slice %216 {offsets = [2, 0], sizes = [1, 64], strides = [1, 1]} : vector<229x64xf32> to vector<1x64xf32>
    %219 = vector.extract_strided_slice %216 {offsets = [4, 0], sizes = [1, 64], strides = [1, 1]} : vector<229x64xf32> to vector<1x64xf32>
    %220 = vector.extract_strided_slice %216 {offsets = [14, 0], sizes = [1, 64], strides = [1, 1]} : vector<229x64xf32> to vector<1x64xf32>
    %221 = vector.extract_strided_slice %216 {offsets = [16, 0], sizes = [1, 64], strides = [1, 1]} : vector<229x64xf32> to vector<1x64xf32>
    %222 = vector.extract_strided_slice %216 {offsets = [18, 0], sizes = [1, 64], strides = [1, 1]} : vector<229x64xf32> to vector<1x64xf32>
    %223 = vector.extract_strided_slice %216 {offsets = [28, 0], sizes = [1, 64], strides = [1, 1]} : vector<229x64xf32> to vector<1x64xf32>
    %224 = vector.extract_strided_slice %216 {offsets = [30, 0], sizes = [1, 64], strides = [1, 1]} : vector<229x64xf32> to vector<1x64xf32>
    %225 = vector.extract_strided_slice %216 {offsets = [32, 0], sizes = [1, 64], strides = [1, 1]} : vector<229x64xf32> to vector<1x64xf32>
    %226 = vector.extract_strided_slice %216 {offsets = [98, 0], sizes = [1, 64], strides = [1, 1]} : vector<229x64xf32> to vector<1x64xf32>
    %227 = vector.extract_strided_slice %216 {offsets = [100, 0], sizes = [1, 64], strides = [1, 1]} : vector<229x64xf32> to vector<1x64xf32>
    %228 = vector.extract_strided_slice %216 {offsets = [102, 0], sizes = [1, 64], strides = [1, 1]} : vector<229x64xf32> to vector<1x64xf32>
    %229 = vector.extract_strided_slice %216 {offsets = [112, 0], sizes = [1, 64], strides = [1, 1]} : vector<229x64xf32> to vector<1x64xf32>
    %230 = vector.extract_strided_slice %216 {offsets = [114, 0], sizes = [1, 64], strides = [1, 1]} : vector<229x64xf32> to vector<1x64xf32>
    %231 = vector.extract_strided_slice %216 {offsets = [116, 0], sizes = [1, 64], strides = [1, 1]} : vector<229x64xf32> to vector<1x64xf32>
    %232 = vector.extract_strided_slice %216 {offsets = [126, 0], sizes = [1, 64], strides = [1, 1]} : vector<229x64xf32> to vector<1x64xf32>
    %233 = vector.extract_strided_slice %216 {offsets = [128, 0], sizes = [1, 64], strides = [1, 1]} : vector<229x64xf32> to vector<1x64xf32>
    %234 = vector.extract_strided_slice %216 {offsets = [130, 0], sizes = [1, 64], strides = [1, 1]} : vector<229x64xf32> to vector<1x64xf32>
    %235 = vector.extract_strided_slice %216 {offsets = [196, 0], sizes = [1, 64], strides = [1, 1]} : vector<229x64xf32> to vector<1x64xf32>
    %236 = vector.extract_strided_slice %216 {offsets = [198, 0], sizes = [1, 64], strides = [1, 1]} : vector<229x64xf32> to vector<1x64xf32>
    %237 = vector.extract_strided_slice %216 {offsets = [200, 0], sizes = [1, 64], strides = [1, 1]} : vector<229x64xf32> to vector<1x64xf32>
    %238 = vector.extract_strided_slice %216 {offsets = [210, 0], sizes = [1, 64], strides = [1, 1]} : vector<229x64xf32> to vector<1x64xf32>
    %239 = vector.extract_strided_slice %216 {offsets = [212, 0], sizes = [1, 64], strides = [1, 1]} : vector<229x64xf32> to vector<1x64xf32>
    %240 = vector.extract_strided_slice %216 {offsets = [214, 0], sizes = [1, 64], strides = [1, 1]} : vector<229x64xf32> to vector<1x64xf32>
    %241 = vector.extract_strided_slice %216 {offsets = [224, 0], sizes = [1, 64], strides = [1, 1]} : vector<229x64xf32> to vector<1x64xf32>
    %242 = vector.extract_strided_slice %216 {offsets = [226, 0], sizes = [1, 64], strides = [1, 1]} : vector<229x64xf32> to vector<1x64xf32>
    %243 = vector.extract_strided_slice %216 {offsets = [228, 0], sizes = [1, 64], strides = [1, 1]} : vector<229x64xf32> to vector<1x64xf32>
    %cst_133 = arith.constant 0.000000e+00 : f32
    %244 = vector.broadcast %cst_133 : f32 to vector<1x64xf32>
    %245 = tpu.concatenate %217, %218, %219, %220, %221, %222, %223, %224, %225, %226, %227, %228, %229, %230, %231, %232 in 1 : vector<1x64xf32>, vector<1x64xf32>, vector<1x64xf32>, vector<1x64xf32>, vector<1x64xf32>, vector<1x64xf32>, vector<1x64xf32>, vector<1x64xf32>, vector<1x64xf32>, vector<1x64xf32>, vector<1x64xf32>, vector<1x64xf32>, vector<1x64xf32>, vector<1x64xf32>, vector<1x64xf32>, vector<1x64xf32> -> vector<1x1024xf32>
    %246 = tpu.concatenate %233, %234, %235, %236, %237, %238, %239, %240, %241, %242, %243, %244 in 1 : vector<1x64xf32>, vector<1x64xf32>, vector<1x64xf32>, vector<1x64xf32>, vector<1x64xf32>, vector<1x64xf32>, vector<1x64xf32>, vector<1x64xf32>, vector<1x64xf32>, vector<1x64xf32>, vector<1x64xf32>, vector<1x64xf32> -> vector<1x768xf32>
    %247 = tpu.concatenate %245, %246 in 1 : vector<1x1024xf32>, vector<1x768xf32> -> vector<1x1792xf32>
    %248 = tpu.concatenate %124, %247 in 0 : vector<1x1792xf32>, vector<1x1792xf32> -> vector<2x1792xf32>
    %249 = arith.truncf %248 : vector<2x1792xf32> to vector<2x1792xbf16>
    %c0_134 = arith.constant 0 : index
    %c0_135 = arith.constant 0 : index
    %250 = vector.load %arg6[%c0_134, %c0_135] : memref<1792x512xbf16, #tpu.memory_space<vmem>>, vector<1792x512xbf16>
    %cst_136 = arith.constant dense<0.000000e+00> : vector<2x512xf32>
    %251 = tpu.matmul %249, %250, %cst_136 {dimension_numbers = #tpu.dot_dimension_numbers<[1], [0], [0], [1], [0, 0, 1, 1], [], []>} : vector<2x1792xbf16>, vector<1792x512xbf16>, vector<2x512xf32> -> vector<2x512xf32>
    %c0_137 = arith.constant 0 : index
    %c0_138 = arith.constant 0 : index
    %252 = vector.load %arg7[%c0_137, %c0_138] : memref<1x512xf32, #tpu.memory_space<vmem>>, vector<1x512xf32>
    %253 = vector.broadcast %252 : vector<1x512xf32> to vector<2x512xf32>
    %254 = arith.addf %251, %253 : vector<2x512xf32>
    %cst_139 = arith.constant 0.000000e+00 : f32
    %255 = vector.broadcast %cst_139 : f32 to vector<2x512xf32>
    %256 = arith.maximumf %254, %255 : vector<2x512xf32>
    %257 = arith.truncf %256 : vector<2x512xf32> to vector<2x512xbf16>
    %c0_140 = arith.constant 0 : index
    %c0_141 = arith.constant 0 : index
    %258 = vector.load %arg8[%c0_140, %c0_141] : memref<512x512xbf16, #tpu.memory_space<vmem>>, vector<512x512xbf16>
    %cst_142 = arith.constant dense<0.000000e+00> : vector<2x512xf32>
    %259 = tpu.matmul %257, %258, %cst_142 {dimension_numbers = #tpu.dot_dimension_numbers<[1], [0], [0], [1], [0, 0, 1, 1], [], []>} : vector<2x512xbf16>, vector<512x512xbf16>, vector<2x512xf32> -> vector<2x512xf32>
    %c0_143 = arith.constant 0 : index
    %c0_144 = arith.constant 0 : index
    %260 = vector.load %arg9[%c0_143, %c0_144] : memref<1x512xf32, #tpu.memory_space<vmem>>, vector<1x512xf32>
    %261 = vector.broadcast %260 : vector<1x512xf32> to vector<2x512xf32>
    %262 = arith.addf %259, %261 : vector<2x512xf32>
    %cst_145 = arith.constant 0.000000e+00 : f32
    %263 = vector.broadcast %cst_145 : f32 to vector<2x512xf32>
    %264 = arith.maximumf %262, %263 : vector<2x512xf32>
    %c0_146 = arith.constant 0 : index
    %c0_147 = arith.constant 0 : index
    %265 = vector.load %arg12[%c0_146, %c0_147] : memref<2x512xf32, #tpu.memory_space<vmem>>, vector<2x512xf32>
    tpu.vector_store %arg12[%c0_146, %c0_147], %264 {strides = array<i32>} : memref<2x512xf32, #tpu.memory_space<vmem>>, vector<2x512xf32>,
    %266 = arith.truncf %264 : vector<2x512xf32> to vector<2x512xbf16>
    %c0_148 = arith.constant 0 : index
    %c0_149 = arith.constant 0 : index
    %267 = vector.load %arg10[%c0_148, %c0_149] : memref<512x128xbf16, #tpu.memory_space<vmem>>, vector<512x128xbf16>
    %cst_150 = arith.constant dense<0.000000e+00> : vector<2x128xf32>
    %268 = tpu.matmul %266, %267, %cst_150 {dimension_numbers = #tpu.dot_dimension_numbers<[1], [0], [0], [1], [0, 0, 1, 1], [], []>} : vector<2x512xbf16>, vector<512x128xbf16>, vector<2x128xf32> -> vector<2x128xf32>
    %c0_151 = arith.constant 0 : index
    %c0_152 = arith.constant 0 : index
    %269 = vector.load %arg11[%c0_151, %c0_152] : memref<1x128xf32, #tpu.memory_space<vmem>>, vector<1x128xf32>
    %270 = vector.broadcast %269 : vector<1x128xf32> to vector<2x128xf32>
    %271 = arith.addf %268, %270 : vector<2x128xf32>
    %c0_153 = arith.constant 0 : index
    %c0_154 = arith.constant 0 : index
    %272 = vector.load %arg13[%c0_153, %c0_154] : memref<2x128xf32, #tpu.memory_space<vmem>>, vector<2x128xf32>
    tpu.vector_store %arg13[%c0_153, %c0_154], %271 {strides = array<i32>} : memref<2x128xf32, #tpu.memory_space<vmem>>, vector<2x128xf32>,
    return
  }
  func.func @transform_0(%arg0: i32) -> (i32, i32, i32) {
    %c0_i32 = arith.constant 0 : i32
    %c0_i32_0 = arith.constant 0 : i32
    %c0_i32_1 = arith.constant 0 : i32
    %c0_i32_2 = arith.constant 0 : i32
    return %c0_i32, %c0_i32_0, %c0_i32_1 : i32, i32, i32
  }
  func.func @transform_1(%arg0: i32) -> (i32, i32) {
    %c0_i32 = arith.constant 0 : i32
    %c0_i32_0 = arith.constant 0 : i32
    %c0_i32_1 = arith.constant 0 : i32
    return %c0_i32, %c0_i32_0 : i32, i32
  }
  func.func @transform_2(%arg0: i32) -> (i32, i32) {
    %c0_i32 = arith.constant 0 : i32
    %c0_i32_0 = arith.constant 0 : i32
    %c0_i32_1 = arith.constant 0 : i32
    return %c0_i32, %c0_i32_0 : i32, i32
  }
  func.func @transform_3(%arg0: i32) -> (i32, i32) {
    %c0_i32 = arith.constant 0 : i32
    %c0_i32_0 = arith.constant 0 : i32
    %c0_i32_1 = arith.constant 0 : i32
    return %c0_i32, %c0_i32_0 : i32, i32
  }
  func.func @transform_4(%arg0: i32) -> (i32, i32) {
    %c0_i32 = arith.constant 0 : i32
    %c0_i32_0 = arith.constant 0 : i32
    %c0_i32_1 = arith.constant 0 : i32
    return %c0_i32, %c0_i32_0 : i32, i32
  }
  func.func @transform_5(%arg0: i32) -> (i32, i32) {
    %c0_i32 = arith.constant 0 : i32
    %c0_i32_0 = arith.constant 0 : i32
    %c0_i32_1 = arith.constant 0 : i32
    return %c0_i32, %c0_i32_0 : i32, i32
  }
  func.func @transform_6(%arg0: i32) -> (i32, i32) {
    %c0_i32 = arith.constant 0 : i32
    %c0_i32_0 = arith.constant 0 : i32
    %c0_i32_1 = arith.constant 0 : i32
    return %c0_i32, %c0_i32_0 : i32, i32
  }
  func.func @transform_7(%arg0: i32) -> (i32, i32) {
    %c0_i32 = arith.constant 0 : i32
    %c0_i32_0 = arith.constant 0 : i32
    %c0_i32_1 = arith.constant 0 : i32
    return %c0_i32, %c0_i32_0 : i32, i32
  }
  func.func @transform_8(%arg0: i32) -> (i32, i32) {
    %c0_i32 = arith.constant 0 : i32
    %c0_i32_0 = arith.constant 0 : i32
    %c0_i32_1 = arith.constant 0 : i32
    return %c0_i32, %c0_i32_0 : i32, i32
  }
  func.func @transform_9(%arg0: i32) -> (i32, i32) {
    %c0_i32 = arith.constant 0 : i32
    %c0_i32_0 = arith.constant 0 : i32
    %c0_i32_1 = arith.constant 0 : i32
    return %c0_i32, %c0_i32_0 : i32, i32
  }
  func.func @transform_10(%arg0: i32) -> (i32, i32) {
    %c0_i32 = arith.constant 0 : i32
    %c0_i32_0 = arith.constant 0 : i32
    %c0_i32_1 = arith.constant 0 : i32
    return %c0_i32, %c0_i32_0 : i32, i32
  }
  func.func @transform_11(%arg0: i32) -> (i32, i32) {
    %c0_i32 = arith.constant 0 : i32
    %c0_i32_0 = arith.constant 0 : i32
    %c0_i32_1 = arith.constant 0 : i32
    return %c0_i32, %c0_i32_0 : i32, i32
  }
  func.func @transform_12(%arg0: i32) -> (i32, i32) {
    %c0_i32 = arith.constant 0 : i32
    %c0_i32_0 = arith.constant 0 : i32
    %c0_i32_1 = arith.constant 0 : i32
    return %c0_i32, %c0_i32_0 : i32, i32
  }
}

</mosaic_0001>

<bundles_post_ra>
// kernel: cuboid_classifier_forward.1
= control target key start
LH: loop header
LB: loop body
LE: loop exit
PB: predicated region body
PF: predicated region fallthrough
CT: control target
= control target key end

     0   :  { %18 = vsyncpa [#allocation4], 0  ;;  %vm177_vm0 = vcmask 1043456   ;;  %vm152_vm1 = vcmask 64512   ;;  %vm43_vm2 = vcmask 261120   ;;  %v15641_v7 = vmov 0.0   ;;  %s15628_s0 = inlined_call_operand.vmem [shape: bf16[2,125,8], index: 0, kind: input, shape index: {}]   ;;  %s15629_s1 = inlined_call_operand.vmem [shape: bf16[8,32], index: 1, kind: input, shape index: {}]   ;;  %s15630_s2 = inlined_call_operand.vmem [shape: f32[1,32], index: 2, kind: input, shape index: {}]   ;;  %s15631_s3 = inlined_call_operand.vmem [shape: bf16[256,64], index: 3, kind: input, shape index: {}]   ;;  %s15632_s4 = inlined_call_operand.vmem [shape: f32[1,64], index: 4, kind: input, shape index: {}]   ;;  %s15633_s5 = inlined_call_operand.vmem [shape: bf16[1792,512], index: 5, kind: input, shape index: {}]   ;;  %s15634_s6 = inlined_call_operand.vmem [shape: f32[1,512], index: 6, kind: input, shape index: {}]   ;;  %s15635_s7 = inlined_call_operand.vmem [shape: bf16[512,512], index: 7, kind: input, shape index: {}]   ;;  %s15636_s8 = inlined_call_operand.vmem [shape: f32[1,512], index: 8, kind: input, shape index: {}]   ;;  %s15637_s9 = inlined_call_operand.vmem [shape: bf16[512,128], index: 9, kind: input, shape index: {}]   ;;  %s15638_s10 = inlined_call_operand.vmem [shape: f32[1,128], index: 10, kind: input, shape index: {}]   ;;  %s15639_s11 = inlined_call_operand.hbm [shape: f32[2,512], index: 11, kind: output, shape index: {0}]   ;;  %s15640_s12 = inlined_call_operand.hbm [shape: f32[2,128], index: 12, kind: output, shape index: {1}]  }
   0x1   :  { %v104_v0 = vld [vmem:[%s15629_s1] sm:$0xf]  ;;  %v9690_v3 = vld [vmem:[%s15628_s0 + $0x8] sm:$0xff]   ;;  %v9691_v6 = vld [vmem:[%s15628_s0 + $0x10] sm:$0xff]   ;;  %44 = vst.msk [vmem:[#allocation2] sm:$0xff] %vm43_vm2, %v15641_v7  ;;  %s10704_s20 = smov 32  }
   0x2   :  { %v9689_v1 = vld [vmem:[%s15628_s0] sm:$0xff]   ;;  %9619 = vmatprep.subr.msk.bf16.mxu0 %vm177_vm0, %v104_v0  ;;  %v179_v2 = vsel %vm177_vm0, %v104_v0, 0  ;;  %45 = vst.msk [vmem:[#allocation2 + $0x8] sm:$0xff] %vm43_vm2, %v15641_v7  ;;  %46 = vst.msk [vmem:[#allocation2 + $0x10] sm:$0xff] %vm43_vm2, %v15641_v7  ;;  %v9692_v8 = vld [vmem:[%s15628_s0 + $0x18] sm:$0xff]   ;;  %s10705_s21 = smov 64  }
   0x3   :  { %9520 = vmatpush3.bf16.msra.mxu0 %v179_v2  ;;  %9521 = vmatprep.mubr.msk.bf16.mxu0 %vm152_vm1, %v9689_v1  ;;  %v2092_v4 = vld [vmem:[%s15629_s1] sm:$0xf]  ;;  %47 = vst.msk [vmem:[#allocation2 + $0x18] sm:$0xff] %vm43_vm2, %v15641_v7  ;;  %48 = vst.msk [vmem:[#allocation2 + $0x20] sm:$0xff] %vm43_vm2, %v15641_v7  ;;  %v9694_v15 = vld [vmem:[%s15628_s0 + $0x28] sm:$0xff]   ;;  %s10706_s24 = smov 96  }
   0x4   :  { %9620 = vmatprep.subr.msk.bf16.mxu0 %vm177_vm0, %v2092_v4  ;;  %v2165_v5 = vsel %vm177_vm0, %v2092_v4, 0  ;;  %49 = vst.msk [vmem:[#allocation2 + $0x28] sm:$0xff] %vm43_vm2, %v15641_v7  ;;  %50 = vst.msk [vmem:[#allocation2 + $0x30] sm:$0xff] %vm43_vm2, %v15641_v7  ;;  %v9693_v9 = vld [vmem:[%s15628_s0 + $0x20] sm:$0xff]   ;;  %v9695_v16 = vld [vmem:[%s15628_s0 + $0x30] sm:$0xff]   ;;  %v15642_v50 = vmov 0  }
   0x5   :  { %51 = vst.msk [vmem:[#allocation2 + $0x38] sm:$0xff] %vm43_vm2, %v15641_v7  ;;  %52 = vst.msk [vmem:[#allocation2 + $0x40] sm:$0xff] %vm43_vm2, %v15641_v7  ;;  %v9696_v25 = vld [vmem:[%s15628_s0 + $0x38] sm:$0x7f]   ;;  %v9697_v27 = vld [vmem:[%s15628_s0 + $0x40] sm:$0xff]   ;;  %1356 = vmatprep.subr.bf16.mxu1 %v15642_v50  ;;  %vm304_vm3 = vcmask 257024  }
   0x6   :  { %9522 = vmatmul.mubr.msk.bf16.vlgmr.msra.gmra.mrb[0].mxu0 %vm152_vm1, %v9690_v3  ;;  %53 = vst.msk [vmem:[#allocation2 + $0x48] sm:$0xff] %vm43_vm2, %v15641_v7  ;;  %54 = vst.msk [vmem:[#allocation2 + $0x50] sm:$0xff] %vm43_vm2, %v15641_v7  ;;  %v9698_v32 = vld [vmem:[%s15628_s0 + $0x48] sm:$0xff]   ;;  %v9699_v33 = vld [vmem:[%s15628_s0 + $0x50] sm:$0xff]   ;;  %vm306_vm4 = vcmask 261124   ;;  %vm294_vm5 = vcmask 258048  }
   0x7   :  { %55 = vst.msk [vmem:[#allocation2 + $0x58] sm:$0xff] %vm43_vm2, %v15641_v7  ;;  %56 = vst.msk [vmem:[#allocation2 + $0x60] sm:$0xff] %vm43_vm2, %v15641_v7  ;;  %9538 = vmatpush3.bf16.msra.mxu0 %v2165_v5  ;;  %9525 = vmatprep.mubr.msk.bf16.mxu0 %vm152_vm1, %v9691_v6  ;;  %v9700_v37 = vld [vmem:[%s15628_s0 + $0x58] sm:$0xff]   ;;  %v9701_v38 = vld [vmem:[%s15628_s0 + $0x60] sm:$0xff]   ;;  %vm296_vm6 = vcmask 261125   ;;  %vm308_vm7 = vcmask 253952  }
   0x8   :  { %57 = vst.msk [vmem:[#allocation2 + $0x68] sm:$0xff] %vm43_vm2, %v15641_v7  ;;  %58 = vst.msk [vmem:[#allocation2 + $0x70] sm:$0xff] %vm43_vm2, %v15641_v7  ;;  %v9702_v40 = vld [vmem:[%s15628_s0 + $0x68] sm:$0xff]   ;;  %v9703_v47 = vld [vmem:[%s15628_s0 + $0x70] sm:$0xff]   ;;  %3328 = vmatprep.subr.bf16.mxu0 %v15642_v50  ;;  %vm310_vm8 = vcmask 259073   ;;  %vm312_vm9 = vcmask 261126  }
   0x9   :  { %59 = vst.msk [vmem:[#allocation2 + $0x78] sm:$0xff] %vm43_vm2, %v15641_v7  ;;  %60 = vst.msk [vmem:[#allocation2 + $0x80] sm:$0xff] %vm43_vm2, %v15641_v7  ;;  %v2371_v10 = vld [vmem:[#allocation2 + $0x1] sm:$0xff]  ;;  %v2372_v11 = vld [vmem:[#allocation2 + $0x9] sm:$0xff]  ;;  %vm298_vm10 = vcmask 254976   ;;  %vm300_vm11 = vcmask 260098  }
   0xa   :  { %61 = vst.msk [vmem:[#allocation2 + $0x88] sm:$0xff] %vm43_vm2, %v15641_v7  ;;  %62 = vst.msk [vmem:[#allocation2 + $0x90] sm:$0xff] %vm43_vm2, %v15641_v7  ;;  %v2425_v12 = vld [vmem:[#allocation2 + $0x7] sm:$0xff]  ;;  %v2407_v13 = vpack.c.bf16 %v2372_v11, %v2371_v10  ;;  %v2426_v14 = vld [vmem:[#allocation2 + $0xf] sm:$0xff]  ;;  %vm302_vm12 = vcmask 261127   ;;  %vm314_vm13 = vcmask 256000  }
   0xb   :  { %63 = vst.msk [vmem:[#allocation2 + $0x98] sm:$0xff] %vm43_vm2, %v15641_v7  ;;  %64 = vst.msk [vmem:[#allocation2 + $0xa0] sm:$0xff] %vm43_vm2, %v15641_v7  ;;  %v2461_v17 = vpack.c.bf16 %v2426_v14, %v2425_v12  ;;  %v2318_v18 = vld [vmem:[#allocation2 + $0x8] sm:$0xff]  ;;  %v2319_v19 = vld [vmem:[#allocation2 + $0x10] sm:$0xff]  ;;  %vm316_vm14 = vcmask 261123  }
   0xc   :  { %65 = vst.msk [vmem:[#allocation2 + $0xa8] sm:$0xff] %vm43_vm2, %v15641_v7  ;;  %66 = vst.msk [vmem:[#allocation2 + $0xb0] sm:$0xff] %vm43_vm2, %v15641_v7  ;;  %2613 = vrot.lane.b32.xlu0 %v2407_v13, %s10704_s20  ;;  %v2320_v20 = vld [vmem:[#allocation2 + $0x18] sm:$0xff]  ;;  %v2481_v24 = vpack.c.bf16 %v2319_v19, %v2318_v18  ;;  %v2321_v30 = vld [vmem:[#allocation2 + $0x20] sm:$0xff] }
   0xd   :  { %67 = vst.msk [vmem:[#allocation2 + $0xb8] sm:$0xff] %vm43_vm2, %v15641_v7  ;;  %68 = vst.msk [vmem:[#allocation2 + $0xc0] sm:$0xff] %vm43_vm2, %v15641_v7  ;;  %693 = vrot.lane.b32.xlu1 %v2461_v17, %s10705_s21  ;;  %v2373_v21 = vld [vmem:[#allocation2 + $0x11] sm:$0xff]  ;;  %v2374_v22 = vld [vmem:[#allocation2 + $0x19] sm:$0xff]  ;;  %v10894_v23 = vpack.c.bf16 %v2320_v20, %v2319_v19  ;;  %v2482_v34 = vpack.c.bf16 %v2321_v30, %v2320_v20 }
   0xe   :  { %69 = vst.msk [vmem:[#allocation2 + $0xc8] sm:$0xff] %vm43_vm2, %v15641_v7  ;;  %70 = vst.msk [vmem:[#allocation2 + $0xd0] sm:$0xff] %vm43_vm2, %v15641_v7  ;;  %9526 = vmatmul.mubr.msk.bf16.gmra.mrb[4].mxu0 %vm152_vm1, %v9692_v8  ;;  %v2408_v26 = vpack.c.bf16 %v2374_v22, %v2373_v21  ;;  %v2427_v28 = vld [vmem:[#allocation2 + $0x17] sm:$0xff]  ;;  %v2428_v29 = vld [vmem:[#allocation2 + $0x1f] sm:$0xff] }
   0xf   :  { %71 = vst.msk [vmem:[#allocation2 + $0xd8] sm:$0xff] %vm43_vm2, %v15641_v7  ;;  %72 = vst.msk [vmem:[#allocation2 + $0xe0] sm:$0xff] %vm43_vm2, %v15641_v7  ;;  %9529 = vmatprep.mubr.msk.bf16.mxu0 %vm152_vm1, %v9693_v9  ;;  %v2462_v31 = vpack.c.bf16 %v2428_v29, %v2427_v28  ;;  %v2429_v35 = vld [vmem:[#allocation2 + $0x27] sm:$0xff]  ;;  %v2430_v36 = vld [vmem:[#allocation2 + $0x2f] sm:$0xff] }
  0x10   :  { %73 = vst.msk [vmem:[#allocation2 + $0xe8] sm:$0xff] %vm43_vm2, %v15641_v7  ;;  %74 = vst.msk [vmem:[#allocation2 + $0xf0] sm:$0xff] %vm43_vm2, %v15641_v7  ;;  %2667 = vrot.lane.b32.xlu0 %v2461_v17, %s10705_s21  ;;  %v2463_v39 = vpack.c.bf16 %v2430_v36, %v2429_v35  ;;  %v2375_v41 = vld [vmem:[#allocation2 + $0x21] sm:$0xff]  ;;  %v2376_v42 = vld [vmem:[#allocation2 + $0x29] sm:$0xff] }
  0x11   :  { %75 = vst.msk [vmem:[#allocation2 + $0xf8] sm:$0xff] %vm43_vm2, %v15641_v7  ;;  %76 = vst.msk [vmem:[#allocation2 + $0x100] sm:$0xff] %vm43_vm2, %v15641_v7  ;;  %747 = vrot.lane.b32.xlu1 %v2481_v24, %s10706_s24  ;;  %v2409_v43 = vpack.c.bf16 %v2376_v42, %v2375_v41  ;;  %v2322_v44 = vld [vmem:[#allocation2 + $0x28] sm:$0xff]  ;;  %v2323_v45 = vld [vmem:[#allocation2 + $0x30] sm:$0xff] }
  0x12   :  { %77 = vst.msk [vmem:[#allocation2 + $0x108] sm:$0xff] %vm43_vm2, %v15641_v7  ;;  %78 = vst.msk [vmem:[#allocation2 + $0x110] sm:$0xff] %vm43_vm2, %v15641_v7  ;;  %v2483_v46 = vpack.c.bf16 %v2323_v45, %v2322_v44  ;;  %v9704_v48 = vld [vmem:[%s15628_s0 + $0x78] sm:$0x7f]   ;;  %v9705_v49 = vld [vmem:[%s15631_s3] sm:$0xff]  }
  0x13   :  { %79 = vst.msk [vmem:[#allocation2 + $0x118] sm:$0xff] %vm43_vm2, %v15641_v7  ;;  %80 = vst.msk [vmem:[#allocation2 + $0x120] sm:$0xff] %vm43_vm2, %v15641_v7  ;;  %1357 = vmatpush1.bf16.msra.mxu1 %v9705_v49  ;;  %v9706_v51 = vld [vmem:[%s15631_s3 + $0x8] sm:$0xff]   ;;  %v9707_v52 = vld [vmem:[%s15631_s3 + $0x10] sm:$0xff]  }
  0x14   :  { %81 = vst.msk [vmem:[#allocation2 + $0x128] sm:$0xff] %vm43_vm2, %v15641_v7  ;;  %82 = vst.msk [vmem:[#allocation2 + $0x130] sm:$0xff] %vm43_vm2, %v15641_v7  ;;  %639 = vrot.lane.b32.xlu0 %v2407_v13, %s10704_s20  ;;  %1358 = vmatprep.subr.bf16.mxu1 %v15642_v50  ;;  %v9708_v53 = vld [vmem:[%s15631_s3 + $0x18] sm:$0xff]   ;;  %v9709_v54 = vld [vmem:[%s15631_s3 + $0x20] sm:$0xff]  }
  0x15   :  { %83 = vst.msk [vmem:[#allocation2 + $0x138] sm:$0xff] %vm43_vm2, %v15641_v7  ;;  %84 = vst.msk [vmem:[#allocation2 + $0x140] sm:$0xff] %vm43_vm2, %v15641_v7  ;;  %2615 = vrot.lane.b32.xlu1 %v2408_v26, %s10704_s20  ;;  %v9710_v55 = vld [vmem:[%s15631_s3 + $0x28] sm:$0xff]   ;;  %v9711_v56 = vld [vmem:[%s15631_s3 + $0x30] sm:$0xff]  }
  0x16   :  { %85 = vst.msk [vmem:[#allocation2 + $0x148] sm:$0xff] %vm43_vm2, %v15641_v7  ;;  %9530 = vmatmul.mubr.msk.bf16.gmra.mrb[8].mxu0 %vm152_vm1, %v9694_v15  ;;  %v9712_v57 = vld [vmem:[%s15631_s3 + $0x38] sm:$0xff]   ;;  %v9713_v58 = vld [vmem:[%s15631_s3 + $0x40] sm:$0xff]   ;;  %v9714_v59 = vld [vmem:[%s15631_s3 + $0x48] sm:$0xff]  }
  0x17   :  { %9533 = vmatprep.mubr.msk.bf16.mxu0 %vm152_vm1, %v9695_v16  ;;  %1359 = vmatpush1.bf16.msra.mxu1 %v9706_v51  ;;  %v10995_v60 = vld [vmem:[%s15630_s2] ss:$0 sm:$0xff]  ;;  %v9715_v61 = vld [vmem:[%s15631_s3 + $0x50] sm:$0xff]   ;;  %v9716_v9 = vld [vmem:[%s15631_s3 + $0x58] sm:$0xff]  }
  0x18   :  { %2721 = vrot.lane.b32.xlu0 %v2481_v24, %s10706_s24  ;;  %1360 = vmatprep.subr.bf16.mxu1 %v15642_v50  ;;  %v9717_v12 = vld [vmem:[%s15631_s3 + $0x60] sm:$0xff]   ;;  %v9718_v21 = vld [vmem:[%s15631_s3 + $0x68] sm:$0xff]  }
  0x19   :  { %695 = vrot.lane.b32.xlu1 %v2462_v31, %s10705_s21  ;;  %v11035_v29 = vld [vmem:[#allocation2 + $0x60] sm:$0xff] }
  0x1a   :  { %15730 = vst [vmem:[#allocation9_spill] sm:$0xff] %v11035_v29  ;;  %v11047_v35 = vld [vmem:[#allocation2 + $0x5a] sm:$0xff] }
  0x1b   :  { %1361 = vmatpush1.bf16.msra.mxu1 %v9707_v52 }
  0x1c   :  { %2669 = vrot.lane.b32.xlu0 %v2462_v31, %s10705_s21  ;;  %1362 = vmatprep.subr.bf16.mxu1 %v15642_v50 }
  0x1d   :  { %749 = vrot.lane.b32.xlu1 %v2482_v34, %s10706_s24 }
  0x1e   :  { %9534 = vmatmul.mubr.msk.bf16.gmra.mrb[12].mxu0 %vm152_vm1, %v9696_v25  ;;  %v11030_v25 = vld [vmem:[#allocation2 + $0x31] sm:$0xff] }
  0x1f   :  { %9539 = vmatprep.mubr.msk.bf16.mxu0 %vm152_vm1, %v9697_v27  ;;  %1363 = vmatpush1.bf16.msra.mxu1 %v9708_v53 }
  0x20   :  { %641 = vrot.lane.b32.xlu0 %v2408_v26, %s10704_s20  ;;  %1364 = vmatprep.subr.bf16.mxu1 %v15642_v50 }
  0x21   :  { %2617 = vrot.lane.b32.xlu1 %v2409_v43, %s10704_s20 }
  0x23   :  { %1365 = vmatpush1.bf16.msra.mxu1 %v9709_v54 }
  0x24   :  { %2723 = vrot.lane.b32.xlu0 %v2482_v34, %s10706_s24  ;;  %1366 = vmatprep.subr.bf16.mxu1 %v15642_v50 }
  0x25   :  { %697 = vrot.lane.b32.xlu1 %v2463_v39, %s10705_s21 }
  0x26   :  { %9540 = vmatmul.mubr.msk.bf16.vlgmr.msra.gmra.mrb[16].mxu0 %vm152_vm1, %v9698_v32 }
  0x27   :  { %9543 = vmatprep.mubr.msk.bf16.mxu0 %vm152_vm1, %v9699_v33  ;;  %1367 = vmatpush1.bf16.msra.mxu1 %v9710_v55 }
  0x28   :  { %2671 = vrot.lane.b32.xlu0 %v2463_v39, %s10705_s21  ;;  %1368 = vmatprep.subr.bf16.mxu1 %v15642_v50  ;;  %v11057_v39 = vld [vmem:[#allocation2 + $0x61] sm:$0xff] }
  0x29   :  { %751 = vrot.lane.b32.xlu1 %v2483_v46, %s10706_s24 }
  0x2b   :  { %1369 = vmatpush1.bf16.msra.mxu1 %v9711_v56 }
  0x2c   :  { %643 = vrot.lane.b32.xlu0 %v2409_v43, %s10704_s20  ;;  %1370 = vmatprep.subr.bf16.mxu1 %v15642_v50  ;;  %v11064_v43 = vld [vmem:[#allocation2 + $0x91] sm:$0xff] }
  0x2e   :  { %9544 = vmatmul.mubr.msk.bf16.gmra.mrb[20].mxu0 %vm152_vm1, %v9700_v37 }
  0x2f   :  { %9547 = vmatprep.mubr.msk.bf16.mxu0 %vm152_vm1, %v9701_v38  ;;  %1371 = vmatpush1.bf16.msra.mxu1 %v9712_v57 }
  0x30   :  { %2725 = vrot.lane.b32.xlu0 %v2483_v46, %s10706_s24  ;;  %1372 = vmatprep.subr.bf16.mxu1 %v15642_v50 }
  0x33   :  { %1373 = vmatpush1.bf16.msra.mxu1 %v9713_v58 }
  0x34   :  { %1374 = vmatprep.subr.bf16.mxu1 %v15642_v50 }
  0x36   :  { %9548 = vmatmul.mubr.msk.bf16.gmra.mrb[24].mxu0 %vm152_vm1, %v9702_v40 }
  0x37   :  { %9551 = vmatprep.mubr.msk.bf16.mxu0 %vm152_vm1, %v9703_v47  ;;  %1375 = vmatpush1.bf16.msra.mxu1 %v9714_v59 }
  0x38   :  { %1376 = vmatprep.subr.bf16.mxu1 %v15642_v50 }
  0x3b   :  { %1377 = vmatpush1.bf16.msra.mxu1 %v9715_v61 }
  0x3c   :  { %1378 = vmatprep.subr.bf16.mxu1 %v15642_v50 }
  0x3e   :  { %9552 = vmatmul.mubr.msk.bf16.gmra.mrb[28].mxu0 %vm152_vm1, %v9704_v48 }
  0x3f   :  { %1379 = vmatpush1.bf16.msra.mxu1 %v9716_v9 }
  0x40   :  { %1380 = vmatprep.subr.bf16.mxu1 %v15642_v50 }
  0x43   :  { %1381 = vmatpush1.bf16.msra.mxu1 %v9717_v12 }
  0x44   :  { %1382 = vmatprep.subr.bf16.mxu1 %v15642_v50 }
  0x47   :  { %1383 = vmatpush1.bf16.msra.mxu1 %v9718_v21 }
  0x48   :  { %1384 = vmatprep.subr.bf16.mxu1 %v15642_v50 }
  0xd9   :  { %v9523_v62 = vpop.f32.mrb[0].mxu0 }
  0xda   :  { %v224_v63 = vadd.f32 %v9523_v62, %v10995_v60  ;;  %v215_v0 = vpop.f32.mrb[1].mxu0 }
  0xdb   :  { %v216_v1 = vadd.f32 %v10995_v60, %v215_v0  ;;  %v9524_v2 = vpop.f32.mrb[2].mxu0 }
  0xdc   :  { %v280_v3 = vmax.f32 %v224_v63, 0.0  ;;  %v227_v4 = vadd.f32 %v9524_v2, %v10995_v60  ;;  %v218_v5 = vpop.f32.mrb[3].mxu0 }
  0xdd   :  { %v278_v6 = vmax.f32 %v216_v1, 0.0  ;;  %v219_v8 = vadd.f32 %v10995_v60, %v218_v5 }
  0xde   :  { %305 = vst.msk [vmem:[#allocation2 + $0x4f] sm:$0xf] %vm304_vm3, %v280_v3  ;;  %v281_v10 = vmax.f32 %v227_v4, 0.0 }
  0xdf   :  { %307 = vst.msk [vmem:[#allocation2 + $0x51] sm:$0xf0] %vm306_vm4, %v280_v3  ;;  %v279_v11 = vmax.f32 %v219_v8, 0.0 }
  0xe0   :  { %295 = vst.msk [vmem:[#allocation2 + $0x39] sm:$0x1f] %vm294_vm5, %v278_v6 }
  0xe1   :  { %297 = vst.msk [vmem:[#allocation2 + $0x3b] sm:$0xe0] %vm296_vm6, %v278_v6  ;;  %v9527_v13 = vpop.f32.mrb[4].mxu0  ;;  %v11111_v6 = vld [vmem:[#allocation2 + $0x62] sm:$0xff] }
  0xe2   :  { %309 = vst.msk [vmem:[#allocation2 + $0x59] sm:$0x1] %vm308_vm7, %v281_v10  ;;  %v240_v14 = vadd.f32 %v9527_v13, %v10995_v60  ;;  %v231_v15 = vpop.f32.mrb[5].mxu0 }
  0xe3   :  { %311 = vst.msk [vmem:[#allocation2 + $0x69] sm:$0x3e] %vm310_vm8, %v281_v10  ;;  %v232_v16 = vadd.f32 %v10995_v60, %v231_v15  ;;  %v9528_v17 = vpop.f32.mrb[6].mxu0 }
  0xe4   :  { %313 = vst.msk [vmem:[#allocation2 + $0x6b] sm:$0xc0] %vm312_vm9, %v281_v10  ;;  %v284_v18 = vmax.f32 %v240_v14, 0.0  ;;  %v243_v19 = vadd.f32 %v9528_v17, %v10995_v60  ;;  %v234_v20 = vpop.f32.mrb[7].mxu0  ;;  %v11126_v14 = vld [vmem:[#allocation2 + $0x90] sm:$0xff] }
  0xe5   :  { %299 = vst.msk [vmem:[#allocation2 + $0x43] sm:$0x3] %vm298_vm10, %v279_v11  ;;  %v282_v22 = vmax.f32 %v232_v16, 0.0  ;;  %v235_v24 = vadd.f32 %v10995_v60, %v234_v20  ;;  %15739 = vst [vmem:[#allocation18_spill] sm:$0xff] %v11126_v14 }
  0xe6   :  { %301 = vst.msk [vmem:[#allocation2 + $0x45] sm:$0x7c] %vm300_vm11, %v279_v11  ;;  %321 = vst.msk [vmem:[#allocation2 + $0x99] sm:$0x7c] %vm300_vm11, %v284_v18  ;;  %v285_v26 = vmax.f32 %v243_v19, 0.0  ;;  %v11094_v0 = vld [vmem:[#allocation2 + $0x50] sm:$0xff] }
  0xe7   :  { %303 = vst.msk [vmem:[#allocation2 + $0x47] sm:$0x80] %vm302_vm12, %v279_v11  ;;  %322 = vst.msk [vmem:[#allocation2 + $0x9b] sm:$0x80] %vm302_vm12, %v284_v18  ;;  %v536_v27 = vld [vmem:[#allocation2 + $0x32] sm:$0xff]  ;;  %v283_v30 = vmax.f32 %v235_v24, 0.0 }
  0xe8   :  { %320 = vst.msk [vmem:[#allocation2 + $0x89] sm:$0x3] %vm298_vm10, %v284_v18  ;;  %v537_v28 = vld [vmem:[#allocation2 + $0x3a] sm:$0xff]  ;;  %15736 = vst [vmem:[#allocation15_spill] sm:$0xff] %v11094_v0  ;;  %v11144_v24 = vld [vmem:[#allocation2 + $0x51] sm:$0xff] }
  0xe9   :  { %315 = vst.msk [vmem:[#allocation2 + $0x73] sm:$0x7] %vm314_vm13, %v282_v22  ;;  %v572_v31 = vpack.c.bf16 %v537_v28, %v536_v27  ;;  %v11039_v32 = vld [vmem:[#allocation2 + $0x39] sm:$0xff]  ;;  %v9531_v37 = vpop.f32.mrb[8].mxu0 }
  0xea   :  { %317 = vst.msk [vmem:[#allocation2 + $0x75] sm:$0xf8] %vm316_vm14, %v282_v22  ;;  %v11045_v33 = vpack.c.bf16 %v11039_v32, %v11030_v25  ;;  %v540_v34 = vld [vmem:[#allocation2 + $0x52] sm:$0xff]  ;;  %v11049_v36 = vld [vmem:[#allocation2 + $0x68] sm:$0xff]  ;;  %v256_v41 = vadd.f32 %v9531_v37, %v10995_v60  ;;  %v247_v42 = vpop.f32.mrb[9].mxu0 }
  0xeb   :  { %323 = vst.msk [vmem:[#allocation2 + $0xa3] sm:$0xf] %vm304_vm3, %v285_v26  ;;  %15731 = vst [vmem:[#allocation10_spill] sm:$0xff] %v11049_v36  ;;  %801 = vrot.lane.b32.xlu1 %v572_v31, %s10704_s20  ;;  %v11055_v38 = vld [vmem:[#allocation2 + $0x59] sm:$0xff]  ;;  %v248_v44 = vadd.f32 %v10995_v60, %v247_v42  ;;  %v9532_v45 = vpop.f32.mrb[10].mxu0  ;;  %v574_v46 = vpack.c.bf16 %v11047_v35, %v540_v34  ;;  %v11070_v48 = vld [vmem:[#allocation2 + $0x69] sm:$0xff] }
  0xec   :  { %324 = vst.msk [vmem:[#allocation2 + $0xa5] sm:$0xf0] %vm306_vm4, %v285_v26  ;;  %645 = vrot.lane.b32.xlu0 %v11045_v33, %s10704_s20  ;;  %v288_v51 = vmax.f32 %v256_v41, 0.0  ;;  %v259_v52 = vadd.f32 %v9532_v45, %v10995_v60  ;;  %v250_v53 = vpop.f32.mrb[11].mxu0  ;;  %v605_v54 = vpack.c.bf16 %v11057_v39, %v11055_v38  ;;  %v11077_v55 = vld [vmem:[#allocation2 + $0x58] sm:$0xff]  ;;  %v11081_v56 = vpack.c.bf16 %v11070_v48, %v11057_v39  ;;  %v543_v8 = vld [vmem:[#allocation2 + $0x6a] sm:$0xff] }
  0xed   :  { %318 = vst.msk [vmem:[#allocation2 + $0x7f] sm:$0x1f] %vm294_vm5, %v283_v30  ;;  %v11068_v47 = vld [vmem:[#allocation2 + $0x40] sm:$0xff]  ;;  %15734 = vst [vmem:[#allocation13_spill] sm:$0xff] %v11077_v55  ;;  %v286_v58 = vmax.f32 %v248_v44, 0.0  ;;  %v251_v59 = vadd.f32 %v10995_v60, %v250_v53  ;;  %v11109_v5 = vpack.c.bf16 %v11035_v29, %v11077_v55  ;;  %v11156_v31 = vld [vmem:[#allocation2 + $0x38] sm:$0xff]  ;;  %v575_v42 = vpack.c.bf16 %v543_v8, %v11111_v6 }
  0xee   :  { %319 = vst.msk [vmem:[#allocation2 + $0x81] sm:$0xe0] %vm296_vm6, %v283_v30  ;;  %15732 = vst [vmem:[#allocation11_spill] sm:$0xff] %v11068_v47  ;;  %v11072_v49 = vld [vmem:[#allocation2 + $0x48] sm:$0xff]  ;;  %v11083_v57 = vld [vmem:[#allocation2 + $0x99] sm:$0xff]  ;;  %v289_v63 = vmax.f32 %v259_v52, 0.0  ;;  %v11207_v7 = vpack.c.bf16 %v11068_v47, %v11156_v31 }
  0xef   :  { %15733 = vst [vmem:[#allocation12_spill] sm:$0xff] %v11072_v49  ;;  %805 = vrot.lane.b32.xlu1 %v574_v46, %s10704_s20  ;;  %v11087_v61 = vld [vmem:[#allocation2 + $0x41] sm:$0xff]  ;;  %330 = vst.msk [vmem:[#allocation2 + $0xd3] sm:$0x1f] %vm294_vm5, %v288_v51  ;;  %v11100_v2 = vpack.c.bf16 %v11083_v57, %v11064_v43  ;;  %v287_v4 = vmax.f32 %v251_v59, 0.0  ;;  %v11122_v12 = vld [vmem:[#allocation2 + $0x49] sm:$0xff] }
  0xf0   :  { %331 = vst.msk [vmem:[#allocation2 + $0xd5] sm:$0xe0] %vm296_vm6, %v288_v51  ;;  %899 = vrot.lane.b32.xlu0 %v605_v54, %s10706_s24  ;;  %v603_v11 = vpack.c.bf16 %v11087_v61, %v11039_v32  ;;  %v11124_v13 = vld [vmem:[#allocation2 + $0x67] sm:$0xff]  ;;  %v11138_v19 = vld [vmem:[#allocation2 + $0x6f] sm:$0xff]  ;;  %15742 = vst [vmem:[#allocation21_spill] sm:$0xff] %v11156_v31  ;;  %v604_v53 = vpack.c.bf16 %v11144_v24, %v11122_v12 }
  0xf1   :  { %v11089_v62 = vld [vmem:[#allocation2 + $0x77] sm:$0xff]  ;;  %15737 = vst [vmem:[#allocation16_spill] sm:$0xff] %v11100_v2  ;;  %325 = vst.msk [vmem:[#allocation2 + $0xad] sm:$0x1] %vm308_vm7, %v286_v58  ;;  %v9535_v16 = vpop.f32.mrb[12].mxu0  ;;  %v538_v40 = vld [vmem:[#allocation2 + $0x42] sm:$0xff] }
  0xf2   :  { %15735 = vst [vmem:[#allocation14_spill] sm:$0xff] %v11089_v62  ;;  %v11102_v3 = vld [vmem:[#allocation2 + $0xa1] sm:$0xff]  ;;  %326 = vst.msk [vmem:[#allocation2 + $0xaf] sm:$0x3e] %vm310_vm8, %v286_v58  ;;  %v11134_v17 = vld [vmem:[#allocation2 + $0x71] sm:$0xff]  ;;  %v272_v21 = vadd.f32 %v9535_v16, %v10995_v60  ;;  %v263_v22 = vpop.f32.mrb[13].mxu0 }
  0xf3   :  { %327 = vst.msk [vmem:[#allocation2 + $0xb1] sm:$0xc0] %vm312_vm9, %v286_v58  ;;  %845 = vrot.lane.b32.xlu1 %v11109_v5, %s10705_s21  ;;  %v11146_v26 = vld [vmem:[#allocation2 + $0x70] sm:$0xff]  ;;  %v11158_v32 = vld [vmem:[#allocation2 + $0xa0] sm:$0xff]  ;;  %v264_v37 = vadd.f32 %v10995_v60, %v263_v22  ;;  %v9536_v41 = vpop.f32.mrb[14].mxu0  ;;  %v11175_v59 = vld [vmem:[#allocation2 + $0x98] sm:$0xff] }
  0xf4   :  { %332 = vst.msk [vmem:[#allocation2 + $0xdd] sm:$0x3] %vm298_vm10, %v289_v63  ;;  %v11136_v18 = vld [vmem:[#allocation2 + $0x79] sm:$0xff]  ;;  %895 = vrot.lane.b32.xlu0 %v603_v11, %s10706_s24  ;;  %15740 = vst [vmem:[#allocation19_spill] sm:$0xff] %v11146_v26  ;;  %v292_v46 = vmax.f32 %v272_v21, 0.0  ;;  %v275_v51 = vadd.f32 %v9536_v41, %v10995_v60  ;;  %v266_v52 = vpop.f32.mrb[15].mxu0  ;;  %v11211_v1 = vpack.c.bf16 %v11158_v32, %v11175_v59 }
  0xf5   :  { %v11115_v10 = vld [vmem:[#allocation2 + $0x7f] sm:$0xff]  ;;  %333 = vst.msk [vmem:[#allocation2 + $0xdf] sm:$0x7c] %vm300_vm11, %v289_v63  ;;  %v11154_v30 = vpack.c.bf16 %v11136_v18, %v11134_v17  ;;  %15743 = vst [vmem:[#allocation22_spill] sm:$0xff] %v11158_v32  ;;  %v11173_v58 = vld [vmem:[#allocation2 + $0x88] sm:$0xff]  ;;  %v290_v8 = vmax.f32 %v264_v37, 0.0  ;;  %v267_v11 = vadd.f32 %v10995_v60, %v266_v52  ;;  %v11431_v2 = vpack.c.bf16 %v11146_v26, %v11049_v36 }
  0xf6   :  { %15738 = vst [vmem:[#allocation17_spill] sm:$0xff] %v11115_v10  ;;  %334 = vst.msk [vmem:[#allocation2 + $0xe1] sm:$0x80] %vm302_vm12, %v289_v63  ;;  %v11148_v27 = vld [vmem:[#allocation2 + $0x78] sm:$0xff]  ;;  %v11164_v44 = vld [vmem:[#allocation2 + $0x81] sm:$0xff]  ;;  %v293_v16 = vmax.f32 %v275_v51, 0.0 }
  0xf7   :  { %328 = vst.msk [vmem:[#allocation2 + $0xb9] sm:$0x7] %vm314_vm13, %v287_v4  ;;  %15741 = vst [vmem:[#allocation20_spill] sm:$0xff] %v11148_v27  ;;  %v11160_v34 = vld [vmem:[#allocation2 + $0x9f] sm:$0xff]  ;;  %v11177_v63 = vld [vmem:[#allocation2 + $0x97] sm:$0xff]  ;;  %807 = vrot.lane.b32.xlu1 %v575_v42, %s10704_s20 }
  0xf8   :  { %329 = vst.msk [vmem:[#allocation2 + $0xc9] sm:$0xf8] %vm316_vm14, %v287_v4  ;;  %15744 = vst [vmem:[#allocation23_spill] sm:$0xff] %v11160_v34  ;;  %v11171_v54 = vld [vmem:[#allocation2 + $0x80] sm:$0xff]  ;;  %v11179_v4 = vld [vmem:[#allocation2 + $0x89] sm:$0xff]  ;;  %897 = vrot.lane.b32.xlu0 %v604_v53, %s10706_s24  ;;  %v291_v53 = vmax.f32 %v267_v11, 0.0 }
  0xf9   :  { %15745 = vst [vmem:[#allocation24_spill] sm:$0xff] %v11171_v54  ;;  %15746 = vst [vmem:[#allocation25_spill] sm:$0xff] %v11173_v58  ;;  %v9719_v21 = vld [vmem:[%s15631_s3] sm:$0xff]   ;;  %v9720_v22 = vld [vmem:[%s15631_s3 + $0x70] sm:$0xff]   ;;  %v11215_v20 = vpack.c.bf16 %v11179_v4, %v11164_v44  ;;  %v15759_v11 = vmov 0  }
  0xfa   :  { %15747 = vst [vmem:[#allocation26_spill] sm:$0xff] %v11175_v59  ;;  %15748 = vst [vmem:[#allocation27_spill] sm:$0xff] %v11177_v63  ;;  %v9721_v41 = vld [vmem:[%s15631_s3 + $0x8] sm:$0xff]   ;;  %v11198_v42 = vld [vmem:[#allocation2 + $0xb0] sm:$0xff]  ;;  %3329 = vmatpush1.bf16.msra.mxu0 %v9719_v21  ;;  %1385 = vmatpush1.bf16.msra.mxu1 %v9720_v22 }
  0xfb   :  { %v11194_v37 = vld [vmem:[#allocation2 + $0xa2] sm:$0xff]  ;;  %15750 = vst [vmem:[#allocation29_spill] sm:$0xff] %v11198_v42  ;;  %340 = vst.msk [vmem:[#allocation2 + $0x10d] sm:$0x7] %vm314_vm13, %v292_v46  ;;  %v539_v9 = vld [vmem:[#allocation2 + $0x4a] sm:$0xff]  ;;  %3330 = vmatprep.subr.bf16.mxu0 %v15759_v11  ;;  %1386 = vmatprep.subr.bf16.mxu1 %v15759_v11 }
  0xfc   :  { %v11196_v52 = vld [vmem:[#allocation2 + $0xa8] sm:$0xff]  ;;  %341 = vst.msk [vmem:[#allocation2 + $0x10f] sm:$0xf8] %vm316_vm14, %v292_v46  ;;  %15751 = vst [vmem:[#allocation30_spill] sm:$0xff] %v11215_v20  ;;  %v11217_v15 = vld [vmem:[#allocation2 + $0xb1] sm:$0xff]  ;;  %841 = vrot.lane.b32.xlu1 %v11207_v7, %s10705_s21  ;;  %v573_v34 = vpack.c.bf16 %v539_v9, %v538_v40 }
  0xfd   :  { %15749 = vst [vmem:[#allocation28_spill] sm:$0xff] %v11196_v52  ;;  %v11200_v45 = vld [vmem:[#allocation2 + $0xa9] sm:$0xff]  ;;  %335 = vst.msk [vmem:[#allocation2 + $0xe9] sm:$0xf] %vm304_vm3, %v290_v8  ;;  %v11227_v28 = vpack.c.bf16 %v11198_v42, %v11196_v52  ;;  %v11237_v47 = vld [vmem:[#allocation2 + $0xd7] sm:$0xff] }
  0xfe   :  { %v11219_v46 = vld [vmem:[#allocation2 + $0xa7] sm:$0xff]  ;;  %v11221_v51 = vld [vmem:[#allocation2 + $0xaf] sm:$0xff]  ;;  %336 = vst.msk [vmem:[#allocation2 + $0xf9] sm:$0xf0] %vm306_vm4, %v290_v8  ;;  %v11231_v50 = vpack.c.bf16 %v11200_v45, %v11102_v3  ;;  %15756 = vst [vmem:[#allocation35_spill] sm:$0xff] %v11237_v47  ;;  %v11244_v8 = vpack.c.bf16 %v11122_v12, %v11087_v61  ;;  %3331 = vmatpush1.bf16.msra.mxu0 %v9721_v41 }
  0xff   :  { %15752 = vst [vmem:[#allocation31_spill] sm:$0xff] %v11219_v46  ;;  %15753 = vst [vmem:[#allocation32_spill] sm:$0xff] %v11221_v51  ;;  %v11235_v55 = vld [vmem:[#allocation2 + $0xaa] sm:$0xff]  ;;  %v11239_v31 = vld [vmem:[#allocation2 + $0xdf] sm:$0xff]  ;;  %3332 = vmatprep.subr.bf16.mxu0 %v15759_v11 }
 0x100   :  { %15754 = vst [vmem:[#allocation33_spill] sm:$0xff] %v11227_v28  ;;  %15755 = vst [vmem:[#allocation34_spill] sm:$0xff] %v11231_v50  ;;  %v9722_v61 = vld [vmem:[%s15631_s3 + $0x78] sm:$0xff]   ;;  %647 = vrot.lane.b32.xlu0 %v11244_v8, %s10704_s20  ;;  %v9723_v59 = vld [vmem:[%s15631_s3 + $0x10] sm:$0xff]   ;;  %v606_v50 = vpack.c.bf16 %v11134_v17, %v11070_v48  ;;  %803 = vrot.lane.b32.xlu1 %v573_v34, %s10704_s20 }
 0x101   :  { %15757 = vst [vmem:[#allocation36_spill] sm:$0xff] %v11239_v31  ;;  %342 = vst.msk [vmem:[#allocation2 + $0x119] sm:$0x1f] %vm294_vm5, %v293_v16  ;;  %v9541_v16 = vpop.f32.mrb[16].mxu0  ;;  %v11266_v21 = vld [vmem:[#allocation2 + $0xb2] sm:$0xff]  ;;  %1387 = vmatpush1.bf16.msra.mxu1 %v9722_v61  ;;  %v458_v17 = vld [vmem:[#allocation2 + $0x3f] sm:$0xff] }
 0x102   :  { %15758 = vst [vmem:[#allocation37_spill] sm:$0xff] %v11244_v8  ;;  %337 = vst.msk [vmem:[#allocation2 + $0x101] sm:$0x1] %vm308_vm7, %v291_v53  ;;  %v2201_v46 = vpop.f32.mrb[17].mxu0  ;;  %v11277_v22 = vld [vmem:[#allocation2 + $0xb9] sm:$0xff]  ;;  %3333 = vmatpush1.bf16.msra.mxu0 %v9723_v59  ;;  %v11440_v62 = vld [vmem:[#allocation2 + $0xd1] sm:$0xff] }
 0x103   :  { %338 = vst.msk [vmem:[#allocation2 + $0x103] sm:$0x3e] %vm310_vm8, %v291_v53  ;;  %15760 = vst [vmem:[#allocation38_spill] sm:$0xff] %v11266_v21  ;;  %v2202_v63 = vadd.f32 %v10995_v60, %v2201_v46  ;;  %v9542_v12 = vpop.f32.mrb[18].mxu0  ;;  %v11283_v46 = vld [vmem:[#allocation2 + $0xba] sm:$0xff]  ;;  %3334 = vmatprep.subr.bf16.mxu0 %v15759_v11  ;;  %v11456_v36 = vld [vmem:[#allocation2 + $0xc8] sm:$0xff] }
 0x104   :  { %339 = vst.msk [vmem:[#allocation2 + $0x105] sm:$0xc0] %vm312_vm9, %v291_v53  ;;  %v2210_v53 = vadd.f32 %v9541_v16, %v10995_v60  ;;  %15761 = vst [vmem:[#allocation39_spill] sm:$0xff] %v11277_v22  ;;  %v2213_v32 = vadd.f32 %v9542_v12, %v10995_v60  ;;  %v2204_v52 = vpop.f32.mrb[19].mxu0  ;;  %v11285_v40 = vld [vmem:[#allocation2 + $0xb8] sm:$0xff]  ;;  %901 = vrot.lane.b32.xlu0 %v606_v50, %s10706_s24  ;;  %v11306_v12 = vpack.c.bf16 %v11094_v0, %v11072_v49  ;;  %v9725_v42 = vld [vmem:[%s15631_s3 + $0x20] sm:$0xff]  }
 0x105   :  { %15762 = vst [vmem:[#allocation40_spill] sm:$0xff] %v11283_v46  ;;  %15763 = vst [vmem:[#allocation41_spill] sm:$0xff] %v11285_v40  ;;  %v11287_v9 = vld [vmem:[#allocation2 + $0x57] sm:$0xff]  ;;  %v2264_v41 = vmax.f32 %v2202_v63, 0.0  ;;  %v2205_v61 = vadd.f32 %v10995_v60, %v2204_v52  ;;  %v11300_v63 = vpack.c.bf16 %v11277_v22, %v11217_v15  ;;  %v11427_v40 = vld [vmem:[#allocation2 + $0xc9] sm:$0xff] }
 0x106   :  { %v2266_v16 = vmax.f32 %v2210_v53, 0.0  ;;  %v11291_v53 = vld [vmem:[#allocation2 + $0x4f] sm:$0xff]  ;;  %v2267_v51 = vmax.f32 %v2213_v32, 0.0  ;;  %v457_v48 = vld [vmem:[#allocation2 + $0x37] sm:$0xff]  ;;  %843 = vrot.lane.b32.xlu1 %v11306_v12, %s10705_s21  ;;  %15779 = vst [vmem:[#allocation57_spill] sm:$0xff] %v11427_v40  ;;  %v11445_v26 = vld [vmem:[#allocation2 + $0x5f] sm:$0xff] }
 0x107   :  { %15764 = vst [vmem:[#allocation42_spill] sm:$0xff] %v11300_v63  ;;  %v2265_v52 = vmax.f32 %v2205_v61, 0.0  ;;  %2280 = vst.msk [vmem:[#allocation2 + $0x39] sm:$0x1f] %vm294_vm5, %v2264_v41  ;;  %v11310_v50 = vld [vmem:[#allocation2 + $0x72] sm:$0xff]  ;;  %v459_v61 = vld [vmem:[#allocation2 + $0x47] sm:$0xff]  ;;  %v490_v34 = vpack.c.bf16 %v458_v17, %v457_v48 }
 0x108   :  { %2285 = vst.msk [vmem:[#allocation2 + $0x4f] sm:$0xf] %vm304_vm3, %v2266_v16  ;;  %v9724_v32 = vld [vmem:[%s15631_s3 + $0x18] sm:$0xff]   ;;  %v11335_v63 = vld [vmem:[#allocation2 + $0x8a] sm:$0xff]  ;;  %15782 = vst [vmem:[#allocation60_spill] sm:$0xff] %v11456_v36 }
 0x109   :  { %2286 = vst.msk [vmem:[#allocation2 + $0x51] sm:$0xf0] %vm306_vm4, %v2266_v16  ;;  %v607_v16 = vpack.c.bf16 %v11164_v44, %v11136_v18  ;;  %3335 = vmatpush1.bf16.msra.mxu0 %v9724_v32  ;;  %v11332_v47 = vld [vmem:[#allocation2 + $0x9a] sm:$0xff]  ;;  %v11344_v32 = vld [vmem:[#allocation2 + $0x82] sm:$0xff]  ;;  %v11474_v8 = vld [vmem:[#allocation2 + $0xd0] sm:$0xff] }
 0x10a   :  { %2281 = vst.msk [vmem:[#allocation2 + $0x3b] sm:$0xe0] %vm296_vm6, %v2264_v41  ;;  %v9545_v41 = vpop.f32.mrb[20].mxu0  ;;  %3336 = vmatprep.subr.bf16.mxu0 %v15759_v11  ;;  %699 = vrot.lane.b32.xlu1 %v490_v34, %s10705_s21  ;;  %v11347_v49 = vld [vmem:[#allocation2 + $0x7a] sm:$0xff]  ;;  %15785 = vst [vmem:[#allocation63_spill] sm:$0xff] %v11474_v8  ;;  %v11489_v28 = vld [vmem:[#allocation2 + $0xd2] sm:$0xff] }
 0x10b   :  { %2287 = vst.msk [vmem:[#allocation2 + $0x59] sm:$0x1] %vm308_vm7, %v2267_v51  ;;  %v2226_v59 = vadd.f32 %v9545_v41, %v10995_v60  ;;  %903 = vrot.lane.b32.xlu0 %v607_v16, %s10706_s24  ;;  %v2217_v18 = vpop.f32.mrb[21].mxu0  ;;  %v11338_v16 = vld [vmem:[#allocation2 + $0x87] sm:$0xff]  ;;  %v9728_v46 = vld [vmem:[%s15631_s3 + $0x38] sm:$0xff]   ;;  %v576_v22 = vpack.c.bf16 %v11347_v49, %v11310_v50  ;;  %15789 = vst [vmem:[#allocation67_spill] sm:$0xff] %v11489_v28 }
 0x10c   :  { %2288 = vst.msk [vmem:[#allocation2 + $0x69] sm:$0x3e] %vm310_vm8, %v2267_v51  ;;  %v2218_v44 = vadd.f32 %v10995_v60, %v2217_v18  ;;  %15765 = vst [vmem:[#allocation43_spill] sm:$0xff] %v11338_v16  ;;  %v11458_v10 = vld [vmem:[#allocation2 + $0xe1] sm:$0xff] }
 0x10d   :  { %2289 = vst.msk [vmem:[#allocation2 + $0x6b] sm:$0xc0] %vm312_vm9, %v2267_v51  ;;  %v9546_v51 = vpop.f32.mrb[22].mxu0  ;;  %v2270_v31 = vmax.f32 %v2226_v59, 0.0  ;;  %3337 = vmatpush1.bf16.msra.mxu0 %v9725_v42  ;;  %v9729_v49 = vld [vmem:[%s15631_s3 + $0x40] sm:$0xff]  }
 0x10e   :  { %2282 = vst.msk [vmem:[#allocation2 + $0x43] sm:$0x3] %vm298_vm10, %v2265_v52  ;;  %v2229_v0 = vadd.f32 %v9546_v51, %v10995_v60  ;;  %v2268_v41 = vmax.f32 %v2218_v44, 0.0  ;;  %v2510_v18 = vld [vmem:[#allocation2 + $0x32] sm:$0xff]  ;;  %3338 = vmatprep.subr.bf16.mxu0 %v15759_v11  ;;  %753 = vrot.lane.b32.xlu1 %v11207_v7, %s10706_s24  ;;  %v11485_v50 = vld [vmem:[#allocation2 + $0xe2] sm:$0xff] }
 0x10f   :  { %2283 = vst.msk [vmem:[#allocation2 + $0x45] sm:$0x7c] %vm300_vm11, %v2265_v52  ;;  %2295 = vst.msk [vmem:[#allocation2 + $0x99] sm:$0x7c] %vm300_vm11, %v2270_v31  ;;  %v11527_v28 = vld [vmem:[#allocation2 + $0xc7] sm:$0xff] }
 0x110   :  { %2284 = vst.msk [vmem:[#allocation2 + $0x47] sm:$0x80] %vm302_vm12, %v2265_v52  ;;  %v2220_v52 = vpop.f32.mrb[23].mxu0  ;;  %v11342_v17 = vld [vmem:[#allocation2 + $0x50] sm:$0xff]  ;;  %2296 = vst.msk [vmem:[#allocation2 + $0x9b] sm:$0x80] %vm302_vm12, %v2270_v31 }
 0x111   :  { %v2221_v48 = vadd.f32 %v10995_v60, %v2220_v52  ;;  %15766 = vst [vmem:[#allocation44_spill] sm:$0xff] %v11342_v17  ;;  %v2271_v59 = vmax.f32 %v2229_v0, 0.0  ;;  %v2511_v51 = vld [vmem:[#allocation2 + $0x3a] sm:$0xff]  ;;  %2294 = vst.msk [vmem:[#allocation2 + $0x89] sm:$0x3] %vm298_vm10, %v2270_v31  ;;  %v9726_v0 = vld [vmem:[%s15631_s3 + $0x28] sm:$0xff]  }
 0x112   :  { %v2546_v16 = vpack.c.bf16 %v2511_v51, %v2510_v18  ;;  %v11351_v52 = vld [vmem:[#allocation2 + $0x58] sm:$0xff]  ;;  %2290 = vst.msk [vmem:[#allocation2 + $0x73] sm:$0x7] %vm314_vm13, %v2268_v41  ;;  %v491_v18 = vpack.c.bf16 %v11291_v53, %v459_v61  ;;  %3339 = vmatpush1.bf16.msra.mxu0 %v9726_v0  ;;  %15787 = vst [vmem:[#allocation65_spill] sm:$0xff] %v11485_v50  ;;  %v11583_v50 = vld [vmem:[#allocation2 + $0xe7] sm:$0xff] }
 0x113   :  { %v2269_v44 = vmax.f32 %v2221_v48, 0.0  ;;  %15767 = vst [vmem:[#allocation45_spill] sm:$0xff] %v11351_v52  ;;  %2291 = vst.msk [vmem:[#allocation2 + $0x75] sm:$0xf8] %vm316_vm14, %v2268_v41  ;;  %v2514_v34 = vld [vmem:[#allocation2 + $0x52] sm:$0xff]  ;;  %v9549_v41 = vpop.f32.mrb[24].mxu0  ;;  %3340 = vmatprep.subr.bf16.mxu0 %v15759_v11  ;;  %v11388_v61 = vpack.c.bf16 %v11035_v29, %v11351_v52 }
 0x114   :  { %2297 = vst.msk [vmem:[#allocation2 + $0xa3] sm:$0xf] %vm304_vm3, %v2271_v59  ;;  %2775 = vrot.lane.b32.xlu0 %v2546_v16, %s10704_s20  ;;  %v2548_v51 = vpack.c.bf16 %v11047_v35, %v2514_v34  ;;  %v11377_v16 = vld [vmem:[#allocation2 + $0x68] sm:$0xff]  ;;  %701 = vrot.lane.b32.xlu1 %v491_v18, %s10705_s21  ;;  %v11384_v53 = vld [vmem:[#allocation2 + $0xb7] sm:$0xff]  ;;  %v2242_v21 = vadd.f32 %v9549_v41, %v10995_v60  ;;  %15795 = vst [vmem:[#allocation73_spill] sm:$0xff] %v11527_v28 }
 0x115   :  { %2298 = vst.msk [vmem:[#allocation2 + $0xa5] sm:$0xf0] %vm306_vm4, %v2271_v59  ;;  %v2233_v59 = vpop.f32.mrb[25].mxu0  ;;  %15770 = vst [vmem:[#allocation48_spill] sm:$0xff] %v11377_v16  ;;  %v2517_v0 = vld [vmem:[#allocation2 + $0x6a] sm:$0xff] }
 0x116   :  { %2292 = vst.msk [vmem:[#allocation2 + $0x7f] sm:$0x1f] %vm294_vm5, %v2269_v44  ;;  %v11370_v48 = vld [vmem:[#allocation2 + $0x40] sm:$0xff]  ;;  %v2234_v7 = vadd.f32 %v10995_v60, %v2233_v59  ;;  %15771 = vst [vmem:[#allocation49_spill] sm:$0xff] %v11384_v53  ;;  %v11392_v59 = vld [vmem:[#allocation2 + $0x98] sm:$0xff]  ;;  %v2549_v53 = vpack.c.bf16 %v2517_v0, %v11111_v6  ;;  %v2274_v40 = vmax.f32 %v2242_v21, 0.0  ;;  %v11483_v21 = vpack.c.bf16 %v11474_v8, %v11456_v36 }
 0x117   :  { %v11366_v42 = vld [vmem:[#allocation2 + $0x48] sm:$0xff]  ;;  %2293 = vst.msk [vmem:[#allocation2 + $0x81] sm:$0xe0] %vm296_vm6, %v2269_v44  ;;  %15769 = vst [vmem:[#allocation47_spill] sm:$0xff] %v11370_v48  ;;  %v11451_v0 = vld [vmem:[#allocation2 + $0xd9] sm:$0xff] }
 0x118   :  { %15768 = vst [vmem:[#allocation46_spill] sm:$0xff] %v11366_v42  ;;  %2779 = vrot.lane.b32.xlu0 %v2548_v51, %s10704_s20  ;;  %v2272_v35 = vmax.f32 %v2234_v7, 0.0  ;;  %v11390_v34 = vld [vmem:[#allocation2 + $0x89] sm:$0xff]  ;;  %15772 = vst [vmem:[#allocation50_spill] sm:$0xff] %v11392_v59  ;;  %755 = vrot.lane.b32.xlu1 %v11306_v12, %s10706_s24  ;;  %v11507_v36 = vld [vmem:[#allocation2 + $0xd8] sm:$0xff] }
 0x119   :  { %v11396_v18 = vld [vmem:[#allocation2 + $0x70] sm:$0xff]  ;;  %15781 = vst [vmem:[#allocation59_spill] sm:$0xff] %v11451_v0  ;;  %15786 = vst [vmem:[#allocation64_spill] sm:$0xff] %v11483_v21  ;;  %v11511_v21 = vld [vmem:[#allocation2 + $0xff] sm:$0xff] }
 0x11a   :  { %2299 = vst.msk [vmem:[#allocation2 + $0xad] sm:$0x1] %vm308_vm7, %v2272_v35  ;;  %15773 = vst [vmem:[#allocation51_spill] sm:$0xff] %v11396_v18  ;;  %v11409_v31 = vld [vmem:[#allocation2 + $0x71] sm:$0xff] }
 0x11b   :  { %2300 = vst.msk [vmem:[#allocation2 + $0xaf] sm:$0x3e] %vm310_vm8, %v2272_v35  ;;  %v11447_v6 = vld [vmem:[#allocation2 + $0xa0] sm:$0xff]  ;;  %15791 = vst [vmem:[#allocation69_spill] sm:$0xff] %v11507_v36  ;;  %v11537_v8 = vld [vmem:[#allocation2 + $0xf7] sm:$0xff] }
 0x11c   :  { %2301 = vst.msk [vmem:[#allocation2 + $0xb1] sm:$0xc0] %vm312_vm9, %v2272_v35  ;;  %2819 = vrot.lane.b32.xlu0 %v11388_v61, %s10705_s21  ;;  %847 = vrot.lane.b32.xlu1 %v11431_v2, %s10705_s21  ;;  %15780 = vst [vmem:[#allocation58_spill] sm:$0xff] %v11447_v6 }
 0x11d   :  { %v11398_v51 = vld [vmem:[#allocation2 + $0x78] sm:$0xff]  ;;  %15793 = vst [vmem:[#allocation71_spill] sm:$0xff] %v11511_v21  ;;  %15798 = vst [vmem:[#allocation76_spill] sm:$0xff] %v11537_v8 }
 0x11e   :  { %15774 = vst [vmem:[#allocation52_spill] sm:$0xff] %v11398_v51  ;;  %v11400_v44 = vld [vmem:[#allocation2 + $0x80] sm:$0xff]  ;;  %v11425_v12 = vld [vmem:[#allocation2 + $0x88] sm:$0xff]  ;;  %v2431_v8 = vld [vmem:[#allocation2 + $0x37] sm:$0xff] }
 0x11f   :  { %15775 = vst [vmem:[#allocation53_spill] sm:$0xff] %v11400_v44  ;;  %v11413_v29 = vld [vmem:[#allocation2 + $0x79] sm:$0xff]  ;;  %v11415_v52 = vld [vmem:[#allocation2 + $0x81] sm:$0xff]  ;;  %15778 = vst [vmem:[#allocation56_spill] sm:$0xff] %v11425_v12 }
 0x120   :  { %v11419_v7 = vpack.c.bf16 %v11413_v29, %v11409_v31  ;;  %v11423_v35 = vpack.c.bf16 %v11390_v34, %v11415_v52  ;;  %2781 = vrot.lane.b32.xlu0 %v2549_v53, %s10704_s20  ;;  %v11462_v53 = vpack.c.bf16 %v11451_v0, %v11440_v62  ;;  %809 = vrot.lane.b32.xlu1 %v576_v22, %s10704_s20  ;;  %v2432_v21 = vld [vmem:[#allocation2 + $0x3f] sm:$0xff] }
 0x121   :  { %v11467_v20 = vld [vmem:[#allocation2 + $0xa8] sm:$0xff]  ;;  %v11495_v22 = vpack.c.bf16 %v11171_v54, %v11148_v27  ;;  %15802 = vst [vmem:[#allocation80_spill] sm:$0xff] %v11583_v50 }
 0x122   :  { %15776 = vst [vmem:[#allocation54_spill] sm:$0xff] %v11419_v7  ;;  %15777 = vst [vmem:[#allocation55_spill] sm:$0xff] %v11423_v35  ;;  %v9727_v7 = vld [vmem:[%s15631_s3 + $0x30] sm:$0xff]   ;;  %v2512_v54 = vld [vmem:[#allocation2 + $0x42] sm:$0xff] }
 0x123   :  { %v2435_v35 = vld [vmem:[#allocation2 + $0x57] sm:$0xff]  ;;  %3341 = vmatpush1.bf16.msra.mxu0 %v9727_v7  ;;  %15783 = vst [vmem:[#allocation61_spill] sm:$0xff] %v11462_v53  ;;  %15784 = vst [vmem:[#allocation62_spill] sm:$0xff] %v11467_v20  ;;  %v11509_v20 = vld [vmem:[#allocation2 + $0xe0] sm:$0xff] }
 0x124   :  { %v2466_v41 = vpack.c.bf16 %v11445_v26, %v2435_v35  ;;  %3342 = vmatprep.subr.bf16.mxu0 %v15759_v11  ;;  %v11487_v35 = vld [vmem:[#allocation2 + $0xcf] sm:$0xff]  ;;  %v11491_v7 = vld [vmem:[#allocation2 + $0xda] sm:$0xff]  ;;  %15792 = vst [vmem:[#allocation70_spill] sm:$0xff] %v11509_v20  ;;  %849 = vrot.lane.b32.xlu1 %v11495_v22, %s10705_s21 }
 0x125   :  { %15788 = vst [vmem:[#allocation66_spill] sm:$0xff] %v11487_v35  ;;  %15790 = vst [vmem:[#allocation68_spill] sm:$0xff] %v11491_v7  ;;  %v11501_v53 = vld [vmem:[#allocation2 + $0x39] sm:$0xff]  ;;  %v2513_v27 = vld [vmem:[#allocation2 + $0x4a] sm:$0xff] }
 0x126   :  { %2677 = vrot.lane.b32.xlu0 %v2466_v41, %s10705_s21  ;;  %v11499_v41 = vpack.c.bf16 %v11055_v38, %v11144_v24  ;;  %2304 = vst.msk [vmem:[#allocation2 + $0xd3] sm:$0x1f] %vm294_vm5, %v2274_v40  ;;  %v11515_v38 = vpack.c.bf16 %v11509_v20, %v11507_v36  ;;  %v11531_v20 = vpack.c.bf16 %v11501_v53, %v11030_v25  ;;  %v11535_v24 = vld [vmem:[#allocation2 + $0xe9] sm:$0xff]  ;;  %v11558_v36 = vpop.permute.xlu0 %2613 }
 0x127   :  { %3343 = vmatpush1.bf16.msra.mxu0 %v9728_v46  ;;  %2305 = vst.msk [vmem:[#allocation2 + $0xd5] sm:$0xe0] %vm296_vm6, %v2274_v40  ;;  %v9730_v46 = vld [vmem:[%s15631_s3 + $0x48] sm:$0xff]   ;;  %v2382_v40 = vld [vmem:[#allocation2 + $0x59] sm:$0xff]  ;;  %15797 = vst [vmem:[#allocation75_spill] sm:$0xff] %v11535_v24  ;;  %v2547_v7 = vpack.c.bf16 %v2513_v27, %v2512_v54  ;;  %v11546_v25 = vpack.c.bf16 %v11535_v24, %v11458_v10 }
 0x128   :  { %3344 = vmatprep.subr.bf16.mxu0 %v15759_v11  ;;  %15794 = vst [vmem:[#allocation72_spill] sm:$0xff] %v11515_v38  ;;  %v11533_v38 = vld [vmem:[#allocation2 + $0xea] sm:$0xff]  ;;  %2619 = vrot.lane.b32.xlu1 %v11531_v20, %s10704_s20  ;;  %v2579_v0 = vpack.c.bf16 %v11057_v39, %v2382_v40 }
 0x129   :  { %15796 = vst [vmem:[#allocation74_spill] sm:$0xff] %v11533_v38  ;;  %15799 = vst [vmem:[#allocation77_spill] sm:$0xff] %v11546_v25  ;;  %v9731_v27 = vld [vmem:[%s15631_s3 + $0x50] sm:$0xff]   ;;  %v2485_v25 = vpack.c.bf16 %v11342_v17, %v11366_v42  ;;  %v11576_v35 = vld [vmem:[#allocation2 + $0xe8] sm:$0xff] }
 0x12a   :  { %649 = vrot.lane.b32.xlu0 %v11499_v41, %s10704_s20  ;;  %v11556_v54 = vld [vmem:[#allocation2 + $0x51] sm:$0xff]  ;;  %15801 = vst [vmem:[#allocation79_spill] sm:$0xff] %v11576_v35  ;;  %v11578_v24 = vpop.permute.xlu0 %2667  ;;  %v9734_v50 = vld [vmem:[%s15631_s3 + $0x68] sm:$0xff]  }
 0x12b   :  { %3345 = vmatpush1.bf16.msra.mxu0 %v9729_v49  ;;  %v11569_v49 = vld [vmem:[#allocation2 + $0x38] sm:$0xff]  ;;  %v11572_v39 = vpack.c.bf16 %v2382_v40, %v11556_v54  ;;  %v2380_v17 = vld [vmem:[#allocation2 + $0x49] sm:$0xff] }
 0x12c   :  { %3346 = vmatprep.subr.bf16.mxu0 %v15759_v11  ;;  %2873 = vrot.lane.b32.xlu1 %v2579_v0, %s10706_s24  ;;  %15800 = vst [vmem:[#allocation78_spill] sm:$0xff] %v11569_v49  ;;  %v9733_v0 = vld [vmem:[%s15631_s3 + $0x60] sm:$0xff]  }
 0x12e   :  { %2777 = vrot.lane.b32.xlu0 %v2547_v7, %s10704_s20  ;;  %v9732_v7 = vld [vmem:[%s15631_s3 + $0x58] sm:$0xff]  }
 0x12f   :  { %3347 = vmatpush1.bf16.msra.mxu0 %v9730_v46  ;;  %v9550_v46 = vpop.f32.mrb[26].mxu0 }
 0x130   :  { %3348 = vmatprep.subr.bf16.mxu0 %v15759_v11  ;;  %v2245_v28 = vadd.f32 %v9550_v46, %v10995_v60  ;;  %2623 = vrot.lane.b32.xlu1 %v11572_v39, %s10704_s20  ;;  %v2484_v60 = vpack.c.bf16 %v11370_v48, %v11569_v49  ;;  %v2464_v46 = vpack.c.bf16 %v2432_v21, %v2431_v8  ;;  %v2434_v8 = vld [vmem:[#allocation2 + $0x4f] sm:$0xff]  ;;  %v11602_v21 = vpop.permute.xlu0 %639 }
 0x131   :  { %v577_v48 = vpack.c.bf16 %v11335_v63, %v11344_v32  ;;  %v2578_v63 = vpack.c.bf16 %v11556_v54, %v2380_v17  ;;  %v608_v54 = vpack.c.bf16 %v11064_v43, %v11179_v4 }
 0x132   :  { %2817 = vrot.lane.b32.xlu0 %v2485_v25, %s10705_s21  ;;  %v2275_v40 = vmax.f32 %v2245_v28, 0.0  ;;  %v11600_v28 = vpop.permute.xlu1 %693 }
 0x133   :  { %3349 = vmatpush1.bf16.msra.mxu0 %v9731_v27  ;;  %v2379_v27 = vld [vmem:[#allocation2 + $0x41] sm:$0xff] }
 0x134   :  { %3350 = vmatprep.subr.bf16.mxu0 %v15759_v11  ;;  %2308 = vst.msk [vmem:[#allocation2 + $0xe1] sm:$0x80] %vm302_vm12, %v2275_v40  ;;  %2815 = vrot.lane.b32.xlu1 %v2484_v60, %s10705_s21  ;;  %v2577_v35 = vpack.c.bf16 %v2379_v27, %v11501_v53 }
 0x135   :  { %2306 = vst.msk [vmem:[#allocation2 + $0xdd] sm:$0x3] %vm298_vm10, %v2275_v40 }
 0x136   :  { %2731 = vrot.lane.b32.xlu0 %v11388_v61, %s10706_s24  ;;  %2307 = vst.msk [vmem:[#allocation2 + $0xdf] sm:$0x7c] %vm300_vm11, %v2275_v40  ;;  %v2433_v61 = vld [vmem:[#allocation2 + $0x47] sm:$0xff]  ;;  %v11609_v40 = vld [vmem:[%s15630_s2] ss:$0 sm:$0xff]  ;;  %v11621_v49 = vpop.permute.xlu1 %747 }
 0x137   :  { %3351 = vmatpush1.bf16.msra.mxu0 %v9732_v7  ;;  %v2236_v7 = vpop.f32.mrb[27].mxu0  ;;  %v2465_v42 = vpack.c.bf16 %v2434_v8, %v2433_v61  ;;  %v2518_v8 = vld [vmem:[#allocation2 + $0x72] sm:$0xff] }
 0x138   :  { %3352 = vmatprep.subr.bf16.mxu0 %v15759_v11  ;;  %v2237_v38 = vadd.f32 %v11609_v40, %v2236_v7  ;;  %2869 = vrot.lane.b32.xlu1 %v2577_v35, %s10706_s24  ;;  %v11626_v35 = vpop.permute.xlu0 %2721  ;;  %v2582_v7 = vpack.c.bf16 %v11064_v43, %v11390_v34  ;;  %v11679_v43 = vld [vmem:[#allocation2 + $0x108] sm:$0xff] }
 0x139   :  { %15807 = vst [vmem:[#allocation85_spill] sm:$0xff] %v11679_v43  ;;  %v11681_v34 = vld [vmem:[#allocation2 + $0x109] sm:$0xff]  ;;  %v2523_v43 = vld [vmem:[#allocation2 + $0x9a] sm:$0xff] }
 0x13a   :  { %2673 = vrot.lane.b32.xlu0 %v2464_v46, %s10705_s21  ;;  %v9735_v46 = vld [vmem:[%s15631_s3 + $0x70] sm:$0xff]   ;;  %v2273_v53 = vmax.f32 %v2237_v38, 0.0  ;;  %v11637_v32 = vpop.permute.xlu1 %2615  ;;  %15808 = vst [vmem:[#allocation86_spill] sm:$0xff] %v11681_v34 }
 0x13b   :  { %3353 = vmatpush1.bf16.msra.mxu0 %v9733_v0  ;;  %v11617_v0 = vld [vmem:[#allocation2 + $0xca] sm:$0xff] }
 0x13c   :  { %3354 = vmatprep.subr.bf16.mxu0 %v15759_v11  ;;  %2302 = vst.msk [vmem:[#allocation2 + $0xb9] sm:$0x7] %vm314_vm13, %v2273_v53  ;;  %811 = vrot.lane.b32.xlu1 %v577_v48, %s10704_s20  ;;  %v11639_v38 = vpop.permute.xlu0 %2669  ;;  %v11647_v48 = vpack.c.bf16 %v11396_v18, %v11377_v16  ;;  %v11673_v18 = vld [vmem:[#allocation2 + $0x111] sm:$0xff]  ;;  %v11701_v16 = vld [vmem:[#allocation2 + $0xfa] sm:$0xff] }
 0x13d   :  { %2303 = vst.msk [vmem:[#allocation2 + $0xc9] sm:$0xf8] %vm316_vm14, %v2273_v53  ;;  %v9553_v53 = vpop.f32.mrb[28].mxu0  ;;  %15804 = vst [vmem:[#allocation82_spill] sm:$0xff] %v11673_v18  ;;  %v11694_v18 = vld [vmem:[#allocation2 + $0x10a] sm:$0xff] }
 0x13e   :  { %2727 = vrot.lane.b32.xlu0 %v2484_v60, %s10706_s24  ;;  %v11657_v60 = vpop.permute.xlu1 %695  ;;  %15813 = vst [vmem:[#allocation91_spill] sm:$0xff] %v11694_v18 }
 0x13f   :  { %3355 = vmatpush1.bf16.msra.mxu0 %v9734_v50  ;;  %v9736_v50 = vld [vmem:[%s15631_s3 + $0x78] sm:$0xff]  }
 0x140   :  { %3356 = vmatprep.subr.bf16.mxu0 %v15759_v11  ;;  %2871 = vrot.lane.b32.xlu1 %v2578_v63, %s10706_s24  ;;  %v11659_v61 = vpop.permute.xlu0 %641  ;;  %v11671_v63 = vld [vmem:[#allocation2 + $0x110] sm:$0xff] }
 0x141   :  { %15803 = vst [vmem:[#allocation81_spill] sm:$0xff] %v11671_v63  ;;  %v11692_v63 = vld [vmem:[#allocation2 + $0x100] sm:$0xff] }
 0x142   :  { %2675 = vrot.lane.b32.xlu0 %v2465_v42, %s10705_s21  ;;  %v11643_v42 = vpack.c.bf16 %v11126_v14, %v11173_v58  ;;  %v11668_v4 = vpop.permute.xlu1 %749  ;;  %v11677_v14 = vld [vmem:[#allocation2 + $0x112] sm:$0xff]  ;;  %15812 = vst [vmem:[#allocation90_spill] sm:$0xff] %v11692_v63 }
 0x143   :  { %3357 = vmatpush1.bf16.msra.mxu0 %v9735_v46  ;;  %15806 = vst [vmem:[#allocation84_spill] sm:$0xff] %v11677_v14  ;;  %v11699_v14 = vpack.c.bf16 %v11400_v44, %v11398_v51 }
 0x144   :  { %3358 = vmatprep.subr.bf16.mxu0 %v15759_v11  ;;  %851 = vrot.lane.b32.xlu1 %v11643_v42, %s10705_s21  ;;  %v2519_v11 = vld [vmem:[#allocation2 + $0x7a] sm:$0xff] }
 0x145   :  { %v2550_v46 = vpack.c.bf16 %v2519_v11, %v2518_v8  ;;  %v11683_v11 = vld [vmem:[#allocation2 + $0x107] sm:$0xff]  ;;  %v11685_v8 = vpop.permute.xlu0 %2723 }
 0x146   :  { %2729 = vrot.lane.b32.xlu0 %v2485_v25, %s10706_s24  ;;  %v11653_v25 = vpack.c.bf16 %v2380_v17, %v2379_v27  ;;  %v2384_v17 = vld [vmem:[#allocation2 + $0x69] sm:$0xff]  ;;  %v2258_v27 = vadd.f32 %v11609_v40, %v9553_v53  ;;  %15809 = vst [vmem:[#allocation87_spill] sm:$0xff] %v11683_v11  ;;  %v11690_v53 = vld [vmem:[#allocation2 + $0xf9] sm:$0xff] }
 0x147   :  { %3359 = vmatpush1.bf16.msra.mxu0 %v9736_v50  ;;  %v2249_v50 = vpop.f32.mrb[29].mxu0  ;;  %15811 = vst [vmem:[#allocation89_spill] sm:$0xff] %v11690_v53  ;;  %v2522_v11 = vld [vmem:[#allocation2 + $0x92] sm:$0xff] }
 0x148   :  { %2621 = vrot.lane.b32.xlu1 %v11653_v25, %s10704_s20  ;;  %v2278_v34 = vmax.f32 %v2258_v27, 0.0  ;;  %v11710_v27 = vpop.permute.xlu1 %2617  ;;  %v2552_v44 = vpack.c.bf16 %v2523_v43, %v2522_v11 }
 0x14a   :  { %2821 = vrot.lane.b32.xlu0 %v11647_v48, %s10705_s21 }
 0x14c   :  { %2879 = vrot.lane.b32.xlu1 %v2582_v7, %s10706_s24  ;;  %v2250_v7 = vadd.f32 %v11609_v40, %v2249_v50  ;;  %v2521_v50 = vld [vmem:[#allocation2 + $0x8a] sm:$0xff]  ;;  %v11720_v18 = vpop.permute.xlu1 %697 }
 0x14e   :  { %905 = vrot.lane.b32.xlu0 %v608_v54, %s10706_s24  ;;  %v11675_v54 = vld [vmem:[#allocation2 + $0x10f] sm:$0xff]  ;;  %v2276_v58 = vmax.f32 %v2250_v7, 0.0  ;;  %v492_v7 = vpack.c.bf16 %v11445_v26, %v11287_v9 }
 0x14f   :  { %15805 = vst [vmem:[#allocation83_spill] sm:$0xff] %v11675_v54  ;;  %v2580_v54 = vpack.c.bf16 %v11409_v31, %v2384_v17  ;;  %2314 = vst.msk [vmem:[#allocation2 + $0x10d] sm:$0x7] %vm314_vm13, %v2278_v34  ;;  %v2520_v31 = vld [vmem:[#allocation2 + $0x82] sm:$0xff] }
 0x150   :  { %2315 = vst.msk [vmem:[#allocation2 + $0x10f] sm:$0xf8] %vm316_vm14, %v2278_v34  ;;  %v2581_v34 = vpack.c.bf16 %v11415_v52, %v11413_v29  ;;  %v2551_v51 = vpack.c.bf16 %v2521_v50, %v2520_v31 }
 0x151   :  { %2875 = vrot.lane.b32.xlu1 %v2580_v54, %s10706_s24  ;;  %2309 = vst.msk [vmem:[#allocation2 + $0xe9] sm:$0xf] %vm304_vm3, %v2276_v58  ;;  %v11714_v54 = vpop.permute.xlu0 %2671 }
 0x152   :  { %2783 = vrot.lane.b32.xlu0 %v2550_v46, %s10704_s20  ;;  %v11688_v46 = vld [vmem:[#allocation2 + $0xf8] sm:$0xff] }
 0x153   :  { %15810 = vst [vmem:[#allocation88_spill] sm:$0xff] %v11688_v46  ;;  %2310 = vst.msk [vmem:[#allocation2 + $0xf9] sm:$0xf0] %vm306_vm4, %v2276_v58 }
 0x155   :  { %703 = vrot.lane.b32.xlu1 %v492_v7, %s10705_s21 }
 0x156   :  { %2823 = vrot.lane.b32.xlu0 %v11699_v14, %s10705_s21 }
 0x159   :  { %2877 = vrot.lane.b32.xlu1 %v2581_v34, %s10706_s24 }
 0x15a   :  { %2787 = vrot.lane.b32.xlu0 %v2552_v44, %s10704_s20 }
 0x15e   :  { %2785 = vrot.lane.b32.xlu0 %v2551_v51, %s10704_s20 }
 0x15f   :  { %19 = vsyncpa [#allocation6], 0  ;;  %v11724_v58 = vpop.permute.xlu0 %643  ;;  %v10634_v26 = vld [vmem:[#allocation2 + $0x90] sm:$0xff]  ;;  %v9554_v43 = vpop.f32.mrb[30].mxu0  ;;  %757 = vrot.lane.b32.xlu1 %v11109_v5, %s10706_s24  ;;  %v11734_v52 = vld [vmem:[#allocation2 + $0x118] sm:$0x3f]  ;;  %v11748_v5 = vpack.c.bf16 %v11447_v6, %v11392_v59  ;;  %v578_v6 = vpack.c.bf16 %v11332_v47, %v2522_v11 }
 0x160   :  { %v11727_v9 = vpack.c.bf16 %v10634_v26, %v11425_v12  ;;  %v2261_v29 = vadd.f32 %v11609_v40, %v9554_v43  ;;  %15814 = vst [vmem:[#allocation92_spill] sm:$0xff] %v11734_v52  ;;  %v2252_v44 = vpop.f32.mrb[31].mxu0  ;;  %v11736_v51 = vld [vmem:[#allocation2 + $0x119] sm:$0x3f]  ;;  %v11742_v7 = vpop.permute.xlu1 %751  ;;  %v10635_v34 = vld [vmem:[#allocation2 + $0x61] sm:$0xff]  ;;  %vm985_vm15 = vcmask 523264  }
 0x161   :  { %15815 = vst [vmem:[#allocation93_spill] sm:$0xff] %v11736_v51  ;;  %v11738_v31 = vld [vmem:[#allocation2 + $0x117] sm:$0xff]  ;;  %v11744_v26 = vpack.c.bf16 %v2384_v17, %v10635_v34  ;;  %v2253_v43 = vadd.f32 %v11609_v40, %v2252_v44  ;;  %v11762_v34 = vld [vmem:[#allocation2 + $0x101] sm:$0xff]  ;;  %vm1022_vm0 = vcmask 785408   ;;  %vm86_vm1 = vcmask 260096   ;;  %s10709_s28 = smov [#allocation3]  }
 0x162   :  { %2825 = vrot.lane.b32.xlu0 %v11727_v9, %s10705_s21  ;;  %15816 = vst [vmem:[#allocation94_spill] sm:$0xff] %v11738_v31  ;;  %v11740_v50 = vld [vmem:[#allocation2 + $0x118] sm:$0xff]  ;;  %v2279_v12 = vmax.f32 %v2261_v29, 0.0  ;;  %v2438_v31 = vld [vmem:[#allocation2 + $0x6f] sm:$0xff]  ;;  %15820 = vst [vmem:[#allocation98_spill] sm:$0xff] %v11762_v34  ;;  %vm1605_vm3 = vcmask 1046528  }
 0x163   :  { %15817 = vst [vmem:[#allocation95_spill] sm:$0xff] %v11740_v50  ;;  %v11751_v52 = vld [vmem:[#allocation2 + $0x119] sm:$0xff]  ;;  %v11755_v51 = vpop.permute.xlu0 %2725  ;;  %2625 = vrot.lane.b32.xlu1 %v11744_v26, %s10704_s20  ;;  %v2277_v17 = vmax.f32 %v2253_v43, 0.0  ;;  %v11764_v29 = vld [vmem:[#allocation2 + $0x102] sm:$0xff]  ;;  %vm1785_vm4 = vcmask 1040384   ;;  %s8742_s0 = sshll.u32 %s10709_s28, 4  ;;  %s8743_s0 = int_to_ptr.vmem [resolvable:$true] %s8742_s0 }
 0x164   :  { %15818 = vst [vmem:[#allocation96_spill] sm:$0xff] %v11751_v52  ;;  %v11753_v53 = vld [vmem:[#allocation2 + $0x11a] sm:$0xff]  ;;  %15821 = vst [vmem:[#allocation99_spill] sm:$0xff] %v11764_v29  ;;  %v2437_v40 = vld [vmem:[#allocation2 + $0x67] sm:$0xff]  ;;  %v802_v44 = vpop.permute.xlu1 %801  ;;  %s10655_s29 = scalar_lea.vmem %s8743_s0, 128  ;;  %p10660_p1 = scmp.lt.s32.totalorder %s8743_s0, %s8743_s0 }
 0x165   :  { %15819 = vst [vmem:[#allocation97_spill] sm:$0xff] %v11753_v53  ;;  %2316 = vst.msk [vmem:[#allocation2 + $0x119] sm:$0x1f] %vm294_vm5, %v2279_v12  ;;  %v2467_v59 = vpack.c.bf16 %v2438_v31, %v2437_v40  ;;  %v11772_v50 = vld [vmem:[#allocation2 + $0x99] sm:$0xff]  ;;  %v11774_v12 = vld [vmem:[#allocation2 + $0xa1] sm:$0xff]  ;;  %v1079_v34 = vsel %vm43_vm2, %v11045_v33, %v802_v44  ;;  %v936_v33 = vsel %vm43_vm2, %v10894_v23, %v11659_v61  ;;  %p10656_p0 = scmp.ne.s32.totalorder %s8743_s0, %s10655_s29  ;;  %p10661_p2 = scmp.lt.s32.totalorder %s10655_s29, %s10655_s29 }
 0x166   :  { %2827 = vrot.lane.b32.xlu0 %v11748_v5, %s10705_s21  ;;  %2311 = vst.msk [vmem:[#allocation2 + $0x101] sm:$0x1] %vm308_vm7, %v2277_v17  ;;  %v2583_v47 = vpack.c.bf16 %v11774_v12, %v11772_v50  ;;  %v2317_v31 = vld [vmem:[#allocation2] sm:$0xff]  ;;  %v10636_v40 = vld [vmem:[#allocation2 + $0x8] sm:$0xff] }
 0x167   :  { %2313 = vst.msk [vmem:[#allocation2 + $0x105] sm:$0xc0] %vm312_vm9, %v2277_v17  ;;  %v11770_v52 = vpop.permute.xlu0 %645  ;;  %813 = vrot.lane.b32.xlu1 %v578_v6, %s10704_s20  ;;  %v11783_v53 = vpack.c.bf16 %v10636_v40, %v2317_v31  ;;  %v15822_v31 = vpack.c.bf16 %v11138_v19, %v11124_v13  ;;  %v15823_v40 = vpack.c.bf16 %v11102_v3, %v11083_v57  ;;  %p10662_p3 = por %p10661_p2, %p10660_p1 }
 0x168   :  { %2312 = vst.msk [vmem:[#allocation2 + $0x103] sm:$0x3e] %vm310_vm8, %v2277_v17  ;;  %v806_v43 = vpop.permute.xlu1 %805 }
 0x169   :  { %v933_v6 = vsel %vm43_vm2, %v11783_v53, %v11602_v21  ;;  %p10663_p4 = pnand %p10662_p3, %p10656_p0 }
 0x16a   :  { %2679 = vrot.lane.b32.xlu0 %v2467_v59, %s10705_s21 }
 0x16b   :  { %v900_v11 = vpop.permute.xlu0 %899  ;;  %2881 = vrot.lane.b32.xlu1 %v2583_v47, %s10706_s24 }
 0x16c   :  { %v846_v17 = vpop.permute.xlu1 %845 }
 0x16e   :  { %651 = vrot.lane.b32.xlu0 %v11081_v56, %s10704_s20 }
 0x16f   :  { %v896_v29 = vpop.permute.xlu0 %895  ;;  %853 = vrot.lane.b32.xlu1 %v11211_v1, %s10705_s21 }
 0x170   :  { %v11789_v59 = vpop.permute.xlu1 %807 }
 0x172   :  { %2733 = vrot.lane.b32.xlu0 %v11647_v48, %s10706_s24  ;;  %v987_v48 = vsel %vm985_vm15, %v933_v6, %v11600_v28  ;;  %v15825_v28 = vpack.c.bf16 %v11217_v15, %v11200_v45  ;;  %v11839_v6 = vld [vmem:[#allocation2 + $0xe8] sm:$0xff] }
 0x173   :  { %v898_v47 = vpop.permute.xlu0 %897  ;;  %705 = vrot.lane.b32.xlu1 %v15822_v31, %s10705_s21  ;;  %v1024_v3 = vsel %vm1022_vm0, %v987_v48, %v11621_v49  ;;  %v989_v49 = vsel %vm985_vm15, %v936_v33, %v11657_v60  ;;  %v15827_v15 = vld [vmem:[#allocation33_spill] sm:$0xff]  ;;  %v15828_v45 = vld [vmem:[#allocation30_spill] sm:$0xff] }
 0x174   :  { %v842_v63 = vpop.permute.xlu1 %841  ;;  %v10637_v60 = vld [vmem:[#allocation2 + $0x20] sm:$0xff] }
 0x175   :  { %v1132_v21 = vsel %vm985_vm15, %v1079_v34, %v842_v63  ;;  %v1085_v63 = vsel %vm43_vm2, %v11499_v41, %v806_v43  ;;  %v15826_v34 = vld [vmem:[#allocation37_spill] sm:$0xff] }
 0x176   :  { %907 = vrot.lane.b32.xlu0 %v15823_v40, %s10706_s24  ;;  %v1168_v57 = vsel %vm1022_vm0, %v1132_v21, %v896_v29  ;;  %v1136_v44 = vsel %vm985_vm15, %v1085_v63, %v846_v17  ;;  %v10638_v43 = vld [vmem:[#allocation2 + $0x28] sm:$0xff]  ;;  %v1027_v17 = vsel %vm1022_vm0, %v989_v49, %v11668_v4  ;;  %v11850_v40 = vld [vmem:[#allocation2 + $0xd8] sm:$0xff]  ;;  %v11852_v48 = vld [vmem:[#allocation2 + $0xe0] sm:$0xff] }
 0x177   :  { %v11807_v46 = vpop.permute.xlu0 %647  ;;  %759 = vrot.lane.b32.xlu1 %v11431_v2, %s10706_s24  ;;  %1388 = vmatprep.mubr.bf16.mxu1 %v1168_v57  ;;  %v15824_v2 = vpack.c.bf16 %v11235_v55, %v11194_v37  ;;  %v11837_v37 = vld [vmem:[#allocation2 + $0xc1] sm:$0xff]  ;;  %v11846_v31 = vpack.c.bf16 %v10638_v43, %v10637_v60  ;;  %v11854_v21 = vld [vmem:[#allocation2 + $0xd0] sm:$0xff] }
 0x178   :  { %v804_v13 = vpop.permute.xlu1 %803  ;;  %1389 = vmatmul.mubr.bf16.vlgmr.msra.gmra.mrb[0].mxu1 %v1024_v3  ;;  %v2443_v49 = vld [vmem:[#allocation2 + $0x97] sm:$0xff]  ;;  %v2444_v63 = vld [vmem:[#allocation2 + $0x9f] sm:$0xff] }
 0x179   :  { %v1082_v61 = vsel %vm43_vm2, %v15826_v34, %v804_v13  ;;  %v15829_v13 = vld [vmem:[#allocation39_spill] sm:$0xff]  ;;  %v15830_v34 = vld [vmem:[#allocation17_spill] sm:$0xff] }
 0x17a   :  { %653 = vrot.lane.b32.xlu0 %v11154_v30, %s10704_s20  ;;  %v611_v33 = vpack.c.bf16 %v11837_v37, %v15829_v13 }
 0x17b   :  { %v11819_v19 = vpop.permute.xlu0 %901  ;;  %815 = vrot.lane.b32.xlu1 %v15824_v2, %s10704_s20 }
 0x17c   :  { %v844_v29 = vpop.permute.xlu1 %843 }
 0x17d   :  { %v1134_v55 = vsel %vm985_vm15, %v1082_v61, %v844_v29  ;;  %v15831_v61 = vld [vmem:[#allocation14_spill] sm:$0xff] }
 0x17e   :  { %909 = vrot.lane.b32.xlu0 %v15825_v28, %s10706_s24  ;;  %v1171_v41 = vsel %vm1022_vm0, %v1134_v55, %v898_v47  ;;  %v1174_v47 = vsel %vm1022_vm0, %v1136_v44, %v900_v11  ;;  %v939_v28 = vsel %vm43_vm2, %v11846_v31, %v11724_v58  ;;  %v15832_v11 = vpack.c.bf16 %v15830_v34, %v15831_v61  ;;  %v11902_v34 = vld [vmem:[#allocation2 + $0x30] sm:$0xff]  ;;  %v15838_v61 = vld [vmem:[#allocation21_spill] sm:$0xff] }
 0x17f   :  { %855 = vrot.lane.b32.xlu1 %v15827_v15, %s10705_s21  ;;  %1396 = vmatprep.mubr.bf16.mxu1 %v1171_v41  ;;  %v11856_v57 = vpop.permute.xlu0 %903  ;;  %v991_v29 = vsel %vm985_vm15, %v939_v28, %v11720_v18  ;;  %v2470_v41 = vpack.c.bf16 %v2444_v63, %v2443_v49  ;;  %v15833_v18 = vld [vmem:[#allocation40_spill] sm:$0xff]  ;;  %v15837_v49 = vld [vmem:[#allocation41_spill] sm:$0xff]  ;;  %v468_v63 = vld [vmem:[#allocation2 + $0x8f] sm:$0xff] }
 0x180   :  { %v700_v3 = vpop.permute.xlu1 %699  ;;  %1397 = vmatmul.mubr.bf16.gmra.mrb[4].mxu1 %v1027_v17  ;;  %v1030_v58 = vsel %vm1022_vm0, %v991_v29, %v11742_v7  ;;  %v11884_v17 = vld [vmem:[#allocation2 + $0xc0] sm:$0xff]  ;;  %v1088_v29 = vsel %vm43_vm2, %v11081_v56, %v11789_v59 }
 0x181   :  { %1404 = vmatprep.mubr.bf16.mxu1 %v1174_v47  ;;  %v15834_v47 = vld [vmem:[#allocation38_spill] sm:$0xff]  ;;  %v11896_v7 = vpack.c.bf16 %v11884_v17, %v15837_v49 }
 0x182   :  { %655 = vrot.lane.b32.xlu0 %v15828_v45, %s10704_s20  ;;  %v15835_v13 = vpack.c.bf16 %v15833_v18, %v15834_v47  ;;  %v15839_v18 = vld [vmem:[#allocation43_spill] sm:$0xff] }
 0x183   :  { %707 = vrot.lane.b32.xlu1 %v15832_v11, %s10705_s21  ;;  %v382_v11 = vpack.c.bf16 %v15838_v61, %v11902_v34  ;;  %v495_v47 = vpack.c.bf16 %v468_v63, %v15839_v18  ;;  %v15840_v61 = vld [vmem:[#allocation57_spill] sm:$0xff] }
 0x184   :  { %v754_v44 = vpop.permute.xlu1 %753  ;;  %v15841_v2 = vpack.c.bf16 %v11440_v62, %v15840_v61 }
 0x186   :  { %911 = vrot.lane.b32.xlu0 %v611_v33, %s10706_s24  ;;  %v11875_v55 = vpop.permute.xlu0 %2775  ;;  %v15836_v33 = vld [vmem:[#allocation16_spill] sm:$0xff] }
 0x187   :  { %761 = vrot.lane.b32.xlu1 %v11495_v22, %s10706_s24 }
 0x188   :  { %v702_v60 = vpop.permute.xlu1 %701  ;;  %1405 = vmatmul.mubr.bf16.gmra.mrb[8].mxu1 %v1030_v58 }
 0x18a   :  { %2685 = vrot.lane.b32.xlu0 %v2470_v41, %s10705_s21  ;;  %v11882_v43 = vpop.permute.xlu0 %2779 }
 0x18b   :  { %817 = vrot.lane.b32.xlu1 %v15835_v13, %s10704_s20  ;;  %v942_v13 = vsel %vm43_vm2, %v382_v11, %v11770_v52  ;;  %v15842_v52 = vld [vmem:[#allocation34_spill] sm:$0xff]  ;;  %v15844_v11 = vld [vmem:[#allocation11_spill] sm:$0xff] }
 0x18c   :  { %v756_v22 = vpop.permute.xlu1 %755 }
 0x18e   :  { %657 = vrot.lane.b32.xlu0 %v15836_v33, %s10704_s20  ;;  %v11892_v28 = vpop.permute.xlu0 %2819 }
 0x18f   :  { %857 = vrot.lane.b32.xlu1 %v11896_v7, %s10705_s21 }
 0x190   :  { %v848_v41 = vpop.permute.xlu1 %847 }
 0x191   :  { %v1138_v4 = vsel %vm985_vm15, %v1088_v29, %v848_v41 }
 0x192   :  { %2739 = vrot.lane.b32.xlu0 %v11748_v5, %s10706_s24  ;;  %v11909_v58 = vpop.permute.xlu0 %2781  ;;  %v993_v5 = vsel %vm985_vm15, %v942_v13, %v700_v3  ;;  %v1177_v56 = vsel %vm1022_vm0, %v1138_v4, %v11819_v19  ;;  %v10640_v3 = vld [vmem:[#allocation2 + $0x91] sm:$0xff] }
 0x193   :  { %709 = vrot.lane.b32.xlu1 %v495_v47, %s10705_s21  ;;  %1412 = vmatprep.mubr.bf16.mxu1 %v1177_v56  ;;  %v1033_v59 = vsel %vm1022_vm0, %v993_v5, %v754_v44  ;;  %v11931_v62 = vpack.c.bf16 %v11772_v50, %v10640_v3  ;;  %v15843_v44 = vld [vmem:[#allocation12_spill] sm:$0xff]  ;;  %v11943_v47 = vld [vmem:[#allocation2 + $0xc2] sm:$0xff] }
 0x194   :  { %v810_v18 = vpop.permute.xlu1 %809  ;;  %1413 = vmatmul.mubr.bf16.gmra.mrb[12].mxu1 %v1033_v59  ;;  %v15845_v29 = vpack.c.bf16 %v15843_v44, %v15844_v11  ;;  %v2439_v13 = vld [vmem:[#allocation2 + $0x77] sm:$0xff]  ;;  %v2440_v5 = vld [vmem:[#allocation2 + $0x7f] sm:$0xff]  ;;  %v2441_v44 = vld [vmem:[#allocation2 + $0x87] sm:$0xff] }
 0x195   :  { %v1091_v19 = vsel %vm43_vm2, %v11154_v30, %v810_v18  ;;  %v15846_v30 = vld [vmem:[#allocation59_spill] sm:$0xff] }
 0x196   :  { %913 = vrot.lane.b32.xlu0 %v15841_v2, %s10706_s24  ;;  %v945_v41 = vsel %vm43_vm2, %v15845_v29, %v11807_v46  ;;  %v15847_v56 = vpack.c.bf16 %v11458_v10, %v15846_v30  ;;  %v2469_v29 = vpack.c.bf16 %v468_v63, %v2441_v44  ;;  %v2525_v30 = vld [vmem:[#allocation2 + $0xaa] sm:$0xff]  ;;  %v3051_v63 = vsel %vm43_vm2, %v11531_v20, %v11875_v55 }
 0x197   :  { %763 = vrot.lane.b32.xlu1 %v11643_v42, %s10706_s24  ;;  %v995_v50 = vsel %vm985_vm15, %v945_v41, %v702_v60  ;;  %v581_v60 = vpack.c.bf16 %v11617_v0, %v11943_v47  ;;  %v15849_v0 = vld [vmem:[#allocation23_spill] sm:$0xff] }
 0x198   :  { %v11924_v49 = vpop.permute.xlu0 %2677  ;;  %v850_v2 = vpop.permute.xlu1 %849  ;;  %v1036_v46 = vsel %vm1022_vm0, %v995_v50, %v756_v22  ;;  %v15850_v41 = vld [vmem:[#allocation27_spill] sm:$0xff]  ;;  %v2907_v50 = vsel %vm43_vm2, %v11783_v53, %v11558_v36 }
 0x199   :  { %v1140_v42 = vsel %vm985_vm15, %v1091_v19, %v850_v2  ;;  %v2468_v19 = vpack.c.bf16 %v2440_v5, %v2439_v13 }
 0x19a   :  { %659 = vrot.lane.b32.xlu0 %v15842_v52, %s10704_s20  ;;  %v1180_v59 = vsel %vm1022_vm0, %v1140_v42, %v11856_v57  ;;  %v15848_v57 = vld [vmem:[#allocation64_spill] sm:$0xff]  ;;  %v15851_v42 = vpack.c.bf16 %v15849_v0, %v15850_v41  ;;  %v2910_v41 = vsel %vm43_vm2, %v10894_v23, %v11637_v32  ;;  %v12020_v32 = vld [vmem:[#allocation2 + $0x111] sm:$0xff] }
 0x19b   :  { %2631 = vrot.lane.b32.xlu1 %v11931_v62, %s10704_s20  ;;  %1420 = vmatprep.mubr.bf16.mxu1 %v1180_v59  ;;  %v2962_v23 = vsel %vm985_vm15, %v2910_v41, %v11639_v38 }
 0x19c   :  { %v11935_v4 = vpop.permute.xlu0 %649  ;;  %v11955_v18 = vpop.permute.xlu1 %2619  ;;  %1421 = vmatmul.mubr.bf16.gmra.mrb[16].mxu1 %v1036_v46 }
 0x19e   :  { %915 = vrot.lane.b32.xlu0 %v15847_v56, %s10706_s24  ;;  %v2960_v56 = vsel %vm985_vm15, %v2907_v50, %v11578_v24  ;;  %v15856_v50 = vld [vmem:[#allocation72_spill] sm:$0xff] }
 0x19f   :  { %819 = vrot.lane.b32.xlu1 %v581_v60, %s10704_s20  ;;  %v2996_v20 = vsel %vm1022_vm0, %v2960_v56, %v11626_v35 }
 0x1a0   :  { %v2778_v3 = vpop.permute.xlu0 %2777  ;;  %v2874_v10 = vpop.permute.xlu1 %2873 }
 0x1a1   :  { %v3054_v35 = vsel %vm43_vm2, %v11653_v25, %v2778_v3  ;;  %v3057_v25 = vsel %vm43_vm2, %v11572_v39, %v11882_v43  ;;  %v15857_v3 = vld [vmem:[#allocation32_spill] sm:$0xff] }
 0x1a2   :  { %2681 = vrot.lane.b32.xlu0 %v2468_v19, %s10705_s21  ;;  %v11992_v19 = vld [vmem:[#allocation2 + $0xb0] sm:$0xff]  ;;  %v2531_v39 = vld [vmem:[#allocation2 + $0xda] sm:$0xff] }
 0x1a3   :  { %859 = vrot.lane.b32.xlu1 %v15848_v57, %s10705_s21 }
 0x1a4   :  { %v2818_v2 = vpop.permute.xlu0 %2817  ;;  %v11965_v22 = vpop.permute.xlu1 %2623 }
 0x1a6   :  { %2735 = vrot.lane.b32.xlu0 %v11699_v14, %s10706_s24  ;;  %v2524_v14 = vld [vmem:[#allocation2 + $0xa2] sm:$0xff] }
 0x1a7   :  { %711 = vrot.lane.b32.xlu1 %v15851_v42, %s10705_s21  ;;  %v2553_v36 = vpack.c.bf16 %v2525_v30, %v2524_v14  ;;  %v2445_v42 = vld [vmem:[#allocation2 + $0xa7] sm:$0xff]  ;;  %v3106_v30 = vsel %vm985_vm15, %v3054_v35, %v2818_v2  ;;  %v15858_v2 = vld [vmem:[#allocation31_spill] sm:$0xff]  ;;  %v2913_v35 = vsel %vm43_vm2, %v11846_v31, %v11710_v27 }
 0x1a8   :  { %v11967_v11 = vpop.permute.xlu0 %2731  ;;  %v2816_v13 = vpop.permute.xlu1 %2815  ;;  %v12013_v14 = vld [vmem:[#allocation2 + $0x109] sm:$0xff]  ;;  %v2526_v31 = vld [vmem:[#allocation2 + $0xb2] sm:$0xff] }
 0x1a9   :  { %v3104_v59 = vsel %vm985_vm15, %v3051_v63, %v2816_v13  ;;  %v2446_v13 = vld [vmem:[#allocation2 + $0xaf] sm:$0xff] }
 0x1aa   :  { %2683 = vrot.lane.b32.xlu0 %v2469_v29, %s10705_s21  ;;  %v15855_v29 = vld [vmem:[#allocation62_spill] sm:$0xff] }
 0x1ab   :  { %765 = vrot.lane.b32.xlu1 %v11211_v1, %s10706_s24  ;;  %v15852_v1 = vld [vmem:[#allocation68_spill] sm:$0xff]  ;;  %v2491_v0 = vpack.c.bf16 %v11992_v19, %v15855_v29  ;;  %v15860_v27 = vld [vmem:[#allocation54_spill] sm:$0xff] }
 0x1ac   :  { %v11974_v5 = vpop.permute.xlu0 %2673  ;;  %v2870_v46 = vpop.permute.xlu1 %2869 }
 0x1ad   :  { %v3140_v53 = vsel %vm1022_vm0, %v3104_v59, %v2870_v46  ;;  %v2471_v59 = vpack.c.bf16 %v2446_v13, %v2445_v42  ;;  %v12022_v46 = vld [vmem:[#allocation2 + $0x119] sm:$0xff] }
 0x1ae   :  { %2737 = vrot.lane.b32.xlu0 %v11727_v9, %s10706_s24  ;;  %v15853_v9 = vld [vmem:[#allocation67_spill] sm:$0xff]  ;;  %3360 = vmatprep.mubr.bf16.mxu0 %v3140_v53  ;;  %v12025_v53 = vld [vmem:[#allocation2 + $0x101] sm:$0xff] }
 0x1af   :  { %v15854_v44 = vpack.c.bf16 %v15852_v1, %v15853_v9  ;;  %3361 = vmatmul.mubr.bf16.vlgmr.msra.gmra.mrb[32].mxu0 %v2996_v20  ;;  %v15859_v1 = vpack.c.bf16 %v15857_v3, %v15858_v2  ;;  %v12037_v38 = vpack.c.bf16 %v12013_v14, %v12025_v53  ;;  %v3108_v9 = vsel %vm985_vm15, %v3057_v25, %v11892_v28  ;;  %v2530_v20 = vld [vmem:[#allocation2 + $0xd2] sm:$0xff] }
 0x1b0   :  { %v11989_v60 = vpop.permute.xlu0 %2727  ;;  %v812_v24 = vpop.permute.xlu1 %811  ;;  %v3146_v42 = vsel %vm1022_vm0, %v3108_v9, %v2874_v10  ;;  %v2964_v10 = vsel %vm985_vm15, %v2913_v35, %v11714_v54  ;;  %v12067_v25 = vld [vmem:[#allocation2 + $0xb1] sm:$0xff] }
 0x1b1   :  { %821 = vrot.lane.b32.xlu1 %v15854_v44, %s10704_s20  ;;  %v2999_v44 = vsel %vm1022_vm0, %v2962_v23, %v11685_v8  ;;  %v2556_v8 = vpack.c.bf16 %v2531_v39, %v2530_v20  ;;  %v1094_v28 = vsel %vm43_vm2, %v15828_v45, %v812_v24  ;;  %v3002_v45 = vsel %vm1022_vm0, %v2964_v10, %v11755_v51  ;;  %v2527_v24 = vld [vmem:[#allocation2 + $0xba] sm:$0xff]  ;;  %v15861_v3 = vld [vmem:[#allocation55_spill] sm:$0xff] }
 0x1b2   :  { %2789 = vrot.lane.b32.xlu0 %v2553_v36, %s10704_s20  ;;  %v2554_v2 = vpack.c.bf16 %v2527_v24, %v2526_v31  ;;  %v3060_v51 = vsel %vm43_vm2, %v11744_v26, %v11909_v58  ;;  %v15864_v10 = vld [vmem:[#allocation47_spill] sm:$0xff]  ;;  %v2529_v31 = vld [vmem:[#allocation2 + $0xca] sm:$0xff] }
 0x1b4   :  { %v12001_v55 = vpop.permute.xlu0 %2675  ;;  %v2872_v63 = vpop.permute.xlu1 %2871 }
 0x1b5   :  { %861 = vrot.lane.b32.xlu1 %v15856_v50, %s10705_s21  ;;  %v3143_v36 = vsel %vm1022_vm0, %v3106_v30, %v2872_v63 }
 0x1b6   :  { %2829 = vrot.lane.b32.xlu0 %v2491_v0, %s10705_s21  ;;  %3368 = vmatprep.mubr.bf16.mxu0 %v3143_v36  ;;  %v2392_v36 = vld [vmem:[#allocation2 + $0xa9] sm:$0xff] }
 0x1b7   :  { %3369 = vmatmul.mubr.bf16.gmra.mrb[36].mxu0 %v2999_v44  ;;  %v12078_v44 = vld [vmem:[#allocation2 + $0xb8] sm:$0xff] }
 0x1b8   :  { %v12016_v56 = vpop.permute.xlu0 %2729  ;;  %v852_v41 = vpop.permute.xlu1 %851  ;;  %3376 = vmatprep.mubr.bf16.mxu0 %v3146_v42  ;;  %v2584_v42 = vpack.c.bf16 %v12067_v25, %v2392_v36  ;;  %v12091_v26 = vpack.c.bf16 %v11884_v17, %v12078_v44 }
 0x1b9   :  { %713 = vrot.lane.b32.xlu1 %v15859_v1, %s10705_s21  ;;  %v1142_v30 = vsel %vm985_vm15, %v1094_v28, %v852_v41  ;;  %v15862_v1 = vld [vmem:[#allocation78_spill] sm:$0xff]  ;;  %v12100_v28 = vpack.c.bf16 %v2392_v36, %v11774_v12 }
 0x1ba   :  { %2687 = vrot.lane.b32.xlu0 %v2471_v59, %s10705_s21  ;;  %v2356_v9 = vpack.c.bf16 %v15862_v1, %v11902_v34 }
 0x1bc   :  { %v2822_v13 = vpop.permute.xlu0 %2821  ;;  %v2622_v63 = vpop.permute.xlu1 %2621  ;;  %v2916_v35 = vsel %vm43_vm2, %v2356_v9, %v11955_v18  ;;  %v12097_v18 = vld [vmem:[#allocation2 + $0xe1] sm:$0xff]  ;;  %v15866_v9 = vld [vmem:[#allocation42_spill] sm:$0xff] }
 0x1bd   :  { %767 = vrot.lane.b32.xlu1 %v15827_v15, %s10706_s24  ;;  %v12063_v15 = vpack.c.bf16 %v11852_v48, %v11850_v40  ;;  %v3110_v20 = vsel %vm985_vm15, %v3060_v51, %v2822_v13  ;;  %v2966_v34 = vsel %vm985_vm15, %v2916_v35, %v11974_v5  ;;  %v12095_v13 = vld [vmem:[#allocation2 + $0xd9] sm:$0xff]  ;;  %v15867_v51 = vld [vmem:[#allocation13_spill] sm:$0xff] }
 0x1be   :  { %2741 = vrot.lane.b32.xlu0 %v2491_v0, %s10706_s24  ;;  %v3005_v58 = vsel %vm1022_vm0, %v2966_v34, %v11989_v60  ;;  %v2587_v60 = vpack.c.bf16 %v12097_v18, %v12095_v13 }
 0x1bf   :  { %3377 = vmatmul.mubr.bf16.gmra.mrb[40].mxu0 %v3002_v45  ;;  %v12114_v45 = vld [vmem:[#allocation2 + $0xb9] sm:$0xff] }
 0x1c0   :  { %v906_v59 = vpop.permute.xlu0 %905  ;;  %v2880_v0 = vpop.permute.xlu1 %2879 }
 0x1c1   :  { %v1183_v23 = vsel %vm1022_vm0, %v1142_v30, %v906_v59  ;;  %2627 = vrot.lane.b32.xlu1 %v15860_v27, %s10704_s20  ;;  %v15863_v59 = vld [vmem:[#allocation46_spill] sm:$0xff] }
 0x1c2   :  { %2795 = vrot.lane.b32.xlu0 %v2556_v8, %s10704_s20  ;;  %1428 = vmatprep.mubr.bf16.mxu1 %v1183_v23  ;;  %v15865_v23 = vpack.c.bf16 %v15863_v59, %v15864_v10  ;;  %v15871_v59 = vld [vmem:[#allocation44_spill] sm:$0xff] }
 0x1c4   :  { %v2784_v54 = vpop.permute.xlu0 %2783  ;;  %v2876_v39 = vpop.permute.xlu1 %2875  ;;  %v2919_v17 = vsel %vm43_vm2, %v15865_v23, %v2622_v63 }
 0x1c5   :  { %2629 = vrot.lane.b32.xlu1 %v15861_v3, %s10704_s20  ;;  %v3149_v8 = vsel %vm1022_vm0, %v3110_v20, %v2876_v39  ;;  %v3063_v12 = vsel %vm43_vm2, %v15860_v27, %v2784_v54  ;;  %v2968_v63 = vsel %vm985_vm15, %v2919_v17, %v12001_v55  ;;  %v2585_v27 = vpack.c.bf16 %v11837_v37, %v12114_v45  ;;  %v15868_v20 = vld [vmem:[#allocation15_spill] sm:$0xff]  ;;  %v12152_v17 = vld [vmem:[#allocation2 + $0xc9] sm:$0xff] }
 0x1c6   :  { %2835 = vrot.lane.b32.xlu0 %v12063_v15, %s10705_s21  ;;  %3384 = vmatprep.mubr.bf16.mxu0 %v3149_v8  ;;  %v2555_v54 = vpack.c.bf16 %v2529_v31, %v11943_v47  ;;  %v15869_v39 = vpack.c.bf16 %v15867_v51, %v15868_v20  ;;  %v3008_v55 = vsel %vm1022_vm0, %v2968_v63, %v12016_v56  ;;  %v373_v20 = vld [vmem:[#allocation2 + $0xf0] sm:$0xff] }
 0x1c7   :  { %3385 = vmatmul.mubr.bf16.gmra.mrb[44].mxu0 %v3005_v58  ;;  %v15870_v58 = vld [vmem:[#allocation45_spill] sm:$0xff] }
 0x1c8   :  { %v2824_v41 = vpop.permute.xlu0 %2823  ;;  %v704_v5 = vpop.permute.xlu1 %703  ;;  %v15872_v10 = vpack.c.bf16 %v15870_v58, %v15871_v59 }
 0x1c9   :  { %2883 = vrot.lane.b32.xlu1 %v2584_v42, %s10706_s24  ;;  %v3112_v24 = vsel %vm985_vm15, %v3063_v12, %v2824_v41  ;;  %v948_v41 = vsel %vm43_vm2, %v15869_v39, %v11935_v4  ;;  %v12133_v42 = vld [vmem:[#allocation2 + $0xc8] sm:$0xff]  ;;  %v2447_v39 = vld [vmem:[#allocation2 + $0xb7] sm:$0xff] }
 0x1ca   :  { %2791 = vrot.lane.b32.xlu0 %v2554_v2, %s10704_s20  ;;  %v997_v35 = vsel %vm985_vm15, %v948_v41, %v704_v5  ;;  %v2922_v4 = vsel %vm43_vm2, %v15872_v10, %v11965_v22  ;;  %v15878_v10 = vld [vmem:[#allocation48_spill] sm:$0xff] }
 0x1cb   :  { %v2970_v31 = vsel %vm985_vm15, %v2922_v4, %v11924_v49  ;;  %v15876_v49 = vld [vmem:[#allocation75_spill] sm:$0xff]  ;;  %v15879_v4 = vld [vmem:[#allocation9_spill] sm:$0xff] }
 0x1cc   :  { %v2788_v30 = vpop.permute.xlu0 %2787  ;;  %v2878_v36 = vpop.permute.xlu1 %2877 }
 0x1cd   :  { %2633 = vrot.lane.b32.xlu1 %v12100_v28, %s10704_s20  ;;  %v3152_v1 = vsel %vm1022_vm0, %v3112_v24, %v2878_v36  ;;  %v12158_v24 = vld [vmem:[#allocation2 + $0xf1] sm:$0xff]  ;;  %v3069_v41 = vsel %vm43_vm2, %v11931_v62, %v2788_v30 }
 0x1ce   :  { %2831 = vrot.lane.b32.xlu0 %v12091_v26, %s10705_s21  ;;  %3392 = vmatprep.mubr.bf16.mxu0 %v3152_v1  ;;  %v15873_v36 = vld [vmem:[#allocation74_spill] sm:$0xff]  ;;  %v3011_v1 = vsel %vm1022_vm0, %v2970_v31, %v11967_v11  ;;  %v614_v51 = vpack.c.bf16 %v12158_v24, %v15876_v49 }
 0x1cf   :  { %3393 = vmatmul.mubr.bf16.gmra.mrb[48].mxu0 %v3008_v55  ;;  %v2448_v55 = vld [vmem:[#allocation2 + $0xbf] sm:$0xff] }
 0x1d0   :  { %v2786_v2 = vpop.permute.xlu0 %2785  ;;  %v2472_v58 = vpack.c.bf16 %v2448_v55, %v2447_v39  ;;  %v15882_v39 = vld [vmem:[#allocation10_spill] sm:$0xff] }
 0x1d1   :  { %2889 = vrot.lane.b32.xlu1 %v2587_v60, %s10706_s24  ;;  %v3066_v8 = vsel %vm43_vm2, %v15861_v3, %v2786_v2  ;;  %v758_v34 = vpop.permute.xlu1 %757  ;;  %v12150_v3 = vpack.c.bf16 %v11854_v21, %v12133_v42  ;;  %v12154_v60 = vld [vmem:[#allocation2 + $0xd1] sm:$0xff] }
 0x1d2   :  { %661 = vrot.lane.b32.xlu0 %v15866_v9, %s10704_s20  ;;  %v1039_v56 = vsel %vm1022_vm0, %v997_v35, %v758_v34  ;;  %v2586_v63 = vpack.c.bf16 %v12154_v60, %v12152_v17  ;;  %v15877_v34 = vld [vmem:[#allocation79_spill] sm:$0xff] }
 0x1d3   :  { %1429 = vmatmul.mubr.bf16.gmra.mrb[20].mxu1 %v1039_v56 }
 0x1d4   :  { %v2826_v47 = vpop.permute.xlu0 %2825 }
 0x1d5   :  { %v3114_v23 = vsel %vm985_vm15, %v3066_v8, %v2826_v47  ;;  %2885 = vrot.lane.b32.xlu1 %v2585_v27, %s10706_s24  ;;  %v2626_v22 = vpop.permute.xlu1 %2625  ;;  %v12178_v47 = vpack.c.bf16 %v373_v20, %v15877_v34 }
 0x1d6   :  { %2793 = vrot.lane.b32.xlu0 %v2555_v54, %s10704_s20  ;;  %v3155_v5 = vsel %vm1022_vm0, %v3114_v23, %v2880_v0  ;;  %v15874_v0 = vld [vmem:[#allocation65_spill] sm:$0xff]  ;;  %v15880_v23 = vpack.c.bf16 %v15878_v10, %v15879_v4  ;;  %v2348_v10 = vld [vmem:[#allocation2 + $0xf8] sm:$0xff] }
 0x1d7   :  { %3400 = vmatprep.mubr.bf16.mxu0 %v3155_v5  ;;  %v15875_v2 = vpack.c.bf16 %v15873_v36, %v15874_v0  ;;  %v2532_v0 = vld [vmem:[#allocation2 + $0xe2] sm:$0xff] }
 0x1d8   :  { %v2828_v12 = vpop.permute.xlu0 %2827  ;;  %3401 = vmatmul.mubr.bf16.gmra.mrb[52].mxu0 %v3011_v1  ;;  %v2925_v62 = vsel %vm43_vm2, %v15880_v23, %v2626_v22 }
 0x1d9   :  { %823 = vrot.lane.b32.xlu1 %v15875_v2, %s10704_s20  ;;  %v814_v27 = vpop.permute.xlu1 %813  ;;  %v3116_v35 = vsel %vm985_vm15, %v3069_v41, %v2828_v12  ;;  %v15881_v12 = vld [vmem:[#allocation49_spill] sm:$0xff]  ;;  %v2533_v2 = vld [vmem:[#allocation2 + $0xea] sm:$0xff]  ;;  %v15883_v41 = vpack.c.bf16 %v15882_v39, %v15879_v4  ;;  %v15886_v39 = vld [vmem:[#allocation19_spill] sm:$0xff] }
 0x1da   :  { %2833 = vrot.lane.b32.xlu0 %v12150_v3, %s10705_s21  ;;  %v498_v31 = vpack.c.bf16 %v2448_v55, %v15881_v12  ;;  %v2557_v49 = vpack.c.bf16 %v2533_v2, %v2532_v0  ;;  %v2349_v4 = vld [vmem:[#allocation2 + $0x100] sm:$0xff] }
 0x1db   :  { %v12238_v2 = vld [vmem:[#allocation2 + $0xf9] sm:$0xff] }
 0x1dc   :  { %v2680_v54 = vpop.permute.xlu0 %2679 }
 0x1dd   :  { %2887 = vrot.lane.b32.xlu1 %v2586_v63, %s10706_s24  ;;  %v2882_v8 = vpop.permute.xlu1 %2881  ;;  %v2972_v30 = vsel %vm985_vm15, %v2925_v62, %v2680_v54  ;;  %v1097_v63 = vsel %vm43_vm2, %v15836_v33, %v814_v27  ;;  %v2535_v33 = vld [vmem:[#allocation2 + $0xfa] sm:$0xff] }
 0x1de   :  { %917 = vrot.lane.b32.xlu0 %v614_v51, %s10706_s24  ;;  %v3158_v59 = vsel %vm1022_vm0, %v3116_v35, %v2882_v8  ;;  %v12208_v8 = vpack.c.bf16 %v12114_v45, %v12067_v25  ;;  %v12220_v25 = vpack.c.bf16 %v12152_v17, %v11837_v37  ;;  %v12222_v45 = vld [vmem:[#allocation2 + $0xe9] sm:$0xff] }
 0x1df   :  { %3408 = vmatprep.mubr.bf16.mxu0 %v3158_v59  ;;  %v2534_v59 = vld [vmem:[#allocation2 + $0xf2] sm:$0xff] }
 0x1e0   :  { %v652_v11 = vpop.permute.xlu0 %651 }
 0x1e1   :  { %863 = vrot.lane.b32.xlu1 %v12178_v47, %s10705_s21  ;;  %v854_v56 = vpop.permute.xlu1 %853 }
 0x1e2   :  { %2689 = vrot.lane.b32.xlu0 %v2472_v58, %s10705_s21  ;;  %v1144_v22 = vsel %vm985_vm15, %v1097_v63, %v854_v56  ;;  %v12211_v58 = vpack.c.bf16 %v373_v20, %v11839_v6  ;;  %v2588_v20 = vpack.c.bf16 %v12158_v24, %v12222_v45 }
 0x1e4   :  { %v2734_v5 = vpop.permute.xlu0 %2733 }
 0x1e5   :  { %v3014_v36 = vsel %vm1022_vm0, %v2972_v30, %v2734_v5  ;;  %715 = vrot.lane.b32.xlu1 %v498_v31, %s10705_s21  ;;  %v706_v1 = vpop.permute.xlu1 %705  ;;  %v12229_v30 = vpack.c.bf16 %v2349_v4, %v2348_v10  ;;  %v2449_v31 = vld [vmem:[#allocation2 + $0xc7] sm:$0xff] }
 0x1e6   :  { %2743 = vrot.lane.b32.xlu0 %v12091_v26, %s10706_s24  ;;  %3409 = vmatmul.mubr.bf16.gmra.mrb[56].mxu0 %v3014_v36  ;;  %v951_v26 = vsel %vm43_vm2, %v15883_v41, %v652_v11  ;;  %v2558_v11 = vpack.c.bf16 %v2535_v33, %v2534_v59  ;;  %v2450_v36 = vld [vmem:[#allocation2 + $0xcf] sm:$0xff]  ;;  %v445_v33 = vpack.c.bf16 %v15840_v61, %v11837_v37  ;;  %v2536_v37 = vld [vmem:[#allocation2 + $0x102] sm:$0xff] }
 0x1e7   :  { %v999_v27 = vsel %vm985_vm15, %v951_v26, %v706_v1  ;;  %v2473_v1 = vpack.c.bf16 %v2450_v36, %v2449_v31  ;;  %v15889_v10 = vld [vmem:[#allocation90_spill] sm:$0xff]  ;;  %v15893_v36 = vld [vmem:[#allocation73_spill] sm:$0xff] }
 0x1e8   :  { %v908_v54 = vpop.permute.xlu0 %907  ;;  %v2537_v61 = vld [vmem:[#allocation2 + $0x10a] sm:$0xff] }
 0x1e9   :  { %v1186_v51 = vsel %vm1022_vm0, %v1144_v22, %v908_v54  ;;  %769 = vrot.lane.b32.xlu1 %v11896_v7, %s10706_s24  ;;  %v760_v55 = vpop.permute.xlu1 %759  ;;  %v15884_v54 = vmov 0.0   ;;  %v15892_v31 = vld [vmem:[#allocation66_spill] sm:$0xff] }
 0x1ea   :  { %2797 = vrot.lane.b32.xlu0 %v2557_v49, %s10704_s20  ;;  %1436 = vmatprep.mubr.bf16.mxu1 %v1186_v51  ;;  %v1042_v7 = vsel %vm1022_vm0, %v999_v27, %v760_v55  ;;  %87 = vst.msk [vmem:[#allocation2 + $0x150] sm:$0x7f] %vm86_vm1, %v15884_v54  ;;  %v2589_v49 = vpack.c.bf16 %v12025_v53, %v12238_v2  ;;  %v15885_v51 = vld [vmem:[#allocation20_spill] sm:$0xff] }
 0x1eb   :  { %1437 = vmatmul.mubr.bf16.gmra.mrb[24].mxu1 %v1042_v7  ;;  %v15887_v41 = vpack.c.bf16 %v15885_v51, %v15886_v39  ;;  %v15895_v51 = vld [vmem:[#allocation25_spill] sm:$0xff]  ;;  %v15896_v39 = vld [vmem:[#allocation24_spill] sm:$0xff] }
 0x1ec   :  { %v654_v35 = vpop.permute.xlu0 %653 }
 0x1ed   :  { %2635 = vrot.lane.b32.xlu1 %v12208_v8, %s10704_s20  ;;  %v816_v23 = vpop.permute.xlu1 %815  ;;  %v954_v26 = vsel %vm43_vm2, %v15887_v41, %v654_v35  ;;  %v15897_v41 = vpack.c.bf16 %v15895_v51, %v15896_v39 }
 0x1ee   :  { %2837 = vrot.lane.b32.xlu0 %v12211_v58, %s10705_s21  ;;  %v1100_v56 = vsel %vm43_vm2, %v15842_v52, %v816_v23  ;;  %v584_v52 = vpack.c.bf16 %v11701_v16, %v2534_v59 }
 0x1f0   :  { %v910_v62 = vpop.permute.xlu0 %909 }
 0x1f1   :  { %2637 = vrot.lane.b32.xlu1 %v12220_v25, %s10704_s20  ;;  %v856_v5 = vpop.permute.xlu1 %855 }
 0x1f2   :  { %2799 = vrot.lane.b32.xlu0 %v2558_v11, %s10704_s20  ;;  %v1146_v17 = vsel %vm985_vm15, %v1100_v56, %v856_v5  ;;  %v15888_v11 = vld [vmem:[#allocation88_spill] sm:$0xff]  ;;  %v15891_v56 = vld [vmem:[#allocation98_spill] sm:$0xff] }
 0x1f3   :  { %v1189_v0 = vsel %vm1022_vm0, %v1146_v17, %v910_v62  ;;  %v12260_v35 = vpack.c.bf16 %v15889_v10, %v15888_v11 }
 0x1f4   :  { %v656_v12 = vpop.permute.xlu0 %655  ;;  %1444 = vmatprep.mubr.bf16.mxu1 %v1189_v0  ;;  %v15894_v0 = vpack.c.bf16 %v15892_v31, %v15893_v36  ;;  %v15900_v36 = vld [vmem:[#allocation61_spill] sm:$0xff] }
 0x1f5   :  { %2891 = vrot.lane.b32.xlu1 %v2588_v20, %s10706_s24  ;;  %v708_v63 = vpop.permute.xlu1 %707  ;;  %v15890_v20 = vld [vmem:[#allocation89_spill] sm:$0xff] }
 0x1f6   :  { %2839 = vrot.lane.b32.xlu0 %v12229_v30, %s10705_s21  ;;  %v1001_v16 = vsel %vm985_vm15, %v954_v26, %v708_v63  ;;  %v615_v5 = vpack.c.bf16 %v15891_v56, %v15890_v20  ;;  %v2559_v63 = vpack.c.bf16 %v2537_v61, %v2536_v37  ;;  %v957_v26 = vsel %vm43_vm2, %v15897_v41, %v656_v12  ;;  %v2452_v37 = vld [vmem:[#allocation2 + $0xdf] sm:$0xff]  ;;  %v15903_v41 = vld [vmem:[#allocation86_spill] sm:$0xff] }
 0x1f8   :  { %v912_v22 = vpop.permute.xlu0 %911 }
 0x1f9   :  { %825 = vrot.lane.b32.xlu1 %v584_v52, %s10704_s20  ;;  %v762_v27 = vpop.permute.xlu1 %761  ;;  %v2351_v52 = vld [vmem:[#allocation2 + $0x110] sm:$0xff] }
 0x1fa   :  { %2691 = vrot.lane.b32.xlu0 %v2473_v1, %s10705_s21  ;;  %v1045_v7 = vsel %vm1022_vm0, %v1001_v16, %v762_v27 }
 0x1fb   :  { %1445 = vmatmul.mubr.bf16.gmra.mrb[28].mxu1 %v1045_v7  ;;  %v12293_v7 = vpack.c.bf16 %v12095_v13, %v12154_v60  ;;  %v2590_v13 = vpack.c.bf16 %v12020_v32, %v12013_v14 }
 0x1fc   :  { %v12253_v55 = vpop.permute.xlu0 %2685 }
 0x1fd   :  { %2893 = vrot.lane.b32.xlu1 %v2589_v49, %s10706_s24  ;;  %v818_v53 = vpop.permute.xlu1 %817 }
 0x1fe   :  { %663 = vrot.lane.b32.xlu0 %v445_v33, %s10704_s20  ;;  %v1103_v4 = vsel %vm43_vm2, %v15866_v9, %v818_v53  ;;  %v2350_v9 = vld [vmem:[#allocation2 + $0x108] sm:$0xff]  ;;  %v2451_v53 = vld [vmem:[#allocation2 + $0xd7] sm:$0xff] }
 0x1ff   :  { %v12282_v49 = vpack.c.bf16 %v2351_v52, %v2350_v9  ;;  %v15901_v9 = vld [vmem:[#allocation85_spill] sm:$0xff] }
 0x200   :  { %v658_v59 = vpop.permute.xlu0 %657  ;;  %v15902_v52 = vld [vmem:[#allocation81_spill] sm:$0xff] }
 0x201   :  { %865 = vrot.lane.b32.xlu1 %v12260_v35, %s10705_s21  ;;  %v858_v23 = vpop.permute.xlu1 %857 }
 0x202   :  { %2745 = vrot.lane.b32.xlu0 %v12150_v3, %s10706_s24  ;;  %v1148_v17 = vsel %vm985_vm15, %v1103_v4, %v858_v23  ;;  %v15898_v4 = vld [vmem:[#allocation99_spill] sm:$0xff] }
 0x203   :  { %v1192_v3 = vsel %vm1022_vm0, %v1148_v17, %v912_v22  ;;  %v15899_v23 = vld [vmem:[#allocation91_spill] sm:$0xff]  ;;  %v2474_v17 = vpack.c.bf16 %v2452_v37, %v2451_v53  ;;  %v15905_v53 = vld [vmem:[#allocation36_spill] sm:$0xff] }
 0x204   :  { %v12268_v62 = vpop.permute.xlu0 %2739  ;;  %1452 = vmatprep.mubr.bf16.mxu1 %v1192_v3  ;;  %v15906_v37 = vld [vmem:[#allocation35_spill] sm:$0xff] }
 0x205   :  { %717 = vrot.lane.b32.xlu1 %v15894_v0, %s10705_s21  ;;  %v710_v1 = vpop.permute.xlu1 %709 }
 0x206   :  { %919 = vrot.lane.b32.xlu0 %v615_v5, %s10706_s24  ;;  %v1003_v22 = vsel %vm985_vm15, %v957_v26, %v710_v1  ;;  %v585_v5 = vpack.c.bf16 %v15899_v23, %v15898_v4  ;;  %v12318_v1 = vpack.c.bf16 %v15902_v52, %v15901_v9  ;;  %v15904_v26 = vld [vmem:[#allocation82_spill] sm:$0xff]  ;;  %v15907_v4 = vpack.c.bf16 %v15905_v53, %v15906_v37 }
 0x207   :  { %v15908_v23 = vld [vmem:[#allocation26_spill] sm:$0xff] }
 0x208   :  { %v914_v54 = vpop.permute.xlu0 %913  ;;  %v2453_v37 = vld [vmem:[#allocation2 + $0xe7] sm:$0xff] }
 0x209   :  { %771 = vrot.lane.b32.xlu1 %v15848_v57, %s10706_s24  ;;  %v764_v16 = vpop.permute.xlu1 %763 }
 0x20a   :  { %2801 = vrot.lane.b32.xlu0 %v2559_v63, %s10704_s20  ;;  %v1048_v57 = vsel %vm1022_vm0, %v1003_v22, %v764_v16  ;;  %v616_v22 = vpack.c.bf16 %v15904_v26, %v15903_v41  ;;  %v2538_v16 = vld [vmem:[#allocation2 + $0x112] sm:$0xff] }
 0x20b   :  { %1453 = vmatmul.mubr.bf16.gmra.mrb[32].mxu1 %v1048_v57  ;;  %v2539_v57 = vld [vmem:[#allocation2 + $0x11a] sm:$0xff] }
 0x20c   :  { %v12289_v27 = vpop.permute.xlu0 %659 }
 0x20d   :  { %2639 = vrot.lane.b32.xlu1 %v12293_v7, %s10704_s20  ;;  %v12300_v12 = vpop.permute.xlu1 %2631 }
 0x20e   :  { %2841 = vrot.lane.b32.xlu0 %v12282_v49, %s10705_s21 }
 0x210   :  { %v916_v61 = vpop.permute.xlu0 %915 }
 0x211   :  { %827 = vrot.lane.b32.xlu1 %v585_v5, %s10704_s20  ;;  %v820_v60 = vpop.permute.xlu1 %819 }
 0x212   :  { %2693 = vrot.lane.b32.xlu0 %v2474_v17, %s10705_s21  ;;  %v1106_v0 = vsel %vm43_vm2, %v445_v33, %v820_v60 }
 0x214   :  { %v12308_v31 = vpop.permute.xlu0 %2681 }
 0x215   :  { %2895 = vrot.lane.b32.xlu1 %v2590_v13, %s10706_s24  ;;  %v860_v3 = vpop.permute.xlu1 %859 }
 0x216   :  { %665 = vrot.lane.b32.xlu0 %v15900_v36, %s10704_s20  ;;  %v1150_v51 = vsel %vm985_vm15, %v1106_v0, %v860_v3  ;;  %v2560_v0 = vpack.c.bf16 %v2539_v57, %v2538_v16  ;;  %v2454_v16 = vld [vmem:[#allocation2 + $0xef] sm:$0xff] }
 0x217   :  { %v1195_v14 = vsel %vm1022_vm0, %v1150_v51, %v914_v54  ;;  %v2479_v51 = vld [vmem:[#allocation2 + $0x118] sm:$0xff] }
 0x218   :  { %v12314_v63 = vpop.permute.xlu0 %2735  ;;  %1460 = vmatprep.mubr.bf16.mxu1 %v1195_v14  ;;  %v2564_v14 = vld [vmem:[#allocation2 + $0x120] sm:$0xff] }
 0x219   :  { %867 = vrot.lane.b32.xlu1 %v12318_v1, %s10705_s21  ;;  %v712_v39 = vpop.permute.xlu1 %711 }
 0x21a   :  { %2747 = vrot.lane.b32.xlu0 %v12063_v15, %s10706_s24  ;;  %v15909_v15 = vld [vmem:[#allocation18_spill] sm:$0xff] }
 0x21b   :  { %v15910_v5 = vpack.c.bf16 %v15908_v23, %v15909_v15  ;;  %v15911_v23 = vld [vmem:[#allocation84_spill] sm:$0xff] }
 0x21c   :  { %v12326_v33 = vpop.permute.xlu0 %2683 }
 0x21d   :  { %719 = vrot.lane.b32.xlu1 %v15907_v4, %s10705_s21  ;;  %v960_v54 = vsel %vm43_vm2, %v15910_v5, %v658_v59  ;;  %v766_v13 = vpop.permute.xlu1 %765  ;;  %v12348_v59 = vpack.c.bf16 %v12222_v45, %v12097_v18  ;;  %v15912_v5 = vld [vmem:[#allocation97_spill] sm:$0xff] }
 0x21e   :  { %921 = vrot.lane.b32.xlu0 %v616_v22, %s10706_s24  ;;  %v1005_v17 = vsel %vm985_vm15, %v960_v54, %v712_v39  ;;  %v2571_v39 = vpack.c.bf16 %v2564_v14, %v2479_v51  ;;  %v586_v54 = vpack.c.bf16 %v15912_v5, %v15911_v23  ;;  %v15913_v51 = vld [vmem:[#allocation77_spill] sm:$0xff]  ;;  %v15917_v5 = vld [vmem:[#allocation95_spill] sm:$0xff] }
 0x21f   :  { %v1051_v3 = vsel %vm1022_vm0, %v1005_v17, %v766_v13  ;;  %v2475_v17 = vpack.c.bf16 %v2454_v16, %v2453_v37  ;;  %v12361_v13 = vld [vmem:[#allocation2 + $0x121] sm:$0xff] }
 0x220   :  { %v12340_v60 = vpop.permute.xlu0 %2737  ;;  %1461 = vmatmul.mubr.bf16.gmra.mrb[36].mxu1 %v1051_v3 }
 0x221   :  { %773 = vrot.lane.b32.xlu1 %v15856_v50, %s10706_s24 }
 0x222   :  { %2803 = vrot.lane.b32.xlu0 %v2560_v0, %s10704_s20 }
 0x223   :  { %v822_v22 = vpop.permute.xlu1 %821 }
 0x224   :  { %v2790_v53 = vpop.permute.xlu0 %2789  ;;  %v1109_v50 = vsel %vm43_vm2, %v15900_v36, %v822_v22  ;;  %v2591_v36 = vpack.c.bf16 %v12361_v13, %v12022_v46  ;;  %v15914_v22 = vld [vmem:[#allocation28_spill] sm:$0xff] }
 0x225   :  { %2641 = vrot.lane.b32.xlu1 %v12348_v59, %s10704_s20 }
 0x226   :  { %2843 = vrot.lane.b32.xlu0 %v2571_v39, %s10705_s21  ;;  %v15915_v39 = vld [vmem:[#allocation22_spill] sm:$0xff] }
 0x227   :  { %v862_v57 = vpop.permute.xlu1 %861  ;;  %v15916_v37 = vpack.c.bf16 %v15914_v22, %v15915_v39  ;;  %v15919_v39 = vld [vmem:[#allocation96_spill] sm:$0xff] }
 0x228   :  { %v2830_v4 = vpop.permute.xlu0 %2829  ;;  %v1152_v18 = vsel %vm985_vm15, %v1109_v50, %v862_v57 }
 0x229   :  { %829 = vrot.lane.b32.xlu1 %v586_v54, %s10704_s20  ;;  %v1198_v45 = vsel %vm1022_vm0, %v1152_v18, %v916_v61  ;;  %v963_v61 = vsel %vm43_vm2, %v15916_v37, %v12289_v27  ;;  %v597_v54 = vpack.c.bf16 %v2564_v14, %v15917_v5  ;;  %v2540_v18 = vld [vmem:[#allocation2 + $0x122] sm:$0xff]  ;;  %v15918_v27 = vld [vmem:[#allocation80_spill] sm:$0xff]  ;;  %v617_v37 = vpack.c.bf16 %v12361_v13, %v15919_v39 }
 0x22a   :  { %2695 = vrot.lane.b32.xlu0 %v2475_v17, %s10705_s21  ;;  %1468 = vmatprep.mubr.bf16.mxu1 %v1198_v45  ;;  %v2541_v45 = vld [vmem:[#allocation2 + $0x12a] sm:$0xff] }
 0x22b   :  { %v714_v0 = vpop.permute.xlu1 %713  ;;  %v2561_v14 = vpack.c.bf16 %v2541_v45, %v2540_v18 }
 0x22c   :  { %v12363_v3 = vpop.permute.xlu0 %2687  ;;  %v1007_v50 = vsel %vm985_vm15, %v963_v61, %v714_v0  ;;  %v501_v0 = vpack.c.bf16 %v2454_v16, %v15918_v27  ;;  %v2565_v61 = vld [vmem:[#allocation2 + $0x128] sm:$0xff]  ;;  %v3072_v27 = vsel %vm43_vm2, %v12100_v28, %v2790_v53 }
 0x22d   :  { %2897 = vrot.lane.b32.xlu1 %v2591_v36, %s10706_s24  ;;  %v3118_v18 = vsel %vm985_vm15, %v3072_v27, %v2830_v4  ;;  %v12414_v53 = vld [vmem:[#allocation2 + $0x129] sm:$0xff]  ;;  %v12423_v27 = vpack.c.bf16 %v15890_v20, %v12158_v24 }
 0x22e   :  { %667 = vrot.lane.b32.xlu0 %v15913_v51, %s10704_s20 }
 0x22f   :  { %v768_v57 = vpop.permute.xlu1 %767 }
 0x230   :  { %v12376_v23 = vpop.permute.xlu0 %2741  ;;  %v1054_v17 = vsel %vm1022_vm0, %v1007_v50, %v768_v57  ;;  %v2566_v50 = vld [vmem:[#allocation2 + $0x130] sm:$0xff] }
 0x231   :  { %869 = vrot.lane.b32.xlu1 %v597_v54, %s10705_s21  ;;  %1469 = vmatmul.mubr.bf16.gmra.mrb[40].mxu1 %v1054_v17  ;;  %v15920_v54 = vld [vmem:[#allocation52_spill] sm:$0xff]  ;;  %v15921_v17 = vld [vmem:[#allocation51_spill] sm:$0xff]  ;;  %v2572_v16 = vpack.c.bf16 %v2566_v50, %v2565_v61 }
 0x232   :  { %2749 = vrot.lane.b32.xlu0 %v12211_v58, %s10706_s24  ;;  %v15922_v43 = vpack.c.bf16 %v15920_v54, %v15921_v17  ;;  %v2456_v54 = vld [vmem:[#allocation2 + $0xff] sm:$0xff] }
 0x233   :  { %v2628_v36 = vpop.permute.xlu1 %2627 }
 0x234   :  { %v12383_v22 = vpop.permute.xlu0 %2795  ;;  %v2928_v52 = vsel %vm43_vm2, %v15922_v43, %v2628_v36 }
 0x235   :  { %721 = vrot.lane.b32.xlu1 %v501_v0, %s10705_s21  ;;  %v2974_v43 = vsel %vm985_vm15, %v2928_v52, %v12308_v31 }
 0x236   :  { %923 = vrot.lane.b32.xlu0 %v617_v37, %s10706_s24  ;;  %v12404_v37 = vpack.c.bf16 %v12238_v2, %v12158_v24  ;;  %v3017_v28 = vsel %vm1022_vm0, %v2974_v43, %v12314_v63  ;;  %v2502_v2 = vld [vmem:[#allocation2 + $0x131] sm:$0xff]  ;;  %v15923_v63 = vld [vmem:[#allocation56_spill] sm:$0xff] }
 0x237   :  { %v2630_v57 = vpop.permute.xlu1 %2629  ;;  %v2592_v52 = vpack.c.bf16 %v2502_v2, %v12414_v53 }
 0x238   :  { %v12390_v58 = vpop.permute.xlu0 %2835 }
 0x239   :  { %775 = vrot.lane.b32.xlu1 %v12178_v47, %s10706_s24  ;;  %v2455_v47 = vld [vmem:[#allocation2 + $0xf7] sm:$0xff] }
 0x23a   :  { %2805 = vrot.lane.b32.xlu0 %v2561_v14, %s10704_s20  ;;  %v2476_v31 = vpack.c.bf16 %v2456_v54, %v2455_v47 }
 0x23b   :  { %v2884_v45 = vpop.permute.xlu1 %2883 }
 0x23c   :  { %v2792_v0 = vpop.permute.xlu0 %2791  ;;  %v3161_v36 = vsel %vm1022_vm0, %v3118_v18, %v2884_v45  ;;  %v15924_v18 = vld [vmem:[#allocation53_spill] sm:$0xff] }
 0x23d   :  { %2643 = vrot.lane.b32.xlu1 %v12404_v37, %s10704_s20  ;;  %3416 = vmatprep.mubr.bf16.mxu0 %v3161_v36  ;;  %v15925_v45 = vpack.c.bf16 %v15923_v63, %v15924_v18  ;;  %v15929_v63 = vld [vmem:[#allocation76_spill] sm:$0xff] }
 0x23e   :  { %2845 = vrot.lane.b32.xlu0 %v2572_v16, %s10705_s21  ;;  %3417 = vmatmul.mubr.bf16.gmra.mrb[60].mxu0 %v3017_v28  ;;  %v2542_v28 = vld [vmem:[#allocation2 + $0x132] sm:$0xff] }
 0x23f   :  { %v2634_v4 = vpop.permute.xlu1 %2633  ;;  %v2931_v43 = vsel %vm43_vm2, %v15925_v45, %v2630_v57 }
 0x240   :  { %v2832_v61 = vpop.permute.xlu0 %2831  ;;  %v2976_v24 = vsel %vm985_vm15, %v2931_v43, %v12326_v33 }
 0x241   :  { %831 = vrot.lane.b32.xlu1 %v2561_v14, %s10704_s20  ;;  %v3075_v14 = vsel %vm43_vm2, %v12208_v8, %v2792_v0  ;;  %v3020_v57 = vsel %vm1022_vm0, %v2976_v24, %v12340_v60  ;;  %v2543_v8 = vld [vmem:[#allocation2 + $0x13a] sm:$0xff] }
 0x242   :  { %2697 = vrot.lane.b32.xlu0 %v2476_v31, %s10705_s21  ;;  %v3120_v36 = vsel %vm985_vm15, %v3075_v14, %v2832_v61  ;;  %v15926_v61 = vld [vmem:[#allocation50_spill] sm:$0xff]  ;;  %v2562_v18 = vpack.c.bf16 %v2543_v8, %v2542_v28  ;;  %v2568_v14 = vld [vmem:[#allocation2 + $0x140] sm:$0xff] }
 0x243   :  { %v2890_v50 = vpop.permute.xlu1 %2889  ;;  %v15927_v33 = vpack.c.bf16 %v15926_v61, %v15909_v15  ;;  %v2567_v15 = vld [vmem:[#allocation2 + $0x138] sm:$0xff] }
 0x244   :  { %v12419_v17 = vpop.permute.xlu0 %661 }
 0x245   :  { %2899 = vrot.lane.b32.xlu1 %v2592_v52, %s10706_s24  ;;  %v2934_v31 = vsel %vm43_vm2, %v15927_v33, %v12300_v12 }
 0x246   :  { %669 = vrot.lane.b32.xlu0 %v12423_v27, %s10704_s20 }
 0x247   :  { %v2886_v47 = vpop.permute.xlu1 %2885 }
 0x248   :  { %v2794_v54 = vpop.permute.xlu0 %2793  ;;  %v3164_v20 = vsel %vm1022_vm0, %v3120_v36, %v2886_v47 }
 0x249   :  { %871 = vrot.lane.b32.xlu1 %v2572_v16, %s10705_s21  ;;  %3424 = vmatprep.mubr.bf16.mxu0 %v3164_v20  ;;  %v12451_v16 = vld [vmem:[%s15632_s4] ss:$0 sm:$0xff]  ;;  %v3078_v45 = vsel %vm43_vm2, %v12220_v25, %v2794_v54  ;;  %v2978_v20 = vsel %vm985_vm15, %v2934_v31, %v12253_v55  ;;  %v12471_v54 = vpack.c.bf16 %v2568_v14, %v2567_v15  ;;  %v2504_v15 = vld [vmem:[#allocation2 + $0x141] sm:$0xff] }
 0x24a   :  { %2751 = vrot.lane.b32.xlu0 %v12229_v30, %s10706_s24  ;;  %3425 = vmatmul.mubr.bf16.gmra.mrb[64].mxu0 %v3020_v57  ;;  %v15928_v30 = vld [vmem:[#allocation71_spill] sm:$0xff]  ;;  %v3023_v33 = vsel %vm1022_vm0, %v2978_v20, %v12268_v62 }
 0x24b   :  { %v824_v0 = vpop.permute.xlu1 %823  ;;  %v15930_v60 = vpack.c.bf16 %v15928_v30, %v15929_v63  ;;  %v1390_v43 = vpop.f32.mrb[0].mxu1  ;;  %v15931_v30 = vld [vmem:[#allocation58_spill] sm:$0xff] }
 0x24c   :  { %v2834_v2 = vpop.permute.xlu0 %2833  ;;  %v1391_v36 = vadd.f32 %v12451_v16, %v1390_v43  ;;  %v1392_v57 = vpop.f32.mrb[1].mxu1  ;;  %v2457_v43 = vld [vmem:[#allocation2 + $0x107] sm:$0xff]  ;;  %v2458_v62 = vld [vmem:[#allocation2 + $0x10f] sm:$0xff] }
 0x24d   :  { %723 = vrot.lane.b32.xlu1 %v15930_v60, %s10705_s21  ;;  %v3122_v12 = vsel %vm985_vm15, %v3078_v45, %v2834_v2  ;;  %v1393_v25 = vpop.f32.mrb[2].mxu1 }
 0x24e   :  { %925 = vrot.lane.b32.xlu0 %v2592_v52, %s10706_s24  ;;  %v3081_v52 = vsel %vm43_vm2, %v12293_v7, %v12383_v22  ;;  %v1533_v8 = vmax.f32 %v1391_v36, 0.0  ;;  %v1394_v55 = vadd.f32 %v12451_v16, %v1393_v25  ;;  %v1395_v2 = vpop.f32.mrb[3].mxu1  ;;  %v1112_v7 = vsel %vm43_vm2, %v15913_v51, %v824_v0 }
 0x24f   :  { %v2888_v47 = vpop.permute.xlu1 %2887  ;;  %v3124_v28 = vsel %vm985_vm15, %v3081_v52, %v12390_v58  ;;  %v15932_v58 = vpack.c.bf16 %v15855_v29, %v15931_v30  ;;  %v15934_v2 = vld [vmem:[#allocation29_spill] sm:$0xff] }
 0x250   :  { %v918_v24 = vpop.permute.xlu0 %917  ;;  %v3167_v61 = vsel %vm1022_vm0, %v3122_v12, %v2888_v47  ;;  %v3170_v22 = vsel %vm1022_vm0, %v3124_v28, %v2890_v50  ;;  %v1534_v60 = vmax.f32 %v1394_v55, 0.0  ;;  %v1606_v50 = vrot.slane %v1533_v8, 1  ;;  %v15933_v55 = vld [vmem:[#allocation41_spill] sm:$0xff] }
 0x251   :  { %777 = vrot.lane.b32.xlu1 %v12260_v35, %s10706_s24  ;;  %3432 = vmatprep.mubr.bf16.mxu0 %v3167_v61  ;;  %v2937_v63 = vsel %vm43_vm2, %v15932_v58, %v2634_v4  ;;  %v2503_v4 = vld [vmem:[#allocation2 + $0x139] sm:$0xff]  ;;  %v2477_v47 = vpack.c.bf16 %v2458_v62, %v2457_v43 }
 0x252   :  { %2807 = vrot.lane.b32.xlu0 %v2562_v18, %s10704_s20  ;;  %3433 = vmatmul.mubr.bf16.gmra.mrb[68].mxu0 %v3023_v33  ;;  %v1607_v0 = vrot.slane %v1534_v60, 1  ;;  %v2980_v20 = vsel %vm985_vm15, %v2937_v63, %v12363_v3  ;;  %v2593_v28 = vpack.c.bf16 %v2504_v15, %v2503_v4  ;;  %v15935_v33 = vpack.c.bf16 %v15933_v55, %v15934_v2 }
 0x253   :  { %v864_v35 = vpop.permute.xlu1 %863  ;;  %3440 = vmatprep.mubr.bf16.mxu0 %v3170_v22  ;;  %v1398_v29 = vpop.f32.mrb[4].mxu1  ;;  %v12514_v63 = vpack.c.bf16 %v15903_v41, %v15891_v56 }
 0x254   :  { %v12481_v31 = vpop.permute.xlu0 %2689  ;;  %v1154_v45 = vsel %vm985_vm15, %v1112_v7, %v864_v35  ;;  %v1399_v14 = vadd.f32 %v12451_v16, %v1398_v29  ;;  %v1608_v57 = vsel %vm1605_vm3, %v1606_v50, %v1607_v0  ;;  %v1400_v61 = vpop.f32.mrb[5].mxu1  ;;  %v966_v7 = vsel %vm43_vm2, %v15935_v33, %v12419_v17  ;;  %v9737_v29 = vld [vmem:[%s15633_s5] ss:$16 sps:$4 sm:$0xff]  }
 0x255   :  { %2645 = vrot.lane.b32.xlu1 %v12037_v38, %s10704_s20  ;;  %v1201_v51 = vsel %vm1022_vm0, %v1154_v45, %v918_v24  ;;  %v12499_v52 = vmax.f32 %v1533_v8, %v1608_v57  ;;  %v1401_v25 = vpop.f32.mrb[6].mxu1  ;;  %v3026_v8 = vsel %vm1022_vm0, %v2980_v20, %v12376_v23  ;;  %v2364_v20 = vpack.c.bf16 %v12078_v44, %v11992_v19  ;;  %v12541_v61 = vld [vmem:[#allocation2 + $0x142] sm:$0xff]  ;;  %v15936_v33 = vld [vmem:[#allocation87_spill] sm:$0xff] }
 0x256   :  { %2847 = vrot.lane.b32.xlu0 %v12471_v54, %s10705_s21  ;;  %1476 = vmatprep.mubr.bf16.mxu1 %v1201_v51  ;;  %v1535_v24 = vmax.f32 %v1399_v14, 0.0  ;;  %v1402_v3 = vadd.f32 %v12451_v16, %v1401_v25  ;;  %v1403_v35 = vpop.f32.mrb[7].mxu1  ;;  %v571_v25 = vld [vmem:[#allocation2 + $0x14a] sm:$0x3f] }
 0x257   :  { %v716_v12 = vpop.permute.xlu1 %715  ;;  %v1786_v4 = vrot.slane %v12499_v52, 7 }
 0x258   :  { %v12494_v36 = vpop.permute.xlu0 %2743  ;;  %v1609_v22 = vrot.slane %v1535_v24, 1  ;;  %v1009_v30 = vsel %vm985_vm15, %v966_v7, %v716_v12  ;;  %v1536_v45 = vmax.f32 %v1402_v3, 0.0  ;;  %v15937_v7 = vld [vmem:[#allocation83_spill] sm:$0xff] }
 0x259   :  { %833 = vrot.lane.b32.xlu1 %v2562_v18, %s10704_s20  ;;  %v503_v19 = vpack.c.bf16 %v15937_v7, %v15936_v33  ;;  %v12596_v7 = vld [vmem:[#allocation2 + $0x149] sm:$0xff] }
 0x25a   :  { %2699 = vrot.lane.b32.xlu0 %v2477_v47, %s10705_s21  ;;  %3441 = vmatmul.mubr.bf16.gmra.mrb[72].mxu0 %v3026_v8  ;;  %v1610_v17 = vsel %vm1605_vm3, %v1607_v0, %v1609_v22  ;;  %v1611_v62 = vrot.slane %v1536_v45, 1  ;;  %v9739_v0 = vld [vmem:[%s15633_s5 + $0x4] ss:$16 sps:$4 sm:$0xff]  }
 0x25b   :  { %v770_v18 = vpop.permute.xlu1 %769  ;;  %v12521_v23 = vmax.f32 %v1534_v60, %v1610_v17  ;;  %v1406_v51 = vpop.f32.mrb[8].mxu1  ;;  %6825 = vmatprep.subr.bf16.mxu1 %v9739_v0  ;;  %v12576_v0 = vld [vmem:[#allocation2 + $0x148] sm:$0xff] }
 0x25c   :  { %v2798_v58 = vpop.permute.xlu0 %2797  ;;  %v1057_v43 = vsel %vm1022_vm0, %v1009_v30, %v770_v18  ;;  %v1407_v50 = vadd.f32 %v12451_v16, %v1406_v51  ;;  %v1612_v15 = vsel %vm1605_vm3, %v1609_v22, %v1611_v62  ;;  %v1408_v14 = vpop.f32.mrb[9].mxu1  ;;  %6826 = vmatpush1.bf16.msra.mxu1 %v9737_v29  ;;  %v589_v30 = vpack.c.bf16 %v571_v25, %v12541_v61 }
 0x25d   :  { %2901 = vrot.lane.b32.xlu1 %v2593_v28, %s10706_s24  ;;  %1477 = vmatmul.mubr.bf16.gmra.mrb[44].mxu1 %v1057_v43  ;;  %v1787_v60 = vrot.slane %v12521_v23, 7  ;;  %v12533_v12 = vmax.f32 %v1535_v24, %v1612_v15  ;;  %v1409_v57 = vpop.f32.mrb[10].mxu1  ;;  %v3084_v18 = vsel %vm43_vm2, %v12348_v59, %v2798_v58 }
 0x25e   :  { %671 = vrot.lane.b32.xlu0 %v12514_v63, %s10704_s20  ;;  %v1537_v47 = vmax.f32 %v1407_v50, 0.0  ;;  %v12547_v24 = vadd.f32 %v12451_v16, %v1409_v57  ;;  %v1411_v2 = vpop.f32.mrb[11].mxu1 }
 0x25f   :  { %v2636_v56 = vpop.permute.xlu1 %2635  ;;  %v12544_v55 = vsel %vm1785_vm4, %v1786_v4, %v1787_v60  ;;  %v1789_v44 = vrot.slane %v12533_v12, 7 }
 0x260   :  { %v2838_v41 = vpop.permute.xlu0 %2837  ;;  %v2940_v3 = vsel %vm43_vm2, %v2364_v20, %v2636_v56  ;;  %v1882_v8 = vmax.f32 %v12499_v52, %v12544_v55  ;;  %v1538_v22 = vmax.f32 %v12547_v24, 0.0 }
 0x261   :  { %873 = vrot.lane.b32.xlu1 %v12471_v54, %s10705_s21  ;;  %v1613_v54 = vrot.slane %v1537_v47, 1  ;;  %v12565_v17 = vsel %vm1785_vm4, %v1787_v60, %v1789_v44  ;;  %v2982_v56 = vsel %vm985_vm15, %v2940_v3, %v12481_v31  ;;  %v3126_v58 = vsel %vm985_vm15, %v3084_v18, %v2838_v41  ;;  %v486_v3 = vld [vmem:[#allocation2 + $0x11f] sm:$0x3f] }
 0x262   :  { %2753 = vrot.lane.b32.xlu0 %v12282_v49, %s10706_s24  ;;  %v1615_v50 = vrot.slane %v1538_v22, 1  ;;  %v3029_v31 = vsel %vm1022_vm0, %v2982_v56, %v12494_v36  ;;  %v602_v36 = vld [vmem:[#allocation2 + $0x151] sm:$0x3f] }
 0x263   :  { %v12553_v49 = vpop.permute.xlu1 %2637  ;;  %v1614_v43 = vsel %vm1605_vm3, %v1611_v62, %v1613_v54  ;;  %v9742_v56 = vld [vmem:[%s15633_s5 + $0x24] ss:$16 sps:$4 sm:$0xff]  }
 0x264   :  { %v2800_v35 = vpop.permute.xlu0 %2799  ;;  %v12567_v51 = vmax.f32 %v1536_v45, %v1614_v43  ;;  %v1616_v45 = vsel %vm1605_vm3, %v1613_v54, %v1615_v50  ;;  %v9740_v43 = vld [vmem:[%s15633_s5 + $0x20] ss:$16 sps:$4 sm:$0xff]   ;;  %6827 = vmatprep.subr.bf16.mxu1 %v9742_v56 }
 0x265   :  { %725 = vrot.lane.b32.xlu1 %v503_v19, %s10705_s21  ;;  %v12581_v15 = vmax.f32 %v1537_v47, %v1616_v45  ;;  %v620_v45 = vpack.c.bf16 %v602_v36, %v12596_v7  ;;  %6828 = vmatpush1.bf16.msra.mxu1 %v9740_v43 }
 0x266   :  { %927 = vrot.lane.b32.xlu0 %v2593_v28, %s10706_s24  ;;  %v596_v28 = vld [vmem:[#allocation2 + $0x150] sm:$0x3f]  ;;  %v1791_v4 = vrot.slane %v12567_v51, 7 }
 0x267   :  { %v2892_v62 = vpop.permute.xlu1 %2891  ;;  %v1414_v41 = vpop.f32.mrb[12].mxu1  ;;  %v600_v14 = vpack.c.bf16 %v596_v28, %v12576_v0  ;;  %v1793_v57 = vrot.slane %v12581_v15, 7 }
 0x268   :  { %v2840_v29 = vpop.permute.xlu0 %2839  ;;  %v3173_v60 = vsel %vm1022_vm0, %v3126_v58, %v2892_v62  ;;  %v12590_v20 = vsel %vm1785_vm4, %v1789_v44, %v1791_v4  ;;  %v1415_v47 = vadd.f32 %v12451_v16, %v1414_v41  ;;  %v1416_v54 = vpop.f32.mrb[13].mxu1  ;;  %v3087_v58 = vsel %vm43_vm2, %v12404_v37, %v2800_v35  ;;  %v15939_v37 = vld [vmem:[#allocation94_spill] sm:$0xff] }
 0x269   :  { %779 = vrot.lane.b32.xlu1 %v12318_v1, %s10706_s24  ;;  %3448 = vmatprep.mubr.bf16.mxu0 %v3173_v60  ;;  %v15938_v1 = vld [vmem:[#allocation93_spill] sm:$0xff]  ;;  %v1417_v44 = vpop.f32.mrb[14].mxu1  ;;  %v12602_v18 = vsel %vm1785_vm4, %v1791_v4, %v1793_v57  ;;  %v504_v35 = vpack.c.bf16 %v486_v3, %v15939_v37 }
 0x26a   :  { %3449 = vmatmul.mubr.bf16.gmra.mrb[76].mxu0 %v3029_v31  ;;  %835 = vrot.lane.b32.xlu0 %v589_v30, %s10704_s20  ;;  %v450_v33 = vpack.c.bf16 %v15938_v1, %v15904_v26  ;;  %v1539_v30 = vmax.f32 %v1415_v47, 0.0  ;;  %v1418_v62 = vadd.f32 %v12451_v16, %v1417_v44  ;;  %v1419_v28 = vpop.f32.mrb[15].mxu1  ;;  %v9745_v60 = vld [vmem:[%s15633_s5 + $0x44] ss:$16 sps:$4 sm:$0xff]   ;;  %v3128_v31 = vsel %vm985_vm15, %v3087_v58, %v2840_v29 }
 0x26b   :  { %v826_v25 = vpop.permute.xlu1 %825  ;;  %v506_v44 = vld [vmem:[#allocation2 + $0x120] sm:$0x3f]  ;;  %6829 = vmatprep.subr.bf16.mxu1 %v9745_v60 }
 0x26c   :  { %v2692_v2 = vpop.permute.xlu0 %2691  ;;  %v1617_v41 = vrot.slane %v1539_v30, 1  ;;  %v1540_v54 = vmax.f32 %v1418_v62, 0.0  ;;  %v9743_v28 = vld [vmem:[%s15633_s5 + $0x40] ss:$16 sps:$4 sm:$0xff]  }
 0x26d   :  { %673 = vrot.lane.b32.xlu1 %v450_v33, %s10704_s20  ;;  %v10641_v33 = vld [vmem:[#allocation2 + $0xc0] sm:$0xff]  ;;  %6830 = vmatpush1.bf16.msra.mxu1 %v9743_v28 }
 0x26e   :  { %875 = vrot.lane.b32.xlu0 %v600_v14, %s10705_s21  ;;  %v2365_v14 = vpack.c.bf16 %v12133_v42, %v10641_v33  ;;  %v1618_v29 = vsel %vm1605_vm3, %v1615_v50, %v1617_v41  ;;  %v1619_v56 = vrot.slane %v1540_v54, 1 }
 0x26f   :  { %v2894_v47 = vpop.permute.xlu1 %2893  ;;  %v1718_v42 = vmax.f32 %v1538_v22, %v1618_v29  ;;  %v1422_v58 = vpop.f32.mrb[16].mxu1 }
 0x270   :  { %v664_v1 = vpop.permute.xlu0 %663  ;;  %v3176_v36 = vsel %vm1022_vm0, %v3128_v31, %v2894_v47  ;;  %v2943_v3 = vsel %vm43_vm2, %v2365_v14, %v12553_v49  ;;  %v1423_v62 = vadd.f32 %v12451_v16, %v1422_v58  ;;  %v524_v47 = vpack.c.bf16 %v506_v44, %v15917_v5  ;;  %v1424_v49 = vpop.f32.mrb[17].mxu1 }
 0x271   :  { %727 = vrot.lane.b32.xlu1 %v504_v35, %s10705_s21  ;;  %3456 = vmatprep.mubr.bf16.mxu0 %v3176_v36  ;;  %v2984_v43 = vsel %vm985_vm15, %v2943_v3, %v2692_v2  ;;  %v1795_v37 = vrot.slane %v1718_v42, 7  ;;  %v1620_v35 = vsel %vm1605_vm3, %v1617_v41, %v1619_v56  ;;  %v1425_v36 = vpop.f32.mrb[18].mxu1  ;;  %v15940_v3 = vld [vmem:[#allocation60_spill] sm:$0xff] }
 0x272   :  { %929 = vrot.lane.b32.xlu0 %v620_v45, %s10706_s24  ;;  %v1719_v22 = vmax.f32 %v1539_v30, %v1620_v35  ;;  %v1541_v14 = vmax.f32 %v1423_v62, 0.0  ;;  %v1115_v45 = vsel %vm43_vm2, %v12423_v27, %v826_v25  ;;  %v12646_v5 = vadd.f32 %v12451_v16, %v1425_v36  ;;  %v1427_v60 = vpop.f32.mrb[19].mxu1 }
 0x273   :  { %v866_v31 = vpop.permute.xlu1 %865  ;;  %v12641_v2 = vsel %vm1785_vm4, %v1793_v57, %v1795_v37  ;;  %v391_v42 = vpack.c.bf16 %v15940_v3, %v10641_v33 }
 0x274   :  { %v2746_v50 = vpop.permute.xlu0 %2745  ;;  %v1621_v41 = vrot.slane %v1541_v14, 1  ;;  %v1156_v44 = vsel %vm985_vm15, %v1115_v45, %v866_v31  ;;  %v1542_v57 = vmax.f32 %v12646_v5, 0.0  ;;  %v1797_v37 = vrot.slane %v1719_v22, 7  ;;  %v9785_v5 = vld [vmem:[%s15633_s5 + $0xc8] ss:$16 sps:$4 sm:$0xff]  }
 0x275   :  { %v3032_v24 = vsel %vm1022_vm0, %v2984_v43, %v2746_v50  ;;  %781 = vrot.lane.b32.xlu1 %v524_v47, %s10706_s24  ;;  %v969_v25 = vsel %vm43_vm2, %v391_v42, %v664_v1 }
 0x276   :  { %3457 = vmatmul.mubr.bf16.gmra.mrb[80].mxu0 %v3032_v24  ;;  %v1622_v27 = vsel %vm1605_vm3, %v1619_v56, %v1621_v41  ;;  %v12658_v62 = vrot.slane %v1542_v57, 1 }
 0x277   :  { %v718_v28 = vpop.permute.xlu1 %717  ;;  %v1720_v43 = vmax.f32 %v1540_v54, %v1622_v27 }
 0x278   :  { %v920_v30 = vpop.permute.xlu0 %919  ;;  %v1011_v31 = vsel %vm985_vm15, %v969_v25, %v718_v28  ;;  %v1624_v35 = vsel %vm1605_vm3, %v1621_v41, %v12658_v62  ;;  %v9746_v41 = vld [vmem:[%s15633_s5 + $0x60] ss:$16 sps:$4 sm:$0xff]  }
 0x279   :  { %v1204_v58 = vsel %vm1022_vm0, %v1156_v44, %v920_v30  ;;  %v1798_v33 = vrot.slane %v1720_v43, 7  ;;  %v12664_v56 = vmax.f32 %v1541_v14, %v1624_v35  ;;  %v9748_v14 = vld [vmem:[%s15633_s5 + $0x64] ss:$16 sps:$4 sm:$0xff]  }
 0x27a   :  { %1484 = vmatprep.mubr.bf16.mxu1 %v1204_v58  ;;  %6831 = vmatprep.subr.bf16.mxu1 %v9748_v14  ;;  %v9749_v58 = vld [vmem:[%s15633_s5 + $0x80] ss:$16 sps:$4 sm:$0xff]  }
 0x27b   :  { %v772_v50 = vpop.permute.xlu1 %771  ;;  %v1799_v1 = vsel %vm1785_vm4, %v1797_v37, %v1798_v33  ;;  %v1800_v24 = vrot.slane %v12664_v56, 7  ;;  %6832 = vmatpush1.bf16.msra.mxu1 %v9746_v41 }
 0x27c   :  { %v2802_v47 = vpop.permute.xlu0 %2801  ;;  %v1060_v49 = vsel %vm1022_vm0, %v1011_v31, %v772_v50  ;;  %v1887_v54 = vmax.f32 %v1719_v22, %v1799_v1  ;;  %v9751_v22 = vld [vmem:[%s15633_s5 + $0x84] ss:$16 sps:$4 sm:$0xff]  }
 0x27d   :  { %1485 = vmatmul.mubr.bf16.gmra.mrb[48].mxu1 %v1060_v49  ;;  %v1801_v60 = vsel %vm1785_vm4, %v1798_v33, %v1800_v24  ;;  %6833 = vmatprep.subr.bf16.mxu1 %v9751_v22  ;;  %v3090_v27 = vsel %vm43_vm2, %v12037_v38, %v2802_v47 }
 0x27e   :  { %v1888_v44 = vmax.f32 %v1720_v43, %v1801_v60  ;;  %v1929_v3 = vrot.slane %v1887_v54, 1 }
 0x27f   :  { %v2640_v36 = vpop.permute.xlu1 %2639  ;;  %6834 = vmatpush1.bf16.msra.mxu1 %v9749_v58 }
 0x280   :  { %v2842_v45 = vpop.permute.xlu0 %2841  ;;  %v12680_v42 = vrot.slane %v1888_v44, 1 }
 0x281   :  { %v3130_v31 = vsel %vm985_vm15, %v3090_v27, %v2842_v45  ;;  %v15941_v45 = vpack.c.bf16 %v11850_v40, %v11854_v21 }
 0x282   :  { %v3362_v25 = vpop.f32.mrb[32].mxu0  ;;  %v1931_v43 = vsel %vm1605_vm3, %v1929_v3, %v12680_v42 }
 0x283   :  { %v828_v28 = vpop.permute.xlu1 %827  ;;  %v3363_v50 = vadd.f32 %v12451_v16, %v3362_v25  ;;  %v3364_v37 = vpop.f32.mrb[33].mxu0  ;;  %v12694_v35 = vmax.f32 %v1882_v8, %v1931_v43  ;;  %v2946_v41 = vsel %vm43_vm2, %v15941_v45, %v2640_v36 }
 0x284   :  { %v2694_v30 = vpop.permute.xlu0 %2693  ;;  %v3365_v49 = vpop.f32.mrb[34].mxu0  ;;  %v1118_v27 = vsel %vm43_vm2, %v12514_v63, %v828_v28  ;;  %v15943_v63 = vld [vmem:[#allocation63_spill] sm:$0xff] }
 0x285   :  { %v3505_v38 = vmax.f32 %v3363_v50, 0.0  ;;  %v3366_v47 = vadd.f32 %v12451_v16, %v3365_v49  ;;  %v3367_v60 = vpop.f32.mrb[35].mxu0  ;;  %v2986_v52 = vsel %vm985_vm15, %v2946_v41, %v2694_v30  ;;  %v1985_v10 = vrot.slane %v12694_v35, 2 }
 0x287   :  { %v2896_v33 = vpop.permute.xlu1 %2895  ;;  %v3506_v14 = vmax.f32 %v3366_v47, 0.0  ;;  %v3577_v8 = vrot.slane %v3505_v38, 1  ;;  %v15942_v47 = vld [vmem:[#allocation69_spill] sm:$0xff] }
 0x288   :  { %v666_v1 = vpop.permute.xlu0 %665  ;;  %v3179_v54 = vsel %vm1022_vm0, %v3130_v31, %v2896_v33  ;;  %v15944_v28 = vpack.c.bf16 %v15942_v47, %v15943_v63 }
 0x289   :  { %3464 = vmatprep.mubr.bf16.mxu0 %v3179_v54  ;;  %v3578_v22 = vrot.slane %v3506_v14, 1 }
 0x28a   :  { %v3370_v58 = vpop.f32.mrb[36].mxu0  ;;  %v972_v60 = vsel %vm43_vm2, %v15944_v28, %v666_v1  ;;  %v9752_v1 = vld [vmem:[%s15633_s5 + $0xa0] ss:$16 sps:$4 sm:$0xff]  }
 0x28b   :  { %v868_v44 = vpop.permute.xlu1 %867  ;;  %v3579_v25 = vsel %vm1605_vm3, %v3577_v8, %v3578_v22  ;;  %v3371_v40 = vadd.f32 %v12451_v16, %v3370_v58  ;;  %v3372_v21 = vpop.f32.mrb[37].mxu0 }
 0x28c   :  { %v2748_v55 = vpop.permute.xlu0 %2747  ;;  %v12708_v43 = vmax.f32 %v3505_v38, %v3579_v25  ;;  %v1158_v30 = vsel %vm985_vm15, %v1118_v27, %v868_v44  ;;  %v3373_v31 = vpop.f32.mrb[38].mxu0  ;;  %v9754_v25 = vld [vmem:[%s15633_s5 + $0xa4] ss:$16 sps:$4 sm:$0xff]  }
 0x28d   :  { %v3035_v3 = vsel %vm1022_vm0, %v2986_v52, %v2748_v55  ;;  %v3507_v37 = vmax.f32 %v3371_v40, 0.0  ;;  %v3374_v33 = vadd.f32 %v12451_v16, %v3373_v31  ;;  %v3375_v49 = vpop.f32.mrb[39].mxu0  ;;  %6835 = vmatprep.subr.bf16.mxu1 %v9754_v25 }
 0x28e   :  { %3465 = vmatmul.mubr.bf16.gmra.mrb[84].mxu0 %v3035_v3  ;;  %v3756_v31 = vrot.slane %v12708_v43, 7  ;;  %6836 = vmatpush1.bf16.msra.mxu1 %v9752_v1 }
 0x28f   :  { %v720_v36 = vpop.permute.xlu1 %719  ;;  %v3580_v45 = vrot.slane %v3507_v37, 1  ;;  %v3508_v41 = vmax.f32 %v3374_v33, 0.0 }
 0x290   :  { %v922_v50 = vpop.permute.xlu0 %921  ;;  %v1013_v38 = vsel %vm985_vm15, %v972_v60, %v720_v36 }
 0x291   :  { %v1207_v54 = vsel %vm1022_vm0, %v1158_v30, %v922_v50  ;;  %v3581_v8 = vsel %vm1605_vm3, %v3578_v22, %v3580_v45  ;;  %v3582_v3 = vrot.slane %v3508_v41, 1  ;;  %v9757_v22 = vld [vmem:[%s15633_s5 + $0xc] ss:$16 sps:$4 sm:$0xff]  }
 0x292   :  { %1492 = vmatprep.mubr.bf16.mxu1 %v1207_v54  ;;  %v12720_v58 = vmax.f32 %v3506_v14, %v3581_v8  ;;  %v3378_v27 = vpop.f32.mrb[40].mxu0  ;;  %v9755_v14 = vld [vmem:[%s15633_s5 + $0x8] ss:$16 sps:$4 sm:$0xff]   ;;  %7112 = vmatprep.subr.bf16.mxu0 %v9757_v22 }
 0x293   :  { %v774_v52 = vpop.permute.xlu1 %773  ;;  %v3583_v40 = vsel %vm1605_vm3, %v3580_v45, %v3582_v3  ;;  %v3379_v21 = vadd.f32 %v12451_v16, %v3378_v27  ;;  %v3380_v36 = vpop.f32.mrb[41].mxu0  ;;  %7113 = vmatpush1.bf16.msra.mxu0 %v9755_v14 }
 0x294   :  { %v2804_v44 = vpop.permute.xlu0 %2803  ;;  %v1063_v55 = vsel %vm1022_vm0, %v1013_v38, %v774_v52  ;;  %v3757_v50 = vrot.slane %v12720_v58, 7  ;;  %v12738_v33 = vmax.f32 %v3507_v37, %v3583_v40  ;;  %v3381_v49 = vpop.f32.mrb[42].mxu0 }
 0x295   :  { %1493 = vmatmul.mubr.bf16.gmra.mrb[52].mxu1 %v1063_v55  ;;  %v3509_v47 = vmax.f32 %v3379_v21, 0.0  ;;  %v12741_v63 = vadd.f32 %v12451_v16, %v3381_v49  ;;  %v3383_v28 = vpop.f32.mrb[43].mxu0  ;;  %v15945_v21 = vpack.c.bf16 %v12022_v46, %v12020_v32  ;;  %v9760_v32 = vld [vmem:[%s15633_s5 + $0x2c] ss:$16 sps:$4 sm:$0xff]  }
 0x296   :  { %v12744_v60 = vsel %vm1785_vm4, %v3756_v31, %v3757_v50  ;;  %v3759_v45 = vrot.slane %v12738_v33, 7  ;;  %v9758_v28 = vld [vmem:[%s15633_s5 + $0x28] ss:$16 sps:$4 sm:$0xff]   ;;  %7114 = vmatprep.subr.bf16.mxu0 %v9760_v32 }
 0x297   :  { %v2642_v30 = vpop.permute.xlu1 %2641  ;;  %v3584_v38 = vrot.slane %v3509_v47, 1  ;;  %v3510_v37 = vmax.f32 %v12741_v63, 0.0  ;;  %v3093_v36 = vsel %vm43_vm2, %v15945_v21, %v2804_v44  ;;  %v9763_v21 = vld [vmem:[%s15633_s5 + $0xc4] ss:$16 sps:$4 sm:$0xff]   ;;  %7115 = vmatpush1.bf16.msra.mxu0 %v9758_v28 }
 0x298   :  { %v2844_v54 = vpop.permute.xlu0 %2843  ;;  %v12751_v27 = vsel %vm1785_vm4, %v3757_v50, %v3759_v45  ;;  %6837 = vmatprep.subr.bf16.mxu1 %v9763_v21  ;;  %v9772_v28 = vld [vmem:[%s15633_s5 + $0xe4] ss:$16 sps:$4 sm:$0xff]  }
 0x299   :  { %v3585_v1 = vsel %vm1605_vm3, %v3582_v3, %v3584_v38  ;;  %v3586_v25 = vrot.slane %v3510_v37, 1  ;;  %v3132_v49 = vsel %vm985_vm15, %v3093_v36, %v2844_v54 }
 0x29a   :  { %v12760_v14 = vmax.f32 %v3508_v41, %v3585_v1  ;;  %v3386_v22 = vpop.f32.mrb[44].mxu0  ;;  %v9761_v1 = vld [vmem:[%s15633_s5 + $0xc0] ss:$16 sps:$4 sm:$0xff]  }
 0x29b   :  { %v830_v52 = vpop.permute.xlu1 %829  ;;  %v3587_v31 = vsel %vm1605_vm3, %v3584_v38, %v3586_v25  ;;  %v3387_v50 = vadd.f32 %v12451_v16, %v3386_v22  ;;  %v3388_v63 = vpop.f32.mrb[45].mxu0  ;;  %6838 = vmatpush1.bf16.msra.mxu1 %v9761_v1  ;;  %v9769_v1 = vld [vmem:[%s15633_s5 + $0x6c] ss:$16 sps:$4 sm:$0xff]  }
 0x29c   :  { %v2696_v8 = vpop.permute.xlu0 %2695  ;;  %v3761_v46 = vrot.slane %v12760_v14, 7  ;;  %v12772_v41 = vmax.f32 %v3509_v47, %v3587_v31  ;;  %v3389_v44 = vpop.f32.mrb[46].mxu0  ;;  %v9766_v47 = vld [vmem:[%s15633_s5 + $0x4c] ss:$16 sps:$4 sm:$0xff]   ;;  %6839 = vmatprep.subr.bf16.mxu1 %v9772_v28 }
 0x29d   :  { %v3511_v36 = vmax.f32 %v3387_v50, 0.0  ;;  %v12782_v22 = vadd.f32 %v12451_v16, %v3389_v44  ;;  %v3391_v63 = vpop.f32.mrb[47].mxu0  ;;  %v9764_v50 = vld [vmem:[%s15633_s5 + $0x48] ss:$16 sps:$4 sm:$0xff]   ;;  %7116 = vmatprep.subr.bf16.mxu0 %v9766_v47 }
 0x29e   :  { %v3763_v31 = vrot.slane %v12772_v41, 7  ;;  %7117 = vmatpush1.bf16.msra.mxu0 %v9764_v50 }
 0x29f   :  { %v2898_v3 = vpop.permute.xlu1 %2897  ;;  %v3588_v44 = vrot.slane %v3511_v36, 1  ;;  %7118 = vmatprep.subr.bf16.mxu0 %v9769_v1 }
 0x2a0   :  { %v668_v38 = vpop.permute.xlu0 %667  ;;  %v3182_v54 = vsel %vm1022_vm0, %v3132_v49, %v2898_v3  ;;  %v12789_v49 = vsel %vm1785_vm4, %v3759_v45, %v3761_v46  ;;  %v15946_v3 = vpack.c.bf16 %v11839_v6, %v11852_v48  ;;  %v9770_v45 = vld [vmem:[%s15633_s5 + $0xe0] ss:$16 sps:$4 sm:$0xff]   ;;  %v532_v6 = vpack.c.bf16 %v15919_v39, %v15904_v26 }
 0x2a1   :  { %3472 = vmatprep.mubr.bf16.mxu0 %v3182_v54  ;;  %v3512_v54 = vmax.f32 %v12782_v22, 0.0  ;;  %v12811_v21 = vsel %vm1785_vm4, %v3761_v46, %v3763_v31  ;;  %v3589_v47 = vsel %vm1605_vm3, %v3586_v25, %v3588_v44  ;;  %6840 = vmatpush1.bf16.msra.mxu1 %v9770_v45 }
 0x2a2   :  { %v2949_v32 = vsel %vm43_vm2, %v15946_v3, %v2642_v30  ;;  %v3689_v39 = vmax.f32 %v3510_v37, %v3589_v47  ;;  %v1121_v46 = vsel %vm43_vm2, %v532_v6, %v830_v52  ;;  %v15947_v37 = vld [vmem:[#allocation70_spill] sm:$0xff] }
 0x2a3   :  { %v870_v63 = vpop.permute.xlu1 %869  ;;  %v2988_v48 = vsel %vm985_vm15, %v2949_v32, %v2696_v8  ;;  %v3590_v3 = vrot.slane %v3512_v54, 1  ;;  %v3394_v8 = vpop.f32.mrb[48].mxu0 }
 0x2a4   :  { %v2750_v30 = vpop.permute.xlu0 %2749  ;;  %v3395_v29 = vadd.f32 %v12451_v16, %v3394_v8  ;;  %v3396_v19 = vpop.f32.mrb[49].mxu0  ;;  %v1160_v52 = vsel %vm985_vm15, %v1121_v46, %v870_v63  ;;  %v9775_v63 = vld [vmem:[%s15633_s5 + $0x8c] ss:$16 sps:$4 sm:$0xff]  }
 0x2a5   :  { %v3038_v4 = vsel %vm1022_vm0, %v2988_v48, %v2750_v30  ;;  %v3591_v32 = vsel %vm1605_vm3, %v3588_v44, %v3590_v3  ;;  %v9767_v48 = vld [vmem:[%s15633_s5 + $0x68] ss:$16 sps:$4 sm:$0xff]   ;;  %v3765_v30 = vrot.slane %v3689_v39, 7  ;;  %v3397_v28 = vpop.f32.mrb[50].mxu0 }
 0x2a6   :  { %3473 = vmatmul.mubr.bf16.gmra.mrb[88].mxu0 %v3038_v4  ;;  %v12828_v26 = vmax.f32 %v3511_v36, %v3591_v32  ;;  %v393_v4 = vpack.c.bf16 %v15877_v34, %v15947_v37  ;;  %v3513_v6 = vmax.f32 %v3395_v29, 0.0  ;;  %v12834_v19 = vadd.f32 %v12451_v16, %v3397_v28  ;;  %v1430_v50 = vpop.f32.mrb[20].mxu1  ;;  %v3399_v47 = vpop.f32.mrb[51].mxu0  ;;  %v9773_v29 = vld [vmem:[%s15633_s5 + $0x88] ss:$16 sps:$4 sm:$0xff]  }
 0x2a7   :  { %v722_v25 = vpop.permute.xlu1 %721  ;;  %v12838_v45 = vsel %vm1785_vm4, %v3763_v31, %v3765_v30  ;;  %v1431_v34 = vadd.f32 %v12451_v16, %v1430_v50  ;;  %v1432_v39 = vpop.f32.mrb[21].mxu1  ;;  %7119 = vmatpush1.bf16.msra.mxu0 %v9767_v48  ;;  %v9778_v48 = vld [vmem:[%s15633_s5 + $0x104] ss:$16 sps:$4 sm:$0xff]  }
 0x2a8   :  { %v924_v44 = vpop.permute.xlu0 %923  ;;  %v975_v36 = vsel %vm43_vm2, %v393_v4, %v668_v38  ;;  %v3592_v1 = vrot.slane %v3513_v6, 1  ;;  %v3514_v31 = vmax.f32 %v12834_v19, 0.0  ;;  %v1433_v32 = vpop.f32.mrb[22].mxu1  ;;  %v9776_v38 = vld [vmem:[%s15633_s5 + $0x100] ss:$16 sps:$4 sm:$0xff]   ;;  %7120 = vmatprep.subr.bf16.mxu0 %v9775_v63  ;;  %v2507_v63 = vpack.c.bf16 %v12414_v53, %v12361_v13  ;;  %6841 = vmatprep.subr.bf16.mxu1 %v9778_v48 }
 0x2a9   :  { %v1210_v8 = vsel %vm1022_vm0, %v1160_v52, %v924_v44  ;;  %v1015_v46 = vsel %vm985_vm15, %v975_v36, %v722_v25  ;;  %v1543_v4 = vmax.f32 %v1431_v34, 0.0  ;;  %v12856_v52 = vadd.f32 %v12451_v16, %v1433_v32  ;;  %v1435_v44 = vpop.f32.mrb[23].mxu1  ;;  %6842 = vmatpush1.bf16.msra.mxu1 %v9776_v38  ;;  %v9779_v13 = vld [vmem:[%s15633_s5 + $0xa8] ss:$16 sps:$4 sm:$0xff]   ;;  %v9782_v53 = vld [vmem:[%s15633_s5 + $0x120] ss:$16 sps:$4 sm:$0xff]  }
 0x2aa   :  { %1500 = vmatprep.mubr.bf16.mxu1 %v1210_v8  ;;  %v3593_v50 = vsel %vm1605_vm3, %v3590_v3, %v3592_v1  ;;  %v3594_v47 = vrot.slane %v3514_v31, 1  ;;  %v9781_v8 = vld [vmem:[%s15633_s5 + $0xac] ss:$16 sps:$4 sm:$0xff]   ;;  %v9784_v3 = vld [vmem:[%s15633_s5 + $0x124] ss:$16 sps:$4 sm:$0xff]   ;;  %v3767_v32 = vrot.slane %v12828_v26, 7 }
 0x2ab   :  { %v776_v30 = vpop.permute.xlu1 %775  ;;  %v12870_v36 = vmax.f32 %v3512_v54, %v3593_v50  ;;  %v1625_v34 = vrot.slane %v1543_v4, 1  ;;  %v15728_v39 = vmax.f32 %v12856_v52, 0.0  ;;  %7121 = vmatpush1.bf16.msra.mxu0 %v9773_v29  ;;  %6843 = vmatprep.subr.bf16.mxu1 %v9784_v3 }
 0x2ac   :  { %v2806_v28 = vpop.permute.xlu0 %2805  ;;  %v1066_v25 = vsel %vm1022_vm0, %v1015_v46, %v776_v30  ;;  %v3402_v46 = vpop.f32.mrb[52].mxu0  ;;  %v3595_v30 = vsel %vm1605_vm3, %v3592_v1, %v3594_v47  ;;  %7122 = vmatprep.subr.bf16.mxu0 %v9781_v8 }
 0x2ad   :  { %1501 = vmatmul.mubr.bf16.gmra.mrb[56].mxu1 %v1066_v25  ;;  %v12881_v22 = vadd.f32 %v12451_v16, %v3402_v46  ;;  %v3404_v54 = vpop.f32.mrb[53].mxu0  ;;  %v3768_v25 = vrot.slane %v12870_v36, 7  ;;  %v12890_v48 = vmax.f32 %v3513_v6, %v3595_v30  ;;  %v1626_v1 = vsel %vm1605_vm3, %v12658_v62, %v1625_v34 }
 0x2ae   :  { %v12896_v50 = vrot.slane %v15728_v39, 1  ;;  %v3405_v29 = vpop.f32.mrb[54].mxu0  ;;  %v1722_v46 = vmax.f32 %v1542_v57, %v1626_v1  ;;  %v3096_v40 = vsel %vm43_vm2, %v2507_v63, %v2806_v28  ;;  %v9787_v57 = vld [vmem:[%s15633_s5 + $0xcc] ss:$16 sps:$4 sm:$0xff]   ;;  %6844 = vmatpush1.bf16.msra.mxu1 %v9782_v53  ;;  %v9788_v28 = vld [vmem:[%s15633_s5 + $0x140] ss:$16 sps:$4 sm:$0xff]  }
 0x2af   :  { %v2644_v44 = vpop.permute.xlu1 %2643  ;;  %v3515_v54 = vmax.f32 %v12881_v22, 0.0  ;;  %v12902_v37 = vadd.f32 %v12451_v16, %v3405_v29  ;;  %v3407_v6 = vpop.f32.mrb[55].mxu0  ;;  %v3769_v30 = vsel %vm1785_vm4, %v3767_v32, %v3768_v25  ;;  %v3770_v62 = vrot.slane %v12890_v48, 7  ;;  %7123 = vmatpush1.bf16.msra.mxu0 %v9779_v13  ;;  %v9793_v53 = vld [vmem:[%s15633_s5 + $0xec] ss:$16 sps:$4 sm:$0xff]  }
 0x2b0   :  { %v2846_v38 = vpop.permute.xlu0 %2845  ;;  %v1628_v39 = vsel %vm1605_vm3, %v1625_v34, %v12896_v50  ;;  %v3857_v8 = vmax.f32 %v12828_v26, %v3769_v30  ;;  %v1802_v3 = vrot.slane %v1722_v46, 7  ;;  %v9790_v34 = vld [vmem:[%s15633_s5 + $0x144] ss:$16 sps:$4 sm:$0xff]   ;;  %v10643_v26 = vld [vmem:[#allocation2 + $0xf8] sm:$0xff]  ;;  %7124 = vmatprep.subr.bf16.mxu0 %v9787_v57 }
 0x2b1   :  { %v12916_v22 = vmax.f32 %v1543_v4, %v1628_v39  ;;  %v3596_v32 = vrot.slane %v3515_v54, 1  ;;  %v3771_v29 = vsel %vm1785_vm4, %v3768_v25, %v3770_v62  ;;  %v12925_v6 = vld [vmem:[#allocation2 + $0xf0] sm:$0xff]  ;;  %6845 = vmatprep.subr.bf16.mxu1 %v9790_v34  ;;  %v15948_v9 = vmax.f32 %v12902_v37, 0.0 }
 0x2b2   :  { %v2368_v4 = vpack.c.bf16 %v10643_v26, %v12925_v6  ;;  %v1803_v25 = vsel %vm1785_vm4, %v1800_v24, %v1802_v3  ;;  %v3134_v26 = vsel %vm985_vm15, %v3096_v40, %v2846_v38  ;;  %v9796_v13 = vld [vmem:[%s15633_s5 + $0x164] ss:$16 sps:$4 sm:$0xff]   ;;  %6846 = vmatpush1.bf16.msra.mxu1 %v9788_v28 }
 0x2b3   :  { %v832_v1 = vpop.permute.xlu1 %831  ;;  %v3597_v59 = vsel %vm1605_vm3, %v3594_v47, %v3596_v32  ;;  %v12950_v24 = vrot.slane %v15948_v9, 1  ;;  %v1889_v55 = vmax.f32 %v12664_v56, %v1803_v25  ;;  %v15949_v47 = vrot.slane %v12916_v22, 7  ;;  %7125 = vmatpush1.bf16.msra.mxu0 %v9785_v5  ;;  %v9791_v9 = vld [vmem:[%s15633_s5 + $0xe8] ss:$16 sps:$4 sm:$0xff]   ;;  %v9794_v56 = vld [vmem:[%s15633_s5 + $0x160] ss:$16 sps:$4 sm:$0xff]   ;;  %6847 = vmatprep.subr.bf16.mxu1 %v9796_v13 }
 0x2b4   :  { %v2698_v30 = vpop.permute.xlu0 %2697  ;;  %v12945_v57 = vmax.f32 %v3514_v31, %v3597_v59  ;;  %v2952_v39 = vsel %vm43_vm2, %v2368_v4, %v2644_v44  ;;  %v1124_v38 = vsel %vm43_vm2, %v2507_v63, %v832_v1  ;;  %v3858_v59 = vmax.f32 %v12870_v36, %v3771_v29  ;;  %7126 = vmatprep.subr.bf16.mxu0 %v9793_v53 }
 0x2b5   :  { %v1805_v40 = vsel %vm1785_vm4, %v1802_v3, %v15949_v47  ;;  %v3599_v63 = vsel %vm1605_vm3, %v3596_v32, %v12950_v24  ;;  %v3899_v36 = vrot.slane %v3857_v8, 1  ;;  %v1932_v28 = vrot.slane %v1889_v55, 1 }
 0x2b6   :  { %v1890_v19 = vmax.f32 %v1722_v46, %v1805_v40  ;;  %v3772_v31 = vrot.slane %v12945_v57, 7  ;;  %v12969_v5 = vmax.f32 %v3515_v54, %v3599_v63  ;;  %v3900_v29 = vrot.slane %v3858_v59, 1  ;;  %6848 = vmatpush1.bf16.msra.mxu1 %v9794_v56 }
 0x2b7   :  { %v2900_v34 = vpop.permute.xlu1 %2899  ;;  %v2990_v25 = vsel %vm985_vm15, %v2952_v39, %v2698_v30  ;;  %v1933_v54 = vsel %vm1605_vm3, %v12680_v42, %v1932_v28  ;;  %7127 = vmatpush1.bf16.msra.mxu0 %v9791_v9  ;;  %v15950_v42 = vmax.f32 %v12521_v23, %v12565_v17  ;;  %v9799_v23 = vld [vmem:[%s15633_s5 + $0x10c] ss:$16 sps:$4 sm:$0xff]  }
 0x2b8   :  { %v670_v44 = vpop.permute.xlu0 %669  ;;  %v3185_v3 = vsel %vm1022_vm0, %v3134_v26, %v2900_v34  ;;  %v12971_v4 = vrot.slane %v1890_v19, 1  ;;  %v3773_v46 = vsel %vm1785_vm4, %v3770_v62, %v3772_v31  ;;  %v3774_v26 = vrot.slane %v12969_v5, 7  ;;  %v12984_v62 = vld [vmem:[%s15632_s4] ss:$0 sm:$0xff]  ;;  %7128 = vmatprep.subr.bf16.mxu0 %v9799_v23 }
 0x2b9   :  { %v3410_v1 = vpop.f32.mrb[56].mxu0  ;;  %3480 = vmatprep.mubr.bf16.mxu0 %v3185_v3  ;;  %v3859_v8 = vmax.f32 %v12890_v48, %v3773_v46  ;;  %v3901_v55 = vsel %vm1605_vm3, %v3899_v36, %v3900_v29  ;;  %v1972_v48 = vmax.f32 %v15950_v42, %v1933_v54  ;;  %v15951_v19 = vmax.f32 %v12708_v43, %v12744_v60 }
 0x2ba   :  { %v3411_v32 = vadd.f32 %v12451_v16, %v3410_v1  ;;  %v3412_v47 = vpop.f32.mrb[57].mxu0  ;;  %v3775_v59 = vsel %vm1785_vm4, %v3772_v31, %v3774_v26  ;;  %v15952_v43 = vpack.c.bf16 %v15888_v11, %v12925_v6 }
 0x2bb   :  { %v3413_v53 = vpop.f32.mrb[58].mxu0  ;;  %v872_v13 = vpop.permute.xlu1 %871  ;;  %v3902_v56 = vrot.slane %v3859_v8, 1  ;;  %v13000_v63 = vmax.f32 %v15951_v19, %v3901_v55  ;;  %v3860_v17 = vmax.f32 %v12945_v57, %v3775_v59  ;;  %v1992_v36 = vrot.slane %v1972_v48, 6 }
 0x2bc   :  { %v3517_v40 = vmax.f32 %v3411_v32, 0.0  ;;  %v12987_v16 = vadd.f32 %v12984_v62, %v3413_v53  ;;  %v1162_v39 = vsel %vm985_vm15, %v1124_v38, %v872_v13  ;;  %v3415_v30 = vpop.f32.mrb[59].mxu0  ;;  %v2752_v34 = vpop.permute.xlu0 %2751  ;;  %v9797_v38 = vld [vmem:[%s15633_s5 + $0x108] ss:$16 sps:$4 sm:$0xff]   ;;  %v978_v60 = vsel %vm43_vm2, %v15952_v43, %v670_v44  ;;  %v9800_v44 = vld [vmem:[%s15633_s5 + $0x180] ss:$16 sps:$4 sm:$0xff]  }
 0x2bd   :  { %v3041_v9 = vsel %vm1022_vm0, %v2990_v25, %v2752_v34  ;;  %v3903_v46 = vsel %vm1605_vm3, %v3900_v29, %v3902_v56  ;;  %v3955_v25 = vrot.slane %v13000_v63, 2  ;;  %v1935_v32 = vsel %vm1605_vm3, %v1932_v28, %v12971_v4  ;;  %7129 = vmatpush1.bf16.msra.mxu0 %v9797_v38  ;;  %v9802_v28 = vld [vmem:[%s15633_s5 + $0x184] ss:$16 sps:$4 sm:$0xff]   ;;  %v9803_v34 = vld [vmem:[%s15633_s5 + $0x128] ss:$16 sps:$4 sm:$0xff]  }
 0x2be   :  { %v3600_v3 = vrot.slane %v3517_v40, 1  ;;  %v3518_v31 = vmax.f32 %v12987_v16, 0.0  ;;  %3481 = vmatmul.mubr.bf16.gmra.mrb[92].mxu0 %v3041_v9  ;;  %v13018_v57 = vrot.slane %v3860_v17, 1  ;;  %v15953_v29 = vmax.f32 %v12902_v37, 0.0  ;;  %v9805_v37 = vld [vmem:[%s15633_s5 + $0x12c] ss:$16 sps:$4 sm:$0xff]   ;;  %6849 = vmatprep.subr.bf16.mxu1 %v9802_v28 }
 0x2bf   :  { %v724_v1 = vpop.permute.xlu1 %723  ;;  %v9634_v54 = vpack.i.bf16 %v1985_v10, %v1992_v36  ;;  %v15954_v55 = vmax.f32 %v12720_v58, %v12751_v27  ;;  %v15955_v27 = vmax.f32 %v12533_v12, %v12590_v20  ;;  %v9808_v9 = vld [vmem:[%s15633_s5 + $0x1a4] ss:$16 sps:$4 sm:$0xff]   ;;  %v2545_v36 = vld [vmem:[#allocation2 + $0x14a] sm:$0x3f]  ;;  %6850 = vmatpush1.bf16.msra.mxu1 %v9800_v44  ;;  %7130 = vmatprep.subr.bf16.mxu0 %v9805_v37 }
 0x2c0   :  { %v3601_v47 = vsel %vm1605_vm3, %v12950_v24, %v3600_v3  ;;  %v13024_v53 = vrot.slane %v3518_v31, 1  ;;  %v1017_v11 = vsel %vm985_vm15, %v978_v60, %v724_v1  ;;  %v926_v6 = vpop.permute.xlu0 %925  ;;  %v1438_v24 = vpop.f32.mrb[24].mxu1  ;;  %v3905_v58 = vsel %vm1605_vm3, %v3902_v56, %v13018_v57  ;;  %v9814_v44 = vld [vmem:[%s15633_s5 + $0x1c4] ss:$16 sps:$4 sm:$0xff]   ;;  %6851 = vmatprep.subr.bf16.mxu1 %v9808_v9 }
 0x2c1   :  { %v13035_v13 = vmax.f32 %v15953_v29, %v3601_v47  ;;  %v1213_v8 = vsel %vm1022_vm0, %v1162_v39, %v926_v6  ;;  %v3942_v30 = vmax.f32 %v15954_v55, %v3903_v46  ;;  %v13052_v48 = vadd.f32 %v12984_v62, %v1438_v24  ;;  %v1440_v10 = vpop.f32.mrb[25].mxu1  ;;  %v2406_v39 = vld [vmem:[#allocation2 + $0x119] sm:$0x3f]  ;;  %9635 = vrot.lane.b32.xlu1 %v9634_v54, %s10705_s21  ;;  %v9806_v46 = vld [vmem:[%s15633_s5 + $0x1a0] ss:$16 sps:$4 sm:$0xff]  }
 0x2c2   :  { %v3603_v42 = vsel %vm1605_vm3, %v3600_v3, %v13024_v53  ;;  %1508 = vmatprep.mubr.bf16.mxu1 %v1213_v8  ;;  %v13059_v59 = vmax.f32 %v15955_v27, %v1935_v32  ;;  %v1441_v23 = vpop.f32.mrb[26].mxu1  ;;  %v15956_v56 = vmax.f32 %v12738_v33, %v12789_v49  ;;  %v9811_v33 = vld [vmem:[%s15633_s5 + $0x14c] ss:$16 sps:$4 sm:$0xff]   ;;  %v10645_v47 = vld [vmem:[#allocation2 + $0x111] sm:$0xff]  ;;  %7131 = vmatpush1.bf16.msra.mxu0 %v9803_v34 }
 0x2c3   :  { %v3776_v19 = vrot.slane %v13035_v13, 7  ;;  %v13065_v38 = vmax.f32 %v3517_v40, %v3603_v42  ;;  %v778_v17 = vpop.permute.xlu1 %777  ;;  %v3962_v3 = vrot.slane %v3942_v30, 6  ;;  %v1545_v20 = vmax.f32 %v13052_v48, 0.0  ;;  %v1443_v40 = vpop.f32.mrb[27].mxu1  ;;  %v10646_v54 = vld [vmem:[#allocation2 + $0x131] sm:$0xff]  ;;  %v10647_v8 = vld [vmem:[#allocation2 + $0x139] sm:$0xff]  ;;  %7132 = vmatprep.subr.bf16.mxu0 %v9811_v33  ;;  %6852 = vmatpush1.bf16.msra.mxu1 %v9806_v46 }
 0x2c4   :  { %v13071_v12 = vmax.f32 %v15956_v56, %v3905_v58  ;;  %v13075_v43 = vadd.f32 %v12984_v62, %v1441_v23  ;;  %v2808_v60 = vpop.permute.xlu0 %2807  ;;  %v1069_v1 = vsel %vm1022_vm0, %v1017_v11, %v778_v17  ;;  %v2424_v6 = vpack.c.bf16 %v2406_v39, %v10645_v47  ;;  %v9809_v11 = vld [vmem:[%s15633_s5 + $0x148] ss:$16 sps:$4 sm:$0xff]   ;;  %v2460_v30 = vld [vmem:[#allocation2 + $0x11f] sm:$0x3f]  ;;  %v2570_v9 = vld [vmem:[#allocation2 + $0x150] sm:$0x3f]  ;;  %6853 = vmatprep.subr.bf16.mxu1 %v9814_v44 }
 0x2c5   :  { %v3777_v49 = vsel %vm1785_vm4, %v3774_v26, %v3776_v19  ;;  %v3778_v32 = vrot.slane %v13065_v38, 7  ;;  %v9629_v28 = vpack.i.bf16 %v3955_v25, %v3962_v3  ;;  %1509 = vmatmul.mubr.bf16.gmra.mrb[60].mxu1 %v1069_v1  ;;  %v1629_v24 = vrot.slane %v1545_v20, 1  ;;  %v2459_v25 = vld [vmem:[#allocation2 + $0x117] sm:$0xff] }
 0x2c6   :  { %v3861_v29 = vmax.f32 %v12969_v5, %v3777_v49  ;;  %v1546_v26 = vmax.f32 %v13075_v43, 0.0  ;;  %v13096_v55 = vpack.c.bf16 %v10647_v8, %v10646_v54  ;;  %2647 = vrot.lane.b32.xlu1 %v2424_v6, %s10704_s20  ;;  %v2563_v37 = vpack.c.bf16 %v2545_v36, %v12541_v61  ;;  %v9817_v42 = vld [vmem:[%s15633_s5 + $0x16c] ss:$16 sps:$4 sm:$0xff]   ;;  %v9812_v61 = vld [vmem:[%s15633_s5 + $0x1c0] ss:$16 sps:$4 sm:$0xff]   ;;  %7133 = vmatpush1.bf16.msra.mxu0 %v9809_v11 }
 0x2c7   :  { %v3779_v34 = vsel %vm1785_vm4, %v3776_v19, %v3778_v32  ;;  %9630 = vrot.lane.b32.xlu0 %v9629_v28, %s10705_s21  ;;  %v13103_v5 = vpop.permute.xlu1 %2645  ;;  %v1630_v39 = vsel %vm1605_vm3, %v12896_v50, %v1629_v24  ;;  %v15957_v19 = vmax.f32 %v12856_v52, 0.0  ;;  %v2478_v17 = vpack.c.bf16 %v2460_v30, %v2459_v25  ;;  %v9815_v50 = vld [vmem:[%s15633_s5 + $0x168] ss:$16 sps:$4 sm:$0xff]   ;;  %v2480_v52 = vld [vmem:[#allocation2 + $0x120] sm:$0x3f]  ;;  %7134 = vmatprep.subr.bf16.mxu0 %v9817_v42 }
 0x2c8   :  { %v3906_v48 = vrot.slane %v3861_v29, 1  ;;  %v3862_v10 = vmax.f32 %v13035_v13, %v3779_v34  ;;  %v13114_v58 = vrot.slane %v1546_v26, 1  ;;  %v2848_v27 = vpop.permute.xlu0 %2847  ;;  %v9820_v13 = vld [vmem:[%s15633_s5 + $0x1e4] ss:$16 sps:$4 sm:$0xff]   ;;  %v3099_v36 = vsel %vm43_vm2, %v13096_v55, %v2808_v60  ;;  %6854 = vmatpush1.bf16.msra.mxu1 %v9812_v61  ;;  %v9821_v54 = vld [vmem:[%s15633_s5 + $0x188] ss:$16 sps:$4 sm:$0xff]  }
 0x2c9   :  { %v13121_v23 = vmax.f32 %v15957_v19, %v1630_v39  ;;  %v2574_v49 = vpack.c.bf16 %v2570_v9, %v12576_v0  ;;  %v15958_v60 = vmax.f32 %v12760_v14, %v12811_v21  ;;  %v15959_v11 = vrot.slane %v12916_v22, 7  ;;  %v10648_v14 = vld [vmem:[#allocation2 + $0x118] sm:$0xff]  ;;  %6855 = vmatprep.subr.bf16.mxu1 %v9820_v13  ;;  %v9826_v42 = vld [vmem:[%s15633_s5 + $0x204] ss:$16 sps:$4 sm:$0xff]   ;;  %v10650_v9 = vld [vmem:[#allocation2 + $0x108] sm:$0xff] }
 0x2ca   :  { %v1632_v3 = vsel %vm1605_vm3, %v1629_v24, %v13114_v58  ;;  %v3907_v56 = vsel %vm1605_vm3, %v13018_v57, %v3906_v48  ;;  %v3908_v40 = vrot.slane %v3862_v10, 1  ;;  %2701 = vrot.lane.b32.xlu1 %v2478_v17, %s10705_s21  ;;  %v2576_v57 = vld [vmem:[#allocation2 + $0x151] sm:$0x3f]  ;;  %v3136_v29 = vsel %vm985_vm15, %v3099_v36, %v2848_v27  ;;  %7135 = vmatpush1.bf16.msra.mxu0 %v9815_v50  ;;  %v9823_v8 = vld [vmem:[%s15633_s5 + $0x18c] ss:$16 sps:$4 sm:$0xff]   ;;  %v10649_v27 = vld [vmem:[#allocation2 + $0x100] sm:$0xff] }
 0x2cb   :  { %v1806_v1 = vrot.slane %v13121_v23, 7  ;;  %v13136_v46 = vmax.f32 %v1545_v20, %v1632_v3  ;;  %2809 = vrot.lane.b32.xlu0 %v2563_v37, %s10704_s20  ;;  %v834_v33 = vpop.permute.xlu1 %833  ;;  %v13144_v47 = vmax.f32 %v15958_v60, %v3907_v56  ;;  %v9818_v20 = vld [vmem:[%s15633_s5 + $0x1e0] ss:$16 sps:$4 sm:$0xff]   ;;  %v2498_v21 = vpack.c.bf16 %v2480_v52, %v10648_v14  ;;  %7136 = vmatprep.subr.bf16.mxu0 %v9823_v8  ;;  %v9829_v39 = vld [vmem:[%s15633_s5 + $0x1ac] ss:$16 sps:$4 sm:$0xff]  }
 0x2cc   :  { %v2700_v6 = vpop.permute.xlu0 %2699  ;;  %v3909_v28 = vsel %vm1605_vm3, %v3906_v48, %v3908_v40  ;;  %v15960_v25 = vmax.f32 %v12772_v41, %v12838_v45  ;;  %v2594_v37 = vpack.c.bf16 %v2576_v57, %v12596_v7  ;;  %6856 = vmatpush1.bf16.msra.mxu1 %v9818_v20  ;;  %v2369_v61 = vpack.c.bf16 %v10650_v9, %v10649_v27  ;;  %v9835_v36 = vld [vmem:[%s15633_s5 + $0x1cc] ss:$16 sps:$4 sm:$0xff]   ;;  %v9839_v27 = vld [vmem:[%s15633_s5 + $0x1e8] ss:$16 sps:$4 sm:$0xff]  }
 0x2cd   :  { %v1807_v44 = vsel %vm1785_vm4, %v15959_v11, %v1806_v1  ;;  %v1808_v0 = vrot.slane %v13136_v46, 7  ;;  %v3974_v19 = vrot.slane %v13144_v47, 6  ;;  %v1997_v3 = vrot.slane %v13059_v59, 2  ;;  %6866 = vmatprep.subr.bf16.mxu1 %v9826_v42  ;;  %v9841_v8 = vld [vmem:[%s15633_s5 + $0x1ec] ss:$16 sps:$4 sm:$0xff]  }
 0x2ce   :  { %v1891_v24 = vmax.f32 %v12916_v22, %v1807_v44  ;;  %v13165_v30 = vmax.f32 %v15960_v25, %v3909_v28  ;;  %2755 = vrot.lane.b32.xlu1 %v2498_v21, %s10706_s24  ;;  %v1446_v7 = vpop.f32.mrb[28].mxu1  ;;  %7137 = vmatpush1.bf16.msra.mxu0 %v9821_v54  ;;  %v2955_v56 = vsel %vm43_vm2, %v2369_v61, %v13103_v5  ;;  %v9847_v43 = vld [vmem:[%s15633_s5 + $0x20c] ss:$16 sps:$4 sm:$0xff]  }
 0x2cf   :  { %v1809_v34 = vsel %vm1785_vm4, %v1806_v1, %v1808_v0  ;;  %2849 = vrot.lane.b32.xlu0 %v2574_v49, %s10705_s21  ;;  %v2902_v22 = vpop.permute.xlu1 %2901  ;;  %v1447_v17 = vadd.f32 %v12984_v62, %v1446_v7  ;;  %v1448_v50 = vpop.f32.mrb[29].mxu1  ;;  %7138 = vmatprep.subr.bf16.mxu0 %v9829_v39  ;;  %v1127_v40 = vsel %vm43_vm2, %v13096_v55, %v834_v33 }
 0x2d0   :  { %v1936_v48 = vrot.slane %v1891_v24, 1  ;;  %v1892_v41 = vmax.f32 %v13121_v23, %v1809_v34  ;;  %v672_v45 = vpop.permute.xlu0 %671  ;;  %v3188_v10 = vsel %vm1022_vm0, %v3136_v29, %v2902_v22  ;;  %v9827_v23 = vld [vmem:[%s15633_s5 + $0x1a8] ss:$16 sps:$4 sm:$0xff]   ;;  %v1449_v1 = vpop.f32.mrb[30].mxu1  ;;  %v15961_v60 = vmax.f32 %v12567_v51, %v12602_v18 }
 0x2d1   :  { %3488 = vmatprep.mubr.bf16.mxu0 %v3188_v10  ;;  %v2992_v20 = vsel %vm985_vm15, %v2955_v56, %v2700_v6  ;;  %v1547_v28 = vmax.f32 %v1447_v17, 0.0  ;;  %v13205_v11 = vadd.f32 %v12984_v62, %v1449_v1  ;;  %v1451_v44 = vpop.f32.mrb[31].mxu1  ;;  %v9833_v51 = vld [vmem:[%s15633_s5 + $0x1c8] ss:$16 sps:$4 sm:$0xff]   ;;  %v15962_v18 = vmax.f32 %v12581_v15, %v12641_v2 }
 0x2d2   :  { %v1937_v13 = vsel %vm1605_vm3, %v12971_v4, %v1936_v48  ;;  %v1938_v52 = vrot.slane %v1892_v41, 1  ;;  %v3967_v4 = vrot.slane %v13071_v12, 2  ;;  %7139 = vmatpush1.bf16.msra.mxu0 %v9827_v23  ;;  %v15963_v22 = vld [vmem:[#allocation90_spill] sm:$0xff]  ;;  %v13243_v23 = vld [vmem:[#allocation2 + $0x141] sm:$0xff] }
 0x2d3   :  { %2903 = vrot.lane.b32.xlu0 %v2594_v37, %s10706_s24  ;;  %v874_v49 = vpop.permute.xlu1 %873  ;;  %v13201_v57 = vmax.f32 %v15961_v60, %v1937_v13  ;;  %v1633_v21 = vrot.slane %v1547_v28, 1  ;;  %v1548_v24 = vmax.f32 %v13205_v11, 0.0  ;;  %7140 = vmatprep.subr.bf16.mxu0 %v9835_v36  ;;  %v15964_v37 = vld [vmem:[#allocation85_spill] sm:$0xff] }
 0x2d4   :  { %v2754_v5 = vpop.permute.xlu0 %2753  ;;  %v1939_v55 = vsel %vm1605_vm3, %v1936_v48, %v1938_v52  ;;  %v9639_v33 = vpack.i.bf16 %v3967_v4, %v3974_v19  ;;  %v1164_v54 = vsel %vm985_vm15, %v1127_v40, %v874_v49  ;;  %v395_v15 = vpack.c.bf16 %v15964_v37, %v15963_v22  ;;  %v531_v41 = vld [vmem:[#allocation2 + $0x149] sm:$0x3f] }
 0x2d5   :  { %v3044_v29 = vsel %vm1022_vm0, %v2992_v20, %v2754_v5  ;;  %v2004_v14 = vrot.slane %v13201_v57, 6  ;;  %v13216_v6 = vmax.f32 %v15962_v18, %v1939_v55  ;;  %v1634_v2 = vsel %vm1605_vm3, %v13114_v58, %v1633_v21 }
 0x2d6   :  { %3489 = vmatmul.mubr.bf16.gmra.mrb[96].mxu0 %v3044_v29  ;;  %v1635_v42 = vrot.slane %v1548_v24, 1  ;;  %v1726_v10 = vmax.f32 %v1546_v26, %v1634_v2  ;;  %v981_v9 = vsel %vm43_vm2, %v395_v15, %v672_v45  ;;  %v535_v17 = vpack.c.bf16 %v531_v41, %v13243_v23 }
 0x2d7   :  { %9640 = vrot.lane.b32.xlu0 %v9639_v33, %s10705_s21  ;;  %v726_v25 = vpop.permute.xlu1 %725  ;;  %v9644_v34 = vpack.i.bf16 %v1997_v3, %v2004_v14  ;;  %7141 = vmatpush1.bf16.msra.mxu0 %v9833_v51 }
 0x2d8   :  { %v928_v48 = vpop.permute.xlu0 %927  ;;  %v1636_v61 = vsel %vm1605_vm3, %v1633_v21, %v1635_v42  ;;  %7142 = vmatprep.subr.bf16.mxu0 %v9841_v8  ;;  %v1810_v26 = vrot.slane %v1726_v10, 7  ;;  %v1019_v7 = vsel %vm985_vm15, %v981_v9, %v726_v25 }
 0x2d9   :  { %9645 = vrot.lane.b32.xlu1 %v9644_v34, %s10705_s21  ;;  %v1216_v39 = vsel %vm1022_vm0, %v1164_v54, %v928_v48  ;;  %v13240_v58 = vmax.f32 %v1547_v28, %v1636_v61  ;;  %v15966_v28 = vld [vmem:[#allocation92_spill] sm:$0xff] }
 0x2da   :  { %1516 = vmatprep.mubr.bf16.mxu1 %v1216_v39  ;;  %v13250_v13 = vsel %vm1785_vm4, %v1808_v0, %v1810_v26  ;;  %v15965_v0 = vld [vmem:[#allocation81_spill] sm:$0xff] }
 0x2db   :  { %v780_v19 = vpop.permute.xlu1 %779  ;;  %7143 = vmatpush1.bf16.msra.mxu0 %v9839_v27  ;;  %v1893_v3 = vmax.f32 %v13136_v46, %v13250_v13  ;;  %v396_v11 = vpack.c.bf16 %v15966_v28, %v15965_v0  ;;  %v1812_v15 = vrot.slane %v13240_v58, 7 }
 0x2dc   :  { %v1072_v45 = vsel %vm1022_vm0, %v1019_v7, %v780_v19  ;;  %v836_v50 = vpop.permute.xlu0 %835  ;;  %7153 = vmatprep.subr.bf16.mxu0 %v9847_v43 }
 0x2dd   :  { %1517 = vmatmul.mubr.bf16.gmra.mrb[64].mxu1 %v1072_v45  ;;  %v1130_v36 = vsel %vm43_vm2, %v535_v17, %v836_v50 }
 0x2de   :  { %v1454_v40 = vpop.f32.mrb[32].mxu1 }
 0x2df   :  { %v674_v52 = vpop.permute.xlu1 %673  ;;  %v1455_v1 = vadd.f32 %v12984_v62, %v1454_v40  ;;  %v1456_v49 = vpop.f32.mrb[33].mxu1 }
 0x2e0   :  { %v876_v56 = vpop.permute.xlu0 %875  ;;  %v1457_v60 = vpop.f32.mrb[34].mxu1  ;;  %v984_v14 = vsel %vm43_vm2, %v396_v11, %v674_v52 }
 0x2e1   :  { %v1166_v4 = vsel %vm985_vm15, %v1130_v36, %v876_v56  ;;  %v1549_v5 = vmax.f32 %v1455_v1, 0.0  ;;  %v1458_v44 = vadd.f32 %v12984_v62, %v1457_v60  ;;  %v1459_v55 = vpop.f32.mrb[35].mxu1 }
 0x2e3   :  { %v728_v20 = vpop.permute.xlu1 %727  ;;  %v1637_v51 = vrot.slane %v1549_v5, 1  ;;  %v1550_v18 = vmax.f32 %v1458_v44, 0.0 }
 0x2e4   :  { %v930_v33 = vpop.permute.xlu0 %929  ;;  %v1021_v21 = vsel %vm985_vm15, %v984_v14, %v728_v20 }
 0x2e5   :  { %v1219_v29 = vsel %vm1022_vm0, %v1166_v4, %v930_v33  ;;  %v1638_v8 = vsel %vm1605_vm3, %v1635_v42, %v1637_v51  ;;  %v1639_v25 = vrot.slane %v1550_v18, 1 }
 0x2e6   :  { %1524 = vmatprep.mubr.bf16.mxu1 %v1219_v29  ;;  %v13265_v22 = vmax.f32 %v1548_v24, %v1638_v8 }
 0x2e7   :  { %v782_v54 = vpop.permute.xlu1 %781  ;;  %v1640_v37 = vsel %vm1605_vm3, %v1637_v51, %v1639_v25 }
 0x2e8   :  { %v1075_v34 = vsel %vm1022_vm0, %v1021_v21, %v782_v54  ;;  %v1813_v2 = vrot.slane %v13265_v22, 7  ;;  %v13270_v48 = vmax.f32 %v1549_v5, %v1640_v37 }
 0x2e9   :  { %1525 = vmatmul.mubr.bf16.gmra.mrb[68].mxu1 %v1075_v34 }
 0x2ea   :  { %v13273_v41 = vsel %vm1785_vm4, %v1812_v15, %v1813_v2  ;;  %v1815_v10 = vrot.slane %v13270_v48, 7 }
 0x2eb   :  { %v1894_v42 = vmax.f32 %v13240_v58, %v13273_v41 }
 0x2ec   :  { %v13279_v24 = vsel %vm1785_vm4, %v1813_v2, %v1815_v10 }
 0x2f3   :  { %v1462_v27 = vpop.f32.mrb[36].mxu1 }
 0x2f4   :  { %v1463_v9 = vadd.f32 %v12984_v62, %v1462_v27  ;;  %v1464_v61 = vpop.f32.mrb[37].mxu1 }
 0x2f5   :  { %v1465_v43 = vpop.f32.mrb[38].mxu1 }
 0x2f6   :  { %v1551_v26 = vmax.f32 %v1463_v9, 0.0  ;;  %v1466_v7 = vadd.f32 %v12984_v62, %v1465_v43  ;;  %v1467_v19 = vpop.f32.mrb[39].mxu1 }
 0x2f8   :  { %v1641_v17 = vrot.slane %v1551_v26, 1  ;;  %v1552_v45 = vmax.f32 %v1466_v7, 0.0 }
 0x2fa   :  { %v1642_v50 = vsel %vm1605_vm3, %v1639_v25, %v1641_v17  ;;  %v1643_v36 = vrot.slane %v1552_v45, 1 }
 0x2fb   :  { %v1730_v52 = vmax.f32 %v1550_v18, %v1642_v50 }
 0x2fc   :  { %v1644_v56 = vsel %vm1605_vm3, %v1641_v17, %v1643_v36 }
 0x2fd   :  { %v1817_v40 = vrot.slane %v1730_v52, 7  ;;  %v1731_v1 = vmax.f32 %v1551_v26, %v1644_v56 }
 0x2ff   :  { %v13288_v49 = vsel %vm1785_vm4, %v1815_v10, %v1817_v40  ;;  %v1819_v21 = vrot.slane %v1731_v1, 7 }
 0x304   :  { %v1470_v60 = vpop.f32.mrb[40].mxu1 }
 0x305   :  { %v1471_v20 = vadd.f32 %v12984_v62, %v1470_v60  ;;  %v1472_v0 = vpop.f32.mrb[41].mxu1 }
 0x306   :  { %v1473_v28 = vpop.f32.mrb[42].mxu1 }
 0x307   :  { %v1553_v11 = vmax.f32 %v1471_v20, 0.0  ;;  %v13294_v5 = vadd.f32 %v12984_v62, %v1473_v28  ;;  %v1475_v44 = vpop.f32.mrb[43].mxu1 }
 0x309   :  { %v1645_v55 = vrot.slane %v1553_v11, 1  ;;  %v1554_v33 = vmax.f32 %v13294_v5, 0.0 }
 0x30b   :  { %v1646_v29 = vsel %vm1605_vm3, %v1643_v36, %v1645_v55  ;;  %v13300_v14 = vrot.slane %v1554_v33, 1 }
 0x30c   :  { %v1732_v51 = vmax.f32 %v1552_v45, %v1646_v29 }
 0x30d   :  { %v1648_v18 = vsel %vm1605_vm3, %v1645_v55, %v13300_v14 }
 0x30e   :  { %v1820_v54 = vrot.slane %v1732_v51, 7  ;;  %v13304_v8 = vmax.f32 %v1553_v11, %v1648_v18 }
 0x310   :  { %v1821_v25 = vsel %vm1785_vm4, %v1819_v21, %v1820_v54  ;;  %v1822_v34 = vrot.slane %v13304_v8, 7 }
 0x311   :  { %v1897_v37 = vmax.f32 %v1731_v1, %v1821_v25  ;;  %v3418_v15 = vpop.f32.mrb[60].mxu0 }
 0x312   :  { %v1823_v2 = vsel %vm1785_vm4, %v1820_v54, %v1822_v34  ;;  %v3419_v10 = vadd.f32 %v12984_v62, %v3418_v15  ;;  %v3420_v27 = vpop.f32.mrb[61].mxu0 }
 0x313   :  { %v1898_v9 = vmax.f32 %v1732_v51, %v1823_v2  ;;  %v3421_v61 = vpop.f32.mrb[62].mxu0  ;;  %v1940_v19 = vrot.slane %v1897_v37, 1 }
 0x314   :  { %v3519_v43 = vmax.f32 %v3419_v10, 0.0  ;;  %v3422_v26 = vadd.f32 %v12984_v62, %v3421_v61  ;;  %v3423_v7 = vpop.f32.mrb[63].mxu0 }
 0x315   :  { %v1941_v17 = vrot.slane %v1898_v9, 1 }
 0x316   :  { %v3604_v45 = vrot.slane %v3519_v43, 1  ;;  %v3520_v50 = vmax.f32 %v3422_v26, 0.0 }
 0x317   :  { %v1942_v36 = vsel %vm1605_vm3, %v1940_v19, %v1941_v17 }
 0x318   :  { %v3605_v52 = vsel %vm1605_vm3, %v13024_v53, %v3604_v45  ;;  %v3606_v56 = vrot.slane %v3520_v50, 1  ;;  %v13319_v40 = vmax.f32 %v1893_v3, %v1942_v36 }
 0x319   :  { %v3697_v1 = vmax.f32 %v3518_v31, %v3605_v52 }
 0x31a   :  { %v3607_v60 = vsel %vm1605_vm3, %v3604_v45, %v3606_v56  ;;  %v2009_v20 = vrot.slane %v13319_v40, 2  ;;  %v2015_v0 = vrot.slane %v13319_v40, 6 }
 0x31b   :  { %v3780_v28 = vrot.slane %v3697_v1, 7  ;;  %v13326_v11 = vmax.f32 %v3519_v43, %v3607_v60 }
 0x31c   :  { %v9654_v44 = vpack.i.bf16 %v2009_v20, %v2015_v0 }
 0x31d   :  { %v13331_v53 = vsel %vm1785_vm4, %v3778_v32, %v3780_v28  ;;  %v3426_v46 = vpop.f32.mrb[64].mxu0  ;;  %v3782_v27 = vrot.slane %v13326_v11, 7 }
 0x31e   :  { %v3863_v16 = vmax.f32 %v13065_v38, %v13331_v53  ;;  %v3427_v31 = vadd.f32 %v12984_v62, %v3426_v46  ;;  %v3428_v13 = vpop.f32.mrb[65].mxu0  ;;  %9655 = vrot.lane.b32.xlu1 %v9654_v44, %s10705_s21 }
 0x31f   :  { %v3429_v3 = vpop.f32.mrb[66].mxu0 }
 0x320   :  { %v3521_v55 = vmax.f32 %v3427_v31, 0.0  ;;  %v3430_v29 = vadd.f32 %v12984_v62, %v3429_v3  ;;  %v3431_v51 = vpop.f32.mrb[67].mxu0 }
 0x322   :  { %v3608_v18 = vrot.slane %v3521_v55, 1  ;;  %v3522_v21 = vmax.f32 %v3430_v29, 0.0 }
 0x324   :  { %v3609_v54 = vsel %vm1605_vm3, %v3606_v56, %v3608_v18  ;;  %v3610_v32 = vrot.slane %v3522_v21, 1 }
 0x325   :  { %v13339_v25 = vmax.f32 %v3520_v50, %v3609_v54  ;;  %v3434_v37 = vpop.f32.mrb[68].mxu0 }
 0x326   :  { %v3611_v15 = vsel %vm1605_vm3, %v3608_v18, %v3610_v32  ;;  %v3435_v2 = vadd.f32 %v12984_v62, %v3434_v37  ;;  %v3436_v10 = vpop.f32.mrb[69].mxu0 }
 0x327   :  { %v3783_v9 = vrot.slane %v13339_v25, 7  ;;  %v13345_v61 = vmax.f32 %v3521_v55, %v3611_v15  ;;  %v3437_v43 = vpop.f32.mrb[70].mxu0 }
 0x328   :  { %v3523_v26 = vmax.f32 %v3435_v2, 0.0  ;;  %v3438_v7 = vadd.f32 %v12984_v62, %v3437_v43  ;;  %v3439_v19 = vpop.f32.mrb[71].mxu0 }
 0x329   :  { %v13349_v17 = vsel %vm1785_vm4, %v3782_v27, %v3783_v9  ;;  %v3785_v45 = vrot.slane %v13345_v61, 7 }
 0x32a   :  { %v3612_v50 = vrot.slane %v3523_v26, 1  ;;  %v3524_v36 = vmax.f32 %v3438_v7, 0.0  ;;  %v3864_v52 = vmax.f32 %v13326_v11, %v13349_v17  ;;  %v9854_v17 = vld [vmem:[%s15633_s5 + $0x2a0] ss:$16 sps:$4 sm:$0xff]  }
 0x32b   :  { %v13355_v56 = vsel %vm1785_vm4, %v3783_v9, %v3785_v45 }
 0x32c   :  { %v3613_v1 = vsel %vm1605_vm3, %v3610_v32, %v3612_v50  ;;  %v3614_v60 = vrot.slane %v3524_v36, 1 }
 0x32d   :  { %v3701_v0 = vmax.f32 %v3522_v21, %v3613_v1  ;;  %v3442_v28 = vpop.f32.mrb[72].mxu0 }
 0x32e   :  { %v3615_v44 = vsel %vm1605_vm3, %v3612_v50, %v3614_v60  ;;  %v3443_v46 = vadd.f32 %v12984_v62, %v3442_v28  ;;  %v3444_v31 = vpop.f32.mrb[73].mxu0  ;;  %v2352_v28 = vld [vmem:[#allocation2 + $0x118] sm:$0x3f] }
 0x32f   :  { %v3787_v13 = vrot.slane %v3701_v0, 7  ;;  %v3702_v3 = vmax.f32 %v3523_v26, %v3615_v44  ;;  %v3445_v55 = vpop.f32.mrb[74].mxu0 }
 0x330   :  { %v3525_v29 = vmax.f32 %v3443_v46, 0.0  ;;  %v13363_v51 = vadd.f32 %v12984_v62, %v3445_v55  ;;  %v1478_v18 = vpop.f32.mrb[44].mxu1  ;;  %v3447_v54 = vpop.f32.mrb[75].mxu0 }
 0x331   :  { %v13366_v32 = vsel %vm1785_vm4, %v3785_v45, %v3787_v13  ;;  %v1479_v21 = vadd.f32 %v12984_v62, %v1478_v18  ;;  %v1480_v37 = vpop.f32.mrb[45].mxu1  ;;  %v3789_v44 = vrot.slane %v3702_v3, 7  ;;  %v1989_v18 = vrot.slane %v12694_v35, 4 }
 0x332   :  { %v3616_v15 = vrot.slane %v3525_v29, 1  ;;  %v3526_v2 = vmax.f32 %v13363_v51, 0.0  ;;  %v1481_v10 = vpop.f32.mrb[46].mxu1 }
 0x333   :  { %v1555_v9 = vmax.f32 %v1479_v21, 0.0  ;;  %v13373_v43 = vadd.f32 %v12984_v62, %v1481_v10  ;;  %v1483_v26 = vpop.f32.mrb[47].mxu1  ;;  %v9636_v45 = vpop.permute.xlu1 %9635  ;;  %v10652_v21 = vld [vmem:[#allocation2 + $0x110] sm:$0xff] }
 0x334   :  { %v3617_v7 = vsel %vm1605_vm3, %v3614_v60, %v3616_v15  ;;  %v13378_v19 = vrot.slane %v3526_v2, 1  ;;  %v9638_v54 = vunpack.i.h.bf16 %v9636_v45  ;;  %v2370_v37 = vpack.c.bf16 %v2352_v28, %v10652_v21  ;;  %v2505_v26 = vld [vmem:[#allocation2 + $0x149] sm:$0x3f] }
 0x335   :  { %v3703_v50 = vmax.f32 %v3524_v36, %v3617_v7  ;;  %v1649_v1 = vrot.slane %v1555_v9, 1  ;;  %v15729_v0 = vmax.f32 %v13373_v43, 0.0  ;;  %v9637_v21 = vunpack.i.l.bf16 %v9636_v45 }
 0x336   :  { %v3619_v46 = vsel %vm1605_vm3, %v3616_v15, %v13378_v19 }
 0x337   :  { %v3790_v31 = vrot.slane %v3703_v50, 7  ;;  %v13383_v13 = vmax.f32 %v3525_v29, %v3619_v46  ;;  %v1650_v60 = vsel %vm1605_vm3, %v13300_v14, %v1649_v1  ;;  %v13389_v55 = vrot.slane %v15729_v0, 1 }
 0x338   :  { %v1734_v36 = vmax.f32 %v1554_v33, %v1650_v60  ;;  %v2648_v10 = vpop.permute.xlu1 %2647  ;;  %v3959_v46 = vrot.slane %v13000_v63, 4 }
 0x339   :  { %v9631_v15 = vpop.permute.xlu0 %9630  ;;  %v3791_v29 = vsel %vm1785_vm4, %v3789_v44, %v3790_v31  ;;  %v3792_v7 = vrot.slane %v13383_v13, 7  ;;  %v1652_v14 = vsel %vm1605_vm3, %v1649_v1, %v13389_v55  ;;  %v2509_v44 = vpack.c.bf16 %v2505_v26, %v13243_v23 }
 0x33a   :  { %v3867_v4 = vmax.f32 %v3702_v3, %v3791_v29  ;;  %v1824_v5 = vrot.slane %v1734_v36, 7  ;;  %v13399_v33 = vmax.f32 %v1555_v9, %v1652_v14  ;;  %v9633_v60 = vunpack.i.h.bf16 %v9631_v15 }
 0x33b   :  { %v3793_v28 = vsel %vm1785_vm4, %v3790_v31, %v3792_v7  ;;  %v9632_v39 = vunpack.i.l.bf16 %v9631_v15  ;;  %v2031_v3 = vsel %vm985_vm15, %v12694_v35, %v9638_v54  ;;  %v2032_v35 = vsel %vm985_vm15, %v1989_v18, %v9637_v21 }
 0x33c   :  { %v3868_v27 = vmax.f32 %v3703_v50, %v3793_v28  ;;  %v1825_v1 = vsel %vm1785_vm4, %v1822_v34, %v1824_v5  ;;  %v1826_v20 = vrot.slane %v13399_v33, 7  ;;  %v2702_v9 = vpop.permute.xlu1 %2701  ;;  %v3910_v14 = vrot.slane %v3867_v4, 1 }
 0x33d   :  { %v2810_v29 = vpop.permute.xlu0 %2809  ;;  %v1899_v0 = vmax.f32 %v13304_v8, %v1825_v1  ;;  %v4001_v45 = vsel %vm985_vm15, %v13000_v63, %v9633_v60  ;;  %v4002_v23 = vsel %vm985_vm15, %v3959_v46, %v9632_v39  ;;  %v3450_v50 = vpop.f32.mrb[76].mxu0  ;;  %v2958_v4 = vsel %vm43_vm2, %v2370_v37, %v2648_v10 }
 0x33e   :  { %v3911_v31 = vrot.slane %v3868_v27, 1  ;;  %v1827_v34 = vsel %vm1785_vm4, %v1824_v5, %v1826_v20  ;;  %v4059_v15 = vrot.slane %v4001_v45, 7  ;;  %v4060_v26 = vrot.slane %v4002_v23, 7  ;;  %v3452_v28 = vpop.f32.mrb[77].mxu0 }
 0x33f   :  { %v3451_v8 = vadd.f32 %v12984_v62, %v3450_v50  ;;  %v3453_v54 = vpop.f32.mrb[78].mxu0  ;;  %v1900_v1 = vmax.f32 %v1734_v36, %v1827_v34  ;;  %v1943_v60 = vrot.slane %v1899_v0, 1  ;;  %v9824_v36 = vld [vmem:[%s15633_s5 + $0x200] ss:$16 sps:$4 sm:$0xff]   ;;  %v3102_v10 = vsel %vm43_vm2, %v2509_v44, %v2810_v29  ;;  %v9832_v50 = vld [vmem:[%s15633_s5 + $0x224] ss:$16 sps:$4 sm:$0xff]  }
 0x340   :  { %v4087_v63 = vsel %vm1785_vm4, %v2031_v3, %v4059_v15  ;;  %v13423_v39 = vadd.f32 %v12984_v62, %v3453_v54  ;;  %v4088_v46 = vsel %vm1785_vm4, %v2032_v35, %v4060_v26  ;;  %v3912_v5 = vsel %vm1605_vm3, %v3910_v14, %v3911_v31  ;;  %v3455_v21 = vpop.f32.mrb[79].mxu0  ;;  %v2756_v3 = vpop.permute.xlu1 %2755 }
 0x341   :  { %v2850_v27 = vpop.permute.xlu0 %2849  ;;  %v13427_v45 = vpack.c.bf16 %v4087_v63, %v4087_v63  ;;  %v3527_v18 = vmax.f32 %v3451_v8, 0.0  ;;  %v4102_v37 = vpack.c.bf16 %v4088_v46, %v4088_v46  ;;  %v13440_v0 = vmax.f32 %v3863_v16, %v3912_v5 }
 0x342   :  { %v3528_v23 = vmax.f32 %v13423_v39, 0.0  ;;  %v13442_v14 = vrot.slane %v1900_v1, 1  ;;  %v2994_v31 = vsel %vm985_vm15, %v2958_v4, %v2702_v9  ;;  %v3138_v15 = vsel %vm985_vm15, %v3102_v10, %v2850_v27  ;;  %v9830_v9 = vld [vmem:[%s15633_s5 + $0x220] ss:$16 sps:$4 sm:$0xff]   ;;  %v9838_v1 = vld [vmem:[%s15633_s5 + $0x244] ss:$16 sps:$4 sm:$0xff]  }
 0x343   :  { %v3620_v34 = vrot.slane %v3527_v18, 1  ;;  %6857 = vmatprep.mubr.bf16.mxu1 %v4102_v37  ;;  %v3979_v26 = vrot.slane %v13440_v0, 2  ;;  %v3985_v38 = vrot.slane %v13440_v0, 6  ;;  %v3047_v35 = vsel %vm1022_vm0, %v2994_v31, %v2756_v3  ;;  %v9851_v39 = vld [vmem:[%s15633_s5 + $0x228] ss:$16 sps:$4 sm:$0xff]  }
 0x344   :  { %v3622_v44 = vrot.slane %v3528_v23, 1  ;;  %6858 = vmatmul.mubr.bf16.vlgmr.msra.gmra.mrb[72].mxu1 %v13427_v45  ;;  %v1945_v53 = vsel %vm1605_vm3, %v1943_v60, %v13442_v14  ;;  %v9836_v60 = vld [vmem:[%s15633_s5 + $0x240] ss:$16 sps:$4 sm:$0xff]  }
 0x345   :  { %v2904_v29 = vpop.permute.xlu0 %2903  ;;  %v3621_v16 = vsel %vm1605_vm3, %v13378_v19, %v3620_v34  ;;  %6867 = vmatpush1.bf16.msra.mxu1 %v9824_v36  ;;  %v13463_v4 = vmax.f32 %v1894_v42, %v1945_v53  ;;  %v9649_v19 = vpack.i.bf16 %v3979_v26, %v3985_v38  ;;  %v9845_v26 = vld [vmem:[%s15633_s5 + $0x208] ss:$16 sps:$4 sm:$0xff]   ;;  %v2002_v38 = vrot.slane %v13201_v57, 4  ;;  %v9850_v57 = vld [vmem:[%s15633_s5 + $0x284] ss:$16 sps:$4 sm:$0xff]  }
 0x346   :  { %v3191_v28 = vsel %vm1022_vm0, %v3138_v15, %v2904_v29  ;;  %v3705_v8 = vmax.f32 %v3526_v2, %v3621_v16  ;;  %v3623_v54 = vsel %vm1605_vm3, %v3620_v34, %v3622_v44  ;;  %6868 = vmatprep.subr.bf16.mxu1 %v9832_v50  ;;  %v3972_v2 = vrot.slane %v13144_v47, 4  ;;  %v9844_v47 = vld [vmem:[%s15633_s5 + $0x264] ss:$16 sps:$4 sm:$0xff]   ;;  %v9853_v16 = vld [vmem:[%s15633_s5 + $0x22c] ss:$16 sps:$4 sm:$0xff]  }
 0x347   :  { %3496 = vmatprep.mubr.bf16.mxu0 %v3191_v28  ;;  %v13471_v63 = vmax.f32 %v3527_v18, %v3623_v54  ;;  %9650 = vrot.lane.b32.xlu0 %v9649_v19, %s10705_s21 }
 0x348   :  { %3497 = vmatmul.mubr.bf16.gmra.mrb[100].mxu0 %v3047_v35  ;;  %v3794_v46 = vrot.slane %v3705_v8, 7 }
 0x349   :  { %v3458_v27 = vpop.f32.mrb[80].mxu0  ;;  %v13474_v58 = vpop.permute.xlu0 %9640  ;;  %7144 = vmatprep.mubr.bf16.mxu0 %v4102_v37  ;;  %v3796_v51 = vrot.slane %v13471_v63, 7  ;;  %6869 = vmatpush1.bf16.msra.mxu1 %v9830_v9 }
 0x34a   :  { %v3459_v41 = vadd.f32 %v12984_v62, %v3458_v27  ;;  %v3460_v42 = vpop.f32.mrb[81].mxu0  ;;  %v9642_v5 = vunpack.i.l.bf16 %v13474_v58  ;;  %v3795_v21 = vsel %vm1785_vm4, %v3792_v7, %v3794_v46  ;;  %6870 = vmatprep.subr.bf16.mxu1 %v9838_v1 }
 0x34b   :  { %v3461_v18 = vpop.f32.mrb[82].mxu0  ;;  %v13489_v10 = vpop.permute.xlu1 %9645  ;;  %v3869_v50 = vmax.f32 %v13383_v13, %v3795_v21  ;;  %v3797_v31 = vsel %vm1785_vm4, %v3794_v46, %v3796_v51  ;;  %v9842_v13 = vld [vmem:[%s15633_s5 + $0x260] ss:$16 sps:$4 sm:$0xff]  }
 0x34c   :  { %v3529_v37 = vmax.f32 %v3459_v41, 0.0  ;;  %v13487_v36 = vadd.f32 %v12984_v62, %v3461_v18  ;;  %v3463_v3 = vpop.f32.mrb[83].mxu0  ;;  %v4004_v34 = vsel %vm985_vm15, %v3972_v2, %v9642_v5  ;;  %v9647_v53 = vunpack.i.l.bf16 %v13489_v10 }
 0x34d   :  { %v4062_v15 = vrot.slane %v4004_v34, 7  ;;  %6871 = vmatpush1.bf16.msra.mxu1 %v9836_v60  ;;  %v3870_v9 = vmax.f32 %v3705_v8, %v3797_v31  ;;  %v3913_v54 = vrot.slane %v3869_v50, 1  ;;  %v9856_v50 = vld [vmem:[%s15633_s5 + $0x2a4] ss:$16 sps:$4 sm:$0xff]  }
 0x34e   :  { %v3624_v7 = vrot.slane %v3529_v37, 1  ;;  %v3530_v29 = vmax.f32 %v13487_v36, 0.0  ;;  %6872 = vmatprep.subr.bf16.mxu1 %v9844_v47  ;;  %v2034_v1 = vsel %vm985_vm15, %v2002_v38, %v9647_v53  ;;  %v9857_v38 = vld [vmem:[%s15633_s5 + $0x248] ss:$16 sps:$4 sm:$0xff]  }
 0x34f   :  { %v3914_v27 = vrot.slane %v3870_v9, 1  ;;  %v4090_v42 = vsel %vm1785_vm4, %v2034_v1, %v4062_v15 }
 0x350   :  { %v3625_v28 = vsel %vm1605_vm3, %v3622_v44, %v3624_v7  ;;  %v13512_v35 = vrot.slane %v3530_v29, 1  ;;  %7145 = vmatmul.mubr.bf16.vlgmr.msra.gmra.mrb[104].mxu0 %v13427_v45  ;;  %v1486_v8 = vpop.f32.mrb[48].mxu1  ;;  %v9848_v45 = vld [vmem:[%s15633_s5 + $0x280] ss:$16 sps:$4 sm:$0xff]   ;;  %v4104_v5 = vpack.c.bf16 %v4090_v42, %v4090_v42 }
 0x351   :  { %v3707_v19 = vmax.f32 %v3528_v23, %v3625_v28  ;;  %7154 = vmatpush1.bf16.msra.mxu0 %v9845_v26  ;;  %v1487_v46 = vadd.f32 %v12984_v62, %v1486_v8  ;;  %v1488_v41 = vpop.f32.mrb[49].mxu1  ;;  %6873 = vmatpush1.bf16.msra.mxu1 %v9842_v13  ;;  %v9859_v62 = vld [vmem:[%s15633_s5 + $0x24c] ss:$16 sps:$4 sm:$0xff]   ;;  %v3915_v18 = vsel %vm1605_vm3, %v3913_v54, %v3914_v27  ;;  %v15967_v28 = vmax.f32 %v13373_v43, 0.0  ;;  %v9860_v43 = vld [vmem:[%s15633_s5 + $0x2c0] ss:$16 sps:$4 sm:$0xff]  }
 0x352   :  { %v3627_v44 = vsel %vm1605_vm3, %v3624_v7, %v13512_v35  ;;  %7155 = vmatprep.subr.bf16.mxu0 %v9853_v16  ;;  %v1489_v60 = vpop.f32.mrb[50].mxu1  ;;  %6874 = vmatprep.subr.bf16.mxu1 %v9850_v57  ;;  %v13551_v31 = vmax.f32 %v3864_v52, %v3915_v18  ;;  %v9865_v52 = vld [vmem:[%s15633_s5 + $0x26c] ss:$16 sps:$4 sm:$0xff]   ;;  %v9862_v16 = vld [vmem:[%s15633_s5 + $0x2c4] ss:$16 sps:$4 sm:$0xff]   ;;  %v15968_v41 = vmax.f32 %v13339_v25, %v13355_v56 }
 0x353   :  { %v3798_v23 = vrot.slane %v3707_v19, 7  ;;  %v13528_v2 = vmax.f32 %v3529_v37, %v3627_v44  ;;  %v1557_v21 = vmax.f32 %v1487_v46, 0.0  ;;  %v13540_v37 = vld [vmem:[%s15632_s4] ss:$0 sm:$0xff]  ;;  %v1491_v47 = vpop.f32.mrb[51].mxu1  ;;  %6898 = vmatprep.mubr.bf16.mxu1 %v4104_v5  ;;  %7185 = vmatprep.mubr.bf16.mxu0 %v4104_v5  ;;  %v15969_v25 = vmax.f32 %v13345_v61, %v13366_v32 }
 0x354   :  { %v13543_v3 = vadd.f32 %v13540_v37, %v1489_v60  ;;  %v9871_v46 = vld [vmem:[%s15633_s5 + $0x28c] ss:$16 sps:$4 sm:$0xff]  }
 0x355   :  { %v3799_v34 = vsel %vm1785_vm4, %v3796_v51, %v3798_v23  ;;  %v3800_v15 = vrot.slane %v13528_v2, 7  ;;  %v1653_v7 = vrot.slane %v1557_v21, 1  ;;  %7156 = vmatpush1.bf16.msra.mxu0 %v9851_v39  ;;  %6875 = vmatpush1.bf16.msra.mxu1 %v9848_v45  ;;  %v3990_v39 = vrot.slane %v13551_v31, 2  ;;  %v9877_v32 = vld [vmem:[%s15633_s5 + $0x2ac] ss:$16 sps:$4 sm:$0xff]  }
 0x356   :  { %v1558_v26 = vmax.f32 %v13543_v3, 0.0  ;;  %v3871_v53 = vmax.f32 %v13471_v63, %v3799_v34  ;;  %7157 = vmatprep.subr.bf16.mxu0 %v9859_v62  ;;  %6876 = vmatprep.subr.bf16.mxu1 %v9856_v50  ;;  %v9869_v62 = vld [vmem:[%s15633_s5 + $0x288] ss:$16 sps:$4 sm:$0xff]   ;;  %v9896_v3 = vld [vmem:[%s15633_s5 + $0x380] ss:$16 sps:$4 sm:$0xff]  }
 0x357   :  { %v3801_v11 = vsel %vm1785_vm4, %v3798_v23, %v3800_v15  ;;  %v1654_v13 = vsel %vm1605_vm3, %v13389_v55, %v1653_v7  ;;  %v9863_v55 = vld [vmem:[%s15633_s5 + $0x268] ss:$16 sps:$4 sm:$0xff]  }
 0x358   :  { %v3872_v51 = vmax.f32 %v3707_v19, %v3801_v11  ;;  %v13573_v63 = vrot.slane %v1558_v26, 1  ;;  %v3916_v9 = vrot.slane %v3871_v53, 1  ;;  %v1736_v57 = vmax.f32 %v15967_v28, %v1654_v13 }
 0x359   :  { %7158 = vmatpush1.bf16.msra.mxu0 %v9857_v38  ;;  %6877 = vmatpush1.bf16.msra.mxu1 %v9854_v17  ;;  %v9875_v38 = vld [vmem:[%s15633_s5 + $0x2a8] ss:$16 sps:$4 sm:$0xff]   ;;  %v9872_v17 = vld [vmem:[%s15633_s5 + $0x300] ss:$16 sps:$4 sm:$0xff]   ;;  %v15970_v13 = vmax.f32 %v13265_v22, %v13279_v24  ;;  %v2020_v28 = vrot.slane %v13463_v4, 2  ;;  %v15971_v22 = vmax.f32 %v13270_v48, %v13288_v49 }
 0x35a   :  { %v3918_v54 = vrot.slane %v3872_v51, 1  ;;  %v1656_v19 = vsel %vm1605_vm3, %v1653_v7, %v13573_v63  ;;  %v3917_v1 = vsel %vm1605_vm3, %v3914_v27, %v3916_v9  ;;  %v1828_v8 = vrot.slane %v1736_v57, 7  ;;  %7159 = vmatprep.subr.bf16.mxu0 %v9865_v52  ;;  %6878 = vmatprep.subr.bf16.mxu1 %v9862_v16  ;;  %v9868_v27 = vld [vmem:[%s15633_s5 + $0x2e4] ss:$16 sps:$4 sm:$0xff]   ;;  %v9883_v51 = vld [vmem:[%s15633_s5 + $0x2cc] ss:$16 sps:$4 sm:$0xff]  }
 0x35b   :  { %v13586_v44 = vmax.f32 %v1557_v21, %v1656_v19  ;;  %v3948_v42 = vmax.f32 %v15968_v41, %v3917_v1  ;;  %v9878_v41 = vld [vmem:[%s15633_s5 + $0x320] ss:$16 sps:$4 sm:$0xff]   ;;  %v9889_v48 = vld [vmem:[%s15633_s5 + $0x2ec] ss:$16 sps:$4 sm:$0xff]   ;;  %v9886_v49 = vld [vmem:[%s15633_s5 + $0x344] ss:$16 sps:$4 sm:$0xff]  }
 0x35c   :  { %v3919_v23 = vsel %vm1605_vm3, %v3916_v9, %v3918_v54  ;;  %v1829_v45 = vsel %vm1785_vm4, %v1826_v20, %v1828_v8  ;;  %v9866_v20 = vld [vmem:[%s15633_s5 + $0x2e0] ss:$16 sps:$4 sm:$0xff]  }
 0x35d   :  { %v1830_v5 = vrot.slane %v13586_v44, 7  ;;  %v3997_v60 = vrot.slane %v3948_v42, 6  ;;  %v13609_v56 = vmax.f32 %v15969_v25, %v3919_v23  ;;  %7160 = vmatpush1.bf16.msra.mxu0 %v9863_v55  ;;  %v1901_v18 = vmax.f32 %v13399_v33, %v1829_v45  ;;  %6879 = vmatpush1.bf16.msra.mxu1 %v9860_v43  ;;  %v9874_v33 = vld [vmem:[%s15633_s5 + $0x304] ss:$16 sps:$4 sm:$0xff]  }
 0x35e   :  { %7161 = vmatprep.subr.bf16.mxu0 %v9871_v46  ;;  %6880 = vmatprep.subr.bf16.mxu1 %v9868_v27 }
 0x35f   :  { %v1831_v21 = vsel %vm1785_vm4, %v1828_v8, %v1830_v5  ;;  %v9659_v61 = vpack.i.bf16 %v3990_v39, %v3997_v60  ;;  %v1946_v50 = vrot.slane %v1901_v18, 1  ;;  %v9881_v8 = vld [vmem:[%s15633_s5 + $0x2c8] ss:$16 sps:$4 sm:$0xff]   ;;  %v9884_v18 = vld [vmem:[%s15633_s5 + $0x340] ss:$16 sps:$4 sm:$0xff]  }
 0x360   :  { %v1902_v47 = vmax.f32 %v1736_v57, %v1831_v21 }
 0x361   :  { %9660 = vrot.lane.b32.xlu0 %v9659_v61, %s10705_s21  ;;  %7162 = vmatpush1.bf16.msra.mxu0 %v9869_v62  ;;  %v3466_v7 = vpop.f32.mrb[84].mxu0  ;;  %v1947_v53 = vsel %vm1605_vm3, %v13442_v14, %v1946_v50  ;;  %v9880_v14 = vld [vmem:[%s15633_s5 + $0x324] ss:$16 sps:$4 sm:$0xff]   ;;  %v9887_v62 = vld [vmem:[%s15633_s5 + $0x2e8] ss:$16 sps:$4 sm:$0xff]  }
 0x362   :  { %v1948_v34 = vrot.slane %v1902_v47, 1  ;;  %6881 = vmatpush1.bf16.msra.mxu1 %v9866_v20  ;;  %v3467_v11 = vadd.f32 %v13540_v37, %v3466_v7  ;;  %v3468_v52 = vpop.f32.mrb[85].mxu0  ;;  %7163 = vmatprep.subr.bf16.mxu0 %v9877_v32  ;;  %v1978_v16 = vmax.f32 %v15970_v13, %v1947_v53  ;;  %v9898_v13 = vld [vmem:[%s15633_s5 + $0x384] ss:$16 sps:$4 sm:$0xff]  }
 0x363   :  { %6882 = vmatprep.subr.bf16.mxu1 %v9874_v33  ;;  %v3469_v9 = vpop.f32.mrb[86].mxu0  ;;  %v9892_v33 = vld [vmem:[%s15633_s5 + $0x364] ss:$16 sps:$4 sm:$0xff]  }
 0x364   :  { %v1949_v57 = vsel %vm1605_vm3, %v1946_v50, %v1948_v34  ;;  %v3531_v54 = vmax.f32 %v3467_v11, 0.0  ;;  %v13649_v19 = vadd.f32 %v13540_v37, %v3469_v9  ;;  %v3471_v55 = vpop.f32.mrb[87].mxu0  ;;  %v2027_v1 = vrot.slane %v1978_v16, 6  ;;  %v9890_v11 = vld [vmem:[%s15633_s5 + $0x360] ss:$16 sps:$4 sm:$0xff]  }
 0x365   :  { %v13654_v24 = vmax.f32 %v15971_v22, %v1949_v57  ;;  %7164 = vmatpush1.bf16.msra.mxu0 %v9875_v38  ;;  %v9893_v38 = vld [vmem:[%s15633_s5 + $0x308] ss:$16 sps:$4 sm:$0xff]   ;;  %v9904_v55 = vld [vmem:[%s15633_s5 + $0x3a4] ss:$16 sps:$4 sm:$0xff]  }
 0x366   :  { %v3628_v43 = vrot.slane %v3531_v54, 1  ;;  %6883 = vmatpush1.bf16.msra.mxu1 %v9872_v17  ;;  %v3532_v46 = vmax.f32 %v13649_v19, 0.0  ;;  %7165 = vmatprep.subr.bf16.mxu0 %v9883_v51  ;;  %v9664_v42 = vpack.i.bf16 %v2020_v28, %v2027_v1  ;;  %v9901_v17 = vld [vmem:[%s15633_s5 + $0x32c] ss:$16 sps:$4 sm:$0xff]   ;;  %v9899_v28 = vld [vmem:[%s15633_s5 + $0x328] ss:$16 sps:$4 sm:$0xff]   ;;  %v9643_v1 = vunpack.i.h.bf16 %v13474_v58 }
 0x367   :  { %6884 = vmatprep.subr.bf16.mxu1 %v9880_v14  ;;  %v9902_v58 = vld [vmem:[%s15633_s5 + $0x3a0] ss:$16 sps:$4 sm:$0xff]  }
 0x368   :  { %v3629_v27 = vsel %vm1605_vm3, %v13512_v35, %v3628_v43  ;;  %v13673_v39 = vrot.slane %v3532_v46, 1  ;;  %v1494_v23 = vpop.f32.mrb[52].mxu1  ;;  %9665 = vrot.lane.b32.xlu1 %v9664_v42, %s10705_s21  ;;  %v9913_v42 = vld [vmem:[%s15633_s5 + $0x36c] ss:$16 sps:$4 sm:$0xff]   ;;  %v9923_v19 = vld [vmem:[%s15633_s5 + $0x400] ss:$16 sps:$4 sm:$0xff]  }
 0x369   :  { %v13678_v45 = vmax.f32 %v3530_v29, %v3629_v27  ;;  %7166 = vmatpush1.bf16.msra.mxu0 %v9881_v8  ;;  %v1495_v60 = vadd.f32 %v13540_v37, %v1494_v23  ;;  %v1496_v25 = vpop.f32.mrb[53].mxu1  ;;  %v9895_v29 = vld [vmem:[%s15633_s5 + $0x30c] ss:$16 sps:$4 sm:$0xff]   ;;  %v4003_v27 = vsel %vm985_vm15, %v13071_v12, %v9643_v1  ;;  %v9648_v23 = vunpack.i.h.bf16 %v13489_v10  ;;  %v9920_v1 = vld [vmem:[%s15633_s5 + $0x3a8] ss:$16 sps:$4 sm:$0xff]  }
 0x36a   :  { %v3631_v35 = vsel %vm1605_vm3, %v3628_v43, %v13673_v39  ;;  %6885 = vmatpush1.bf16.msra.mxu1 %v9878_v41  ;;  %7167 = vmatprep.subr.bf16.mxu0 %v9889_v48  ;;  %v1497_v36 = vpop.f32.mrb[54].mxu1  ;;  %v9905_v43 = vld [vmem:[%s15633_s5 + $0x348] ss:$16 sps:$4 sm:$0xff]   ;;  %v9910_v48 = vld [vmem:[%s15633_s5 + $0x3c4] ss:$16 sps:$4 sm:$0xff]   ;;  %v4061_v10 = vrot.slane %v4003_v27, 7 }
 0x36b   :  { %v3802_v21 = vrot.slane %v13678_v45, 7  ;;  %v13693_v20 = vmax.f32 %v3531_v54, %v3631_v35  ;;  %v1559_v61 = vmax.f32 %v1495_v60, 0.0  ;;  %6886 = vmatprep.subr.bf16.mxu1 %v9886_v49  ;;  %v13696_v32 = vadd.f32 %v13540_v37, %v1497_v36  ;;  %v1499_v47 = vpop.f32.mrb[55].mxu1  ;;  %v9911_v25 = vld [vmem:[%s15633_s5 + $0x368] ss:$16 sps:$4 sm:$0xff]  }
 0x36c   :  { %v9908_v35 = vld [vmem:[%s15633_s5 + $0x3c0] ss:$16 sps:$4 sm:$0xff]   ;;  %v9919_v12 = vld [vmem:[%s15633_s5 + $0x38c] ss:$16 sps:$4 sm:$0xff]  }
 0x36d   :  { %v3804_v50 = vrot.slane %v13693_v20, 7  ;;  %v1657_v34 = vrot.slane %v1559_v61, 1  ;;  %v1560_v7 = vmax.f32 %v13696_v32, 0.0  ;;  %7168 = vmatpush1.bf16.msra.mxu0 %v9887_v62  ;;  %v13709_v53 = vsel %vm1785_vm4, %v3800_v15, %v3802_v21  ;;  %v9940_v32 = vld [vmem:[%s15633_s5 + $0x40c] ss:$16 sps:$4 sm:$0xff]  }
 0x36e   :  { %6887 = vmatpush1.bf16.msra.mxu1 %v9884_v18  ;;  %7169 = vmatprep.subr.bf16.mxu0 %v9895_v29  ;;  %v3873_v52 = vmax.f32 %v13528_v2, %v13709_v53  ;;  %v9916_v29 = vld [vmem:[%s15633_s5 + $0x3e4] ss:$16 sps:$4 sm:$0xff]   ;;  %v10019_v53 = vld [vmem:[%s15633_s5 + $0x600] ss:$16 sps:$4 sm:$0xff]  }
 0x36f   :  { %v1658_v51 = vsel %vm1605_vm3, %v13573_v63, %v1657_v34  ;;  %v13723_v15 = vrot.slane %v1560_v7, 1  ;;  %6888 = vmatprep.subr.bf16.mxu1 %v9892_v33  ;;  %v13731_v16 = vsel %vm1785_vm4, %v3802_v21, %v3804_v50  ;;  %v2033_v21 = vsel %vm985_vm15, %v13059_v59, %v9648_v23  ;;  %v9922_v59 = vld [vmem:[%s15633_s5 + $0x3ac] ss:$16 sps:$4 sm:$0xff]  }
 0x370   :  { %v13735_v9 = vmax.f32 %v1558_v26, %v1658_v51  ;;  %v9907_v26 = vld [vmem:[%s15633_s5 + $0x34c] ss:$16 sps:$4 sm:$0xff]   ;;  %v4089_v51 = vsel %vm1785_vm4, %v2033_v21, %v4061_v10  ;;  %v2013_v10 = vrot.slane %v13319_v40, 4 }
 0x371   :  { %v1660_v14 = vsel %vm1605_vm3, %v1657_v34, %v13723_v15  ;;  %7170 = vmatpush1.bf16.msra.mxu0 %v9893_v38  ;;  %v9917_v34 = vld [vmem:[%s15633_s5 + $0x388] ss:$16 sps:$4 sm:$0xff]  }
 0x372   :  { %v1832_v57 = vrot.slane %v13735_v9, 7  ;;  %v13745_v54 = vmax.f32 %v1559_v61, %v1660_v14  ;;  %6889 = vmatpush1.bf16.msra.mxu1 %v9890_v11  ;;  %7171 = vmatprep.subr.bf16.mxu0 %v9901_v17  ;;  %v9914_v17 = vld [vmem:[%s15633_s5 + $0x3e0] ss:$16 sps:$4 sm:$0xff]  }
 0x373   :  { %6890 = vmatprep.subr.bf16.mxu1 %v9898_v13  ;;  %v9925_v13 = vld [vmem:[%s15633_s5 + $0x404] ss:$16 sps:$4 sm:$0xff]  }
 0x374   :  { %v1834_v22 = vrot.slane %v13745_v54, 7  ;;  %v13761_v8 = vsel %vm1785_vm4, %v1830_v5, %v1832_v57 }
 0x375   :  { %7172 = vmatpush1.bf16.msra.mxu0 %v9899_v28  ;;  %v1903_v41 = vmax.f32 %v13586_v44, %v13761_v8  ;;  %v10025_v44 = vld [vmem:[%s15633_s5 + $0x620] ss:$16 sps:$4 sm:$0xff]   ;;  %v10030_v8 = vld [vmem:[%s15633_s5 + $0x5ec] ss:$16 sps:$4 sm:$0xff]  }
 0x376   :  { %6891 = vmatpush1.bf16.msra.mxu1 %v9896_v3  ;;  %7173 = vmatprep.subr.bf16.mxu0 %v9907_v26  ;;  %v13777_v5 = vsel %vm1785_vm4, %v1832_v57, %v1834_v22 }
 0x377   :  { %6892 = vmatprep.subr.bf16.mxu1 %v9904_v55  ;;  %v1904_v49 = vmax.f32 %v13735_v9, %v13777_v5  ;;  %v10043_v5 = vld [vmem:[%s15633_s5 + $0x680] ss:$16 sps:$4 sm:$0xff]  }
 0x379   :  { %7174 = vmatpush1.bf16.msra.mxu0 %v9905_v43  ;;  %v3474_v60 = vpop.f32.mrb[88].mxu0 }
 0x37a   :  { %6893 = vmatpush1.bf16.msra.mxu1 %v9902_v58  ;;  %v3475_v62 = vadd.f32 %v13540_v37, %v3474_v60  ;;  %v3476_v18 = vpop.f32.mrb[89].mxu0  ;;  %7175 = vmatprep.subr.bf16.mxu0 %v9913_v42 }
 0x37b   :  { %6894 = vmatprep.subr.bf16.mxu1 %v9910_v48  ;;  %v3477_v36 = vpop.f32.mrb[90].mxu0 }
 0x37c   :  { %v3533_v61 = vmax.f32 %v3475_v62, 0.0  ;;  %v13803_v47 = vadd.f32 %v13540_v37, %v3477_v36  ;;  %v3479_v33 = vpop.f32.mrb[91].mxu0  ;;  %v9929_v36 = vld [vmem:[%s15633_s5 + $0x420] ss:$16 sps:$4 sm:$0xff]  }
 0x37d   :  { %7176 = vmatpush1.bf16.msra.mxu0 %v9911_v25  ;;  %v9931_v25 = vld [vmem:[%s15633_s5 + $0x424] ss:$16 sps:$4 sm:$0xff]  }
 0x37e   :  { %v3632_v38 = vrot.slane %v3533_v61, 1  ;;  %6895 = vmatpush1.bf16.msra.mxu1 %v9908_v35  ;;  %v3534_v11 = vmax.f32 %v13803_v47, 0.0  ;;  %7177 = vmatprep.subr.bf16.mxu0 %v9919_v12  ;;  %v9926_v12 = vld [vmem:[%s15633_s5 + $0x3c8] ss:$16 sps:$4 sm:$0xff]   ;;  %v9959_v47 = vld [vmem:[%s15633_s5 + $0x4c0] ss:$16 sps:$4 sm:$0xff]  }
 0x37f   :  { %6896 = vmatprep.subr.bf16.mxu1 %v9916_v29 }
 0x380   :  { %v3633_v14 = vsel %vm1605_vm3, %v13673_v39, %v3632_v38  ;;  %v13823_v28 = vrot.slane %v3534_v11, 1  ;;  %v1502_v57 = vpop.f32.mrb[56].mxu1  ;;  %v4103_v39 = vpack.c.bf16 %v4089_v51, %v4089_v51 }
 0x381   :  { %v3711_v3 = vmax.f32 %v3532_v46, %v3633_v14  ;;  %7178 = vmatpush1.bf16.msra.mxu0 %v9917_v34  ;;  %v1503_v26 = vadd.f32 %v13540_v37, %v1502_v57  ;;  %v1504_v55 = vpop.f32.mrb[57].mxu1  ;;  %v9928_v46 = vld [vmem:[%s15633_s5 + $0x3cc] ss:$16 sps:$4 sm:$0xff]   ;;  %v9938_v14 = vld [vmem:[%s15633_s5 + $0x408] ss:$16 sps:$4 sm:$0xff]  }
 0x382   :  { %v3635_v43 = vsel %vm1605_vm3, %v3632_v38, %v13823_v28  ;;  %6897 = vmatpush1.bf16.msra.mxu1 %v9914_v17  ;;  %7179 = vmatprep.subr.bf16.mxu0 %v9922_v59  ;;  %v1505_v58 = vpop.f32.mrb[58].mxu1  ;;  %v9935_v59 = vld [vmem:[%s15633_s5 + $0x440] ss:$16 sps:$4 sm:$0xff]   ;;  %v9944_v55 = vld [vmem:[%s15633_s5 + $0x428] ss:$16 sps:$4 sm:$0xff]  }
 0x383   :  { %v3806_v42 = vrot.slane %v3711_v3, 7  ;;  %v13839_v48 = vmax.f32 %v3533_v61, %v3635_v43  ;;  %v1561_v27 = vmax.f32 %v1503_v26, 0.0  ;;  %v13842_v23 = vadd.f32 %v13540_v37, %v1505_v58  ;;  %6907 = vmatprep.subr.bf16.mxu1 %v9925_v13  ;;  %v1507_v60 = vpop.f32.mrb[59].mxu1  ;;  %v9937_v61 = vld [vmem:[%s15633_s5 + $0x444] ss:$16 sps:$4 sm:$0xff]  }
 0x384   :  { %v9941_v57 = vld [vmem:[%s15633_s5 + $0x460] ss:$16 sps:$4 sm:$0xff]   ;;  %v9946_v3 = vld [vmem:[%s15633_s5 + $0x42c] ss:$16 sps:$4 sm:$0xff]  }
 0x385   :  { %v13850_v62 = vsel %vm1785_vm4, %v3804_v50, %v3806_v42  ;;  %v1661_v35 = vrot.slane %v1561_v27, 1  ;;  %6899 = vmatmul.mubr.bf16.vlgmr.msra.gmra.mrb[72].mxu1 %v4103_v39  ;;  %v1562_v18 = vmax.f32 %v13842_v23, 0.0  ;;  %7180 = vmatpush1.bf16.msra.mxu0 %v9920_v1  ;;  %v9934_v50 = vld [vmem:[%s15633_s5 + $0x3ec] ss:$16 sps:$4 sm:$0xff]   ;;  %v9947_v58 = vld [vmem:[%s15633_s5 + $0x480] ss:$16 sps:$4 sm:$0xff]  }
 0x386   :  { %6908 = vmatpush1.bf16.msra.mxu1 %v9923_v19  ;;  %7181 = vmatprep.subr.bf16.mxu0 %v9928_v46  ;;  %v9952_v19 = vld [vmem:[%s15633_s5 + $0x44c] ss:$16 sps:$4 sm:$0xff]   ;;  %v9955_v46 = vld [vmem:[%s15633_s5 + $0x4a4] ss:$16 sps:$4 sm:$0xff]   ;;  %v9971_v23 = vld [vmem:[%s15633_s5 + $0x500] ss:$16 sps:$4 sm:$0xff]  }
 0x387   :  { %v1662_v29 = vsel %vm1605_vm3, %v13723_v15, %v1661_v35  ;;  %v13868_v21 = vrot.slane %v1562_v18, 1  ;;  %6909 = vmatprep.subr.bf16.mxu1 %v9931_v25  ;;  %v9932_v15 = vld [vmem:[%s15633_s5 + $0x3e8] ss:$16 sps:$4 sm:$0xff]  }
 0x388   :  { %v1740_v33 = vmax.f32 %v1560_v7, %v1662_v29  ;;  %v9943_v7 = vld [vmem:[%s15633_s5 + $0x464] ss:$16 sps:$4 sm:$0xff]   ;;  %v9950_v25 = vld [vmem:[%s15633_s5 + $0x448] ss:$16 sps:$4 sm:$0xff]  }
 0x389   :  { %v1664_v34 = vsel %vm1605_vm3, %v1661_v35, %v13868_v21  ;;  %7182 = vmatpush1.bf16.msra.mxu0 %v9926_v12  ;;  %v9961_v29 = vld [vmem:[%s15633_s5 + $0x4c4] ss:$16 sps:$4 sm:$0xff]  }
 0x38a   :  { %v1836_v38 = vrot.slane %v1740_v33, 7  ;;  %v13880_v17 = vmax.f32 %v1561_v27, %v1664_v34  ;;  %6910 = vmatpush1.bf16.msra.mxu1 %v9929_v36  ;;  %7183 = vmatprep.subr.bf16.mxu0 %v9934_v50  ;;  %v9953_v36 = vld [vmem:[%s15633_s5 + $0x4a0] ss:$16 sps:$4 sm:$0xff]   ;;  %v9958_v50 = vld [vmem:[%s15633_s5 + $0x46c] ss:$16 sps:$4 sm:$0xff]  }
 0x38b   :  { %6911 = vmatprep.subr.bf16.mxu1 %v9937_v61 }
 0x38c   :  { %v13894_v51 = vsel %vm1785_vm4, %v1834_v22, %v1836_v38  ;;  %v9949_v22 = vld [vmem:[%s15633_s5 + $0x484] ss:$16 sps:$4 sm:$0xff]  }
 0x38d   :  { %v1905_v13 = vmax.f32 %v13745_v54, %v13894_v51  ;;  %7184 = vmatpush1.bf16.msra.mxu0 %v9932_v15  ;;  %v10051_v54 = vld [vmem:[%s15633_s5 + $0x6a4] ss:$16 sps:$4 sm:$0xff]  }
 0x38e   :  { %6912 = vmatpush1.bf16.msra.mxu1 %v9935_v59  ;;  %7194 = vmatprep.subr.bf16.mxu0 %v9940_v32  ;;  %v9956_v32 = vld [vmem:[%s15633_s5 + $0x468] ss:$16 sps:$4 sm:$0xff]  }
 0x38f   :  { %6913 = vmatprep.subr.bf16.mxu1 %v9943_v7  ;;  %v3808_v7 = vrot.slane %v13839_v48, 7 }
 0x390   :  { %7186 = vmatmul.mubr.bf16.vlgmr.msra.gmra.mrb[104].mxu0 %v4103_v39 }
 0x391   :  { %7195 = vmatpush1.bf16.msra.mxu0 %v9938_v14  ;;  %v3482_v26 = vpop.f32.mrb[92].mxu0 }
 0x392   :  { %6914 = vmatpush1.bf16.msra.mxu1 %v9941_v57  ;;  %v3483_v1 = vadd.f32 %v13540_v37, %v3482_v26  ;;  %v3484_v43 = vpop.f32.mrb[93].mxu0  ;;  %7196 = vmatprep.subr.bf16.mxu0 %v9946_v3 }
 0x393   :  { %v3485_v39 = vpop.f32.mrb[94].mxu0  ;;  %6915 = vmatprep.subr.bf16.mxu1 %v9949_v22 }
 0x394   :  { %v3535_v42 = vmax.f32 %v3483_v1, 0.0  ;;  %v13924_v27 = vadd.f32 %v13540_v37, %v3485_v39  ;;  %v3487_v60 = vpop.f32.mrb[95].mxu0  ;;  %v9967_v1 = vld [vmem:[%s15633_s5 + $0x4e4] ss:$16 sps:$4 sm:$0xff]   ;;  %v9962_v39 = vld [vmem:[%s15633_s5 + $0x488] ss:$16 sps:$4 sm:$0xff]  }
 0x395   :  { %7197 = vmatpush1.bf16.msra.mxu0 %v9944_v55 }
 0x396   :  { %v3636_v35 = vrot.slane %v3535_v42, 1  ;;  %v3536_v12 = vmax.f32 %v13924_v27, 0.0  ;;  %6916 = vmatpush1.bf16.msra.mxu1 %v9947_v58  ;;  %7198 = vmatprep.subr.bf16.mxu0 %v9952_v19  ;;  %v9995_v27 = vld [vmem:[%s15633_s5 + $0x580] ss:$16 sps:$4 sm:$0xff]  }
 0x397   :  { %6917 = vmatprep.subr.bf16.mxu1 %v9955_v46  ;;  %v9965_v46 = vld [vmem:[%s15633_s5 + $0x4e0] ss:$16 sps:$4 sm:$0xff]  }
 0x398   :  { %v3637_v61 = vsel %vm1605_vm3, %v13823_v28, %v3636_v35  ;;  %v13943_v33 = vrot.slane %v3536_v12, 1  ;;  %v1510_v34 = vpop.f32.mrb[60].mxu1 }
 0x399   :  { %v3713_v15 = vmax.f32 %v3534_v11, %v3637_v61  ;;  %7199 = vmatpush1.bf16.msra.mxu0 %v9950_v25  ;;  %v1511_v38 = vadd.f32 %v13540_v37, %v1510_v34  ;;  %v1512_v59 = vpop.f32.mrb[61].mxu1  ;;  %v9964_v11 = vld [vmem:[%s15633_s5 + $0x48c] ss:$16 sps:$4 sm:$0xff]   ;;  %v1838_v61 = vrot.slane %v13880_v17, 7 }
 0x39a   :  { %v3639_v28 = vsel %vm1605_vm3, %v3636_v35, %v13943_v33  ;;  %6918 = vmatpush1.bf16.msra.mxu1 %v9953_v36  ;;  %7200 = vmatprep.subr.bf16.mxu0 %v9958_v50  ;;  %v1513_v14 = vpop.f32.mrb[62].mxu1  ;;  %v9973_v36 = vld [vmem:[%s15633_s5 + $0x504] ss:$16 sps:$4 sm:$0xff]  }
 0x39b   :  { %v3809_v57 = vrot.slane %v3713_v15, 7  ;;  %v13960_v3 = vmax.f32 %v3535_v42, %v3639_v28  ;;  %v1563_v22 = vmax.f32 %v1511_v38, 0.0  ;;  %v13963_v26 = vadd.f32 %v13540_v37, %v1513_v14  ;;  %6919 = vmatprep.subr.bf16.mxu1 %v9961_v29  ;;  %v1515_v55 = vpop.f32.mrb[63].mxu1  ;;  %v9970_v42 = vld [vmem:[%s15633_s5 + $0x4ac] ss:$16 sps:$4 sm:$0xff]  }
 0x39c   :  { %v9979_v38 = vld [vmem:[%s15633_s5 + $0x524] ss:$16 sps:$4 sm:$0xff]   ;;  %v9977_v28 = vld [vmem:[%s15633_s5 + $0x520] ss:$16 sps:$4 sm:$0xff]   ;;  %v9982_v14 = vld [vmem:[%s15633_s5 + $0x4ec] ss:$16 sps:$4 sm:$0xff]  }
 0x39d   :  { %v13969_v43 = vsel %vm1785_vm4, %v3808_v7, %v3809_v57  ;;  %v1665_v58 = vrot.slane %v1563_v22, 1  ;;  %v1564_v19 = vmax.f32 %v13963_v26, 0.0  ;;  %7201 = vmatpush1.bf16.msra.mxu0 %v9956_v32  ;;  %v9974_v32 = vld [vmem:[%s15633_s5 + $0x4c8] ss:$16 sps:$4 sm:$0xff]   ;;  %v10012_v26 = vld [vmem:[%s15633_s5 + $0x58c] ss:$16 sps:$4 sm:$0xff]  }
 0x39e   :  { %6920 = vmatpush1.bf16.msra.mxu1 %v9959_v47  ;;  %7202 = vmatprep.subr.bf16.mxu0 %v9964_v11  ;;  %v9985_v47 = vld [vmem:[%s15633_s5 + $0x544] ss:$16 sps:$4 sm:$0xff]   ;;  %v9980_v57 = vld [vmem:[%s15633_s5 + $0x4e8] ss:$16 sps:$4 sm:$0xff]  }
 0x39f   :  { %v1666_v25 = vsel %vm1605_vm3, %v13868_v21, %v1665_v58  ;;  %v13987_v35 = vrot.slane %v1564_v19, 1  ;;  %6921 = vmatprep.subr.bf16.mxu1 %v9967_v1  ;;  %v9968_v21 = vld [vmem:[%s15633_s5 + $0x4a8] ss:$16 sps:$4 sm:$0xff]   ;;  %v9983_v1 = vld [vmem:[%s15633_s5 + $0x540] ss:$16 sps:$4 sm:$0xff]  }
 0x3a0   :  { %v1742_v50 = vmax.f32 %v1562_v18, %v1666_v25  ;;  %v9976_v18 = vld [vmem:[%s15633_s5 + $0x4cc] ss:$16 sps:$4 sm:$0xff]  }
 0x3a1   :  { %v1668_v29 = vsel %vm1605_vm3, %v1665_v58, %v13987_v35  ;;  %7203 = vmatpush1.bf16.msra.mxu0 %v9962_v39  ;;  %v9988_v58 = vld [vmem:[%s15633_s5 + $0x50c] ss:$16 sps:$4 sm:$0xff]  }
 0x3a2   :  { %v1839_v34 = vrot.slane %v1742_v50, 7  ;;  %v14000_v15 = vmax.f32 %v1563_v22, %v1668_v29  ;;  %6922 = vmatpush1.bf16.msra.mxu1 %v9965_v46  ;;  %7204 = vmatprep.subr.bf16.mxu0 %v9970_v42  ;;  %v9991_v46 = vld [vmem:[%s15633_s5 + $0x564] ss:$16 sps:$4 sm:$0xff]   ;;  %v9986_v50 = vld [vmem:[%s15633_s5 + $0x508] ss:$16 sps:$4 sm:$0xff]  }
 0x3a3   :  { %6923 = vmatprep.subr.bf16.mxu1 %v9973_v36 }
 0x3a4   :  { %v14012_v59 = vsel %vm1785_vm4, %v1838_v61, %v1839_v34  ;;  %v9989_v61 = vld [vmem:[%s15633_s5 + $0x560] ss:$16 sps:$4 sm:$0xff]   ;;  %v9994_v34 = vld [vmem:[%s15633_s5 + $0x52c] ss:$16 sps:$4 sm:$0xff]  }
 0x3a5   :  { %7205 = vmatpush1.bf16.msra.mxu0 %v9968_v21  ;;  %v1906_v7 = vmax.f32 %v13880_v17, %v14012_v59 }
 0x3a6   :  { %6924 = vmatpush1.bf16.msra.mxu1 %v9971_v23  ;;  %7206 = vmatprep.subr.bf16.mxu0 %v9976_v18  ;;  %v9997_v23 = vld [vmem:[%s15633_s5 + $0x584] ss:$16 sps:$4 sm:$0xff]  }
 0x3a7   :  { %6925 = vmatprep.subr.bf16.mxu1 %v9979_v38 }
 0x3a9   :  { %7207 = vmatpush1.bf16.msra.mxu0 %v9974_v32  ;;  %v3490_v11 = vpop.f32.mrb[96].mxu0 }
 0x3aa   :  { %6926 = vmatpush1.bf16.msra.mxu1 %v9977_v28  ;;  %v3491_v22 = vadd.f32 %v13540_v37, %v3490_v11  ;;  %v3492_v55 = vpop.f32.mrb[97].mxu0  ;;  %7208 = vmatprep.subr.bf16.mxu0 %v9982_v14  ;;  %v9992_v11 = vld [vmem:[%s15633_s5 + $0x528] ss:$16 sps:$4 sm:$0xff]  }
 0x3ab   :  { %v3493_v39 = vpop.f32.mrb[98].mxu0  ;;  %6927 = vmatprep.subr.bf16.mxu1 %v9985_v47 }
 0x3ac   :  { %v3537_v42 = vmax.f32 %v3491_v22, 0.0  ;;  %v14042_v25 = vadd.f32 %v13540_v37, %v3493_v39  ;;  %v3495_v36 = vpop.f32.mrb[99].mxu0 }
 0x3ad   :  { %7209 = vmatpush1.bf16.msra.mxu0 %v9980_v57  ;;  %v3811_v57 = vrot.slane %v13960_v3, 7  ;;  %v10003_v36 = vld [vmem:[%s15633_s5 + $0x5a4] ss:$16 sps:$4 sm:$0xff]  }
 0x3ae   :  { %v3640_v29 = vrot.slane %v3537_v42, 1  ;;  %v3538_v21 = vmax.f32 %v14042_v25, 0.0  ;;  %6928 = vmatpush1.bf16.msra.mxu1 %v9983_v1  ;;  %7210 = vmatprep.subr.bf16.mxu0 %v9988_v58  ;;  %v10169_v25 = vld [vmem:[%s15633_s5 + $0x920] ss:$16 sps:$4 sm:$0xff]  }
 0x3af   :  { %6929 = vmatprep.subr.bf16.mxu1 %v9991_v46 }
 0x3b0   :  { %v3641_v18 = vsel %vm1605_vm3, %v13943_v33, %v3640_v29  ;;  %v14061_v38 = vrot.slane %v3538_v21, 1  ;;  %v1518_v32 = vpop.f32.mrb[64].mxu1 }
 0x3b1   :  { %v3715_v28 = vmax.f32 %v3536_v12, %v3641_v18  ;;  %7211 = vmatpush1.bf16.msra.mxu0 %v9986_v50  ;;  %v1519_v14 = vadd.f32 %v13540_v37, %v1518_v32  ;;  %v1520_v47 = vpop.f32.mrb[65].mxu1  ;;  %v10000_v12 = vld [vmem:[%s15633_s5 + $0x54c] ss:$16 sps:$4 sm:$0xff]  }
 0x3b2   :  { %v3643_v33 = vsel %vm1605_vm3, %v3640_v29, %v14061_v38  ;;  %6930 = vmatpush1.bf16.msra.mxu1 %v9989_v61  ;;  %7212 = vmatprep.subr.bf16.mxu0 %v9994_v34  ;;  %v1521_v22 = vpop.f32.mrb[66].mxu1  ;;  %v10006_v32 = vld [vmem:[%s15633_s5 + $0x56c] ss:$16 sps:$4 sm:$0xff]  }
 0x3b3   :  { %v3812_v55 = vrot.slane %v3715_v28, 7  ;;  %v14078_v1 = vmax.f32 %v3537_v42, %v3643_v33  ;;  %v1565_v58 = vmax.f32 %v1519_v14, 0.0  ;;  %v14081_v39 = vadd.f32 %v13540_v37, %v1521_v22  ;;  %6931 = vmatprep.subr.bf16.mxu1 %v9997_v23  ;;  %v1523_v46 = vpop.f32.mrb[67].mxu1  ;;  %v9998_v42 = vld [vmem:[%s15633_s5 + $0x548] ss:$16 sps:$4 sm:$0xff]  }
 0x3b4   :  { %v10001_v23 = vld [vmem:[%s15633_s5 + $0x5a0] ss:$16 sps:$4 sm:$0xff]  }
 0x3b5   :  { %v3813_v50 = vsel %vm1785_vm4, %v3811_v57, %v3812_v55  ;;  %v3814_v29 = vrot.slane %v14078_v1, 7  ;;  %v1669_v61 = vrot.slane %v1565_v58, 1  ;;  %v1566_v34 = vmax.f32 %v14081_v39, 0.0  ;;  %7213 = vmatpush1.bf16.msra.mxu0 %v9992_v11  ;;  %v10009_v11 = vld [vmem:[%s15633_s5 + $0x5c4] ss:$16 sps:$4 sm:$0xff]   ;;  %v9656_v57 = vpop.permute.xlu1 %9655 }
 0x3b6   :  { %v3877_v18 = vmax.f32 %v13960_v3, %v3813_v50  ;;  %6932 = vmatpush1.bf16.msra.mxu1 %v9995_v27  ;;  %7214 = vmatprep.subr.bf16.mxu0 %v10000_v12  ;;  %v10007_v12 = vld [vmem:[%s15633_s5 + $0x5c0] ss:$16 sps:$4 sm:$0xff]   ;;  %v9657_v50 = vunpack.i.l.bf16 %v9656_v57 }
 0x3b7   :  { %v3815_v14 = vsel %vm1785_vm4, %v3812_v55, %v3814_v29  ;;  %v1670_v47 = vsel %vm1605_vm3, %v13987_v35, %v1669_v61  ;;  %v14106_v3 = vrot.slane %v1566_v34, 1  ;;  %6933 = vmatprep.subr.bf16.mxu1 %v10003_v36  ;;  %v10004_v35 = vld [vmem:[%s15633_s5 + $0x568] ss:$16 sps:$4 sm:$0xff]   ;;  %v1841_v55 = vrot.slane %v14000_v15, 7 }
 0x3b8   :  { %v3878_v33 = vmax.f32 %v3715_v28, %v3815_v14  ;;  %v1744_v22 = vmax.f32 %v1564_v19, %v1670_v47  ;;  %v9658_v19 = vunpack.i.h.bf16 %v9656_v57  ;;  %v10015_v47 = vld [vmem:[%s15633_s5 + $0x5e4] ss:$16 sps:$4 sm:$0xff]  }
 0x3b9   :  { %v1672_v27 = vsel %vm1605_vm3, %v1669_v61, %v14106_v3  ;;  %7215 = vmatpush1.bf16.msra.mxu0 %v9998_v42  ;;  %v3920_v61 = vrot.slane %v3877_v18, 1  ;;  %v3983_v42 = vrot.slane %v13440_v0, 4  ;;  %v9651_v14 = vpop.permute.xlu0 %9650 }
 0x3ba   :  { %v14122_v46 = vrot.slane %v3878_v33, 1  ;;  %v1842_v28 = vrot.slane %v1744_v22, 7  ;;  %v14124_v36 = vmax.f32 %v1565_v58, %v1672_v27  ;;  %6934 = vmatpush1.bf16.msra.mxu1 %v10001_v23  ;;  %7216 = vmatprep.subr.bf16.mxu0 %v10006_v32  ;;  %v9653_v32 = vunpack.i.h.bf16 %v9651_v14 }
 0x3bb   :  { %6935 = vmatprep.subr.bf16.mxu1 %v10009_v11  ;;  %v9652_v33 = vunpack.i.l.bf16 %v9651_v14  ;;  %v10010_v11 = vld [vmem:[%s15633_s5 + $0x588] ss:$16 sps:$4 sm:$0xff]  }
 0x3bc   :  { %v1843_v58 = vsel %vm1785_vm4, %v1841_v55, %v1842_v28  ;;  %v1844_v23 = vrot.slane %v14124_v36, 7  ;;  %v1526_v27 = vpop.f32.mrb[68].mxu1  ;;  %v3922_v55 = vsel %vm1605_vm3, %v3920_v61, %v14122_v46  ;;  %v4005_v40 = vsel %vm985_vm15, %v13165_v30, %v9653_v32  ;;  %v10018_v61 = vld [vmem:[%s15633_s5 + $0x5ac] ss:$16 sps:$4 sm:$0xff]  }
 0x3bd   :  { %v1907_v57 = vmax.f32 %v14000_v15, %v1843_v58  ;;  %7217 = vmatpush1.bf16.msra.mxu0 %v10004_v35  ;;  %v1527_v0 = vadd.f32 %v13540_v37, %v1526_v27  ;;  %v1528_v18 = vpop.f32.mrb[69].mxu1  ;;  %v4006_v15 = vsel %vm985_vm15, %v3983_v42, %v9652_v33  ;;  %v10013_v58 = vld [vmem:[%s15633_s5 + $0x5e0] ss:$16 sps:$4 sm:$0xff]   ;;  %v4010_v27 = vrot.slane %v13609_v56, 2 }
 0x3be   :  { %v1845_v14 = vsel %vm1785_vm4, %v1842_v28, %v1844_v23  ;;  %6936 = vmatpush1.bf16.msra.mxu1 %v10007_v12  ;;  %7218 = vmatprep.subr.bf16.mxu0 %v10012_v26  ;;  %v1529_v35 = vpop.f32.mrb[70].mxu1  ;;  %v2035_v28 = vsel %vm985_vm15, %v13216_v6, %v9658_v19  ;;  %v4063_v30 = vrot.slane %v4005_v40, 7  ;;  %v4064_v32 = vrot.slane %v4006_v15, 7  ;;  %v10021_v26 = vld [vmem:[%s15633_s5 + $0x604] ss:$16 sps:$4 sm:$0xff]  }
 0x3bf   :  { %v1908_v18 = vmax.f32 %v1744_v22, %v1845_v14  ;;  %6937 = vmatprep.subr.bf16.mxu1 %v10015_v47  ;;  %v1531_v12 = vpop.f32.mrb[71].mxu1  ;;  %v2036_v42 = vsel %vm985_vm15, %v2013_v10, %v9657_v50  ;;  %v1567_v33 = vmax.f32 %v1527_v0, 0.0  ;;  %v1530_v60 = vadd.f32 %v13540_v37, %v1529_v35  ;;  %v10016_v19 = vld [vmem:[%s15633_s5 + $0x5a8] ss:$16 sps:$4 sm:$0xff]  }
 0x3c0   :  { %v14166_v63 = vmax.f32 %v3873_v52, %v3922_v55  ;;  %v1950_v6 = vrot.slane %v1907_v57, 1  ;;  %v4092_v47 = vsel %vm1785_vm4, %v2036_v42, %v4064_v32  ;;  %v4091_v10 = vsel %vm1785_vm4, %v2035_v28, %v4063_v30  ;;  %v10024_v57 = vld [vmem:[%s15633_s5 + $0x5cc] ss:$16 sps:$4 sm:$0xff]   ;;  %v10033_v28 = vld [vmem:[%s15633_s5 + $0x644] ss:$16 sps:$4 sm:$0xff]  }
 0x3c1   :  { %v14168_v22 = vrot.slane %v1908_v18, 1  ;;  %7219 = vmatpush1.bf16.msra.mxu0 %v10010_v11  ;;  %v1673_v50 = vrot.slane %v1567_v33, 1  ;;  %v1568_v0 = vmax.f32 %v1530_v60, 0.0  ;;  %v4106_v37 = vpack.c.bf16 %v4092_v47, %v4092_v47  ;;  %v10027_v11 = vld [vmem:[%s15633_s5 + $0x624] ss:$16 sps:$4 sm:$0xff]  }
 0x3c2   :  { %6938 = vmatpush1.bf16.msra.mxu1 %v10013_v58  ;;  %7220 = vmatprep.subr.bf16.mxu0 %v10018_v61  ;;  %v4017_v2 = vrot.slane %v14166_v63, 6  ;;  %v4105_v52 = vpack.c.bf16 %v4091_v10, %v4091_v10  ;;  %v10022_v58 = vld [vmem:[%s15633_s5 + $0x5c8] ss:$16 sps:$4 sm:$0xff]  }
 0x3c3   :  { %6948 = vmatprep.subr.bf16.mxu1 %v10021_v26  ;;  %v1952_v60 = vsel %vm1605_vm3, %v1950_v6, %v14168_v22  ;;  %v1674_v55 = vsel %vm1605_vm3, %v14106_v3, %v1673_v50  ;;  %v1675_v14 = vrot.slane %v1568_v0, 1  ;;  %6939 = vmatprep.mubr.bf16.mxu1 %v4106_v37  ;;  %v10028_v26 = vld [vmem:[%s15633_s5 + $0x5e8] ss:$16 sps:$4 sm:$0xff]   ;;  %v10036_v6 = vld [vmem:[%s15633_s5 + $0x60c] ss:$16 sps:$4 sm:$0xff]  }
 0x3c4   :  { %v9669_v40 = vpack.i.bf16 %v4010_v27, %v4017_v2  ;;  %7226 = vmatprep.mubr.bf16.mxu0 %v4106_v37  ;;  %v14192_v15 = vmax.f32 %v1903_v41, %v1952_v60  ;;  %v1746_v35 = vmax.f32 %v1566_v34, %v1674_v55  ;;  %v2040_v41 = vrot.slane %v13654_v24, 2  ;;  %v10045_v60 = vld [vmem:[%s15633_s5 + $0x684] ss:$16 sps:$4 sm:$0xff]  }
 0x3c5   :  { %7221 = vmatpush1.bf16.msra.mxu0 %v10016_v19  ;;  %6940 = vmatmul.mubr.bf16.vlgmr.msra.gmra.mrb[72].mxu1 %v4105_v52  ;;  %v1676_v3 = vsel %vm1605_vm3, %v1673_v50, %v1675_v14  ;;  %v1748_v61 = vmax.f32 %v1568_v0, %v1675_v14  ;;  %v10034_v0 = vld [vmem:[%s15633_s5 + $0x608] ss:$16 sps:$4 sm:$0xff]  }
 0x3c6   :  { %9670 = vrot.lane.b32.xlu0 %v9669_v40, %s10705_s21  ;;  %6949 = vmatpush1.bf16.msra.mxu1 %v10019_v53  ;;  %v2047_v39 = vrot.slane %v14192_v15, 6  ;;  %v1846_v34 = vrot.slane %v1746_v35, 7  ;;  %v1747_v27 = vmax.f32 %v1567_v33, %v1676_v3  ;;  %v10031_v33 = vld [vmem:[%s15633_s5 + $0x640] ss:$16 sps:$4 sm:$0xff]   ;;  %v3994_v3 = vrot.slane %v13551_v31, 4 }
 0x3c7   :  { %7222 = vmatprep.subr.bf16.mxu0 %v10024_v57  ;;  %6950 = vmatprep.subr.bf16.mxu1 %v10027_v11  ;;  %v1850_v18 = vrot.slane %v1748_v61, 7  ;;  %v10037_v53 = vld [vmem:[%s15633_s5 + $0x660] ss:$16 sps:$4 sm:$0xff]   ;;  %v10042_v57 = vld [vmem:[%s15633_s5 + $0x62c] ss:$16 sps:$4 sm:$0xff]  }
 0x3c8   :  { %v9674_v30 = vpack.i.bf16 %v2040_v41, %v2047_v39  ;;  %v1847_v32 = vsel %vm1785_vm4, %v1844_v23, %v1846_v34  ;;  %v1848_v12 = vrot.slane %v1747_v27, 7  ;;  %v10057_v61 = vld [vmem:[%s15633_s5 + $0x6c4] ss:$16 sps:$4 sm:$0xff]  }
 0x3c9   :  { %7223 = vmatpush1.bf16.msra.mxu0 %v10022_v58  ;;  %v1909_v42 = vmax.f32 %v14124_v36, %v1847_v32  ;;  %v10039_v36 = vld [vmem:[%s15633_s5 + $0x664] ss:$16 sps:$4 sm:$0xff]   ;;  %v10054_v58 = vld [vmem:[%s15633_s5 + $0x66c] ss:$16 sps:$4 sm:$0xff]  }
 0x3ca   :  { %6951 = vmatpush1.bf16.msra.mxu1 %v10025_v44  ;;  %7224 = vmatprep.subr.bf16.mxu0 %v10030_v8  ;;  %v1849_v23 = vsel %vm1785_vm4, %v1846_v34, %v1848_v12  ;;  %v1851_v19 = vsel %vm1785_vm4, %v1848_v12, %v1850_v18  ;;  %v10052_v8 = vld [vmem:[%s15633_s5 + $0x668] ss:$16 sps:$4 sm:$0xff]   ;;  %v10055_v34 = vld [vmem:[%s15633_s5 + $0x6c0] ss:$16 sps:$4 sm:$0xff]  }
 0x3cb   :  { %9675 = vrot.lane.b32.xlu1 %v9674_v30, %s10705_s21  ;;  %6952 = vmatprep.subr.bf16.mxu1 %v10033_v28  ;;  %v1953_v47 = vrot.slane %v1909_v42, 1  ;;  %v1910_v10 = vmax.f32 %v1746_v35, %v1849_v23  ;;  %v1911_v50 = vmax.f32 %v1747_v27, %v1851_v19  ;;  %v10060_v27 = vld [vmem:[%s15633_s5 + $0x68c] ss:$16 sps:$4 sm:$0xff]   ;;  %v2024_v28 = vrot.slane %v13463_v4, 4  ;;  %v10063_v30 = vld [vmem:[%s15633_s5 + $0x6e4] ss:$16 sps:$4 sm:$0xff]  }
 0x3cc   :  { %v10061_v42 = vld [vmem:[%s15633_s5 + $0x6e0] ss:$16 sps:$4 sm:$0xff]   ;;  %v10069_v19 = vld [vmem:[%s15633_s5 + $0x704] ss:$16 sps:$4 sm:$0xff]  }
 0x3cd   :  { %7225 = vmatpush1.bf16.msra.mxu0 %v10028_v26  ;;  %v1955_v2 = vrot.slane %v1910_v10, 1  ;;  %v1957_v37 = vrot.slane %v1911_v50, 1  ;;  %v1954_v11 = vsel %vm1605_vm3, %v14168_v22, %v1953_v47  ;;  %v10040_v22 = vld [vmem:[%s15633_s5 + $0x628] ss:$16 sps:$4 sm:$0xff]   ;;  %v10072_v10 = vld [vmem:[%s15633_s5 + $0x6cc] ss:$16 sps:$4 sm:$0xff]  }
 0x3ce   :  { %6953 = vmatpush1.bf16.msra.mxu1 %v10031_v33  ;;  %7235 = vmatprep.subr.bf16.mxu0 %v10036_v6  ;;  %v14248_v55 = vmax.f32 %v1904_v49, %v1954_v11  ;;  %v10048_v49 = vld [vmem:[%s15633_s5 + $0x64c] ss:$16 sps:$4 sm:$0xff]   ;;  %v10058_v26 = vld [vmem:[%s15633_s5 + $0x688] ss:$16 sps:$4 sm:$0xff]   ;;  %v10075_v50 = vld [vmem:[%s15633_s5 + $0x724] ss:$16 sps:$4 sm:$0xff]  }
 0x3cf   :  { %6954 = vmatprep.subr.bf16.mxu1 %v10039_v36  ;;  %v14253_v14 = vmax.f32 %v1906_v7, %v1957_v37  ;;  %v1956_v40 = vsel %vm1605_vm3, %v1953_v47, %v1955_v2  ;;  %v10066_v6 = vld [vmem:[%s15633_s5 + $0x6ac] ss:$16 sps:$4 sm:$0xff]   ;;  %v10064_v36 = vld [vmem:[%s15633_s5 + $0x6a8] ss:$16 sps:$4 sm:$0xff]   ;;  %v10067_v47 = vld [vmem:[%s15633_s5 + $0x700] ss:$16 sps:$4 sm:$0xff]  }
 0x3d0   :  { %7227 = vmatmul.mubr.bf16.vlgmr.msra.gmra.mrb[104].mxu0 %v4105_v52  ;;  %v14262_v35 = vmax.f32 %v1905_v13, %v1956_v40  ;;  %v10046_v13 = vld [vmem:[%s15633_s5 + $0x648] ss:$16 sps:$4 sm:$0xff]   ;;  %v10049_v52 = vld [vmem:[%s15633_s5 + $0x6a0] ss:$16 sps:$4 sm:$0xff]   ;;  %v10078_v37 = vld [vmem:[%s15633_s5 + $0x6ec] ss:$16 sps:$4 sm:$0xff]  }
 0x3d1   :  { %7236 = vmatpush1.bf16.msra.mxu0 %v10034_v0  ;;  %v2063_v41 = vrot.slane %v14253_v14, 2  ;;  %v10070_v0 = vld [vmem:[%s15633_s5 + $0x6c8] ss:$16 sps:$4 sm:$0xff]   ;;  %v10073_v2 = vld [vmem:[%s15633_s5 + $0x720] ss:$16 sps:$4 sm:$0xff]  }
 0x3d2   :  { %6955 = vmatpush1.bf16.msra.mxu1 %v10037_v53  ;;  %7237 = vmatprep.subr.bf16.mxu0 %v10042_v57  ;;  %v2052_v17 = vrot.slane %v14262_v35, 2  ;;  %v2058_v59 = vrot.slane %v14262_v35, 6  ;;  %v10081_v53 = vld [vmem:[%s15633_s5 + $0x744] ss:$16 sps:$4 sm:$0xff]   ;;  %v10076_v57 = vld [vmem:[%s15633_s5 + $0x6e8] ss:$16 sps:$4 sm:$0xff]  }
 0x3d3   :  { %v14264_v9 = vpop.permute.xlu0 %9660  ;;  %6956 = vmatprep.subr.bf16.mxu1 %v10045_v60  ;;  %v10079_v11 = vld [vmem:[%s15633_s5 + $0x740] ss:$16 sps:$4 sm:$0xff]   ;;  %v10084_v60 = vld [vmem:[%s15633_s5 + $0x70c] ss:$16 sps:$4 sm:$0xff]   ;;  %v10087_v40 = vld [vmem:[%s15633_s5 + $0x764] ss:$16 sps:$4 sm:$0xff]  }
 0x3d4   :  { %v9662_v51 = vunpack.i.l.bf16 %v14264_v9  ;;  %v9684_v7 = vpack.i.bf16 %v2052_v17, %v2058_v59  ;;  %v10093_v17 = vld [vmem:[%s15633_s5 + $0x784] ss:$16 sps:$4 sm:$0xff]   ;;  %v10088_v59 = vld [vmem:[%s15633_s5 + $0x728] ss:$16 sps:$4 sm:$0xff]  }
 0x3d5   :  { %7238 = vmatpush1.bf16.msra.mxu0 %v10040_v22  ;;  %v10082_v22 = vld [vmem:[%s15633_s5 + $0x708] ss:$16 sps:$4 sm:$0xff]  }
 0x3d6   :  { %6957 = vmatpush1.bf16.msra.mxu1 %v10043_v5  ;;  %7239 = vmatprep.subr.bf16.mxu0 %v10048_v49  ;;  %v4008_v44 = vsel %vm985_vm15, %v3994_v3, %v9662_v51  ;;  %v10085_v5 = vld [vmem:[%s15633_s5 + $0x760] ss:$16 sps:$4 sm:$0xff]   ;;  %v10090_v49 = vld [vmem:[%s15633_s5 + $0x72c] ss:$16 sps:$4 sm:$0xff]   ;;  %v9663_v3 = vunpack.i.h.bf16 %v14264_v9 }
 0x3d7   :  { %9685 = vrot.lane.b32.xlu1 %v9684_v7, %s10705_s21  ;;  %6958 = vmatprep.subr.bf16.mxu1 %v10051_v54  ;;  %v4066_v32 = vrot.slane %v4008_v44, 7  ;;  %v10091_v54 = vld [vmem:[%s15633_s5 + $0x780] ss:$16 sps:$4 sm:$0xff]   ;;  %v10096_v51 = vld [vmem:[%s15633_s5 + $0x74c] ss:$16 sps:$4 sm:$0xff]  }
 0x3d8   :  { %v10094_v7 = vld [vmem:[%s15633_s5 + $0x748] ss:$16 sps:$4 sm:$0xff]   ;;  %v10108_v9 = vld [vmem:[%s15633_s5 + $0x78c] ss:$16 sps:$4 sm:$0xff]  }
 0x3d9   :  { %7240 = vmatpush1.bf16.msra.mxu0 %v10046_v13  ;;  %v10099_v13 = vld [vmem:[%s15633_s5 + $0x7a4] ss:$16 sps:$4 sm:$0xff]  }
 0x3da   :  { %6959 = vmatpush1.bf16.msra.mxu1 %v10049_v52  ;;  %7241 = vmatprep.subr.bf16.mxu0 %v10054_v58  ;;  %v14297_v39 = vpop.permute.xlu1 %9665  ;;  %v10097_v52 = vld [vmem:[%s15633_s5 + $0x7a0] ss:$16 sps:$4 sm:$0xff]   ;;  %v10102_v58 = vld [vmem:[%s15633_s5 + $0x76c] ss:$16 sps:$4 sm:$0xff]  }
 0x3db   :  { %2064 = vrot.lane.b32.xlu1 %v2063_v41, %s10705_s21  ;;  %v9667_v18 = vunpack.i.l.bf16 %v14297_v39  ;;  %6960 = vmatprep.subr.bf16.mxu1 %v10057_v61  ;;  %v10105_v61 = vld [vmem:[%s15633_s5 + $0x7c4] ss:$16 sps:$4 sm:$0xff]   ;;  %v9668_v44 = vunpack.i.h.bf16 %v14297_v39  ;;  %v10103_v41 = vld [vmem:[%s15633_s5 + $0x7c0] ss:$16 sps:$4 sm:$0xff]  }
 0x3dc   :  { %v10111_v39 = vld [vmem:[%s15633_s5 + $0x7e4] ss:$16 sps:$4 sm:$0xff]  }
 0x3dd   :  { %v2038_v12 = vsel %vm985_vm15, %v2024_v28, %v9667_v18  ;;  %7242 = vmatpush1.bf16.msra.mxu0 %v10052_v8  ;;  %v10100_v8 = vld [vmem:[%s15633_s5 + $0x768] ss:$16 sps:$4 sm:$0xff]  }
 0x3de   :  { %6961 = vmatpush1.bf16.msra.mxu1 %v10055_v34  ;;  %7243 = vmatprep.subr.bf16.mxu0 %v10060_v27  ;;  %v4094_v33 = vsel %vm1785_vm4, %v2038_v12, %v4066_v32  ;;  %v4007_v34 = vsel %vm985_vm15, %v13551_v31, %v9663_v3  ;;  %v2037_v27 = vsel %vm985_vm15, %v13463_v4, %v9668_v44  ;;  %v10106_v28 = vld [vmem:[%s15633_s5 + $0x788] ss:$16 sps:$4 sm:$0xff]   ;;  %v10109_v31 = vld [vmem:[%s15633_s5 + $0x7e0] ss:$16 sps:$4 sm:$0xff]   ;;  %v10117_v4 = vld [vmem:[%s15633_s5 + $0x804] ss:$16 sps:$4 sm:$0xff]  }
 0x3df   :  { %6962 = vmatprep.subr.bf16.mxu1 %v10063_v30  ;;  %v4108_v23 = vpack.c.bf16 %v4094_v33, %v4094_v33  ;;  %v4065_v18 = vrot.slane %v4007_v34, 7  ;;  %v10114_v30 = vld [vmem:[%s15633_s5 + $0x7ac] ss:$16 sps:$4 sm:$0xff]   ;;  %v10112_v12 = vld [vmem:[%s15633_s5 + $0x7a8] ss:$16 sps:$4 sm:$0xff]  }
 0x3e0   :  { %v10654_v3 = vld [vmem:[%s15632_s4] ss:$0 sm:$0xff] }
 0x3e1   :  { %7244 = vmatpush1.bf16.msra.mxu0 %v10058_v26  ;;  %6980 = vmatprep.mubr.bf16.mxu1 %v4108_v23  ;;  %v4093_v32 = vsel %vm1785_vm4, %v2037_v27, %v4065_v18  ;;  %v10115_v26 = vld [vmem:[%s15633_s5 + $0x800] ss:$16 sps:$4 sm:$0xff]   ;;  %v10165_v18 = vld [vmem:[%s15633_s5 + $0x904] ss:$16 sps:$4 sm:$0xff]  }
 0x3e2   :  { %6963 = vmatpush1.bf16.msra.mxu1 %v10061_v42  ;;  %7245 = vmatprep.subr.bf16.mxu0 %v10066_v6  ;;  %v10120_v42 = vld [vmem:[%s15633_s5 + $0x7cc] ss:$16 sps:$4 sm:$0xff]   ;;  %v4107_v33 = vpack.c.bf16 %v4093_v32, %v4093_v32  ;;  %v10123_v6 = vld [vmem:[%s15633_s5 + $0x824] ss:$16 sps:$4 sm:$0xff]   ;;  %v10157_v27 = vld [vmem:[%s15633_s5 + $0x8e0] ss:$16 sps:$4 sm:$0xff]  }
 0x3e3   :  { %7267 = vmatprep.mubr.bf16.mxu0 %v4108_v23  ;;  %6964 = vmatprep.subr.bf16.mxu1 %v10069_v19  ;;  %v10118_v23 = vld [vmem:[%s15633_s5 + $0x7c8] ss:$16 sps:$4 sm:$0xff]   ;;  %v10121_v19 = vld [vmem:[%s15633_s5 + $0x820] ss:$16 sps:$4 sm:$0xff]  }
 0x3e5   :  { %7246 = vmatpush1.bf16.msra.mxu0 %v10064_v36  ;;  %v10126_v36 = vld [vmem:[%s15633_s5 + $0x7ec] ss:$16 sps:$4 sm:$0xff]  }
 0x3e6   :  { %6965 = vmatpush1.bf16.msra.mxu1 %v10067_v47  ;;  %7247 = vmatprep.subr.bf16.mxu0 %v10072_v10  ;;  %v10129_v47 = vld [vmem:[%s15633_s5 + $0x844] ss:$16 sps:$4 sm:$0xff]   ;;  %v10124_v10 = vld [vmem:[%s15633_s5 + $0x7e8] ss:$16 sps:$4 sm:$0xff]  }
 0x3e7   :  { %6966 = vmatprep.subr.bf16.mxu1 %v10075_v50  ;;  %v10127_v50 = vld [vmem:[%s15633_s5 + $0x840] ss:$16 sps:$4 sm:$0xff]  }
 0x3e9   :  { %7248 = vmatpush1.bf16.msra.mxu0 %v10070_v0  ;;  %v10132_v0 = vld [vmem:[%s15633_s5 + $0x80c] ss:$16 sps:$4 sm:$0xff]  }
 0x3ea   :  { %6967 = vmatpush1.bf16.msra.mxu1 %v10073_v2  ;;  %7249 = vmatprep.subr.bf16.mxu0 %v10078_v37  ;;  %v10135_v2 = vld [vmem:[%s15633_s5 + $0x864] ss:$16 sps:$4 sm:$0xff]   ;;  %v10130_v37 = vld [vmem:[%s15633_s5 + $0x808] ss:$16 sps:$4 sm:$0xff]  }
 0x3eb   :  { %6968 = vmatprep.subr.bf16.mxu1 %v10081_v53  ;;  %v10133_v53 = vld [vmem:[%s15633_s5 + $0x860] ss:$16 sps:$4 sm:$0xff]  }
 0x3ed   :  { %7250 = vmatpush1.bf16.msra.mxu0 %v10076_v57  ;;  %v10138_v57 = vld [vmem:[%s15633_s5 + $0x82c] ss:$16 sps:$4 sm:$0xff]  }
 0x3ee   :  { %6969 = vmatpush1.bf16.msra.mxu1 %v10079_v11  ;;  %7251 = vmatprep.subr.bf16.mxu0 %v10084_v60  ;;  %v10141_v11 = vld [vmem:[%s15633_s5 + $0x884] ss:$16 sps:$4 sm:$0xff]   ;;  %v10136_v60 = vld [vmem:[%s15633_s5 + $0x828] ss:$16 sps:$4 sm:$0xff]  }
 0x3ef   :  { %6970 = vmatprep.subr.bf16.mxu1 %v10087_v40  ;;  %v10139_v40 = vld [vmem:[%s15633_s5 + $0x880] ss:$16 sps:$4 sm:$0xff]  }
 0x3f1   :  { %7252 = vmatpush1.bf16.msra.mxu0 %v10082_v22  ;;  %v10144_v22 = vld [vmem:[%s15633_s5 + $0x84c] ss:$16 sps:$4 sm:$0xff]  }
 0x3f2   :  { %6971 = vmatpush1.bf16.msra.mxu1 %v10085_v5  ;;  %7253 = vmatprep.subr.bf16.mxu0 %v10090_v49  ;;  %v10147_v5 = vld [vmem:[%s15633_s5 + $0x8a4] ss:$16 sps:$4 sm:$0xff]   ;;  %v10142_v49 = vld [vmem:[%s15633_s5 + $0x848] ss:$16 sps:$4 sm:$0xff]  }
 0x3f3   :  { %6972 = vmatprep.subr.bf16.mxu1 %v10093_v17  ;;  %v10145_v17 = vld [vmem:[%s15633_s5 + $0x8a0] ss:$16 sps:$4 sm:$0xff]  }
 0x3f5   :  { %7254 = vmatpush1.bf16.msra.mxu0 %v10088_v59  ;;  %v10150_v59 = vld [vmem:[%s15633_s5 + $0x86c] ss:$16 sps:$4 sm:$0xff]  }
 0x3f6   :  { %6973 = vmatpush1.bf16.msra.mxu1 %v10091_v54  ;;  %7255 = vmatprep.subr.bf16.mxu0 %v10096_v51  ;;  %v10153_v54 = vld [vmem:[%s15633_s5 + $0x8c4] ss:$16 sps:$4 sm:$0xff]   ;;  %v10148_v51 = vld [vmem:[%s15633_s5 + $0x868] ss:$16 sps:$4 sm:$0xff]  }
 0x3f7   :  { %6974 = vmatprep.subr.bf16.mxu1 %v10099_v13  ;;  %v10151_v13 = vld [vmem:[%s15633_s5 + $0x8c0] ss:$16 sps:$4 sm:$0xff]  }
 0x3f9   :  { %7256 = vmatpush1.bf16.msra.mxu0 %v10094_v7  ;;  %v10156_v7 = vld [vmem:[%s15633_s5 + $0x88c] ss:$16 sps:$4 sm:$0xff]  }
 0x3fa   :  { %6975 = vmatpush1.bf16.msra.mxu1 %v10097_v52  ;;  %7257 = vmatprep.subr.bf16.mxu0 %v10102_v58  ;;  %v10159_v58 = vld [vmem:[%s15633_s5 + $0x8e4] ss:$16 sps:$4 sm:$0xff]  }
 0x3fb   :  { %6976 = vmatprep.subr.bf16.mxu1 %v10105_v61 }
 0x3fd   :  { %7258 = vmatpush1.bf16.msra.mxu0 %v10100_v8 }
 0x3fe   :  { %6977 = vmatpush1.bf16.msra.mxu1 %v10103_v41  ;;  %7259 = vmatprep.subr.bf16.mxu0 %v10108_v9  ;;  %v10154_v41 = vld [vmem:[%s15633_s5 + $0x888] ss:$16 sps:$4 sm:$0xff]  }
 0x3ff   :  { %6978 = vmatprep.subr.bf16.mxu1 %v10111_v39 }
 0x401   :  { %7260 = vmatpush1.bf16.msra.mxu0 %v10106_v28  ;;  %v10162_v28 = vld [vmem:[%s15633_s5 + $0x8ac] ss:$16 sps:$4 sm:$0xff]  }
 0x402   :  { %6979 = vmatpush1.bf16.msra.mxu1 %v10109_v31  ;;  %7261 = vmatprep.subr.bf16.mxu0 %v10114_v30 }
 0x403   :  { %6989 = vmatprep.subr.bf16.mxu1 %v10117_v4  ;;  %v10160_v4 = vld [vmem:[%s15633_s5 + $0x8a8] ss:$16 sps:$4 sm:$0xff]  }
 0x405   :  { %6981 = vmatmul.mubr.bf16.vlgmr.msra.gmra.mrb[72].mxu1 %v4107_v33  ;;  %7262 = vmatpush1.bf16.msra.mxu0 %v10112_v12 }
 0x406   :  { %6990 = vmatpush1.bf16.msra.mxu1 %v10115_v26  ;;  %7263 = vmatprep.subr.bf16.mxu0 %v10120_v42  ;;  %v10163_v26 = vld [vmem:[%s15633_s5 + $0x900] ss:$16 sps:$4 sm:$0xff]   ;;  %v10168_v42 = vld [vmem:[%s15633_s5 + $0x8cc] ss:$16 sps:$4 sm:$0xff]  }
 0x407   :  { %6991 = vmatprep.subr.bf16.mxu1 %v10123_v6  ;;  %v10171_v6 = vld [vmem:[%s15633_s5 + $0x924] ss:$16 sps:$4 sm:$0xff]  }
 0x409   :  { %7264 = vmatpush1.bf16.msra.mxu0 %v10118_v23 }
 0x40a   :  { %6992 = vmatpush1.bf16.msra.mxu1 %v10121_v19  ;;  %7265 = vmatprep.subr.bf16.mxu0 %v10126_v36 }
 0x40b   :  { %6993 = vmatprep.subr.bf16.mxu1 %v10129_v47  ;;  %v10166_v47 = vld [vmem:[%s15633_s5 + $0x8c8] ss:$16 sps:$4 sm:$0xff]  }
 0x40d   :  { %7266 = vmatpush1.bf16.msra.mxu0 %v10124_v10 }
 0x40e   :  { %6994 = vmatpush1.bf16.msra.mxu1 %v10127_v50  ;;  %7276 = vmatprep.subr.bf16.mxu0 %v10132_v0 }
 0x40f   :  { %6995 = vmatprep.subr.bf16.mxu1 %v10135_v2  ;;  %v10177_v2 = vld [vmem:[%s15633_s5 + $0x944] ss:$16 sps:$4 sm:$0xff]  }
 0x410   :  { %7268 = vmatmul.mubr.bf16.vlgmr.msra.gmra.mrb[104].mxu0 %v4107_v33 }
 0x411   :  { %7277 = vmatpush1.bf16.msra.mxu0 %v10130_v37 }
 0x412   :  { %6996 = vmatpush1.bf16.msra.mxu1 %v10133_v53  ;;  %7278 = vmatprep.subr.bf16.mxu0 %v10138_v57 }
 0x413   :  { %6997 = vmatprep.subr.bf16.mxu1 %v10141_v11  ;;  %v10172_v11 = vld [vmem:[%s15633_s5 + $0x8e8] ss:$16 sps:$4 sm:$0xff]  }
 0x415   :  { %7279 = vmatpush1.bf16.msra.mxu0 %v10136_v60 }
 0x416   :  { %6998 = vmatpush1.bf16.msra.mxu1 %v10139_v40  ;;  %7280 = vmatprep.subr.bf16.mxu0 %v10144_v22  ;;  %v10175_v22 = vld [vmem:[%s15633_s5 + $0x940] ss:$16 sps:$4 sm:$0xff]  }
 0x417   :  { %6999 = vmatprep.subr.bf16.mxu1 %v10147_v5  ;;  %v10183_v5 = vld [vmem:[%s15633_s5 + $0x964] ss:$16 sps:$4 sm:$0xff]  }
 0x419   :  { %7281 = vmatpush1.bf16.msra.mxu0 %v10142_v49 }
 0x41a   :  { %7000 = vmatpush1.bf16.msra.mxu1 %v10145_v17  ;;  %7282 = vmatprep.subr.bf16.mxu0 %v10150_v59 }
 0x41b   :  { %v3498_v52 = vpop.f32.mrb[100].mxu0  ;;  %7001 = vmatprep.subr.bf16.mxu1 %v10153_v54  ;;  %v10178_v54 = vld [vmem:[%s15633_s5 + $0x908] ss:$16 sps:$4 sm:$0xff]  }
 0x41c   :  { %v3499_v61 = vadd.f32 %v10654_v3, %v3498_v52  ;;  %v3500_v44 = vpop.f32.mrb[101].mxu0 }
 0x41d   :  { %7283 = vmatpush1.bf16.msra.mxu0 %v10148_v51  ;;  %v3501_v8 = vpop.f32.mrb[102].mxu0  ;;  %v15972_v51 = vmax.f32 %v13678_v45, %v13731_v16  ;;  %v15974_v45 = vmax.f32 %v13693_v20, %v13850_v62  ;;  %v10187_v20 = vld [vmem:[%s15633_s5 + $0x980] ss:$16 sps:$4 sm:$0xff]   ;;  %v10192_v62 = vld [vmem:[%s15633_s5 + $0x94c] ss:$16 sps:$4 sm:$0xff]  }
 0x41e   :  { %v3539_v9 = vmax.f32 %v3499_v61, 0.0  ;;  %v3502_v34 = vadd.f32 %v10654_v3, %v3501_v8  ;;  %v3503_v39 = vpop.f32.mrb[103].mxu0  ;;  %7002 = vmatpush1.bf16.msra.mxu1 %v10151_v13  ;;  %7284 = vmatprep.subr.bf16.mxu0 %v10156_v7  ;;  %v15973_v7 = vmax.f32 %v13839_v48, %v13969_v43  ;;  %v10189_v48 = vld [vmem:[%s15633_s5 + $0x984] ss:$16 sps:$4 sm:$0xff]   ;;  %v10184_v43 = vld [vmem:[%s15633_s5 + $0x928] ss:$16 sps:$4 sm:$0xff]  }
 0x41f   :  { %7003 = vmatprep.subr.bf16.mxu1 %v10159_v58  ;;  %v10186_v58 = vld [vmem:[%s15633_s5 + $0x92c] ss:$16 sps:$4 sm:$0xff]  }
 0x420   :  { %v3644_v31 = vrot.slane %v3539_v9, 1  ;;  %v3540_v30 = vmax.f32 %v3502_v34, 0.0  ;;  %v10193_v34 = vld [vmem:[%s15633_s5 + $0x9a0] ss:$16 sps:$4 sm:$0xff]   ;;  %v10198_v39 = vld [vmem:[%s15633_s5 + $0x96c] ss:$16 sps:$4 sm:$0xff]  }
 0x421   :  { %7285 = vmatpush1.bf16.msra.mxu0 %v10154_v41  ;;  %v10195_v41 = vld [vmem:[%s15633_s5 + $0x9a4] ss:$16 sps:$4 sm:$0xff]  }
 0x422   :  { %v3645_v32 = vsel %vm1605_vm3, %v14061_v38, %v3644_v31  ;;  %v3646_v12 = vrot.slane %v3540_v30, 1  ;;  %7004 = vmatpush1.bf16.msra.mxu1 %v10157_v27  ;;  %7286 = vmatprep.subr.bf16.mxu0 %v10162_v28  ;;  %v10201_v28 = vld [vmem:[%s15633_s5 + $0x9c4] ss:$16 sps:$4 sm:$0xff]  }
 0x423   :  { %v3717_v33 = vmax.f32 %v3538_v21, %v3645_v32  ;;  %7005 = vmatprep.subr.bf16.mxu1 %v10165_v18  ;;  %v10174_v21 = vld [vmem:[%s15633_s5 + $0x8ec] ss:$16 sps:$4 sm:$0xff]   ;;  %v4015_v32 = vrot.slane %v14166_v63, 4 }
 0x424   :  { %v3647_v38 = vsel %vm1605_vm3, %v3644_v31, %v3646_v12  ;;  %v3719_v23 = vmax.f32 %v3540_v30, %v3646_v12  ;;  %v10199_v12 = vld [vmem:[%s15633_s5 + $0x9c0] ss:$16 sps:$4 sm:$0xff]  }
 0x425   :  { %v3816_v19 = vrot.slane %v3717_v33, 7  ;;  %v3718_v36 = vmax.f32 %v3539_v9, %v3647_v38  ;;  %7287 = vmatpush1.bf16.msra.mxu0 %v10160_v4  ;;  %v10190_v9 = vld [vmem:[%s15633_s5 + $0x948] ss:$16 sps:$4 sm:$0xff]  }
 0x426   :  { %v3820_v10 = vrot.slane %v3719_v23, 7  ;;  %7006 = vmatpush1.bf16.msra.mxu1 %v10163_v26  ;;  %7288 = vmatprep.subr.bf16.mxu0 %v10168_v42  ;;  %v10196_v4 = vld [vmem:[%s15633_s5 + $0x968] ss:$16 sps:$4 sm:$0xff]   ;;  %v10204_v26 = vld [vmem:[%s15633_s5 + $0x98c] ss:$16 sps:$4 sm:$0xff]   ;;  %v2045_v23 = vrot.slane %v14192_v15, 4 }
 0x427   :  { %v3817_v50 = vsel %vm1785_vm4, %v3814_v29, %v3816_v19  ;;  %v3818_v0 = vrot.slane %v3718_v36, 7  ;;  %7007 = vmatprep.subr.bf16.mxu1 %v10171_v6  ;;  %v10207_v42 = vld [vmem:[%s15633_s5 + $0x9e4] ss:$16 sps:$4 sm:$0xff]   ;;  %v10202_v38 = vld [vmem:[%s15633_s5 + $0x988] ss:$16 sps:$4 sm:$0xff]  }
 0x428   :  { %v3879_v37 = vmax.f32 %v14078_v1, %v3817_v50  ;;  %v10180_v1 = vld [vmem:[%s15633_s5 + $0x90c] ss:$16 sps:$4 sm:$0xff]  }
 0x429   :  { %v3819_v53 = vsel %vm1785_vm4, %v3816_v19, %v3818_v0  ;;  %v3821_v57 = vsel %vm1785_vm4, %v3818_v0, %v3820_v10  ;;  %7289 = vmatpush1.bf16.msra.mxu0 %v10166_v47  ;;  %v10205_v47 = vld [vmem:[%s15633_s5 + $0x9e0] ss:$16 sps:$4 sm:$0xff]   ;;  %v10208_v0 = vld [vmem:[%s15633_s5 + $0x9a8] ss:$16 sps:$4 sm:$0xff]  }
 0x42a   :  { %v3923_v60 = vrot.slane %v3879_v37, 1  ;;  %v3880_v40 = vmax.f32 %v3717_v33, %v3819_v53  ;;  %v3881_v29 = vmax.f32 %v3718_v36, %v3821_v57  ;;  %7008 = vmatpush1.bf16.msra.mxu1 %v10169_v25  ;;  %7290 = vmatprep.subr.bf16.mxu0 %v10174_v21  ;;  %v10219_v21 = vld [vmem:[%s15633_s5 + $0xa04] ss:$16 sps:$4 sm:$0xff]  }
 0x42b   :  { %7009 = vmatprep.subr.bf16.mxu1 %v10177_v2 }
 0x42c   :  { %v3925_v49 = vrot.slane %v3880_v40, 1  ;;  %v3927_v17 = vrot.slane %v3881_v29, 1  ;;  %v3924_v59 = vsel %vm1605_vm3, %v14122_v46, %v3923_v60  ;;  %v10181_v46 = vld [vmem:[%s15633_s5 + $0x960] ss:$16 sps:$4 sm:$0xff]   ;;  %v10211_v40 = vld [vmem:[%s15633_s5 + $0x9c8] ss:$16 sps:$4 sm:$0xff]  }
 0x42d   :  { %7291 = vmatpush1.bf16.msra.mxu0 %v10172_v11  ;;  %v14582_v13 = vmax.f32 %v15972_v51, %v3924_v59  ;;  %v10213_v11 = vld [vmem:[%s15633_s5 + $0x9cc] ss:$16 sps:$4 sm:$0xff]   ;;  %v10237_v59 = vld [vmem:[%s15633_s5 + $0xa64] ss:$16 sps:$4 sm:$0xff]  }
 0x42e   :  { %v14587_v52 = vmax.f32 %v15973_v7, %v3927_v17  ;;  %7010 = vmatpush1.bf16.msra.mxu1 %v10175_v22  ;;  %7292 = vmatprep.subr.bf16.mxu0 %v10180_v1  ;;  %v3926_v3 = vsel %vm1605_vm3, %v3923_v60, %v3925_v49  ;;  %v10225_v60 = vld [vmem:[%s15633_s5 + $0xa24] ss:$16 sps:$4 sm:$0xff]   ;;  %v10216_v29 = vld [vmem:[%s15633_s5 + $0x9ec] ss:$16 sps:$4 sm:$0xff]   ;;  %v10223_v22 = vld [vmem:[%s15633_s5 + $0xa20] ss:$16 sps:$4 sm:$0xff]  }
 0x42f   :  { %7011 = vmatprep.subr.bf16.mxu1 %v10183_v5  ;;  %v14599_v16 = vmax.f32 %v15974_v45, %v3926_v3  ;;  %v10231_v1 = vld [vmem:[%s15633_s5 + $0xa44] ss:$16 sps:$4 sm:$0xff]   ;;  %v10214_v5 = vld [vmem:[%s15633_s5 + $0x9e8] ss:$16 sps:$4 sm:$0xff]   ;;  %v10222_v49 = vld [vmem:[%s15633_s5 + $0xa0c] ss:$16 sps:$4 sm:$0xff]  }
 0x430   :  { %v4033_v27 = vrot.slane %v14587_v52, 2  ;;  %v10229_v17 = vld [vmem:[%s15633_s5 + $0xa40] ss:$16 sps:$4 sm:$0xff]   ;;  %v10228_v51 = vld [vmem:[%s15633_s5 + $0xa2c] ss:$16 sps:$4 sm:$0xff]  }
 0x431   :  { %7293 = vmatpush1.bf16.msra.mxu0 %v10178_v54  ;;  %v4022_v61 = vrot.slane %v14599_v16, 2  ;;  %v4028_v44 = vrot.slane %v14599_v16, 6  ;;  %v10220_v54 = vld [vmem:[%s15633_s5 + $0xa08] ss:$16 sps:$4 sm:$0xff]   ;;  %v10235_v7 = vld [vmem:[%s15633_s5 + $0xa60] ss:$16 sps:$4 sm:$0xff]  }
 0x432   :  { %7012 = vmatpush1.bf16.msra.mxu1 %v10181_v46  ;;  %7294 = vmatprep.subr.bf16.mxu0 %v10186_v58  ;;  %v10243_v46 = vld [vmem:[%s15633_s5 + $0xa84] ss:$16 sps:$4 sm:$0xff]   ;;  %v10226_v58 = vld [vmem:[%s15633_s5 + $0xa28] ss:$16 sps:$4 sm:$0xff]   ;;  %v10234_v3 = vld [vmem:[%s15633_s5 + $0xa4c] ss:$16 sps:$4 sm:$0xff]  }
 0x433   :  { %v9679_v8 = vpack.i.bf16 %v4022_v61, %v4028_v44  ;;  %7013 = vmatprep.subr.bf16.mxu1 %v10189_v48  ;;  %v10241_v45 = vld [vmem:[%s15633_s5 + $0xa80] ss:$16 sps:$4 sm:$0xff]   ;;  %v10249_v48 = vld [vmem:[%s15633_s5 + $0xaa4] ss:$16 sps:$4 sm:$0xff]   ;;  %v10240_v61 = vld [vmem:[%s15633_s5 + $0xa6c] ss:$16 sps:$4 sm:$0xff]  }
 0x434   :  { %v10247_v44 = vld [vmem:[%s15633_s5 + $0xaa0] ss:$16 sps:$4 sm:$0xff]  }
 0x435   :  { %7295 = vmatpush1.bf16.msra.mxu0 %v10184_v43  ;;  %9680 = vrot.lane.b32.xlu0 %v9679_v8, %s10705_s21  ;;  %v10232_v43 = vld [vmem:[%s15633_s5 + $0xa48] ss:$16 sps:$4 sm:$0xff]   ;;  %v10246_v8 = vld [vmem:[%s15633_s5 + $0xa8c] ss:$16 sps:$4 sm:$0xff]  }
 0x436   :  { %7014 = vmatpush1.bf16.msra.mxu1 %v10187_v20  ;;  %7296 = vmatprep.subr.bf16.mxu0 %v10192_v62  ;;  %v10255_v20 = vld [vmem:[%s15633_s5 + $0xac4] ss:$16 sps:$4 sm:$0xff]   ;;  %v10238_v62 = vld [vmem:[%s15633_s5 + $0xa68] ss:$16 sps:$4 sm:$0xff]  }
 0x437   :  { %7015 = vmatprep.subr.bf16.mxu1 %v10195_v41  ;;  %v10253_v41 = vld [vmem:[%s15633_s5 + $0xac0] ss:$16 sps:$4 sm:$0xff]  }
 0x438   :  { %v9671_v18 = vpop.permute.xlu0 %9670 }
 0x439   :  { %v9673_v31 = vunpack.i.h.bf16 %v9671_v18  ;;  %v9672_v30 = vunpack.i.l.bf16 %v9671_v18  ;;  %7297 = vmatpush1.bf16.msra.mxu0 %v10190_v9  ;;  %4034 = vrot.lane.b32.xlu0 %v4033_v27, %s10705_s21  ;;  %v10261_v9 = vld [vmem:[%s15633_s5 + $0xae4] ss:$16 sps:$4 sm:$0xff]   ;;  %v10259_v27 = vld [vmem:[%s15633_s5 + $0xae0] ss:$16 sps:$4 sm:$0xff]   ;;  %v10250_v18 = vld [vmem:[%s15633_s5 + $0xaa8] ss:$16 sps:$4 sm:$0xff]  }
 0x43a   :  { %7016 = vmatpush1.bf16.msra.mxu1 %v10193_v34  ;;  %7298 = vmatprep.subr.bf16.mxu0 %v10198_v39  ;;  %v10244_v34 = vld [vmem:[%s15633_s5 + $0xa88] ss:$16 sps:$4 sm:$0xff]   ;;  %v10252_v39 = vld [vmem:[%s15633_s5 + $0xaac] ss:$16 sps:$4 sm:$0xff]  }
 0x43b   :  { %7017 = vmatprep.subr.bf16.mxu1 %v10201_v28  ;;  %v4039_v33 = vsel %vm985_vm15, %v13609_v56, %v9673_v31  ;;  %v4040_v63 = vsel %vm985_vm15, %v4015_v32, %v9672_v30  ;;  %v10210_v56 = vld [vmem:[%s15633_s5 + $0x9ac] ss:$16 sps:$4 sm:$0xff]   ;;  %v10267_v28 = vld [vmem:[%s15633_s5 + $0xb04] ss:$16 sps:$4 sm:$0xff]   ;;  %v10265_v30 = vld [vmem:[%s15633_s5 + $0xb00] ss:$16 sps:$4 sm:$0xff]  }
 0x43c   :  { %v4067_v10 = vrot.slane %v4039_v33, 7  ;;  %v4068_v25 = vrot.slane %v4040_v63, 7  ;;  %v10258_v31 = vld [vmem:[%s15633_s5 + $0xacc] ss:$16 sps:$4 sm:$0xff]   ;;  %v10256_v32 = vld [vmem:[%s15633_s5 + $0xac8] ss:$16 sps:$4 sm:$0xff]  }
 0x43d   :  { %7299 = vmatpush1.bf16.msra.mxu0 %v10196_v4  ;;  %v9676_v6 = vpop.permute.xlu1 %9675  ;;  %v10273_v4 = vld [vmem:[%s15633_s5 + $0xb24] ss:$16 sps:$4 sm:$0xff]   ;;  %v10262_v33 = vld [vmem:[%s15633_s5 + $0xae8] ss:$16 sps:$4 sm:$0xff]   ;;  %v10270_v63 = vld [vmem:[%s15633_s5 + $0xb0c] ss:$16 sps:$4 sm:$0xff]  }
 0x43e   :  { %v9678_v19 = vunpack.i.h.bf16 %v9676_v6  ;;  %v9677_v36 = vunpack.i.l.bf16 %v9676_v6  ;;  %7018 = vmatpush1.bf16.msra.mxu1 %v10199_v12  ;;  %7300 = vmatprep.subr.bf16.mxu0 %v10204_v26  ;;  %v10264_v12 = vld [vmem:[%s15633_s5 + $0xaec] ss:$16 sps:$4 sm:$0xff]   ;;  %v10271_v26 = vld [vmem:[%s15633_s5 + $0xb20] ss:$16 sps:$4 sm:$0xff]  }
 0x43f   :  { %7019 = vmatprep.subr.bf16.mxu1 %v10207_v42  ;;  %v10279_v42 = vld [vmem:[%s15633_s5 + $0xb44] ss:$16 sps:$4 sm:$0xff]   ;;  %v10277_v6 = vld [vmem:[%s15633_s5 + $0xb40] ss:$16 sps:$4 sm:$0xff]  }
 0x440   :  { %v2069_v15 = vsel %vm985_vm15, %v13654_v24, %v9678_v19  ;;  %v2070_v50 = vsel %vm985_vm15, %v2045_v23, %v9677_v36  ;;  %v10217_v24 = vld [vmem:[%s15633_s5 + $0xa00] ss:$16 sps:$4 sm:$0xff]   ;;  %v10268_v23 = vld [vmem:[%s15633_s5 + $0xb08] ss:$16 sps:$4 sm:$0xff]   ;;  %v10276_v19 = vld [vmem:[%s15633_s5 + $0xb2c] ss:$16 sps:$4 sm:$0xff]  }
 0x441   :  { %7301 = vmatpush1.bf16.msra.mxu0 %v10202_v38  ;;  %v4096_v2 = vsel %vm1785_vm4, %v2070_v50, %v4068_v25  ;;  %v4095_v37 = vsel %vm1785_vm4, %v2069_v15, %v4067_v10  ;;  %v10285_v38 = vld [vmem:[%s15633_s5 + $0xb64] ss:$16 sps:$4 sm:$0xff]   ;;  %v10283_v36 = vld [vmem:[%s15633_s5 + $0xb60] ss:$16 sps:$4 sm:$0xff]   ;;  %v10282_v10 = vld [vmem:[%s15633_s5 + $0xb4c] ss:$16 sps:$4 sm:$0xff]  }
 0x442   :  { %7020 = vmatpush1.bf16.msra.mxu1 %v10205_v47  ;;  %7302 = vmatprep.subr.bf16.mxu0 %v10210_v56  ;;  %v4110_v53 = vpack.c.bf16 %v4096_v2, %v4096_v2  ;;  %v4109_v57 = vpack.c.bf16 %v4095_v37, %v4095_v37  ;;  %v10291_v47 = vld [vmem:[%s15633_s5 + $0xb84] ss:$16 sps:$4 sm:$0xff]   ;;  %v10274_v56 = vld [vmem:[%s15633_s5 + $0xb28] ss:$16 sps:$4 sm:$0xff]   ;;  %v10289_v25 = vld [vmem:[%s15633_s5 + $0xb80] ss:$16 sps:$4 sm:$0xff]  }
 0x443   :  { %7030 = vmatprep.subr.bf16.mxu1 %v10219_v21  ;;  %v10297_v21 = vld [vmem:[%s15633_s5 + $0xba4] ss:$16 sps:$4 sm:$0xff]   ;;  %v10280_v15 = vld [vmem:[%s15633_s5 + $0xb48] ss:$16 sps:$4 sm:$0xff]   ;;  %v10288_v50 = vld [vmem:[%s15633_s5 + $0xb6c] ss:$16 sps:$4 sm:$0xff]  }
 0x444   :  { %7021 = vmatprep.mubr.bf16.mxu1 %v4110_v53  ;;  %7308 = vmatprep.mubr.bf16.mxu0 %v4110_v53  ;;  %v10303_v2 = vld [vmem:[%s15633_s5 + $0xbc4] ss:$16 sps:$4 sm:$0xff]   ;;  %v10286_v37 = vld [vmem:[%s15633_s5 + $0xb68] ss:$16 sps:$4 sm:$0xff]   ;;  %v10294_v53 = vld [vmem:[%s15633_s5 + $0xb8c] ss:$16 sps:$4 sm:$0xff]  }
 0x445   :  { %7303 = vmatpush1.bf16.msra.mxu0 %v10208_v0  ;;  %7022 = vmatmul.mubr.bf16.vlgmr.msra.gmra.mrb[72].mxu1 %v4109_v57  ;;  %v10295_v0 = vld [vmem:[%s15633_s5 + $0xba0] ss:$16 sps:$4 sm:$0xff]  }
 0x446   :  { %7304 = vmatprep.subr.bf16.mxu0 %v10213_v11  ;;  %7031 = vmatpush1.bf16.msra.mxu1 %v10217_v24  ;;  %v10309_v11 = vld [vmem:[%s15633_s5 + $0xbe4] ss:$16 sps:$4 sm:$0xff]   ;;  %v10292_v24 = vld [vmem:[%s15633_s5 + $0xb88] ss:$16 sps:$4 sm:$0xff]  }
 0x447   :  { %7032 = vmatprep.subr.bf16.mxu1 %v10225_v60  ;;  %v10300_v60 = vld [vmem:[%s15633_s5 + $0xbac] ss:$16 sps:$4 sm:$0xff]  }
 0x449   :  { %7305 = vmatpush1.bf16.msra.mxu0 %v10211_v40  ;;  %v10307_v40 = vld [vmem:[%s15633_s5 + $0xbe0] ss:$16 sps:$4 sm:$0xff]  }
 0x44a   :  { %7306 = vmatprep.subr.bf16.mxu0 %v10216_v29  ;;  %7033 = vmatpush1.bf16.msra.mxu1 %v10223_v22  ;;  %v10315_v29 = vld [vmem:[%s15633_s5 + $0xc04] ss:$16 sps:$4 sm:$0xff]   ;;  %v10298_v22 = vld [vmem:[%s15633_s5 + $0xba8] ss:$16 sps:$4 sm:$0xff]  }
 0x44b   :  { %7034 = vmatprep.subr.bf16.mxu1 %v10231_v1  ;;  %v10306_v1 = vld [vmem:[%s15633_s5 + $0xbcc] ss:$16 sps:$4 sm:$0xff]  }
 0x44d   :  { %7307 = vmatpush1.bf16.msra.mxu0 %v10214_v5  ;;  %v10304_v5 = vld [vmem:[%s15633_s5 + $0xbc8] ss:$16 sps:$4 sm:$0xff]  }
 0x44e   :  { %7317 = vmatprep.subr.bf16.mxu0 %v10222_v49  ;;  %7035 = vmatpush1.bf16.msra.mxu1 %v10229_v17  ;;  %v10312_v49 = vld [vmem:[%s15633_s5 + $0xbec] ss:$16 sps:$4 sm:$0xff]   ;;  %v10310_v17 = vld [vmem:[%s15633_s5 + $0xbe8] ss:$16 sps:$4 sm:$0xff]  }
 0x44f   :  { %7036 = vmatprep.subr.bf16.mxu1 %v10237_v59  ;;  %v10318_v59 = vld [vmem:[%s15633_s5 + $0xc0c] ss:$16 sps:$4 sm:$0xff]  }
 0x450   :  { %7309 = vmatmul.mubr.bf16.vlgmr.msra.gmra.mrb[104].mxu0 %v4109_v57  ;;  %v10301_v57 = vld [vmem:[%s15633_s5 + $0xbc0] ss:$16 sps:$4 sm:$0xff]  }
 0x451   :  { %7318 = vmatpush1.bf16.msra.mxu0 %v10220_v54  ;;  %v4037_v54 = vrot.slane %v14587_v52, 4 }
 0x452   :  { %7319 = vmatprep.subr.bf16.mxu0 %v10228_v51  ;;  %7037 = vmatpush1.bf16.msra.mxu1 %v10235_v7  ;;  %v9686_v51 = vpop.permute.xlu1 %9685  ;;  %v4026_v7 = vrot.slane %v14599_v16, 4 }
 0x453   :  { %7038 = vmatprep.subr.bf16.mxu1 %v10243_v46 }
 0x455   :  { %7320 = vmatpush1.bf16.msra.mxu0 %v10226_v58  ;;  %v4044_v58 = vsel %vm985_vm15, %v4037_v54, 0.0  ;;  %v10370_v54 = vld [vmem:[%s15633_s5 + $0xd28] ss:$16 sps:$4 sm:$0xff]  }
 0x456   :  { %7321 = vmatprep.subr.bf16.mxu0 %v10234_v3  ;;  %7039 = vmatpush1.bf16.msra.mxu1 %v10241_v45  ;;  %v9688_v3 = vunpack.i.h.bf16 %v9686_v51  ;;  %v9687_v45 = vunpack.i.l.bf16 %v9686_v51  ;;  %v10375_v51 = vld [vmem:[%s15633_s5 + $0xd44] ss:$16 sps:$4 sm:$0xff]  }
 0x457   :  { %7040 = vmatprep.subr.bf16.mxu1 %v10249_v48 }
 0x458   :  { %v2071_v16 = vsel %vm985_vm15, %v14248_v55, %v9688_v3  ;;  %v10381_v3 = vld [vmem:[%s15633_s5 + $0xd64] ss:$16 sps:$4 sm:$0xff]  }
 0x459   :  { %7322 = vmatpush1.bf16.msra.mxu0 %v10232_v43 }
 0x45a   :  { %7323 = vmatprep.subr.bf16.mxu0 %v10240_v61  ;;  %7041 = vmatpush1.bf16.msra.mxu1 %v10247_v44  ;;  %v2067_v61 = vrot.slane %v14253_v14, 4  ;;  %v2056_v44 = vrot.slane %v14262_v35, 4 }
 0x45b   :  { %7042 = vmatprep.subr.bf16.mxu1 %v10255_v20 }
 0x45d   :  { %7324 = vmatpush1.bf16.msra.mxu0 %v10238_v62 }
 0x45e   :  { %7325 = vmatprep.subr.bf16.mxu0 %v10246_v8  ;;  %7043 = vmatpush1.bf16.msra.mxu1 %v10253_v41  ;;  %v4072_v8 = vrot.slane %v4044_v58, 7  ;;  %v10376_v58 = vld [vmem:[%s15633_s5 + $0xd48] ss:$16 sps:$4 sm:$0xff]  }
 0x45f   :  { %7044 = vmatprep.subr.bf16.mxu1 %v10261_v9 }
 0x461   :  { %7326 = vmatpush1.bf16.msra.mxu0 %v10244_v34  ;;  %v2072_v34 = vsel %vm985_vm15, %v2056_v44, %v9687_v45  ;;  %v10384_v45 = vld [vmem:[%s15633_s5 + $0xd6c] ss:$16 sps:$4 sm:$0xff]  }
 0x462   :  { %7327 = vmatprep.subr.bf16.mxu0 %v10252_v39  ;;  %7045 = vmatpush1.bf16.msra.mxu1 %v10259_v27  ;;  %v10390_v44 = vld [vmem:[%s15633_s5 + $0xd8c] ss:$16 sps:$4 sm:$0xff]  }
 0x463   :  { %7046 = vmatprep.subr.bf16.mxu1 %v10267_v28  ;;  %v2074_v28 = vsel %vm985_vm15, %v2067_v61, 0.0  ;;  %v10387_v61 = vld [vmem:[%s15633_s5 + $0xd84] ss:$16 sps:$4 sm:$0xff]  }
 0x464   :  { %v4100_v55 = vsel %vm1785_vm4, %v2074_v28, %v4072_v8  ;;  %v10393_v8 = vld [vmem:[%s15633_s5 + $0xda4] ss:$16 sps:$4 sm:$0xff]  }
 0x465   :  { %7328 = vmatpush1.bf16.msra.mxu0 %v10250_v18  ;;  %v10316_v18 = vld [vmem:[%s15633_s5 + $0xc08] ss:$16 sps:$4 sm:$0xff]  }
 0x466   :  { %7329 = vmatprep.subr.bf16.mxu0 %v10258_v31  ;;  %7047 = vmatpush1.bf16.msra.mxu1 %v10265_v30  ;;  %v10321_v30 = vld [vmem:[%s15633_s5 + $0xc24] ss:$16 sps:$4 sm:$0xff]  }
 0x467   :  { %7048 = vmatprep.subr.bf16.mxu1 %v10273_v4  ;;  %v10324_v4 = vld [vmem:[%s15633_s5 + $0xc2c] ss:$16 sps:$4 sm:$0xff]  }
 0x469   :  { %7330 = vmatpush1.bf16.msra.mxu0 %v10256_v32  ;;  %v4114_v32 = vpack.c.bf16 %v4100_v55, %v4100_v55 }
 0x46a   :  { %7331 = vmatprep.subr.bf16.mxu0 %v10264_v12  ;;  %7049 = vmatpush1.bf16.msra.mxu1 %v10271_v26  ;;  %v10319_v12 = vld [vmem:[%s15633_s5 + $0xc20] ss:$16 sps:$4 sm:$0xff]   ;;  %v10322_v26 = vld [vmem:[%s15633_s5 + $0xc28] ss:$16 sps:$4 sm:$0xff]  }
 0x46b   :  { %7050 = vmatprep.subr.bf16.mxu1 %v10279_v42  ;;  %v10327_v42 = vld [vmem:[%s15633_s5 + $0xc44] ss:$16 sps:$4 sm:$0xff]  }
 0x46d   :  { %7332 = vmatpush1.bf16.msra.mxu0 %v10262_v33  ;;  %v10330_v33 = vld [vmem:[%s15633_s5 + $0xc4c] ss:$16 sps:$4 sm:$0xff]  }
 0x46e   :  { %7333 = vmatprep.subr.bf16.mxu0 %v10270_v63  ;;  %7051 = vmatpush1.bf16.msra.mxu1 %v10277_v6  ;;  %v10325_v63 = vld [vmem:[%s15633_s5 + $0xc40] ss:$16 sps:$4 sm:$0xff]   ;;  %v10328_v6 = vld [vmem:[%s15633_s5 + $0xc48] ss:$16 sps:$4 sm:$0xff]  }
 0x46f   :  { %7052 = vmatprep.subr.bf16.mxu1 %v10285_v38  ;;  %v10333_v38 = vld [vmem:[%s15633_s5 + $0xc64] ss:$16 sps:$4 sm:$0xff]  }
 0x471   :  { %7334 = vmatpush1.bf16.msra.mxu0 %v10268_v23  ;;  %v10336_v23 = vld [vmem:[%s15633_s5 + $0xc6c] ss:$16 sps:$4 sm:$0xff]  }
 0x472   :  { %7335 = vmatprep.subr.bf16.mxu0 %v10276_v19  ;;  %7053 = vmatpush1.bf16.msra.mxu1 %v10283_v36  ;;  %v10331_v19 = vld [vmem:[%s15633_s5 + $0xc60] ss:$16 sps:$4 sm:$0xff]   ;;  %v10334_v36 = vld [vmem:[%s15633_s5 + $0xc68] ss:$16 sps:$4 sm:$0xff]  }
 0x473   :  { %7054 = vmatprep.subr.bf16.mxu1 %v10291_v47  ;;  %v10339_v47 = vld [vmem:[%s15633_s5 + $0xc84] ss:$16 sps:$4 sm:$0xff]  }
 0x475   :  { %7336 = vmatpush1.bf16.msra.mxu0 %v10274_v56  ;;  %v10342_v56 = vld [vmem:[%s15633_s5 + $0xc8c] ss:$16 sps:$4 sm:$0xff]  }
 0x476   :  { %7337 = vmatprep.subr.bf16.mxu0 %v10282_v10  ;;  %7055 = vmatpush1.bf16.msra.mxu1 %v10289_v25  ;;  %v10337_v10 = vld [vmem:[%s15633_s5 + $0xc80] ss:$16 sps:$4 sm:$0xff]   ;;  %v10340_v25 = vld [vmem:[%s15633_s5 + $0xc88] ss:$16 sps:$4 sm:$0xff]  }
 0x477   :  { %7056 = vmatprep.subr.bf16.mxu1 %v10297_v21  ;;  %v10345_v21 = vld [vmem:[%s15633_s5 + $0xca4] ss:$16 sps:$4 sm:$0xff]  }
 0x479   :  { %7338 = vmatpush1.bf16.msra.mxu0 %v10280_v15  ;;  %v10348_v15 = vld [vmem:[%s15633_s5 + $0xcac] ss:$16 sps:$4 sm:$0xff]  }
 0x47a   :  { %7339 = vmatprep.subr.bf16.mxu0 %v10288_v50  ;;  %7057 = vmatpush1.bf16.msra.mxu1 %v10295_v0  ;;  %v10343_v50 = vld [vmem:[%s15633_s5 + $0xca0] ss:$16 sps:$4 sm:$0xff]   ;;  %v10346_v0 = vld [vmem:[%s15633_s5 + $0xca8] ss:$16 sps:$4 sm:$0xff]  }
 0x47b   :  { %7058 = vmatprep.subr.bf16.mxu1 %v10303_v2  ;;  %v10351_v2 = vld [vmem:[%s15633_s5 + $0xcc4] ss:$16 sps:$4 sm:$0xff]  }
 0x47d   :  { %7340 = vmatpush1.bf16.msra.mxu0 %v10286_v37  ;;  %v10354_v37 = vld [vmem:[%s15633_s5 + $0xccc] ss:$16 sps:$4 sm:$0xff]  }
 0x47e   :  { %7341 = vmatprep.subr.bf16.mxu0 %v10294_v53  ;;  %7059 = vmatpush1.bf16.msra.mxu1 %v10301_v57  ;;  %v10349_v53 = vld [vmem:[%s15633_s5 + $0xcc0] ss:$16 sps:$4 sm:$0xff]   ;;  %v10352_v57 = vld [vmem:[%s15633_s5 + $0xcc8] ss:$16 sps:$4 sm:$0xff]  }
 0x47f   :  { %7060 = vmatprep.subr.bf16.mxu1 %v10309_v11  ;;  %v10357_v11 = vld [vmem:[%s15633_s5 + $0xce4] ss:$16 sps:$4 sm:$0xff]  }
 0x481   :  { %7342 = vmatpush1.bf16.msra.mxu0 %v10292_v24  ;;  %v10360_v24 = vld [vmem:[%s15633_s5 + $0xcec] ss:$16 sps:$4 sm:$0xff]  }
 0x482   :  { %7343 = vmatprep.subr.bf16.mxu0 %v10300_v60  ;;  %7061 = vmatpush1.bf16.msra.mxu1 %v10307_v40  ;;  %v10355_v60 = vld [vmem:[%s15633_s5 + $0xce0] ss:$16 sps:$4 sm:$0xff]   ;;  %v10358_v40 = vld [vmem:[%s15633_s5 + $0xce8] ss:$16 sps:$4 sm:$0xff]  }
 0x483   :  { %7071 = vmatprep.subr.bf16.mxu1 %v10315_v29  ;;  %v10363_v29 = vld [vmem:[%s15633_s5 + $0xd04] ss:$16 sps:$4 sm:$0xff]  }
 0x485   :  { %7344 = vmatpush1.bf16.msra.mxu0 %v10298_v22  ;;  %v10366_v22 = vld [vmem:[%s15633_s5 + $0xd0c] ss:$16 sps:$4 sm:$0xff]  }
 0x486   :  { %7345 = vmatprep.subr.bf16.mxu0 %v10306_v1  ;;  %v10361_v1 = vld [vmem:[%s15633_s5 + $0xd00] ss:$16 sps:$4 sm:$0xff]  }
 0x489   :  { %7346 = vmatpush1.bf16.msra.mxu0 %v10304_v5  ;;  %v10364_v5 = vld [vmem:[%s15633_s5 + $0xd08] ss:$16 sps:$4 sm:$0xff]  }
 0x48a   :  { %7347 = vmatprep.subr.bf16.mxu0 %v10312_v49  ;;  %v10369_v49 = vld [vmem:[%s15633_s5 + $0xd24] ss:$16 sps:$4 sm:$0xff]  }
 0x48d   :  { %7348 = vmatpush1.bf16.msra.mxu0 %v10310_v17  ;;  %v10372_v17 = vld [vmem:[%s15633_s5 + $0xd2c] ss:$16 sps:$4 sm:$0xff]  }
 0x48e   :  { %7358 = vmatprep.subr.bf16.mxu0 %v10318_v59  ;;  %v10367_v59 = vld [vmem:[%s15633_s5 + $0xd20] ss:$16 sps:$4 sm:$0xff]  }
 0x4a7   :  { %v9681_v46 = vpop.permute.xlu0 %9680 }
 0x4a8   :  { %v9683_v48 = vunpack.i.h.bf16 %v9681_v46  ;;  %v9682_v43 = vunpack.i.l.bf16 %v9681_v46  ;;  %v10373_v46 = vld [vmem:[%s15633_s5 + $0xd40] ss:$16 sps:$4 sm:$0xff]  }
 0x4aa   :  { %v4041_v20 = vsel %vm985_vm15, %v14582_v13, %v9683_v48  ;;  %v4042_v62 = vsel %vm985_vm15, %v4026_v7, %v9682_v43  ;;  %v10313_v13 = vld [vmem:[%s15633_s5 + $0xc00] ss:$16 sps:$4 sm:$0xff]   ;;  %v10378_v7 = vld [vmem:[%s15633_s5 + $0xd4c] ss:$16 sps:$4 sm:$0xff]   ;;  %v10382_v43 = vld [vmem:[%s15633_s5 + $0xd68] ss:$16 sps:$4 sm:$0xff]  }
 0x4ab   :  { %v4069_v41 = vrot.slane %v4041_v20, 7  ;;  %v4070_v9 = vrot.slane %v4042_v62, 7  ;;  %v10379_v48 = vld [vmem:[%s15633_s5 + $0xd60] ss:$16 sps:$4 sm:$0xff]   ;;  %v10388_v62 = vld [vmem:[%s15633_s5 + $0xd88] ss:$16 sps:$4 sm:$0xff]  }
 0x4ac   :  { %v10385_v20 = vld [vmem:[%s15633_s5 + $0xd80] ss:$16 sps:$4 sm:$0xff]  }
 0x4ad   :  { %v4098_v39 = vsel %vm1785_vm4, %v2072_v34, %v4070_v9  ;;  %v4097_v27 = vsel %vm1785_vm4, %v2071_v16, %v4069_v41  ;;  %v10396_v41 = vld [vmem:[%s15633_s5 + $0xdac] ss:$16 sps:$4 sm:$0xff]   ;;  %v4035_v9 = vpop.permute.xlu0 %4034  ;;  %v10391_v16 = vld [vmem:[%s15633_s5 + $0xda0] ss:$16 sps:$4 sm:$0xff]   ;;  %v10394_v34 = vld [vmem:[%s15633_s5 + $0xda8] ss:$16 sps:$4 sm:$0xff]  }
 0x4ae   :  { %v4112_v35 = vpack.c.bf16 %v4098_v39, %v4098_v39  ;;  %v4111_v31 = vpack.c.bf16 %v4097_v27, %v4097_v27  ;;  %v10399_v39 = vld [vmem:[%s15633_s5 + $0xdc4] ss:$16 sps:$4 sm:$0xff]   ;;  %v10402_v27 = vld [vmem:[%s15633_s5 + $0xdcc] ss:$16 sps:$4 sm:$0xff]   ;;  %v4043_v28 = vsel %vm985_vm15, %v14587_v52, %v4035_v9  ;;  %v10478_v9 = vld [vmem:[%s15635_s7 + $0x168] ss:$16 sps:$4 sm:$0xff]  }
 0x4af   :  { %v10408_v52 = vld [vmem:[%s15633_s5 + $0xdec] ss:$16 sps:$4 sm:$0xff]   ;;  %v4071_v55 = vrot.slane %v4043_v28, 7  ;;  %v10489_v28 = vld [vmem:[%s15635_s7 + $0x1a4] ss:$16 sps:$4 sm:$0xff]  }
 0x4b0   :  { %7062 = vmatprep.mubr.bf16.mxu1 %v4112_v35  ;;  %7349 = vmatprep.mubr.bf16.mxu0 %v4112_v35  ;;  %v10397_v35 = vld [vmem:[%s15633_s5 + $0xdc0] ss:$16 sps:$4 sm:$0xff]  }
 0x4b1   :  { %7063 = vmatmul.mubr.bf16.vlgmr.msra.gmra.mrb[72].mxu1 %v4111_v31  ;;  %7350 = vmatmul.mubr.bf16.vlgmr.msra.gmra.mrb[104].mxu0 %v4111_v31  ;;  %v2065_v31 = vpop.permute.xlu1 %2064 }
 0x4b2   :  { %7072 = vmatpush1.bf16.msra.mxu1 %v10313_v13  ;;  %7359 = vmatpush1.bf16.msra.mxu0 %v10316_v18  ;;  %v10400_v13 = vld [vmem:[%s15633_s5 + $0xdc8] ss:$16 sps:$4 sm:$0xff]   ;;  %v10405_v18 = vld [vmem:[%s15633_s5 + $0xde4] ss:$16 sps:$4 sm:$0xff]  }
 0x4b3   :  { %7103 = vmatprep.mubr.bf16.mxu1 %v4114_v32  ;;  %7390 = vmatprep.mubr.bf16.mxu0 %v4114_v32  ;;  %v2073_v32 = vsel %vm985_vm15, %v14253_v14, %v2065_v31  ;;  %v10412_v14 = vld [vmem:[%s15635_s7 + $0x8] ss:$16 sps:$4 sm:$0xff]   ;;  %v10495_v31 = vld [vmem:[%s15635_s7 + $0x1c4] ss:$16 sps:$4 sm:$0xff]  }
 0x4b4   :  { %7073 = vmatprep.subr.bf16.mxu1 %v10321_v30  ;;  %7360 = vmatprep.subr.bf16.mxu0 %v10324_v4  ;;  %v10403_v30 = vld [vmem:[%s15633_s5 + $0xde0] ss:$16 sps:$4 sm:$0xff]   ;;  %v10406_v4 = vld [vmem:[%s15633_s5 + $0xde8] ss:$16 sps:$4 sm:$0xff]  }
 0x4b6   :  { %7074 = vmatpush1.bf16.msra.mxu1 %v10319_v12  ;;  %7361 = vmatpush1.bf16.msra.mxu0 %v10322_v26  ;;  %v10411_v12 = vld [vmem:[%s15635_s7 + $0x4] ss:$16 sps:$4 sm:$0xff]   ;;  %v10414_v26 = vld [vmem:[%s15635_s7 + $0xc] ss:$16 sps:$4 sm:$0xff]  }
 0x4b7   :  { %7075 = vmatprep.subr.bf16.mxu1 %v10327_v42  ;;  %7362 = vmatprep.subr.bf16.mxu0 %v10330_v33  ;;  %v4099_v42 = vsel %vm1785_vm4, %v2073_v32, %v4071_v55  ;;  %v10409_v33 = vld [vmem:[%s15635_s7] ss:$16 sps:$4 sm:$0xff]   ;;  %v10496_v55 = vld [vmem:[%s15635_s7 + $0x1c8] ss:$16 sps:$4 sm:$0xff]  }
 0x4b8   :  { %v10499_v32 = vld [vmem:[%s15635_s7 + $0x1e0] ss:$16 sps:$4 sm:$0xff]  }
 0x4ba   :  { %7076 = vmatpush1.bf16.msra.mxu1 %v10325_v63  ;;  %7363 = vmatpush1.bf16.msra.mxu0 %v10328_v6  ;;  %v4113_v63 = vpack.c.bf16 %v4099_v42, %v4099_v42  ;;  %v10417_v6 = vld [vmem:[%s15635_s7 + $0x24] ss:$16 sps:$4 sm:$0xff]  }
 0x4bb   :  { %7077 = vmatprep.subr.bf16.mxu1 %v10333_v38  ;;  %7364 = vmatprep.subr.bf16.mxu0 %v10336_v23  ;;  %v10420_v38 = vld [vmem:[%s15635_s7 + $0x2c] ss:$16 sps:$4 sm:$0xff]   ;;  %v10415_v23 = vld [vmem:[%s15635_s7 + $0x20] ss:$16 sps:$4 sm:$0xff]   ;;  %v10507_v42 = vld [vmem:[%s15635_s7 + $0x204] ss:$16 sps:$4 sm:$0xff]  }
 0x4be   :  { %7078 = vmatpush1.bf16.msra.mxu1 %v10331_v19  ;;  %7365 = vmatpush1.bf16.msra.mxu0 %v10334_v36  ;;  %v10418_v19 = vld [vmem:[%s15635_s7 + $0x28] ss:$16 sps:$4 sm:$0xff]   ;;  %v10423_v36 = vld [vmem:[%s15635_s7 + $0x44] ss:$16 sps:$4 sm:$0xff]  }
 0x4bf   :  { %7079 = vmatprep.subr.bf16.mxu1 %v10339_v47  ;;  %7366 = vmatprep.subr.bf16.mxu0 %v10342_v56  ;;  %v10426_v47 = vld [vmem:[%s15635_s7 + $0x4c] ss:$16 sps:$4 sm:$0xff]   ;;  %v10421_v56 = vld [vmem:[%s15635_s7 + $0x40] ss:$16 sps:$4 sm:$0xff]  }
 0x4c2   :  { %7080 = vmatpush1.bf16.msra.mxu1 %v10337_v10  ;;  %7367 = vmatpush1.bf16.msra.mxu0 %v10340_v25  ;;  %v10424_v10 = vld [vmem:[%s15635_s7 + $0x48] ss:$16 sps:$4 sm:$0xff]   ;;  %v10429_v25 = vld [vmem:[%s15635_s7 + $0x64] ss:$16 sps:$4 sm:$0xff]  }
 0x4c3   :  { %7081 = vmatprep.subr.bf16.mxu1 %v10345_v21  ;;  %7368 = vmatprep.subr.bf16.mxu0 %v10348_v15  ;;  %v10432_v21 = vld [vmem:[%s15635_s7 + $0x6c] ss:$16 sps:$4 sm:$0xff]   ;;  %v10427_v15 = vld [vmem:[%s15635_s7 + $0x60] ss:$16 sps:$4 sm:$0xff]  }
 0x4c6   :  { %7082 = vmatpush1.bf16.msra.mxu1 %v10343_v50  ;;  %7369 = vmatpush1.bf16.msra.mxu0 %v10346_v0  ;;  %v10430_v50 = vld [vmem:[%s15635_s7 + $0x68] ss:$16 sps:$4 sm:$0xff]   ;;  %v10435_v0 = vld [vmem:[%s15635_s7 + $0x84] ss:$16 sps:$4 sm:$0xff]  }
 0x4c7   :  { %7083 = vmatprep.subr.bf16.mxu1 %v10351_v2  ;;  %7370 = vmatprep.subr.bf16.mxu0 %v10354_v37  ;;  %v10438_v2 = vld [vmem:[%s15635_s7 + $0x8c] ss:$16 sps:$4 sm:$0xff]   ;;  %v10433_v37 = vld [vmem:[%s15635_s7 + $0x80] ss:$16 sps:$4 sm:$0xff]  }
 0x4ca   :  { %7084 = vmatpush1.bf16.msra.mxu1 %v10349_v53  ;;  %7371 = vmatpush1.bf16.msra.mxu0 %v10352_v57  ;;  %v10436_v53 = vld [vmem:[%s15635_s7 + $0x88] ss:$16 sps:$4 sm:$0xff]   ;;  %v10441_v57 = vld [vmem:[%s15635_s7 + $0xa4] ss:$16 sps:$4 sm:$0xff]  }
 0x4cb   :  { %7085 = vmatprep.subr.bf16.mxu1 %v10357_v11  ;;  %7372 = vmatprep.subr.bf16.mxu0 %v10360_v24  ;;  %v10444_v11 = vld [vmem:[%s15635_s7 + $0xac] ss:$16 sps:$4 sm:$0xff]   ;;  %v10439_v24 = vld [vmem:[%s15635_s7 + $0xa0] ss:$16 sps:$4 sm:$0xff]  }
 0x4ce   :  { %7086 = vmatpush1.bf16.msra.mxu1 %v10355_v60  ;;  %7373 = vmatpush1.bf16.msra.mxu0 %v10358_v40  ;;  %v10442_v60 = vld [vmem:[%s15635_s7 + $0xa8] ss:$16 sps:$4 sm:$0xff]   ;;  %v10447_v40 = vld [vmem:[%s15635_s7 + $0xc4] ss:$16 sps:$4 sm:$0xff]  }
 0x4cf   :  { %7087 = vmatprep.subr.bf16.mxu1 %v10363_v29  ;;  %7374 = vmatprep.subr.bf16.mxu0 %v10366_v22  ;;  %v10450_v29 = vld [vmem:[%s15635_s7 + $0xcc] ss:$16 sps:$4 sm:$0xff]   ;;  %v10445_v22 = vld [vmem:[%s15635_s7 + $0xc0] ss:$16 sps:$4 sm:$0xff]  }
 0x4d2   :  { %7088 = vmatpush1.bf16.msra.mxu1 %v10361_v1  ;;  %7375 = vmatpush1.bf16.msra.mxu0 %v10364_v5  ;;  %v10448_v1 = vld [vmem:[%s15635_s7 + $0xc8] ss:$16 sps:$4 sm:$0xff]   ;;  %v10453_v5 = vld [vmem:[%s15635_s7 + $0xe4] ss:$16 sps:$4 sm:$0xff]  }
 0x4d3   :  { %7089 = vmatprep.subr.bf16.mxu1 %v10369_v49  ;;  %7376 = vmatprep.subr.bf16.mxu0 %v10372_v17  ;;  %v10456_v49 = vld [vmem:[%s15635_s7 + $0xec] ss:$16 sps:$4 sm:$0xff]   ;;  %v10451_v17 = vld [vmem:[%s15635_s7 + $0xe0] ss:$16 sps:$4 sm:$0xff]  }
 0x4d6   :  { %7090 = vmatpush1.bf16.msra.mxu1 %v10367_v59  ;;  %7377 = vmatpush1.bf16.msra.mxu0 %v10370_v54  ;;  %v10454_v59 = vld [vmem:[%s15635_s7 + $0xe8] ss:$16 sps:$4 sm:$0xff]   ;;  %v10459_v54 = vld [vmem:[%s15635_s7 + $0x104] ss:$16 sps:$4 sm:$0xff]  }
 0x4d7   :  { %7091 = vmatprep.subr.bf16.mxu1 %v10375_v51  ;;  %7378 = vmatprep.subr.bf16.mxu0 %v10378_v7  ;;  %v10462_v51 = vld [vmem:[%s15635_s7 + $0x10c] ss:$16 sps:$4 sm:$0xff]   ;;  %v10457_v7 = vld [vmem:[%s15635_s7 + $0x100] ss:$16 sps:$4 sm:$0xff]  }
 0x4da   :  { %7092 = vmatpush1.bf16.msra.mxu1 %v10373_v46  ;;  %7379 = vmatpush1.bf16.msra.mxu0 %v10376_v58  ;;  %v10460_v46 = vld [vmem:[%s15635_s7 + $0x108] ss:$16 sps:$4 sm:$0xff]   ;;  %v10465_v58 = vld [vmem:[%s15635_s7 + $0x124] ss:$16 sps:$4 sm:$0xff]  }
 0x4db   :  { %7093 = vmatprep.subr.bf16.mxu1 %v10381_v3  ;;  %7380 = vmatprep.subr.bf16.mxu0 %v10384_v45  ;;  %v10468_v3 = vld [vmem:[%s15635_s7 + $0x12c] ss:$16 sps:$4 sm:$0xff]   ;;  %v10463_v45 = vld [vmem:[%s15635_s7 + $0x120] ss:$16 sps:$4 sm:$0xff]  }
 0x4de   :  { %7094 = vmatpush1.bf16.msra.mxu1 %v10379_v48  ;;  %7381 = vmatpush1.bf16.msra.mxu0 %v10382_v43  ;;  %v10466_v48 = vld [vmem:[%s15635_s7 + $0x128] ss:$16 sps:$4 sm:$0xff]   ;;  %v10471_v43 = vld [vmem:[%s15635_s7 + $0x144] ss:$16 sps:$4 sm:$0xff]  }
 0x4df   :  { %7095 = vmatprep.subr.bf16.mxu1 %v10387_v61  ;;  %7382 = vmatprep.subr.bf16.mxu0 %v10390_v44  ;;  %v10474_v61 = vld [vmem:[%s15635_s7 + $0x14c] ss:$16 sps:$4 sm:$0xff]   ;;  %v10469_v44 = vld [vmem:[%s15635_s7 + $0x140] ss:$16 sps:$4 sm:$0xff]  }
 0x4e2   :  { %7096 = vmatpush1.bf16.msra.mxu1 %v10385_v20  ;;  %7383 = vmatpush1.bf16.msra.mxu0 %v10388_v62  ;;  %v10472_v20 = vld [vmem:[%s15635_s7 + $0x148] ss:$16 sps:$4 sm:$0xff]   ;;  %v10477_v62 = vld [vmem:[%s15635_s7 + $0x164] ss:$16 sps:$4 sm:$0xff]  }
 0x4e3   :  { %7097 = vmatprep.subr.bf16.mxu1 %v10393_v8  ;;  %7384 = vmatprep.subr.bf16.mxu0 %v10396_v41  ;;  %v10480_v8 = vld [vmem:[%s15635_s7 + $0x16c] ss:$16 sps:$4 sm:$0xff]   ;;  %v10475_v41 = vld [vmem:[%s15635_s7 + $0x160] ss:$16 sps:$4 sm:$0xff]  }
 0x4e6   :  { %7098 = vmatpush1.bf16.msra.mxu1 %v10391_v16  ;;  %7385 = vmatpush1.bf16.msra.mxu0 %v10394_v34  ;;  %v10483_v16 = vld [vmem:[%s15635_s7 + $0x184] ss:$16 sps:$4 sm:$0xff]   ;;  %v10486_v34 = vld [vmem:[%s15635_s7 + $0x18c] ss:$16 sps:$4 sm:$0xff]  }
 0x4e7   :  { %7099 = vmatprep.subr.bf16.mxu1 %v10399_v39  ;;  %7386 = vmatprep.subr.bf16.mxu0 %v10402_v27  ;;  %v10481_v39 = vld [vmem:[%s15635_s7 + $0x180] ss:$16 sps:$4 sm:$0xff]   ;;  %v10484_v27 = vld [vmem:[%s15635_s7 + $0x188] ss:$16 sps:$4 sm:$0xff]  }
 0x4ea   :  { %7100 = vmatpush1.bf16.msra.mxu1 %v10397_v35  ;;  %7387 = vmatpush1.bf16.msra.mxu0 %v10400_v13  ;;  %v10492_v35 = vld [vmem:[%s15635_s7 + $0x1ac] ss:$16 sps:$4 sm:$0xff]   ;;  %v10487_v13 = vld [vmem:[%s15635_s7 + $0x1a0] ss:$16 sps:$4 sm:$0xff]  }
 0x4eb   :  { %7101 = vmatprep.subr.bf16.mxu1 %v10405_v18  ;;  %7388 = vmatprep.subr.bf16.mxu0 %v10408_v52  ;;  %v10490_v18 = vld [vmem:[%s15635_s7 + $0x1a8] ss:$16 sps:$4 sm:$0xff]   ;;  %v10493_v52 = vld [vmem:[%s15635_s7 + $0x1c0] ss:$16 sps:$4 sm:$0xff]  }
 0x4ee   :  { %7102 = vmatpush1.bf16.msra.mxu1 %v10403_v30  ;;  %7389 = vmatpush1.bf16.msra.mxu0 %v10406_v4  ;;  %v10498_v30 = vld [vmem:[%s15635_s7 + $0x1cc] ss:$16 sps:$4 sm:$0xff]   ;;  %v10501_v4 = vld [vmem:[%s15635_s7 + $0x1e4] ss:$16 sps:$4 sm:$0xff]  }
 0x4ef   :  { %8197 = vmatprep.subr.bf16.mxu1 %v10411_v12  ;;  %8279 = vmatprep.subr.bf16.mxu0 %v10414_v26  ;;  %v10504_v12 = vld [vmem:[%s15635_s7 + $0x1ec] ss:$16 sps:$4 sm:$0xff]   ;;  %v10502_v26 = vld [vmem:[%s15635_s7 + $0x1e8] ss:$16 sps:$4 sm:$0xff]  }
 0x4f1   :  { %7104 = vmatmul.mubr.bf16.vlgmr.msra.gmra.mrb[72].mxu1 %v4113_v63  ;;  %7391 = vmatmul.mubr.bf16.vlgmr.msra.gmra.mrb[104].mxu0 %v4113_v63 }
 0x4f2   :  { %8198 = vmatpush1.bf16.msra.mxu1 %v10409_v33  ;;  %8280 = vmatpush1.bf16.msra.mxu0 %v10412_v14  ;;  %v10510_v33 = vld [vmem:[%s15635_s7 + $0x20c] ss:$16 sps:$4 sm:$0xff]   ;;  %v4565_v14 = vlaneseq }
 0x4f3   :  { %8199 = vmatprep.subr.bf16.mxu1 %v10417_v6  ;;  %8281 = vmatprep.subr.bf16.mxu0 %v10420_v38  ;;  %v15287_v38 = vld [vmem:[%s15634_s6] sm:$0xf] }
 0x4f4   :  { %v15281_v63 = vshrl.u32 %v4565_v14, 7  ;;  %v10567_v14 = vld [vmem:[%s15635_s7 + $0x344] ss:$16 sps:$4 sm:$0xff]  }
 0x4f6   :  { %8200 = vmatpush1.bf16.msra.mxu1 %v10415_v23  ;;  %8282 = vmatpush1.bf16.msra.mxu0 %v10418_v19  ;;  %v4567_v6 = vsub.s32 0, %v15281_v63  ;;  %v4571_v23 = vsub.s32 1, %v15281_v63  ;;  %v4579_v19 = vsub.s32 3, %v15281_v63 }
 0x4f7   :  { %8201 = vmatprep.subr.bf16.mxu1 %v10423_v36  ;;  %8283 = vmatprep.subr.bf16.mxu0 %v10426_v47 }
 0x4f8   :  { %v4568_v36 = vrot.slane %v15287_v38, %v4567_v6  ;;  %v4572_v47 = vrot.slane %v15287_v38, %v4571_v23 }
 0x4fa   :  { %8202 = vmatpush1.bf16.msra.mxu1 %v10421_v56  ;;  %8284 = vmatpush1.bf16.msra.mxu0 %v10424_v10  ;;  %v4580_v56 = vrot.slane %v15287_v38, %v4579_v19 }
 0x4fb   :  { %8203 = vmatprep.subr.bf16.mxu1 %v10429_v25  ;;  %8285 = vmatprep.subr.bf16.mxu0 %v10432_v21 }
 0x4fe   :  { %8204 = vmatpush1.bf16.msra.mxu1 %v10427_v15  ;;  %8286 = vmatpush1.bf16.msra.mxu0 %v10430_v50 }
 0x4ff   :  { %8205 = vmatprep.subr.bf16.mxu1 %v10435_v0  ;;  %8287 = vmatprep.subr.bf16.mxu0 %v10438_v2 }
 0x502   :  { %8206 = vmatpush1.bf16.msra.mxu1 %v10433_v37  ;;  %8288 = vmatpush1.bf16.msra.mxu0 %v10436_v53 }
 0x503   :  { %8207 = vmatprep.subr.bf16.mxu1 %v10441_v57  ;;  %8289 = vmatprep.subr.bf16.mxu0 %v10444_v11 }
 0x506   :  { %8208 = vmatpush1.bf16.msra.mxu1 %v10439_v24  ;;  %8290 = vmatpush1.bf16.msra.mxu0 %v10442_v60 }
 0x507   :  { %8209 = vmatprep.subr.bf16.mxu1 %v10447_v40  ;;  %8291 = vmatprep.subr.bf16.mxu0 %v10450_v29 }
 0x50a   :  { %8210 = vmatpush1.bf16.msra.mxu1 %v10445_v22  ;;  %8292 = vmatpush1.bf16.msra.mxu0 %v10448_v1  ;;  %v10505_v22 = vld [vmem:[%s15635_s7 + $0x200] ss:$16 sps:$4 sm:$0xff]   ;;  %v10508_v1 = vld [vmem:[%s15635_s7 + $0x208] ss:$16 sps:$4 sm:$0xff]  }
 0x50b   :  { %8211 = vmatprep.subr.bf16.mxu1 %v10453_v5  ;;  %8293 = vmatprep.subr.bf16.mxu0 %v10456_v49  ;;  %v10513_v49 = vld [vmem:[%s15635_s7 + $0x224] ss:$16 sps:$4 sm:$0xff]  }
 0x50e   :  { %8212 = vmatpush1.bf16.msra.mxu1 %v10451_v17  ;;  %8294 = vmatpush1.bf16.msra.mxu0 %v10454_v59  ;;  %v10516_v17 = vld [vmem:[%s15635_s7 + $0x22c] ss:$16 sps:$4 sm:$0xff]  }
 0x50f   :  { %8213 = vmatprep.subr.bf16.mxu1 %v10459_v54  ;;  %8295 = vmatprep.subr.bf16.mxu0 %v10462_v51  ;;  %v10511_v54 = vld [vmem:[%s15635_s7 + $0x220] ss:$16 sps:$4 sm:$0xff]   ;;  %v10514_v51 = vld [vmem:[%s15635_s7 + $0x228] ss:$16 sps:$4 sm:$0xff]  }
 0x512   :  { %8214 = vmatpush1.bf16.msra.mxu1 %v10457_v7  ;;  %8296 = vmatpush1.bf16.msra.mxu0 %v10460_v46  ;;  %v10519_v7 = vld [vmem:[%s15635_s7 + $0x244] ss:$16 sps:$4 sm:$0xff]   ;;  %v10522_v46 = vld [vmem:[%s15635_s7 + $0x24c] ss:$16 sps:$4 sm:$0xff]  }
 0x513   :  { %8215 = vmatprep.subr.bf16.mxu1 %v10465_v58  ;;  %8297 = vmatprep.subr.bf16.mxu0 %v10468_v3  ;;  %v10517_v58 = vld [vmem:[%s15635_s7 + $0x240] ss:$16 sps:$4 sm:$0xff]   ;;  %v10520_v3 = vld [vmem:[%s15635_s7 + $0x248] ss:$16 sps:$4 sm:$0xff]  }
 0x516   :  { %8216 = vmatpush1.bf16.msra.mxu1 %v10463_v45  ;;  %8298 = vmatpush1.bf16.msra.mxu0 %v10466_v48  ;;  %v10525_v45 = vld [vmem:[%s15635_s7 + $0x264] ss:$16 sps:$4 sm:$0xff]   ;;  %v10528_v48 = vld [vmem:[%s15635_s7 + $0x26c] ss:$16 sps:$4 sm:$0xff]  }
 0x517   :  { %8217 = vmatprep.subr.bf16.mxu1 %v10471_v43  ;;  %8299 = vmatprep.subr.bf16.mxu0 %v10474_v61  ;;  %v10523_v43 = vld [vmem:[%s15635_s7 + $0x260] ss:$16 sps:$4 sm:$0xff]   ;;  %v10526_v61 = vld [vmem:[%s15635_s7 + $0x268] ss:$16 sps:$4 sm:$0xff]  }
 0x51a   :  { %8218 = vmatpush1.bf16.msra.mxu1 %v10469_v44  ;;  %8300 = vmatpush1.bf16.msra.mxu0 %v10472_v20  ;;  %v10531_v44 = vld [vmem:[%s15635_s7 + $0x284] ss:$16 sps:$4 sm:$0xff]   ;;  %v10534_v20 = vld [vmem:[%s15635_s7 + $0x28c] ss:$16 sps:$4 sm:$0xff]  }
 0x51b   :  { %8219 = vmatprep.subr.bf16.mxu1 %v10477_v62  ;;  %8301 = vmatprep.subr.bf16.mxu0 %v10480_v8  ;;  %v10529_v62 = vld [vmem:[%s15635_s7 + $0x280] ss:$16 sps:$4 sm:$0xff]   ;;  %v10532_v8 = vld [vmem:[%s15635_s7 + $0x288] ss:$16 sps:$4 sm:$0xff]  }
 0x51e   :  { %8220 = vmatpush1.bf16.msra.mxu1 %v10475_v41  ;;  %8302 = vmatpush1.bf16.msra.mxu0 %v10478_v9  ;;  %v10537_v41 = vld [vmem:[%s15635_s7 + $0x2a4] ss:$16 sps:$4 sm:$0xff]   ;;  %v10540_v9 = vld [vmem:[%s15635_s7 + $0x2ac] ss:$16 sps:$4 sm:$0xff]  }
 0x51f   :  { %8221 = vmatprep.subr.bf16.mxu1 %v10483_v16  ;;  %8303 = vmatprep.subr.bf16.mxu0 %v10486_v34  ;;  %v10535_v16 = vld [vmem:[%s15635_s7 + $0x2a0] ss:$16 sps:$4 sm:$0xff]   ;;  %v10538_v34 = vld [vmem:[%s15635_s7 + $0x2a8] ss:$16 sps:$4 sm:$0xff]  }
 0x522   :  { %8222 = vmatpush1.bf16.msra.mxu1 %v10481_v39  ;;  %8304 = vmatpush1.bf16.msra.mxu0 %v10484_v27  ;;  %v10543_v39 = vld [vmem:[%s15635_s7 + $0x2c4] ss:$16 sps:$4 sm:$0xff]   ;;  %v10546_v27 = vld [vmem:[%s15635_s7 + $0x2cc] ss:$16 sps:$4 sm:$0xff]  }
 0x523   :  { %8223 = vmatprep.subr.bf16.mxu1 %v10489_v28  ;;  %8305 = vmatprep.subr.bf16.mxu0 %v10492_v35  ;;  %v10541_v28 = vld [vmem:[%s15635_s7 + $0x2c0] ss:$16 sps:$4 sm:$0xff]   ;;  %v10544_v35 = vld [vmem:[%s15635_s7 + $0x2c8] ss:$16 sps:$4 sm:$0xff]  }
 0x526   :  { %8224 = vmatpush1.bf16.msra.mxu1 %v10487_v13  ;;  %8306 = vmatpush1.bf16.msra.mxu0 %v10490_v18  ;;  %v10549_v13 = vld [vmem:[%s15635_s7 + $0x2e4] ss:$16 sps:$4 sm:$0xff]   ;;  %v10552_v18 = vld [vmem:[%s15635_s7 + $0x2ec] ss:$16 sps:$4 sm:$0xff]  }
 0x527   :  { %8225 = vmatprep.subr.bf16.mxu1 %v10495_v31  ;;  %8307 = vmatprep.subr.bf16.mxu0 %v10498_v30  ;;  %v10550_v31 = vld [vmem:[%s15635_s7 + $0x2e8] ss:$16 sps:$4 sm:$0xff]   ;;  %v10558_v30 = vld [vmem:[%s15635_s7 + $0x30c] ss:$16 sps:$4 sm:$0xff]  }
 0x52a   :  { %8226 = vmatpush1.bf16.msra.mxu1 %v10493_v52  ;;  %8308 = vmatpush1.bf16.msra.mxu0 %v10496_v55  ;;  %v10547_v52 = vld [vmem:[%s15635_s7 + $0x2e0] ss:$16 sps:$4 sm:$0xff]   ;;  %v10555_v55 = vld [vmem:[%s15635_s7 + $0x304] ss:$16 sps:$4 sm:$0xff]  }
 0x52b   :  { %8227 = vmatprep.subr.bf16.mxu1 %v10501_v4  ;;  %8309 = vmatprep.subr.bf16.mxu0 %v10504_v12  ;;  %v10553_v4 = vld [vmem:[%s15635_s7 + $0x300] ss:$16 sps:$4 sm:$0xff]   ;;  %v10561_v12 = vld [vmem:[%s15635_s7 + $0x324] ss:$16 sps:$4 sm:$0xff]  }
 0x52e   :  { %8228 = vmatpush1.bf16.msra.mxu1 %v10499_v32  ;;  %8310 = vmatpush1.bf16.msra.mxu0 %v10502_v26  ;;  %v10556_v32 = vld [vmem:[%s15635_s7 + $0x308] ss:$16 sps:$4 sm:$0xff]   ;;  %v10564_v26 = vld [vmem:[%s15635_s7 + $0x32c] ss:$16 sps:$4 sm:$0xff]  }
 0x52f   :  { %8238 = vmatprep.subr.bf16.mxu1 %v10507_v42  ;;  %8320 = vmatprep.subr.bf16.mxu0 %v10510_v33  ;;  %v10559_v42 = vld [vmem:[%s15635_s7 + $0x320] ss:$16 sps:$4 sm:$0xff]   ;;  %v10562_v33 = vld [vmem:[%s15635_s7 + $0x328] ss:$16 sps:$4 sm:$0xff]  }
 0x5c4   :  { %v7105_v10 = vpop.f32.mrb[72].mxu1  ;;  %v15300_v25 = vpop.f32.mrb[104].mxu0 }
 0x5c5   :  { %v9555_v21 = vadd.f32 %v7105_v10, %v4568_v36  ;;  %v7107_v15 = vpop.f32.mrb[73].mxu1  ;;  %v7394_v50 = vpop.f32.mrb[105].mxu0  ;;  %v10570_v36 = vld [vmem:[%s15635_s7 + $0x34c] ss:$16 sps:$4 sm:$0xff]   ;;  %v10573_v10 = vld [vmem:[%s15635_s7 + $0x364] ss:$16 sps:$4 sm:$0xff]  }
 0x5c6   :  { %v9556_v0 = vadd.f32 %v7107_v15, %v4572_v47  ;;  %v9558_v2 = vadd.f32 %v7394_v50, %v4580_v56  ;;  %v7109_v37 = vpop.f32.mrb[74].mxu1  ;;  %v7396_v53 = vpop.f32.mrb[106].mxu0  ;;  %v10565_v47 = vld [vmem:[%s15635_s7 + $0x340] ss:$16 sps:$4 sm:$0xff]   ;;  %v10568_v56 = vld [vmem:[%s15635_s7 + $0x348] ss:$16 sps:$4 sm:$0xff]  }
 0x5c7   :  { %v7399_v57 = vmax.f32 %v9555_v21, 0.0  ;;  %v7110_v11 = vpop.f32.mrb[75].mxu1  ;;  %v7397_v24 = vpop.f32.mrb[107].mxu0  ;;  %v10576_v21 = vld [vmem:[%s15635_s7 + $0x36c] ss:$16 sps:$4 sm:$0xff]  }
 0x5c8   :  { %v7400_v60 = vmax.f32 %v9556_v0, 0.0  ;;  %v7402_v40 = vmax.f32 %v9558_v2, 0.0  ;;  %v10571_v15 = vld [vmem:[%s15635_s7 + $0x360] ss:$16 sps:$4 sm:$0xff]   ;;  %v10574_v50 = vld [vmem:[%s15635_s7 + $0x368] ss:$16 sps:$4 sm:$0xff]  }
 0x5c9   :  { %v7403_v5 = vpack.c.bf16 %v7399_v57, %v7399_v57  ;;  %v10579_v0 = vld [vmem:[%s15635_s7 + $0x384] ss:$16 sps:$4 sm:$0xff]   ;;  %v10582_v2 = vld [vmem:[%s15635_s7 + $0x38c] ss:$16 sps:$4 sm:$0xff]   ;;  %v10577_v37 = vld [vmem:[%s15635_s7 + $0x380] ss:$16 sps:$4 sm:$0xff]  }
 0x5ca   :  { %v7404_v29 = vpack.c.bf16 %v7400_v60, %v7400_v60  ;;  %v7406_v59 = vpack.c.bf16 %v7402_v40, %v7402_v40  ;;  %v10580_v53 = vld [vmem:[%s15635_s7 + $0x388] ss:$16 sps:$4 sm:$0xff]   ;;  %v4575_v57 = vsub.s32 2, %v15281_v63  ;;  %v10585_v11 = vld [vmem:[%s15635_s7 + $0x3a4] ss:$16 sps:$4 sm:$0xff]  }
 0x5cb   :  { %v10588_v24 = vld [vmem:[%s15635_s7 + $0x3ac] ss:$16 sps:$4 sm:$0xff]   ;;  %v10583_v60 = vld [vmem:[%s15635_s7 + $0x3a0] ss:$16 sps:$4 sm:$0xff]   ;;  %v10586_v40 = vld [vmem:[%s15635_s7 + $0x3a8] ss:$16 sps:$4 sm:$0xff]  }
 0x5cc   :  { %8229 = vmatprep.mubr.bf16.mxu1 %v7404_v29  ;;  %8311 = vmatprep.mubr.bf16.mxu0 %v7404_v29  ;;  %v4576_v29 = vrot.slane %v15287_v38, %v4575_v57  ;;  %v10592_v38 = vld [vmem:[%s15635_s7 + $0x3c8] ss:$16 sps:$4 sm:$0xff]  }
 0x5cd   :  { %8230 = vmatmul.mubr.bf16.vlgmr.msra.gmra.mrb[76].mxu1 %v7403_v5  ;;  %8312 = vmatmul.mubr.bf16.vlgmr.msra.gmra.mrb[108].mxu0 %v7403_v5  ;;  %v10589_v5 = vld [vmem:[%s15635_s7 + $0x3c0] ss:$16 sps:$4 sm:$0xff]  }
 0x5ce   :  { %8239 = vmatpush1.bf16.msra.mxu1 %v10505_v22  ;;  %8321 = vmatpush1.bf16.msra.mxu0 %v10508_v1  ;;  %v10591_v22 = vld [vmem:[%s15635_s7 + $0x3c4] ss:$16 sps:$4 sm:$0xff]   ;;  %v10594_v1 = vld [vmem:[%s15635_s7 + $0x3cc] ss:$16 sps:$4 sm:$0xff]  }
 0x5cf   :  { %8270 = vmatprep.mubr.bf16.mxu1 %v7406_v59  ;;  %8352 = vmatprep.mubr.bf16.mxu0 %v7406_v59  ;;  %v10600_v59 = vld [vmem:[%s15635_s7 + $0x3ec] ss:$16 sps:$4 sm:$0xff]  }
 0x5d0   :  { %8240 = vmatprep.subr.bf16.mxu1 %v10513_v49  ;;  %8322 = vmatprep.subr.bf16.mxu0 %v10516_v17  ;;  %v9557_v49 = vadd.f32 %v15300_v25, %v4576_v29  ;;  %v10597_v17 = vld [vmem:[%s15635_s7 + $0x3e4] ss:$16 sps:$4 sm:$0xff]   ;;  %v10598_v25 = vld [vmem:[%s15635_s7 + $0x3e8] ss:$16 sps:$4 sm:$0xff]  }
 0x5d2   :  { %8241 = vmatpush1.bf16.msra.mxu1 %v10511_v54  ;;  %8323 = vmatpush1.bf16.msra.mxu0 %v10514_v51  ;;  %v10595_v54 = vld [vmem:[%s15635_s7 + $0x3e0] ss:$16 sps:$4 sm:$0xff]   ;;  %v7401_v51 = vmax.f32 %v9557_v49, 0.0 }
 0x5d3   :  { %8242 = vmatprep.subr.bf16.mxu1 %v10519_v7  ;;  %8324 = vmatprep.subr.bf16.mxu0 %v10522_v46  ;;  %v10601_v7 = vld [vmem:[%s15637_s9 + $0x40] sm:$0xff]  }
 0x5d4   :  { %v10602_v46 = vld [vmem:[%s15637_s9] sm:$0xff]  }
 0x5d5   :  { %v10625_v49 = vld [vmem:[%s15637_s9 + $0xe0] sm:$0xff]  }
 0x5d6   :  { %8243 = vmatpush1.bf16.msra.mxu1 %v10517_v58  ;;  %8325 = vmatpush1.bf16.msra.mxu0 %v10520_v3  ;;  %v7405_v58 = vpack.c.bf16 %v7401_v51, %v7401_v51  ;;  %v10603_v3 = vld [vmem:[%s15637_s9 + $0x48] sm:$0xff]   ;;  %v10630_v51 = vld [vmem:[%s15637_s9 + $0xb0] sm:$0xff]  }
 0x5d7   :  { %8244 = vmatprep.subr.bf16.mxu1 %v10525_v45  ;;  %8326 = vmatprep.subr.bf16.mxu0 %v10528_v48  ;;  %v10604_v45 = vld [vmem:[%s15637_s9 + $0x8] sm:$0xff]   ;;  %v10605_v48 = vld [vmem:[%s15637_s9 + $0x50] sm:$0xff]  }
 0x5da   :  { %8245 = vmatpush1.bf16.msra.mxu1 %v10523_v43  ;;  %8327 = vmatpush1.bf16.msra.mxu0 %v10526_v61  ;;  %v10606_v43 = vld [vmem:[%s15637_s9 + $0x10] sm:$0xff]   ;;  %v10607_v61 = vld [vmem:[%s15637_s9 + $0x58] sm:$0xff]  }
 0x5db   :  { %8246 = vmatprep.subr.bf16.mxu1 %v10531_v44  ;;  %8328 = vmatprep.subr.bf16.mxu0 %v10534_v20  ;;  %v10608_v44 = vld [vmem:[%s15637_s9 + $0x18] sm:$0xff]   ;;  %v10609_v20 = vld [vmem:[%s15637_s9 + $0x60] sm:$0xff]  }
 0x5de   :  { %8247 = vmatpush1.bf16.msra.mxu1 %v10529_v62  ;;  %8329 = vmatpush1.bf16.msra.mxu0 %v10532_v8  ;;  %v10610_v62 = vld [vmem:[%s15637_s9 + $0x20] sm:$0xff]   ;;  %v10611_v8 = vld [vmem:[%s15637_s9 + $0x68] sm:$0xff]  }
 0x5df   :  { %8248 = vmatprep.subr.bf16.mxu1 %v10537_v41  ;;  %8330 = vmatprep.subr.bf16.mxu0 %v10540_v9  ;;  %v10612_v41 = vld [vmem:[%s15637_s9 + $0x28] sm:$0xff]   ;;  %v10613_v9 = vld [vmem:[%s15637_s9 + $0x70] sm:$0xff]  }
 0x5e2   :  { %8249 = vmatpush1.bf16.msra.mxu1 %v10535_v16  ;;  %8331 = vmatpush1.bf16.msra.mxu0 %v10538_v34  ;;  %v10614_v16 = vld [vmem:[%s15637_s9 + $0x30] sm:$0xff]   ;;  %v10615_v34 = vld [vmem:[%s15637_s9 + $0x78] sm:$0xff]  }
 0x5e3   :  { %8250 = vmatprep.subr.bf16.mxu1 %v10543_v39  ;;  %8332 = vmatprep.subr.bf16.mxu0 %v10546_v27  ;;  %v10616_v39 = vld [vmem:[%s15637_s9 + $0x38] sm:$0xff]   ;;  %v10617_v27 = vld [vmem:[%s15637_s9 + $0xc0] sm:$0xff]  }
 0x5e6   :  { %8251 = vmatpush1.bf16.msra.mxu1 %v10541_v28  ;;  %8333 = vmatpush1.bf16.msra.mxu0 %v10544_v35  ;;  %v7535_v28 = vld [vmem:[%s15636_s8] sm:$0xf]  ;;  %v10708_v35 = vmov 1983009808  }
 0x5e7   :  { %8252 = vmatprep.subr.bf16.mxu1 %v10549_v13  ;;  %8334 = vmatprep.subr.bf16.mxu0 %v10552_v18  ;;  %v8372_v13 = vunpack.c.l.s4 %v10708_v35  ;;  %v7540_v18 = vrot.slane %v7535_v28, %v4567_v6 }
 0x5ea   :  { %8253 = vmatpush1.bf16.msra.mxu1 %v10547_v52  ;;  %8335 = vmatpush1.bf16.msra.mxu0 %v10550_v31  ;;  %v7548_v52 = vrot.slane %v7535_v28, %v4575_v57  ;;  %v7544_v31 = vrot.slane %v7535_v28, %v4571_v23 }
 0x5eb   :  { %8254 = vmatprep.subr.bf16.mxu1 %v10555_v55  ;;  %8336 = vmatprep.subr.bf16.mxu0 %v10558_v30  ;;  %v7552_v55 = vrot.slane %v7535_v28, %v4579_v19 }
 0x5ee   :  { %8255 = vmatpush1.bf16.msra.mxu1 %v10553_v4  ;;  %8337 = vmatpush1.bf16.msra.mxu0 %v10556_v32  ;;  %v8373_v32 = vunpack.c.0.s8 %v8372_v13 }
 0x5ef   :  { %8256 = vmatprep.subr.bf16.mxu1 %v10561_v12  ;;  %8338 = vmatprep.subr.bf16.mxu0 %v10564_v26 }
 0x5f2   :  { %8257 = vmatpush1.bf16.msra.mxu1 %v10559_v42  ;;  %8339 = vmatpush1.bf16.msra.mxu0 %v10562_v33 }
 0x5f3   :  { %8258 = vmatprep.subr.bf16.mxu1 %v10567_v14  ;;  %8340 = vmatprep.subr.bf16.mxu0 %v10570_v36 }
 0x5f6   :  { %8259 = vmatpush1.bf16.msra.mxu1 %v10565_v47  ;;  %8341 = vmatpush1.bf16.msra.mxu0 %v10568_v56 }
 0x5f7   :  { %8260 = vmatprep.subr.bf16.mxu1 %v10573_v10  ;;  %8342 = vmatprep.subr.bf16.mxu0 %v10576_v21 }
 0x5fa   :  { %8261 = vmatpush1.bf16.msra.mxu1 %v10571_v15  ;;  %8343 = vmatpush1.bf16.msra.mxu0 %v10574_v50 }
 0x5fb   :  { %8262 = vmatprep.subr.bf16.mxu1 %v10579_v0  ;;  %8344 = vmatprep.subr.bf16.mxu0 %v10582_v2  ;;  %v8376_v0 = vsub.s32 %v8373_v32, %v15281_v63  ;;  %v10620_v63 = vld [vmem:[%s15637_s9 + $0x88] sm:$0xff]  }
 0x5fe   :  { %8263 = vmatpush1.bf16.msra.mxu1 %v10577_v37  ;;  %8345 = vmatpush1.bf16.msra.mxu0 %v10580_v53  ;;  %v10618_v53 = vld [vmem:[%s15637_s9 + $0x80] sm:$0xff]  }
 0x5ff   :  { %8264 = vmatprep.subr.bf16.mxu1 %v10585_v11  ;;  %8346 = vmatprep.subr.bf16.mxu0 %v10588_v24  ;;  %v10619_v11 = vld [vmem:[%s15637_s9 + $0xc8] sm:$0xff]  }
 0x602   :  { %8265 = vmatpush1.bf16.msra.mxu1 %v10583_v60  ;;  %8347 = vmatpush1.bf16.msra.mxu0 %v10586_v40 }
 0x603   :  { %8266 = vmatprep.subr.bf16.mxu1 %v10591_v22  ;;  %8348 = vmatprep.subr.bf16.mxu0 %v10594_v1  ;;  %v10621_v22 = vld [vmem:[%s15637_s9 + $0xd0] sm:$0xff]  }
 0x604   :  { %v10622_v1 = vld [vmem:[%s15637_s9 + $0x90] sm:$0xff]  }
 0x606   :  { %8267 = vmatpush1.bf16.msra.mxu1 %v10589_v5  ;;  %8349 = vmatpush1.bf16.msra.mxu0 %v10592_v38  ;;  %v10623_v5 = vld [vmem:[%s15637_s9 + $0xd8] sm:$0xff]  }
 0x607   :  { %8268 = vmatprep.subr.bf16.mxu1 %v10597_v17  ;;  %8350 = vmatprep.subr.bf16.mxu0 %v10600_v59  ;;  %v10624_v38 = vld [vmem:[%s15637_s9 + $0x98] sm:$0xff]   ;;  %v10626_v17 = vld [vmem:[%s15637_s9 + $0xa0] sm:$0xff]   ;;  %v10627_v59 = vld [vmem:[%s15637_s9 + $0xe8] sm:$0xff]  }
 0x60a   :  { %8269 = vmatpush1.bf16.msra.mxu1 %v10595_v54  ;;  %8351 = vmatpush1.bf16.msra.mxu0 %v10598_v25  ;;  %v10628_v54 = vld [vmem:[%s15637_s9 + $0xa8] sm:$0xff]   ;;  %v10629_v25 = vld [vmem:[%s15637_s9 + $0xf0] sm:$0xff]  }
 0x60b   :  { %9475 = vmatprep.subr.bf16.mxu1 %v10601_v7  ;;  %v10631_v7 = vld [vmem:[%s15637_s9 + $0xf8] sm:$0xff]  }
 0x60d   :  { %8271 = vmatmul.mubr.bf16.vlgmr.msra.gmra.mrb[76].mxu1 %v7405_v58  ;;  %8353 = vmatmul.mubr.bf16.vlgmr.msra.gmra.mrb[108].mxu0 %v7405_v58 }
 0x60e   :  { %9476 = vmatpush3.bf16.msra.mxu1 %v10602_v46  ;;  %v10632_v46 = vld [vmem:[%s15637_s9 + $0xb8] sm:$0xff]  }
 0x60f   :  { %9477 = vmatprep.subr.bf16.mxu1 %v10603_v3 }
 0x612   :  { %9478 = vmatpush3.bf16.msra.mxu1 %v10604_v45 }
 0x613   :  { %9479 = vmatprep.subr.bf16.mxu1 %v10605_v48 }
 0x616   :  { %9480 = vmatpush3.bf16.msra.mxu1 %v10606_v43 }
 0x617   :  { %9481 = vmatprep.subr.bf16.mxu1 %v10607_v61 }
 0x61a   :  { %9482 = vmatpush3.bf16.msra.mxu1 %v10608_v44 }
 0x61b   :  { %9483 = vmatprep.subr.bf16.mxu1 %v10609_v20 }
 0x61e   :  { %9484 = vmatpush3.bf16.msra.mxu1 %v10610_v62 }
 0x61f   :  { %9485 = vmatprep.subr.bf16.mxu1 %v10611_v8 }
 0x622   :  { %9486 = vmatpush3.bf16.msra.mxu1 %v10612_v41 }
 0x623   :  { %9487 = vmatprep.subr.bf16.mxu1 %v10613_v9 }
 0x626   :  { %9488 = vmatpush3.bf16.msra.mxu1 %v10614_v16 }
 0x627   :  { %9489 = vmatprep.subr.bf16.mxu1 %v10615_v34 }
 0x62a   :  { %9490 = vmatpush3.bf16.msra.mxu1 %v10616_v39 }
 0x62b   :  { %9497 = vmatprep.subr.bf16.mxu1 %v10617_v27 }
 0x6e0   :  { %v8272_v30 = vpop.f32.mrb[76].mxu1  ;;  %v8354_v4 = vpop.f32.mrb[108].mxu0 }
 0x6e1   :  { %v9559_v12 = vadd.f32 %v8272_v30, %v7540_v18  ;;  %v9561_v26 = vadd.f32 %v8354_v4, %v7548_v52  ;;  %v8274_v42 = vpop.f32.mrb[77].mxu1  ;;  %v8356_v33 = vpop.f32.mrb[109].mxu0 }
 0x6e2   :  { %v9560_v14 = vadd.f32 %v8274_v42, %v7544_v31  ;;  %v9562_v36 = vadd.f32 %v8356_v33, %v7552_v55  ;;  %v8276_v47 = vpop.f32.mrb[78].mxu1  ;;  %v8358_v6 = vpop.f32.mrb[110].mxu0 }
 0x6e3   :  { %v8361_v56 = vmax.f32 %v9559_v12, 0.0  ;;  %v8363_v10 = vmax.f32 %v9561_v26, 0.0  ;;  %v8277_v21 = vpop.f32.mrb[79].mxu1  ;;  %v8359_v15 = vpop.f32.mrb[111].mxu0 }
 0x6e4   :  { %v8362_v50 = vmax.f32 %v9560_v14, 0.0  ;;  %v8364_v23 = vmax.f32 %v9562_v36, 0.0 }
 0x6e5   :  { %v8388_v57 = vpack.c.bf16 %v8361_v56, %v8361_v56  ;;  %v8390_v58 = vpack.c.bf16 %v8363_v10, %v8363_v10 }
 0x6e6   :  { %v8369_v19 = vcombine.low %v8361_v56, %v8362_v50  ;;  %v8389_v2 = vpack.c.bf16 %v8362_v50, %v8362_v50  ;;  %v8370_v37 = vcombine.low %v8363_v10, %v8364_v23  ;;  %v8391_v24 = vpack.c.bf16 %v8364_v23, %v8364_v23 }
 0x6e8   :  { %8687 = vmatprep.mubr.bf16.mxu1 %v8389_v2  ;;  %v8377_v60 = vrot.slane %v8369_v19, %v8376_v0  ;;  %v8384_v40 = vrot.slane %v8370_v37, %v8376_v0 }
 0x6e9   :  { %8688 = vmatmul.mubr.bf16.vlgmr.msra.gmra.mrb[80].mxu1 %v8388_v57 }
 0x6ea   :  { %9498 = vmatpush3.bf16.msra.mxu1 %v10618_v53  ;;  %8727 = vmatprep.mubr.bf16.mxu1 %v8391_v24  ;;  %v8385_v29 = vcombine.low %v8377_v60, %v8384_v40 }
 0x6eb   :  { %9499 = vmatprep.subr.bf16.mxu1 %v10619_v11 }
 0x6ec   :  { %8387 = vst [vmem:[#allocation3] sm:$0xff] %v8385_v29 }
 0x6ee   :  { %9500 = vmatpush3.bf16.msra.mxu1 %v10620_v63 }
 0x6ef   :  { %9501 = vmatprep.subr.bf16.mxu1 %v10621_v22 }
 0x6f2   :  { %9502 = vmatpush3.bf16.msra.mxu1 %v10622_v1 }
 0x6f3   :  { %9503 = vmatprep.subr.bf16.mxu1 %v10623_v5 }
 0x6f6   :  { %9504 = vmatpush3.bf16.msra.mxu1 %v10624_v38 }
 0x6f7   :  { %9505 = vmatprep.subr.bf16.mxu1 %v10625_v49 }
 0x6fa   :  { %9506 = vmatpush3.bf16.msra.mxu1 %v10626_v17 }
 0x6fb   :  { %9507 = vmatprep.subr.bf16.mxu1 %v10627_v59 }
 0x6fe   :  { %9508 = vmatpush3.bf16.msra.mxu1 %v10628_v54 }
 0x6ff   :  { %9509 = vmatprep.subr.bf16.mxu1 %v10629_v25 }
 0x702   :  { %9510 = vmatpush3.bf16.msra.mxu1 %v10630_v51 }
 0x703   :  { %9511 = vmatprep.subr.bf16.mxu1 %v10631_v7 }
 0x706   :  { %9512 = vmatpush3.bf16.msra.mxu1 %v10632_v46 }
 0x709   :  { %8728 = vmatmul.mubr.bf16.vlgmr.msra.gmra.mrb[84].mxu1 %v8390_v58 }
 0x70a   :  { %10666 = shalt.err (!%p10663_p4)
}
 0x70b   :  { %s10667_s21 = scalar_lea.hbm %s15639_s11, 128 }
 0x70c   :  { %p10668_p5 = scmp.ne.s32.totalorder %s15639_s11, %s10667_s21  ;;  %p10671_p6 = scmp.lt.u32.totalorder %s10667_s21, %s15639_s11 }
 0x70e   :  { %p10673_p7 = pnand %p10671_p6, %p10668_p5 }
 0x710   :  { %10676 = shalt.err (!%p10673_p7)
}
 0x711   :  { %8745 = dma.vmem_to_hbm [thread:$0]  %s8743_s0, 128, %s15639_s11, [#allocation4]   ;;  %v9424_v44 = vld [vmem:[%s15638_s10] ss:$0 sm:$0xff] }
 0x712   :  { %s10710_s18 = smov [#allocation5]  }
 0x713   :  { %s8752_s19 = sshll.u32 %s10710_s18, 4  ;;  %s8753_s19 = int_to_ptr.vmem [resolvable:$true] %s8752_s19 }
 0x714   :  { %s10677_s11 = scalar_lea.vmem %s8753_s19, 32  ;;  %p10682_p9 = scmp.lt.s32.totalorder %s8753_s19, %s8753_s19 }
 0x715   :  { %p10678_p8 = scmp.ne.s32.totalorder %s8753_s19, %s10677_s11  ;;  %p10683_p10 = scmp.lt.s32.totalorder %s10677_s11, %s10677_s11 }
 0x717   :  { %p10684_p11 = por %p10683_p10, %p10682_p9 }
 0x719   :  { %p10685_p12 = pnand %p10684_p11, %p10678_p8 }
 0x7bc   :  { %v9491_v3 = vpop.f32.mrb[80].mxu1 }
 0x7bd   :  { %v9492_v45 = vpop.f32.mrb[81].mxu1 }
 0x7be   :  { %v9493_v48 = vadd.f32 %v9492_v45, %v9491_v3  ;;  %v9494_v43 = vpop.f32.mrb[82].mxu1 }
 0x7bf   :  { %v9495_v61 = vpop.f32.mrb[83].mxu1 }
 0x7c0   :  { %v8690_v8 = vadd.f32 %v9493_v48, %v9424_v44 }
 0x7dc   :  { %v9513_v20 = vpop.f32.mrb[84].mxu1 }
 0x7dd   :  { %v9514_v62 = vpop.f32.mrb[85].mxu1 }
 0x7de   :  { %v9515_v41 = vadd.f32 %v9514_v62, %v9513_v20  ;;  %v9516_v9 = vpop.f32.mrb[86].mxu1 }
 0x7df   :  { %v9517_v16 = vpop.f32.mrb[87].mxu1 }
 0x7e0   :  { %v8730_v34 = vadd.f32 %v9515_v41, %v8690_v8 }
 0x7e2   :  { %8735 = vst [vmem:[#allocation5] sm:$0x3] %v8730_v34 }
 0x7e3   :  { %10688 = shalt.err (!%p10685_p12)
}
 0x7e4   :  { %s10689_s4 = scalar_lea.hbm %s15640_s12, 32 }
 0x7e5   :  { %p10690_p13 = scmp.ne.s32.totalorder %s15640_s12, %s10689_s4  ;;  %p10693_p0 = scmp.lt.u32.totalorder %s10689_s4, %s15640_s12 }
 0x7e7   :  { %p10695_p1 = pnand %p10693_p0, %p10690_p13 }
 0x7e9   :  { %10698 = shalt.err (!%p10695_p1)
}
 0x7ea   :  { %8755 = dma.vmem_to_hbm [thread:$0]  %s8753_s19, 32, %s15640_s12, [#allocation6]  }
 0x7eb   :  { %10699 = dma.done.wait [#allocation4], 128  }
 0x7ec   :  { %10700 = vsyncadd [#allocation4], 4294967168 }
 0x7ed   :  { %10701 = dma.done.wait [#allocation6], 32  }
 0x7ee   :  { %10702 = vsyncadd [#allocation6], 4294967264 }
 0x7ef   :  { %8762 = vsyncpa [#allocation4], 1 }
 0x7f0   :  { %8763 = vsyncpa [#allocation6], 1 }

</bundles_post_ra>
